<compile_context>
chip_gen: v7x
topology: tpu7x:2x2x1
jax: 0.10.0
libtpu: 0.0.40
codegen_flags: <defaults>
</compile_context>

<pallas_src>
import jax
import jax.numpy as jnp
from jax.experimental import pallas as pl
from jax.experimental.pallas import tpu as pltpu


# ----------------------------------------------------------------------------
# Plain-JAX glue: bilinear 2x upsample (PyTorch align_corners=False), NHWC.
# ----------------------------------------------------------------------------
def _bilerp_idx(out_size, in_size):
    i = jnp.arange(out_size, dtype=jnp.float32)
    src = jnp.maximum((i + 0.5) * (in_size / out_size) - 0.5, 0.0)
    i0 = jnp.minimum(jnp.floor(src).astype(jnp.int32), in_size - 1)
    i1 = jnp.minimum(i0 + 1, in_size - 1)
    w1 = src - i0.astype(jnp.float32)
    return i0, i1, 1.0 - w1, w1


def bilinear_upsample_2x_nhwc(x):
    N, H, W, C = x.shape
    h0, h1, wh0, wh1 = _bilerp_idx(2 * H, H)
    w0, w1, ww0, ww1 = _bilerp_idx(2 * W, W)
    xh = (x[:, h0, :, :] * wh0[None, :, None, None]
          + x[:, h1, :, :] * wh1[None, :, None, None])
    return (xh[:, :, w0, :] * ww0[None, None, :, None]
            + xh[:, :, w1, :] * ww1[None, None, :, None])


# ----------------------------------------------------------------------------
# Fused Pallas kernel: 1x1 conv -> (virtual concat) -> conv3x3+ReLU -> conv3x3+ReLU
# ----------------------------------------------------------------------------
def _make_fused_kernel(TR):
    RW = TR + 4          # input rows per strip (conv1 halo + conv2 halo)
    R1 = TR + 2          # conv1 rows computed per strip (conv2 halo)
    ALIGN = 8 if TR % 8 == 0 else (4 if TR % 4 == 0 else (2 if TR % 2 == 0 else 1))

    def mm(a, b):
        # Operands are pre-cast in the wrapper (f32 or bf16); accumulate in f32.
        return jnp.dot(a, b, preferred_element_type=jnp.float32)

    def kernel(skip_ref, up_ref, w1x1_ref, b1x1_ref, w1_ref, b1_ref,
               w2_ref, b2_ref, o_ref, mid_sc, h1_sc):
        W = up_ref.shape[2]
        C2 = up_ref.shape[3]
        Cmid = w1x1_ref.shape[1]
        Cout = w2_ref.shape[1]

        s = pl.program_id(1)
        r0 = s * TR                                   # first output row of this strip
        if ALIGN > 1:
            r0 = pl.multiple_of(r0, ALIGN)
        first = s == 0
        last = s == pl.num_programs(1) - 1

        def taps(x, rows):
            # x: (rows + 2, W + 2, C) spatially padded  ->  9 tiles of (rows * W, C)
            C = x.shape[-1]
            return [x[kh:kh + rows, kw:kw + W, :].reshape(rows * W, C)
                    for kh in range(3) for kw in range(3)]

        # ---- input windows (full padded images are VMEM resident) -------------
        skip_win = skip_ref[0, pl.ds(r0, RW), :, :]   # (RW, W+2, C1), zero-padded
        up_win = up_ref[0, pl.ds(r0, RW), :, :]       # (RW, W,   C2), rows zero-padded

        # ---- 1x1 conv on the upsampled path, written into padded scratch ------
        mid = mm(up_win.reshape(RW * W, C2), w1x1_ref[...]) + b1x1_ref[...]
        mid_sc[:, 0:1, :] = jnp.zeros((RW, 1, Cmid), mid_sc.dtype)
        mid_sc[:, W + 1:W + 2, :] = jnp.zeros((RW, 1, Cmid), mid_sc.dtype)
        mid_sc[:, 1:W + 1, :] = mid.reshape(RW, W, Cmid).astype(mid_sc.dtype)

        # Rows outside the image are conv1's zero padding, not conv1d(0)+bias.
        @pl.when(first)
        def _():
            mid_sc[0:2, :, :] = jnp.zeros((2, W + 2, Cmid), mid_sc.dtype)

        @pl.when(last)
        def _():
            mid_sc[RW - 2:RW, :, :] = jnp.zeros((2, W + 2, Cmid), mid_sc.dtype)

        mid_p = mid_sc[...]                           # (RW, W+2, Cmid)

        # ---- conv1 (3x3, SAME) + ReLU: single K-stacked im2col matmul ---------
        cols1 = jnp.concatenate(taps(skip_win, R1) + taps(mid_p, R1), axis=1)
        h1 = jnp.maximum(mm(cols1, w1_ref[...]) + b1_ref[...], 0.0)

        h1_sc[:, 0:1, :] = jnp.zeros((R1, 1, Cout), h1_sc.dtype)
        h1_sc[:, W + 1:W + 2, :] = jnp.zeros((R1, 1, Cout), h1_sc.dtype)
        h1_sc[:, 1:W + 1, :] = h1.reshape(R1, W, Cout).astype(h1_sc.dtype)

        # conv1 rows outside the image are conv2's zero padding.
        @pl.when(first)
        def _():
            h1_sc[0:1, :, :] = jnp.zeros((1, W + 2, Cout), h1_sc.dtype)

        @pl.when(last)
        def _():
            h1_sc[R1 - 1:R1, :, :] = jnp.zeros((1, W + 2, Cout), h1_sc.dtype)

        h1_p = h1_sc[...]                             # (R1, W+2, Cout)

        # ---- conv2 (3x3, SAME) + ReLU, lane-dense (Cout, TR*W) store -----------
        cols2 = jnp.concatenate(taps(h1_p, TR), axis=1)
        out_t = jnp.transpose(mm(cols2, w2_ref[...]))             # (Cout, TR*W)
        o_ref[0] = jnp.maximum(out_t + b2_ref[...], 0.0).astype(o_ref.dtype)

    return kernel


# ----------------------------------------------------------------------------
# Tiling / VMEM-limit helpers
# ----------------------------------------------------------------------------
def _choose_rows_per_strip(H, W, requested):
    # Valid strip heights: divisors of H whose output tile is lane-dense
    # (TR*W % 128 == 0) or the whole image.
    valid = [d for d in range(1, H + 1)
             if H % d == 0 and (d == H or (d * W) % 128 == 0)]
    if requested is not None:
        ok = [d for d in valid if d <= int(requested)]
        if not ok:
            raise ValueError(
                f"rows_per_strip={requested} has no valid strip size <= it for "
                f"H={H}, W={W}; smallest valid is {min(valid)}")
        return max(ok)
    # Auto: largest strip whose im2col M dim stays modest; whole image if tiny.
    capped = [d for d in valid if d * W <= 8192] or valid
    return max(capped)


def _estimate_vmem_bytes(H, W, C1, C2, Cmid, Cout, TR, act_bytes):
    RW, R1 = TR + 4, TR + 2
    img = ((H + 4) * (W + 2) * C1 + (H + 4) * W * C2) * act_bytes      # one buffer
    wgt = (C2 * Cmid + 9 * (C1 + Cmid) * Cout + 9 * Cout * Cout) * act_bytes \
        + (Cmid + 2 * Cout) * 4
    outb = Cout * TR * W * 4
    scr = (RW * (W + 2) * Cmid + R1 * (W + 2) * Cout) * act_bytes
    tmp = (R1 * W * 9 * (C1 + Cmid) + TR * W * 9 * Cout + RW * W * Cmid
           + R1 * W * Cout + 2 * TR * W * Cout) * 4
    # inputs / weights / outputs are double-buffered by the pipeline; 2x slack on temps.
    return 2 * img + 2 * wgt + 2 * outb + scr + 2 * tmp


def _vmem_limit_bytes(needed):
    try:
        info = pltpu.get_tpu_info()
        phys = int(getattr(info, "vmem_capacity_bytes", 0)) or (64 << 20)
    except Exception:
        phys = 64 << 20                      # conservative (v7x-sized) fallback
    cap = int(phys * 0.85)                   # ~56 MiB on v7x, ~108 MiB on v5e/v6e
    return int(min(cap, max(32 << 20, needed)))


# ----------------------------------------------------------------------------
# UnetUp forward (public API in NCHW, like PyTorch)
# ----------------------------------------------------------------------------
def unet_up_forward(inputs1, inputs2, params, *, rows_per_strip=None,
                    use_bf16_mxu=False):
    N, C1, H1, W1 = inputs1.shape
    _, C2, _, _ = inputs2.shape
    act_dt = jnp.bfloat16 if use_bf16_mxu else jnp.float32

    # F.interpolate(scale_factor=2, mode='bilinear') on the (small) NHWC inputs2.
    up = bilinear_upsample_2x_nhwc(jnp.transpose(inputs2, (0, 2, 3, 1)))
    H, W = up.shape[1], up.shape[2]

    # F.pad(inputs1, 2 * [offset // 2, offset // 2])
    offset = H - H1
    assert offset >= 0 and offset % 2 == 0, f"unsupported skip offset {offset}"
    p = offset // 2
    assert H1 + 2 * p == H and W1 + 2 * p == W, "skip/upsample spatial mismatch"

    Cmid = params["w1x1"].shape[1]
    Cout = params["w_c1"].shape[3]
    assert params["w1x1"].shape[0] == C2
    assert params["w_c1"].shape[2] == C1 + Cmid

    # Halo pads done once in the wrapper (XLA fuses them into the transpose / upsample
    # producers): +-2 rows both paths, +-1 cols on the skip path (its conv1 SAME pad).
    skip_p = jnp.pad(jnp.transpose(inputs1, (0, 2, 3, 1)),
                     ((0, 0), (p + 2, p + 2), (p + 1, p + 1), (0, 0))).astype(act_dt)
    up_p = jnp.pad(up, ((0, 0), (2, 2), (0, 0), (0, 0))).astype(act_dt)

    # One-time weight prep (pre-cast once; never per strip). conv1's skip / 1x1-path
    # halves are stacked along K so the channel concat never materializes and conv1 is
    # a single MXU pass.
    w1a = params["w_c1"][:, :, :C1, :].reshape(9 * C1, Cout)
    w1b = params["w_c1"][:, :, C1:, :].reshape(9 * Cmid, Cout)
    w1 = jnp.concatenate([w1a, w1b], axis=0).astype(act_dt)
    w1x1 = params["w1x1"].astype(act_dt)
    w2 = params["w_c2"].reshape(9 * Cout, Cout).astype(act_dt)
    b1x1 = params["b1x1"].reshape(1, Cmid).astype(jnp.float32)
    b1 = params["b_c1"].reshape(1, Cout).astype(jnp.float32)
    b2 = params["b_c2"].reshape(Cout, 1).astype(jnp.float32)   # lane-dense bias

    TR = _choose_rows_per_strip(H, W, rows_per_strip)
    S = H // TR
    RW, R1 = TR + 4, TR + 2

    act_bytes = 2 if use_bf16_mxu else 4
    vmem_limit = _vmem_limit_bytes(
        _estimate_vmem_bytes(H, W, C1, C2, Cmid, Cout, TR, act_bytes))

    kernel = _make_fused_kernel(TR)

    out_flat = pl.pallas_call(
        kernel,
        out_shape=jax.ShapeDtypeStruct((N, Cout, H * W), jnp.float32),
        grid=(N, S),
        in_specs=[
            pl.BlockSpec((1, H + 4, W + 2, C1), lambda n, s: (n, 0, 0, 0)),
            pl.BlockSpec((1, H + 4, W, C2), lambda n, s: (n, 0, 0, 0)),
            pl.BlockSpec((C2, Cmid), lambda n, s: (0, 0)),
            pl.BlockSpec((1, Cmid), lambda n, s: (0, 0)),
            pl.BlockSpec((9 * (C1 + Cmid), Cout), lambda n, s: (0, 0)),
            pl.BlockSpec((1, Cout), lambda n, s: (0, 0)),
            pl.BlockSpec((9 * Cout, Cout), lambda n, s: (0, 0)),
            pl.BlockSpec((Cout, 1), lambda n, s: (0, 0)),
        ],
        out_specs=pl.BlockSpec((1, Cout, TR * W), lambda n, s: (n, 0, s)),
        scratch_shapes=[
            pltpu.VMEM((RW, W + 2, Cmid), act_dt),   # zero-col-padded 1x1 output
            pltpu.VMEM((R1, W + 2, Cout), act_dt),   # zero-col-padded conv1 output
        ],
        compiler_params=pltpu.CompilerParams(
            dimension_semantics=("parallel", "parallel"),
            vmem_limit_bytes=vmem_limit,
        ),
    )(skip_p, up_p, w1x1, b1x1, w1, b1, w2, b2)

    # Kernel already emits NCHW (lane-dense Cout x H*W per strip): just reshape.
    return out_flat.reshape(N, Cout, H, W)


# ----------------------------------------------------------------------------
# Pure-JAX reference (f32 precision) for the self-check
# ----------------------------------------------------------------------------
def reference_forward(inputs1, inputs2, params):
    hp = jax.lax.Precision.HIGHEST
    up = jnp.transpose(
        bilinear_upsample_2x_nhwc(jnp.transpose(inputs2, (0, 2, 3, 1))),
        (0, 3, 1, 2))
    out2 = (jnp.einsum("nchw,cd->ndhw", up, params["w1x1"], precision=hp)
            + params["b1x1"][None, :, None, None])
    p = (out2.shape[2] - inputs1.shape[2]) // 2
    out1 = jnp.pad(inputs1, ((0, 0), (0, 0), (p, p), (p, p)))
    x = jnp.concatenate([out1, out2], axis=1)

    def conv3x3(x, w_hwio, b):
        w_oihw = jnp.transpose(w_hwio, (3, 2, 0, 1))
        y = jax.lax.conv_general_dilated(
            x, w_oihw, (1, 1), ((1, 1), (1, 1)),
            dimension_numbers=("NCHW", "OIHW", "NCHW"), precision=hp)
        return jax.nn.relu(y + b[None, :, None, None])

    y = conv3x3(x, params["w_c1"], params["b_c1"])
    return conv3x3(y, params["w_c2"], params["b_c2"])


# ----------------------------------------------------------------------------
if __name__ == "__main__":
    root = jax.random.PRNGKey(0)
    key_a, key_b = jax.random.split(root)
    in_size, out_size = 8, 4            # UnetUp(in_size=8, out_size=4)

    def make_case(key, N, H2, W2):
        k = jax.random.split(key, 8)
        # Skip connection has (in_size - out_size) channels so the concatenated tensor
        # has exactly in_size channels (as UnetConv2 expects).
        inputs1 = jax.random.normal(k[0], (N, in_size - out_size, 2 * H2, 2 * W2),
                                    jnp.float32)
        inputs2 = jax.random.normal(k[1], (N, in_size, H2, W2), jnp.float32)
        params = dict(
            # Conv1d(in_size, out_size, kernel_size=(1,1)): weight stored as (Cin, Cout)
            w1x1=jax.random.normal(k[2], (in_size, out_size), jnp.float32) * 0.1,
            b1x1=jax.random.normal(k[3], (out_size,), jnp.float32) * 0.1,
            # Conv2d(in_size, out_size, 3, 1, 1): weight stored HWIO (3,3,Cin,Cout)
            w_c1=jax.random.normal(k[4], (3, 3, in_size, out_size), jnp.float32) * 0.1,
            b_c1=jax.random.normal(k[5], (out_size,), jnp.float32) * 0.1,
            # Conv2d(out_size, out_size, 3, 1, 1)
            w_c2=jax.random.normal(k[6], (3, 3, out_size, out_size), jnp.float32) * 0.1,
            b_c2=jax.random.normal(k[7], (out_size,), jnp.float32) * 0.1,
        )
        return inputs1, inputs2, params

    # Case 1: small image, auto strip size (TR = H -> S = 1, lane-dense 256-wide store).
    i1, i2, prm = make_case(key_a, N=2, H2=8, W2=8)
    out = unet_up_forward(i1, i2, prm)
    jax.block_until_ready(out)
    ref = reference_forward(i1, i2, prm)
    assert out.shape == (2, out_size, 16, 16), out.shape
    d1 = float(jnp.max(jnp.abs(out - ref)))
    assert d1 < 1e-3, f"case1 mismatch vs reference: {d1}"

    # Case 2: multi-strip grid (S = 4) exercising first / interior / last strips.
    i1b, i2b, prmb = make_case(key_b, N=2, H2=16, W2=16)
    outb = unet_up_forward(i1b, i2b, prmb, rows_per_strip=8)
    jax.block_until_ready(outb)
    refb = reference_forward(i1b, i2b, prmb)
    assert outb.shape == (2, out_size, 32, 32), outb.shape
    d2 = float(jnp.max(jnp.abs(outb - refb)))
    assert d2 < 1e-3, f"case2 mismatch vs reference: {d2}"

    print("KERNEL_OK")
</pallas_src>

<mosaic_0001>
module attributes {stable_mosaic.version = 11 : i64} {
  func.func @kernel(%arg0: i32, %arg1: i32, %arg2: memref<1x20x18x4xf32, #tpu.memory_space<vmem>>, %arg3: memref<1x20x16x8xf32, #tpu.memory_space<vmem>>, %arg4: memref<8x4xf32, #tpu.memory_space<vmem>>, %arg5: memref<1x4xf32, #tpu.memory_space<vmem>>, %arg6: memref<72x4xf32, #tpu.memory_space<vmem>>, %arg7: memref<1x4xf32, #tpu.memory_space<vmem>>, %arg8: memref<36x4xf32, #tpu.memory_space<vmem>>, %arg9: memref<4x1xf32, #tpu.memory_space<vmem>>, %arg10: memref<1x4x256xf32, #tpu.memory_space<vmem>>, %arg11: memref<20x18x4xf32, #tpu.memory_space<vmem>>, %arg12: memref<18x18x4xf32, #tpu.memory_space<vmem>>) attributes {dimension_semantics = [#tpu.dimension_semantics<parallel>, #tpu.dimension_semantics<parallel>], iteration_bounds = array<i64: 2, 1>, scalar_prefetch = 0 : i64, scratch_operands = 2 : i64, tpu.core_type = #tpu.core_type<tc>, window_params = [{transform_indices = @transform_0, window_bounds = array<i64: 1, 20, 18, 4>}, {transform_indices = @transform_1, window_bounds = array<i64: 1, 20, 16, 8>}, {pipeline_mode = #tpu.pipeline_mode<synchronous>, transform_indices = @transform_2, window_bounds = array<i64: 8, 4>}, {pipeline_mode = #tpu.pipeline_mode<synchronous>, transform_indices = @transform_3, window_bounds = array<i64: 1, 4>}, {pipeline_mode = #tpu.pipeline_mode<synchronous>, transform_indices = @transform_4, window_bounds = array<i64: 72, 4>}, {pipeline_mode = #tpu.pipeline_mode<synchronous>, transform_indices = @transform_5, window_bounds = array<i64: 1, 4>}, {pipeline_mode = #tpu.pipeline_mode<synchronous>, transform_indices = @transform_6, window_bounds = array<i64: 36, 4>}, {pipeline_mode = #tpu.pipeline_mode<synchronous>, transform_indices = @transform_7, window_bounds = array<i64: 4, 1>}, {transform_indices = @transform_8, window_bounds = array<i64: 1, 4, 256>}]} {
    %c16_i32 = arith.constant 16 : i32
    %0 = arith.muli %arg1, %c16_i32 : i32
    %1 = tpu.assume_multiple %0, 8 : i32
    %c0_i32 = arith.constant 0 : i32
    %2 = arith.cmpi eq, %arg1, %c0_i32 : i32
    %c0_i32_0 = arith.constant 0 : i32
    %3 = arith.cmpi eq, %arg1, %c0_i32_0 : i32
    %c0 = arith.constant 0 : index
    %4 = arith.index_cast %1 : i32 to index
    %c0_1 = arith.constant 0 : index
    %c0_2 = arith.constant 0 : index
    %5 = vector.load %arg2[%c0, %4, %c0_1, %c0_2] : memref<1x20x18x4xf32, #tpu.memory_space<vmem>>, vector<1x20x18x4xf32>
    %6 = vector.shape_cast %5 : vector<1x20x18x4xf32> to vector<20x18x4xf32>
    %c0_3 = arith.constant 0 : index
    %7 = arith.index_cast %1 : i32 to index
    %c0_4 = arith.constant 0 : index
    %c0_5 = arith.constant 0 : index
    %8 = vector.load %arg3[%c0_3, %7, %c0_4, %c0_5] : memref<1x20x16x8xf32, #tpu.memory_space<vmem>>, vector<1x20x16x8xf32>
    %9 = vector.shape_cast %8 : vector<1x20x16x8xf32> to vector<20x16x8xf32>
    %10 = vector.shape_cast %9 : vector<20x16x8xf32> to vector<320x8xf32>
    %c0_6 = arith.constant 0 : index
    %c0_7 = arith.constant 0 : index
    %11 = vector.load %arg4[%c0_6, %c0_7] : memref<8x4xf32, #tpu.memory_space<vmem>>, vector<8x4xf32>
    %cst = arith.constant dense<0.000000e+00> : vector<320x4xf32>
    %12 = tpu.matmul %10, %11, %cst {dimension_numbers = #tpu.dot_dimension_numbers<[1], [0], [0], [1], [0, 0, 1, 1], [], []>} : vector<320x8xf32>, vector<8x4xf32>, vector<320x4xf32> -> vector<320x4xf32>
    %c0_8 = arith.constant 0 : index
    %c0_9 = arith.constant 0 : index
    %13 = vector.load %arg5[%c0_8, %c0_9] : memref<1x4xf32, #tpu.memory_space<vmem>>, vector<1x4xf32>
    %14 = vector.broadcast %13 : vector<1x4xf32> to vector<320x4xf32>
    %15 = arith.addf %12, %14 : vector<320x4xf32>
    %cst_10 = arith.constant 0.000000e+00 : f32
    %16 = vector.broadcast %cst_10 : f32 to vector<20x1x4xf32>
    %c0_11 = arith.constant 0 : index
    %c0_12 = arith.constant 0 : index
    %c0_13 = arith.constant 0 : index
    %17 = vector.load %arg11[%c0_11, %c0_12, %c0_13] : memref<20x18x4xf32, #tpu.memory_space<vmem>>, vector<20x1x4xf32>
    tpu.vector_store %arg11[%c0_11, %c0_12, %c0_13], %16 {strides = array<i32>} : memref<20x18x4xf32, #tpu.memory_space<vmem>>, vector<20x1x4xf32>,
    %cst_14 = arith.constant 0.000000e+00 : f32
    %18 = vector.broadcast %cst_14 : f32 to vector<20x1x4xf32>
    %c0_15 = arith.constant 0 : index
    %c17 = arith.constant 17 : index
    %c0_16 = arith.constant 0 : index
    %19 = vector.load %arg11[%c0_15, %c17, %c0_16] : memref<20x18x4xf32, #tpu.memory_space<vmem>>, vector<20x1x4xf32>
    tpu.vector_store %arg11[%c0_15, %c17, %c0_16], %18 {strides = array<i32>} : memref<20x18x4xf32, #tpu.memory_space<vmem>>, vector<20x1x4xf32>,
    %20 = vector.shape_cast %15 : vector<320x4xf32> to vector<20x16x4xf32>
    %c0_17 = arith.constant 0 : index
    %c1 = arith.constant 1 : index
    %c0_18 = arith.constant 0 : index
    %21 = vector.load %arg11[%c0_17, %c1, %c0_18] : memref<20x18x4xf32, #tpu.memory_space<vmem>>, vector<20x16x4xf32>
    tpu.vector_store %arg11[%c0_17, %c1, %c0_18], %20 {strides = array<i32>} : memref<20x18x4xf32, #tpu.memory_space<vmem>>, vector<20x16x4xf32>,
    %22 = arith.extui %2 : i1 to i32
    %c0_i32_19 = arith.constant 0 : i32
    %23 = arith.cmpi ne, %22, %c0_i32_19 : i32
    scf.if %23 {
      %cst_55 = arith.constant 0.000000e+00 : f32
      %114 = vector.broadcast %cst_55 : f32 to vector<2x18x4xf32>
      %c0_56 = arith.constant 0 : index
      %c0_57 = arith.constant 0 : index
      %c0_58 = arith.constant 0 : index
      %115 = vector.load %arg11[%c0_56, %c0_57, %c0_58] : memref<20x18x4xf32, #tpu.memory_space<vmem>>, vector<2x18x4xf32>
      tpu.vector_store %arg11[%c0_56, %c0_57, %c0_58], %114 {strides = array<i32>} : memref<20x18x4xf32, #tpu.memory_space<vmem>>, vector<2x18x4xf32>,
    } else {
    }
    %24 = arith.extui %3 : i1 to i32
    %c0_i32_20 = arith.constant 0 : i32
    %25 = arith.cmpi ne, %24, %c0_i32_20 : i32
    scf.if %25 {
      %cst_55 = arith.constant 0.000000e+00 : f32
      %114 = vector.broadcast %cst_55 : f32 to vector<2x18x4xf32>
      %c18 = arith.constant 18 : index
      %c0_56 = arith.constant 0 : index
      %c0_57 = arith.constant 0 : index
      %115 = vector.load %arg11[%c18, %c0_56, %c0_57] : memref<20x18x4xf32, #tpu.memory_space<vmem>>, vector<2x18x4xf32>
      tpu.vector_store %arg11[%c18, %c0_56, %c0_57], %114 {strides = array<i32>} : memref<20x18x4xf32, #tpu.memory_space<vmem>>, vector<2x18x4xf32>,
    } else {
    }
    %c0_21 = arith.constant 0 : index
    %c0_22 = arith.constant 0 : index
    %c0_23 = arith.constant 0 : index
    %26 = vector.load %arg11[%c0_21, %c0_22, %c0_23] : memref<20x18x4xf32, #tpu.memory_space<vmem>>, vector<20x18x4xf32>
    %27 = vector.extract_strided_slice %6 {offsets = [0, 0, 0], sizes = [18, 16, 4], strides = [1, 1, 1]} : vector<20x18x4xf32> to vector<18x16x4xf32>
    %28 = vector.shape_cast %27 : vector<18x16x4xf32> to vector<288x4xf32>
    %29 = vector.extract_strided_slice %6 {offsets = [0, 1, 0], sizes = [18, 16, 4], strides = [1, 1, 1]} : vector<20x18x4xf32> to vector<18x16x4xf32>
    %30 = vector.shape_cast %29 : vector<18x16x4xf32> to vector<288x4xf32>
    %31 = vector.extract_strided_slice %6 {offsets = [0, 2, 0], sizes = [18, 16, 4], strides = [1, 1, 1]} : vector<20x18x4xf32> to vector<18x16x4xf32>
    %32 = vector.shape_cast %31 : vector<18x16x4xf32> to vector<288x4xf32>
    %33 = vector.extract_strided_slice %6 {offsets = [1, 0, 0], sizes = [18, 16, 4], strides = [1, 1, 1]} : vector<20x18x4xf32> to vector<18x16x4xf32>
    %34 = vector.shape_cast %33 : vector<18x16x4xf32> to vector<288x4xf32>
    %35 = vector.extract_strided_slice %6 {offsets = [1, 1, 0], sizes = [18, 16, 4], strides = [1, 1, 1]} : vector<20x18x4xf32> to vector<18x16x4xf32>
    %36 = vector.shape_cast %35 : vector<18x16x4xf32> to vector<288x4xf32>
    %37 = vector.extract_strided_slice %6 {offsets = [1, 2, 0], sizes = [18, 16, 4], strides = [1, 1, 1]} : vector<20x18x4xf32> to vector<18x16x4xf32>
    %38 = vector.shape_cast %37 : vector<18x16x4xf32> to vector<288x4xf32>
    %39 = vector.extract_strided_slice %6 {offsets = [2, 0, 0], sizes = [18, 16, 4], strides = [1, 1, 1]} : vector<20x18x4xf32> to vector<18x16x4xf32>
    %40 = vector.shape_cast %39 : vector<18x16x4xf32> to vector<288x4xf32>
    %41 = vector.extract_strided_slice %6 {offsets = [2, 1, 0], sizes = [18, 16, 4], strides = [1, 1, 1]} : vector<20x18x4xf32> to vector<18x16x4xf32>
    %42 = vector.shape_cast %41 : vector<18x16x4xf32> to vector<288x4xf32>
    %43 = vector.extract_strided_slice %6 {offsets = [2, 2, 0], sizes = [18, 16, 4], strides = [1, 1, 1]} : vector<20x18x4xf32> to vector<18x16x4xf32>
    %44 = vector.shape_cast %43 : vector<18x16x4xf32> to vector<288x4xf32>
    %45 = vector.extract_strided_slice %26 {offsets = [0, 0, 0], sizes = [18, 16, 4], strides = [1, 1, 1]} : vector<20x18x4xf32> to vector<18x16x4xf32>
    %46 = vector.shape_cast %45 : vector<18x16x4xf32> to vector<288x4xf32>
    %47 = vector.extract_strided_slice %26 {offsets = [0, 1, 0], sizes = [18, 16, 4], strides = [1, 1, 1]} : vector<20x18x4xf32> to vector<18x16x4xf32>
    %48 = vector.shape_cast %47 : vector<18x16x4xf32> to vector<288x4xf32>
    %49 = vector.extract_strided_slice %26 {offsets = [0, 2, 0], sizes = [18, 16, 4], strides = [1, 1, 1]} : vector<20x18x4xf32> to vector<18x16x4xf32>
    %50 = vector.shape_cast %49 : vector<18x16x4xf32> to vector<288x4xf32>
    %51 = vector.extract_strided_slice %26 {offsets = [1, 0, 0], sizes = [18, 16, 4], strides = [1, 1, 1]} : vector<20x18x4xf32> to vector<18x16x4xf32>
    %52 = vector.shape_cast %51 : vector<18x16x4xf32> to vector<288x4xf32>
    %53 = vector.extract_strided_slice %26 {offsets = [1, 1, 0], sizes = [18, 16, 4], strides = [1, 1, 1]} : vector<20x18x4xf32> to vector<18x16x4xf32>
    %54 = vector.shape_cast %53 : vector<18x16x4xf32> to vector<288x4xf32>
    %55 = vector.extract_strided_slice %26 {offsets = [1, 2, 0], sizes = [18, 16, 4], strides = [1, 1, 1]} : vector<20x18x4xf32> to vector<18x16x4xf32>
    %56 = vector.shape_cast %55 : vector<18x16x4xf32> to vector<288x4xf32>
    %57 = vector.extract_strided_slice %26 {offsets = [2, 0, 0], sizes = [18, 16, 4], strides = [1, 1, 1]} : vector<20x18x4xf32> to vector<18x16x4xf32>
    %58 = vector.shape_cast %57 : vector<18x16x4xf32> to vector<288x4xf32>
    %59 = vector.extract_strided_slice %26 {offsets = [2, 1, 0], sizes = [18, 16, 4], strides = [1, 1, 1]} : vector<20x18x4xf32> to vector<18x16x4xf32>
    %60 = vector.shape_cast %59 : vector<18x16x4xf32> to vector<288x4xf32>
    %61 = vector.extract_strided_slice %26 {offsets = [2, 2, 0], sizes = [18, 16, 4], strides = [1, 1, 1]} : vector<20x18x4xf32> to vector<18x16x4xf32>
    %62 = vector.shape_cast %61 : vector<18x16x4xf32> to vector<288x4xf32>
    %63 = tpu.concatenate %28, %30, %32, %34, %36, %38, %40, %42, %44, %46, %48, %50, %52, %54, %56, %58 in 1 : vector<288x4xf32>, vector<288x4xf32>, vector<288x4xf32>, vector<288x4xf32>, vector<288x4xf32>, vector<288x4xf32>, vector<288x4xf32>, vector<288x4xf32>, vector<288x4xf32>, vector<288x4xf32>, vector<288x4xf32>, vector<288x4xf32>, vector<288x4xf32>, vector<288x4xf32>, vector<288x4xf32>, vector<288x4xf32> -> vector<288x64xf32>
    %64 = tpu.concatenate %60, %62 in 1 : vector<288x4xf32>, vector<288x4xf32> -> vector<288x8xf32>
    %65 = tpu.concatenate %63, %64 in 1 : vector<288x64xf32>, vector<288x8xf32> -> vector<288x72xf32>
    %c0_24 = arith.constant 0 : index
    %c0_25 = arith.constant 0 : index
    %66 = vector.load %arg6[%c0_24, %c0_25] : memref<72x4xf32, #tpu.memory_space<vmem>>, vector<72x4xf32>
    %cst_26 = arith.constant dense<0.000000e+00> : vector<288x4xf32>
    %67 = tpu.matmul %65, %66, %cst_26 {dimension_numbers = #tpu.dot_dimension_numbers<[1], [0], [0], [1], [0, 0, 1, 1], [], []>} : vector<288x72xf32>, vector<72x4xf32>, vector<288x4xf32> -> vector<288x4xf32>
    %c0_27 = arith.constant 0 : index
    %c0_28 = arith.constant 0 : index
    %68 = vector.load %arg7[%c0_27, %c0_28] : memref<1x4xf32, #tpu.memory_space<vmem>>, vector<1x4xf32>
    %69 = vector.broadcast %68 : vector<1x4xf32> to vector<288x4xf32>
    %70 = arith.addf %67, %69 : vector<288x4xf32>
    %cst_29 = arith.constant 0.000000e+00 : f32
    %71 = vector.broadcast %cst_29 : f32 to vector<288x4xf32>
    %72 = arith.maximumf %70, %71 : vector<288x4xf32>
    %cst_30 = arith.constant 0.000000e+00 : f32
    %73 = vector.broadcast %cst_30 : f32 to vector<18x1x4xf32>
    %c0_31 = arith.constant 0 : index
    %c0_32 = arith.constant 0 : index
    %c0_33 = arith.constant 0 : index
    %74 = vector.load %arg12[%c0_31, %c0_32, %c0_33] : memref<18x18x4xf32, #tpu.memory_space<vmem>>, vector<18x1x4xf32>
    tpu.vector_store %arg12[%c0_31, %c0_32, %c0_33], %73 {strides = array<i32>} : memref<18x18x4xf32, #tpu.memory_space<vmem>>, vector<18x1x4xf32>,
    %cst_34 = arith.constant 0.000000e+00 : f32
    %75 = vector.broadcast %cst_34 : f32 to vector<18x1x4xf32>
    %c0_35 = arith.constant 0 : index
    %c17_36 = arith.constant 17 : index
    %c0_37 = arith.constant 0 : index
    %76 = vector.load %arg12[%c0_35, %c17_36, %c0_37] : memref<18x18x4xf32, #tpu.memory_space<vmem>>, vector<18x1x4xf32>
    tpu.vector_store %arg12[%c0_35, %c17_36, %c0_37], %75 {strides = array<i32>} : memref<18x18x4xf32, #tpu.memory_space<vmem>>, vector<18x1x4xf32>,
    %77 = vector.shape_cast %72 : vector<288x4xf32> to vector<18x16x4xf32>
    %c0_38 = arith.constant 0 : index
    %c1_39 = arith.constant 1 : index
    %c0_40 = arith.constant 0 : index
    %78 = vector.load %arg12[%c0_38, %c1_39, %c0_40] : memref<18x18x4xf32, #tpu.memory_space<vmem>>, vector<18x16x4xf32>
    tpu.vector_store %arg12[%c0_38, %c1_39, %c0_40], %77 {strides = array<i32>} : memref<18x18x4xf32, #tpu.memory_space<vmem>>, vector<18x16x4xf32>,
    %79 = arith.extui %2 : i1 to i32
    %c0_i32_41 = arith.constant 0 : i32
    %80 = arith.cmpi ne, %79, %c0_i32_41 : i32
    scf.if %80 {
      %cst_55 = arith.constant 0.000000e+00 : f32
      %114 = vector.broadcast %cst_55 : f32 to vector<1x18x4xf32>
      %c0_56 = arith.constant 0 : index
      %c0_57 = arith.constant 0 : index
      %c0_58 = arith.constant 0 : index
      %115 = vector.load %arg12[%c0_56, %c0_57, %c0_58] : memref<18x18x4xf32, #tpu.memory_space<vmem>>, vector<1x18x4xf32>
      tpu.vector_store %arg12[%c0_56, %c0_57, %c0_58], %114 {strides = array<i32>} : memref<18x18x4xf32, #tpu.memory_space<vmem>>, vector<1x18x4xf32>,
    } else {
    }
    %81 = arith.extui %3 : i1 to i32
    %c0_i32_42 = arith.constant 0 : i32
    %82 = arith.cmpi ne, %81, %c0_i32_42 : i32
    scf.if %82 {
      %cst_55 = arith.constant 0.000000e+00 : f32
      %114 = vector.broadcast %cst_55 : f32 to vector<1x18x4xf32>
      %c17_56 = arith.constant 17 : index
      %c0_57 = arith.constant 0 : index
      %c0_58 = arith.constant 0 : index
      %115 = vector.load %arg12[%c17_56, %c0_57, %c0_58] : memref<18x18x4xf32, #tpu.memory_space<vmem>>, vector<1x18x4xf32>
      tpu.vector_store %arg12[%c17_56, %c0_57, %c0_58], %114 {strides = array<i32>} : memref<18x18x4xf32, #tpu.memory_space<vmem>>, vector<1x18x4xf32>,
    } else {
    }
    %c0_43 = arith.constant 0 : index
    %c0_44 = arith.constant 0 : index
    %c0_45 = arith.constant 0 : index
    %83 = vector.load %arg12[%c0_43, %c0_44, %c0_45] : memref<18x18x4xf32, #tpu.memory_space<vmem>>, vector<18x18x4xf32>
    %84 = vector.extract_strided_slice %83 {offsets = [0, 0, 0], sizes = [16, 16, 4], strides = [1, 1, 1]} : vector<18x18x4xf32> to vector<16x16x4xf32>
    %85 = vector.shape_cast %84 : vector<16x16x4xf32> to vector<256x4xf32>
    %86 = vector.extract_strided_slice %83 {offsets = [0, 1, 0], sizes = [16, 16, 4], strides = [1, 1, 1]} : vector<18x18x4xf32> to vector<16x16x4xf32>
    %87 = vector.shape_cast %86 : vector<16x16x4xf32> to vector<256x4xf32>
    %88 = vector.extract_strided_slice %83 {offsets = [0, 2, 0], sizes = [16, 16, 4], strides = [1, 1, 1]} : vector<18x18x4xf32> to vector<16x16x4xf32>
    %89 = vector.shape_cast %88 : vector<16x16x4xf32> to vector<256x4xf32>
    %90 = vector.extract_strided_slice %83 {offsets = [1, 0, 0], sizes = [16, 16, 4], strides = [1, 1, 1]} : vector<18x18x4xf32> to vector<16x16x4xf32>
    %91 = vector.shape_cast %90 : vector<16x16x4xf32> to vector<256x4xf32>
    %92 = vector.extract_strided_slice %83 {offsets = [1, 1, 0], sizes = [16, 16, 4], strides = [1, 1, 1]} : vector<18x18x4xf32> to vector<16x16x4xf32>
    %93 = vector.shape_cast %92 : vector<16x16x4xf32> to vector<256x4xf32>
    %94 = vector.extract_strided_slice %83 {offsets = [1, 2, 0], sizes = [16, 16, 4], strides = [1, 1, 1]} : vector<18x18x4xf32> to vector<16x16x4xf32>
    %95 = vector.shape_cast %94 : vector<16x16x4xf32> to vector<256x4xf32>
    %96 = vector.extract_strided_slice %83 {offsets = [2, 0, 0], sizes = [16, 16, 4], strides = [1, 1, 1]} : vector<18x18x4xf32> to vector<16x16x4xf32>
    %97 = vector.shape_cast %96 : vector<16x16x4xf32> to vector<256x4xf32>
    %98 = vector.extract_strided_slice %83 {offsets = [2, 1, 0], sizes = [16, 16, 4], strides = [1, 1, 1]} : vector<18x18x4xf32> to vector<16x16x4xf32>
    %99 = vector.shape_cast %98 : vector<16x16x4xf32> to vector<256x4xf32>
    %100 = vector.extract_strided_slice %83 {offsets = [2, 2, 0], sizes = [16, 16, 4], strides = [1, 1, 1]} : vector<18x18x4xf32> to vector<16x16x4xf32>
    %101 = vector.shape_cast %100 : vector<16x16x4xf32> to vector<256x4xf32>
    %102 = tpu.concatenate %85, %87, %89, %91, %93, %95, %97, %99, %101 in 1 : vector<256x4xf32>, vector<256x4xf32>, vector<256x4xf32>, vector<256x4xf32>, vector<256x4xf32>, vector<256x4xf32>, vector<256x4xf32>, vector<256x4xf32>, vector<256x4xf32> -> vector<256x36xf32>
    %c0_46 = arith.constant 0 : index
    %c0_47 = arith.constant 0 : index
    %103 = vector.load %arg8[%c0_46, %c0_47] : memref<36x4xf32, #tpu.memory_space<vmem>>, vector<36x4xf32>
    %cst_48 = arith.constant dense<0.000000e+00> : vector<256x4xf32>
    %104 = tpu.matmul %102, %103, %cst_48 {dimension_numbers = #tpu.dot_dimension_numbers<[1], [0], [0], [1], [0, 0, 1, 1], [], []>} : vector<256x36xf32>, vector<36x4xf32>, vector<256x4xf32> -> vector<256x4xf32>
    %105 = tpu.transpose %104, [1, 0] : vector<256x4xf32> -> vector<4x256xf32>
    %c0_49 = arith.constant 0 : index
    %c0_50 = arith.constant 0 : index
    %106 = vector.load %arg9[%c0_49, %c0_50] : memref<4x1xf32, #tpu.memory_space<vmem>>, vector<4x1xf32>
    %107 = vector.broadcast %106 : vector<4x1xf32> to vector<4x256xf32>
    %108 = arith.addf %105, %107 : vector<4x256xf32>
    %cst_51 = arith.constant 0.000000e+00 : f32
    %109 = vector.broadcast %cst_51 : f32 to vector<4x256xf32>
    %110 = arith.maximumf %108, %109 : vector<4x256xf32>
    %c0_52 = arith.constant 0 : index
    %c0_53 = arith.constant 0 : index
    %c0_54 = arith.constant 0 : index
    %111 = vector.load %arg10[%c0_52, %c0_53, %c0_54] : memref<1x4x256xf32, #tpu.memory_space<vmem>>, vector<1x4x256xf32>
    %112 = vector.shape_cast %111 : vector<1x4x256xf32> to vector<4x256xf32>
    %113 = vector.shape_cast %110 : vector<4x256xf32> to vector<1x4x256xf32>
    tpu.vector_store %arg10[%c0_52, %c0_53, %c0_54], %113 {strides = array<i32>} : memref<1x4x256xf32, #tpu.memory_space<vmem>>, vector<1x4x256xf32>,
    return
  }
  func.func @transform_0(%arg0: i32, %arg1: i32) -> (i32, i32, i32, i32) {
    %c0_i32 = arith.constant 0 : i32
    %c0_i32_0 = arith.constant 0 : i32
    %c0_i32_1 = arith.constant 0 : i32
    %c0_i32_2 = arith.constant 0 : i32
    return %arg0, %c0_i32, %c0_i32_0, %c0_i32_1 : i32, i32, i32, i32
  }
  func.func @transform_1(%arg0: i32, %arg1: i32) -> (i32, i32, i32, i32) {
    %c0_i32 = arith.constant 0 : i32
    %c0_i32_0 = arith.constant 0 : i32
    %c0_i32_1 = arith.constant 0 : i32
    %c0_i32_2 = arith.constant 0 : i32
    return %arg0, %c0_i32, %c0_i32_0, %c0_i32_1 : i32, i32, i32, i32
  }
  func.func @transform_2(%arg0: i32, %arg1: i32) -> (i32, i32) {
    %c0_i32 = arith.constant 0 : i32
    %c0_i32_0 = arith.constant 0 : i32
    %c0_i32_1 = arith.constant 0 : i32
    return %c0_i32, %c0_i32_0 : i32, i32
  }
  func.func @transform_3(%arg0: i32, %arg1: i32) -> (i32, i32) {
    %c0_i32 = arith.constant 0 : i32
    %c0_i32_0 = arith.constant 0 : i32
    %c0_i32_1 = arith.constant 0 : i32
    return %c0_i32, %c0_i32_0 : i32, i32
  }
  func.func @transform_4(%arg0: i32, %arg1: i32) -> (i32, i32) {
    %c0_i32 = arith.constant 0 : i32
    %c0_i32_0 = arith.constant 0 : i32
    %c0_i32_1 = arith.constant 0 : i32
    return %c0_i32, %c0_i32_0 : i32, i32
  }
  func.func @transform_5(%arg0: i32, %arg1: i32) -> (i32, i32) {
    %c0_i32 = arith.constant 0 : i32
    %c0_i32_0 = arith.constant 0 : i32
    %c0_i32_1 = arith.constant 0 : i32
    return %c0_i32, %c0_i32_0 : i32, i32
  }
  func.func @transform_6(%arg0: i32, %arg1: i32) -> (i32, i32) {
    %c0_i32 = arith.constant 0 : i32
    %c0_i32_0 = arith.constant 0 : i32
    %c0_i32_1 = arith.constant 0 : i32
    return %c0_i32, %c0_i32_0 : i32, i32
  }
  func.func @transform_7(%arg0: i32, %arg1: i32) -> (i32, i32) {
    %c0_i32 = arith.constant 0 : i32
    %c0_i32_0 = arith.constant 0 : i32
    %c0_i32_1 = arith.constant 0 : i32
    return %c0_i32, %c0_i32_0 : i32, i32
  }
  func.func @transform_8(%arg0: i32, %arg1: i32) -> (i32, i32, i32) {
    %c0_i32 = arith.constant 0 : i32
    %c0_i32_0 = arith.constant 0 : i32
    return %arg0, %c0_i32, %arg1 : i32, i32, i32
  }
}

</mosaic_0001>

<bundles_post_ra>
// kernel: tpu_custom_call.1
= control target key start
LH: loop header
LB: loop body
LE: loop exit
PB: predicated region body
PF: predicated region fallthrough
CT: control target
= control target key end

     0   :  { %13 = vsyncpa [#allocation5], 0  ;;  %s13977_s0 = inlined_call_operand.vmem [shape: f32[2,20,18,4], index: 0, kind: input, shape index: {}]   ;;  %s13978_s1 = inlined_call_operand.vmem [shape: f32[2,20,16,8], index: 1, kind: input, shape index: {}]   ;;  %s13979_s2 = inlined_call_operand.vmem [shape: f32[8,4], index: 2, kind: input, shape index: {}]   ;;  %s13980_s3 = inlined_call_operand.vmem [shape: f32[1,4], index: 3, kind: input, shape index: {}]   ;;  %s13981_s4 = inlined_call_operand.vmem [shape: f32[72,4], index: 4, kind: input, shape index: {}]   ;;  %s13982_s5 = inlined_call_operand.vmem [shape: f32[1,4], index: 5, kind: input, shape index: {}]   ;;  %s13983_s6 = inlined_call_operand.vmem [shape: f32[36,4], index: 6, kind: input, shape index: {}]   ;;  %s13984_s7 = inlined_call_operand.vmem [shape: f32[4,1], index: 7, kind: input, shape index: {}]   ;;  %s13985_s8 = inlined_call_operand.hbm [shape: f32[2,4,256], index: 8, kind: output, shape index: {}]  }
   0x1   :  { %15 = vsyncpa [#allocation5 + $0x1], 0  ;;  %s7187_s27 = smov 0   ;;  %s7189_s28 = smov 0  }
   0x2   :  { %s7191_s29 = smov 0   ;;  %s7193_s30 = smov 0  }
   0x3   :  { %s7195_s9 = smov 0   ;;  %s7197_s10 = smov 0  }
   0x4 LB: > { %s6367_s11 = sadd.s32 4294967295, %s7121_s10   ;;  %s6368_s12 = sadd.s32 4294967294, %s7121_s10   ;;  %s7121_s10 = sphi %s7197_s10, %s21_s10   ;;  %s7117_s9 = sphi %s7195_s9, %s15949_s9   ;;  %s7113_s30 = sphi %s7193_s30, %s15948_s30   ;;  %s7109_s29 = sphi %s7191_s29, %s15947_s29   ;;  %s7105_s28 = sphi %s7189_s28, %s15946_s28   ;;  %s7101_s27 = sphi %s7187_s27, %s15945_s27  }
   0x5   : > { %s33_s13 = sadd.s32 1, %s7117_s9  ;;  %s220_s14 = sadd.s32 1, %s7109_s29 }
   0x6   : > { %p35_p0 = scmp.ge.s32.totalorder %s33_s13, 2  ;;  %p230_p1 = scmp.ne.s32.totalorder %s7109_s29, %s7105_s28 }
   0x7   : > { %p231_p2 = scmp.eq.s32.totalorder %s6367_s11, 1  ;;  %p236_p3 = scmp.ne.s32.totalorder %s7105_s28, %s7101_s27 }
   0x8   : > { %s15951_s13 = smov (%p35_p0, %s33_s13), 0  ;;  %p237_p5 = scmp.eq.s32.totalorder %s6368_s12, 1 }
   0x9   : > { %p7227_p4 = por %p231_p2, %p230_p1  ;;  %s215_s16 = ssub.s32 %s7117_s9, %s15951_s13 }
   0xa   : > { %p6371_p6 = scmp.ge.s32.totalorder %s7121_s10, 1  ;;  %p218_p7 = scmp.eq.s32.totalorder %s215_s16, 0 }
   0xb   : > { %p7234_p8 = por %p237_p5, %p236_p3  ;;  %p289_p9 = scmp.lt.s32.totalorder %s7121_s10, 3 }
   0xc   : > { %s7240_s18 = scalar_select %p218_p7, %s7109_s29, %s220_s14  }
   0xd   : > { %p290_p10 = pnand %p6371_p6, %p289_p9 }
   0xf   : > { %293 = sbr.rel (%p290_p10) target bundleno = 2567 (0xa07), region = 52 }
  0x16   : > { %p328_p11 = scmp.lt.s32.totalorder %s7113_s30, 1  ;;  %vm1052_vm0 = vcmask 1046528   ;;  %s7123_s24 = smov 4   ;;  %vm1143_vm1 = vcmask 1045504   ;;  %vm453_vm2 = vcmask 64512   ;;  %vm839_vm3 = vcmask 24576  }
  0x17   : > { %s7124_s25 = smov 8   ;;  %s7125_s26 = smov 12   ;;  %vm926_vm4 = vcmask 25600   ;;  %vm880_vm5 = vcmask 31744   ;;  %vm3248_vm6 = vcmask 97280   ;;  %vm3285_vm7 = vcmask 130048  }
  0x18   : > { %s7244_s19 = scalar_select %p328_p11, %s7113_s30, 1  ;;  %vm14197_vm8 = vcmask 162816   ;;  %vm14195_vm9 = vcmask 195584   ;;  %vm14194_vm10 = vcmask 228352   ;;  %vm14196_vm11 = vcmask 261120  }
  0x19   : > { %s14192_s11 = smov 16   ;;  %s14149_s14 = smov 28   ;;  %vm3470_vm12 = vcmask 293888   ;;  %vm3507_vm13 = vcmask 326656   ;;  %vm3544_vm14 = vcmask 359424   ;;  %vm3581_vm15 = vcmask 392192  }
  0x1a   : > { %s6833_s20 = smul.u32 480, %s7244_s19  ;;  %s14147_s21 = smov 32  }
  0x1b   : > { %s6834_s12 = smul.u32 320, %s7244_s19  ;;  %s14190_s19 = smov 20  }
  0x1c   : > { %s7250_s23 = scalar_lea.vmem %s13977_s0, %s6833_s20  ;;  %s7132_s16 = smov 36  }
  0x1d   : > { %v7253_v0 = vld [vmem:[%s7250_s23 + $0x18] sm:$0xff]  ;;  %v7256_v1 = vld [vmem:[%s7250_s23 + $0x20] sm:$0xff]  ;;  %v7264_v5 = vld [vmem:[%s7250_s23 + $0x8] sm:$0xff]  ;;  %s8071_s22 = scalar_lea.vmem %s13978_s1, %s6834_s12  ;;  %s14188_s12 = smov 24  }
  0x1e   : > { %v7259_v2 = vld [vmem:[%s7250_s23] sm:$0xff]  ;;  %v1058_v3 = vrot.slane %v7253_v0, 1  ;;  %v1059_v4 = vrot.slane %v7256_v1, 1  ;;  %v7268_v7 = vld [vmem:[%s7250_s23 + $0x28] sm:$0x3]  ;;  %v1054_v8 = vrot.slane %v7264_v5, 1 }
  0x1f   : > { %v1053_v6 = vrot.slane %v7259_v2, 1  ;;  %v1061_v9 = vrot.slane %v7268_v7, 1  ;;  %v7273_v10 = vld [vmem:[%s7250_s23 + $0x10] sm:$0x3]  ;;  %v7276_v11 = vld [vmem:[%s7250_s23 + $0x38] sm:$0xff]  ;;  %v7306_v24 = vld [vmem:[%s7250_s23 + $0x48] sm:$0xff] }
  0x20   : > { %v7279_v12 = vsel %vm1052_vm0, %v1058_v3, %v1059_v4  ;;  %v1056_v13 = vrot.slane %v7273_v10, 1  ;;  %v7283_v14 = vld [vmem:[%s7250_s23 + $0x40] sm:$0x3]  ;;  %v7286_v15 = vld [vmem:[%s7250_s23 + $0x30] sm:$0xff]  ;;  %v1064_v18 = vrot.slane %v7276_v11, 1  ;;  %v1068_v29 = vrot.slane %v7306_v24, 1 }
  0x21   : > { %14288 = vst [vmem:[#allocation7_spill] sm:$0xff] %v7279_v12  ;;  %1560 = vrot.lane.b32.xlu1 %v7279_v12, %s7123_s24  ;;  %v1055_v16 = vsel %vm1052_vm0, %v1053_v6, %v1054_v8  ;;  %v7293_v17 = vsel %vm1052_vm0, %v1059_v4, %v1061_v9  ;;  %v1066_v19 = vrot.slane %v7283_v14, 1  ;;  %v1063_v21 = vrot.slane %v7286_v15, 1  ;;  %v7300_v22 = vld [vmem:[%s7250_s23 + $0x50] sm:$0xff]  ;;  %v7303_v23 = vld [vmem:[%s7250_s23 + $0x58] sm:$0x3] }
  0x22   : > { %1556 = vrot.lane.b32.xlu0 %v1055_v16, %s7123_s24  ;;  %14289 = vst [vmem:[#allocation8_spill] sm:$0xff] %v7293_v17  ;;  %v1057_v20 = vsel %vm1052_vm0, %v1054_v8, %v1056_v13  ;;  %v1069_v26 = vrot.slane %v7300_v22, 1  ;;  %v1071_v27 = vrot.slane %v7303_v23, 1  ;;  %v7321_v30 = vld [vmem:[%s7250_s23 + $0x68] sm:$0xff]  ;;  %v7324_v31 = vld [vmem:[%s7250_s23 + $0x70] sm:$0x3] }
  0x23   : > { %v7312_v25 = vsel %vm1052_vm0, %v1064_v18, %v1066_v19  ;;  %v7317_v28 = vsel %vm1052_vm0, %v1063_v21, %v1064_v18  ;;  %v7327_v32 = vld [vmem:[%s7250_s23 + $0x60] sm:$0xff]  ;;  %v1074_v34 = vrot.slane %v7321_v30, 1  ;;  %v1076_v35 = vrot.slane %v7324_v31, 1  ;;  %v7346_v39 = vld [vmem:[%s7250_s23 + $0x88] sm:$0x3]  ;;  %v7349_v40 = vld [vmem:[%s7250_s23 + $0x78] sm:$0xff] }
  0x24   : > { %14290 = vst [vmem:[#allocation9_spill] sm:$0xff] %v7312_v25  ;;  %14291 = vst [vmem:[#allocation10_spill] sm:$0xff] %v7317_v28  ;;  %v7334_v33 = vsel %vm1052_vm0, %v1069_v26, %v1071_v27  ;;  %v7339_v36 = vsel %vm1052_vm0, %v1068_v29, %v1069_v26  ;;  %v1073_v37 = vrot.slane %v7327_v32, 1  ;;  %v7343_v38 = vld [vmem:[%s7250_s23 + $0x80] sm:$0xff]  ;;  %v1081_v43 = vrot.slane %v7346_v39, 1  ;;  %v7365_v46 = vld [vmem:[%s7250_s23 + $0x98] sm:$0xff] }
  0x25   : > { %1562 = vrot.lane.b32.xlu1 %v7293_v17, %s7123_s24  ;;  %14292 = vst [vmem:[#allocation11_spill] sm:$0xff] %v7334_v33  ;;  %14293 = vst [vmem:[#allocation12_spill] sm:$0xff] %v7339_v36  ;;  %v7356_v41 = vsel %vm1052_vm0, %v1074_v34, %v1076_v35  ;;  %v1079_v42 = vrot.slane %v7343_v38, 1  ;;  %v1078_v45 = vrot.slane %v7349_v40, 1  ;;  %v7368_v47 = vld [vmem:[%s7250_s23 + $0xa0] sm:$0x3] }
  0x26   : > { %1558 = vrot.lane.b32.xlu0 %v1057_v20, %s7123_s24  ;;  %14294 = vst [vmem:[#allocation13_spill] sm:$0xff] %v7356_v41  ;;  %v7361_v44 = vsel %vm1052_vm0, %v1073_v37, %v1074_v34  ;;  %v7371_v48 = vld [vmem:[%s7250_s23 + $0x90] sm:$0xff]  ;;  %v1084_v50 = vrot.slane %v7365_v46, 1  ;;  %v1086_v51 = vrot.slane %v7368_v47, 1  ;;  %v7390_v55 = vld [vmem:[%s7250_s23 + $0xb8] sm:$0x3] }
  0x27   : > { %14295 = vst [vmem:[#allocation14_spill] sm:$0xff] %v7361_v44  ;;  %v7378_v49 = vsel %vm1052_vm0, %v1079_v42, %v1081_v43  ;;  %v7383_v52 = vsel %vm1052_vm0, %v1078_v45, %v1079_v42  ;;  %v1083_v53 = vrot.slane %v7371_v48, 1  ;;  %v7387_v54 = vld [vmem:[%s7250_s23 + $0xb0] sm:$0xff]  ;;  %v7393_v56 = vld [vmem:[%s7250_s23 + $0xa8] sm:$0xff]  ;;  %v1091_v59 = vrot.slane %v7390_v55, 1  ;;  %v7415_v3 = vld [vmem:[%s7250_s23 + $0xc0] sm:$0xff] }
  0x28   : > { %14296 = vst [vmem:[#allocation15_spill] sm:$0xff] %v7378_v49  ;;  %14297 = vst [vmem:[#allocation16_spill] sm:$0xff] %v7383_v52  ;;  %v7400_v57 = vsel %vm1052_vm0, %v1084_v50, %v1086_v51  ;;  %v1089_v58 = vrot.slane %v7387_v54, 1  ;;  %v1088_v61 = vrot.slane %v7393_v56, 1  ;;  %v7409_v62 = vld [vmem:[%s7250_s23 + $0xc8] sm:$0xff]  ;;  %v1093_v13 = vrot.slane %v7415_v3, 1 }
  0x29   : > { %1566 = vrot.lane.b32.xlu1 %v7312_v25, %s7123_s24  ;;  %14298 = vst [vmem:[#allocation17_spill] sm:$0xff] %v7400_v57  ;;  %v7405_v60 = vsel %vm1052_vm0, %v1083_v53, %v1084_v50  ;;  %v7412_v63 = vld [vmem:[%s7250_s23 + $0xd0] sm:$0x3]  ;;  %v1094_v6 = vrot.slane %v7409_v62, 1  ;;  %v7431_v16 = vld [vmem:[%s7250_s23 + $0xe0] sm:$0xff]  ;;  %v7437_v19 = vld [vmem:[%s7250_s23 + $0xd8] sm:$0xff] }
  0x2a   : > { %1564 = vrot.lane.b32.xlu0 %v7317_v28, %s7123_s24  ;;  %14299 = vst [vmem:[#allocation18_spill] sm:$0xff] %v7405_v60  ;;  %v7422_v4 = vsel %vm1052_vm0, %v1089_v58, %v1091_v59  ;;  %v1096_v8 = vrot.slane %v7412_v63, 1  ;;  %v7427_v9 = vsel %vm1052_vm0, %v1088_v61, %v1089_v58  ;;  %v7434_v18 = vld [vmem:[%s7250_s23 + $0xe8] sm:$0x3]  ;;  %v1099_v21 = vrot.slane %v7431_v16, 1  ;;  %v7453_v34 = vld [vmem:[%s7250_s23 + $0xf8] sm:$0xff] }
  0x2b   : > { %14300 = vst [vmem:[#allocation19_spill] sm:$0xff] %v7422_v4  ;;  %14301 = vst [vmem:[#allocation20_spill] sm:$0xff] %v7427_v9  ;;  %v1101_v26 = vrot.slane %v7434_v18, 1  ;;  %v7449_v27 = vsel %vm1052_vm0, %v1093_v13, %v1094_v6  ;;  %v1098_v29 = vrot.slane %v7437_v19, 1  ;;  %v7456_v35 = vld [vmem:[%s7250_s23 + $0x100] sm:$0x3] }
  0x2c   : > { %v7444_v20 = vsel %vm1052_vm0, %v1094_v6, %v1096_v8  ;;  %14303 = vst [vmem:[#allocation22_spill] sm:$0xff] %v7449_v27  ;;  %v7459_v37 = vld [vmem:[%s7250_s23 + $0xf0] sm:$0xff]  ;;  %v1104_v43 = vrot.slane %v7453_v34, 1  ;;  %v1106_v45 = vrot.slane %v7456_v35, 1  ;;  %v7478_v58 = vld [vmem:[%s7250_s23 + $0x118] sm:$0x3] }
  0x2d   : > { %1570 = vrot.lane.b32.xlu1 %v7334_v33, %s7123_s24  ;;  %14302 = vst [vmem:[#allocation21_spill] sm:$0xff] %v7444_v20  ;;  %v7466_v42 = vsel %vm1052_vm0, %v1099_v21, %v1101_v26  ;;  %v7471_v50 = vsel %vm1052_vm0, %v1098_v29, %v1099_v21  ;;  %v1103_v51 = vrot.slane %v7459_v37, 1  ;;  %v7475_v53 = vld [vmem:[%s7250_s23 + $0x110] sm:$0xff]  ;;  %v7481_v59 = vld [vmem:[%s7250_s23 + $0x108] sm:$0xff]  ;;  %v1111_v8 = vrot.slane %v7478_v58, 1  ;;  %v7607_v25 = vld [vmem:[%s7250_s23 + $0x1a0] sm:$0xff] }
  0x2e   : > { %1568 = vrot.lane.b32.xlu0 %v7339_v36, %s7123_s24  ;;  %14304 = vst [vmem:[#allocation23_spill] sm:$0xff] %v7466_v42  ;;  %14305 = vst [vmem:[#allocation24_spill] sm:$0xff] %v7471_v50  ;;  %v7488_v61 = vsel %vm1052_vm0, %v1104_v43, %v1106_v45  ;;  %v1109_v6 = vrot.slane %v7475_v53, 1  ;;  %v1108_v21 = vrot.slane %v7481_v59, 1  ;;  %v7497_v26 = vld [vmem:[%s7250_s23 + $0x128] sm:$0xff]  ;;  %s7133_s20 = smov 40  }
  0x2f   : > { %14306 = vst [vmem:[#allocation25_spill] sm:$0xff] %v7488_v61  ;;  %v7493_v13 = vsel %vm1052_vm0, %v1103_v51, %v1104_v43  ;;  %v7500_v29 = vld [vmem:[%s7250_s23 + $0x130] sm:$0x3]  ;;  %v1114_v43 = vrot.slane %v7497_v26, 1  ;;  %v7585_v36 = vld [vmem:[%s7250_s23 + $0x188] sm:$0xff] }
  0x30   : > { %14307 = vst [vmem:[#allocation26_spill] sm:$0xff] %v7493_v13  ;;  %v7510_v45 = vsel %vm1052_vm0, %v1109_v6, %v1111_v8  ;;  %v1116_v51 = vrot.slane %v7500_v29, 1  ;;  %v7610_v12 = vld [vmem:[%s7250_s23 + $0x1a8] sm:$0x3] }
  0x31   : > { %1574 = vrot.lane.b32.xlu1 %v7356_v41, %s7123_s24  ;;  %14308 = vst [vmem:[#allocation27_spill] sm:$0xff] %v7510_v45  ;;  %14318 = vst [vmem:[#allocation37_spill] sm:$0xff] %v7610_v12 }
  0x32   : > { %1572 = vrot.lane.b32.xlu0 %v7361_v44, %s7123_s24  ;;  %v7532_v8 = vsel %vm1052_vm0, %v1114_v43, %v1116_v51 }
  0x33   : > { %14310 = vst [vmem:[#allocation29_spill] sm:$0xff] %v7532_v8 }
  0x35   : > { %1578 = vrot.lane.b32.xlu1 %v7378_v49, %s7123_s24  ;;  %v7563_v49 = vld [vmem:[%s7250_s23 + $0x170] sm:$0xff] }
  0x36   : > { %1576 = vrot.lane.b32.xlu0 %v7383_v52, %s7123_s24 }
  0x39   : > { %1582 = vrot.lane.b32.xlu1 %v7400_v57, %s7123_s24 }
  0x3a   : > { %1580 = vrot.lane.b32.xlu0 %v7405_v60, %s7123_s24  ;;  %v7541_v60 = vld [vmem:[%s7250_s23 + $0x158] sm:$0xff] }
  0x3d   : > { %1586 = vrot.lane.b32.xlu1 %v7422_v4, %s7123_s24 }
  0x3e   : > { %1584 = vrot.lane.b32.xlu0 %v7427_v9, %s7123_s24 }
  0x41   : > { %1590 = vrot.lane.b32.xlu1 %v7444_v20, %s7123_s24  ;;  %v7519_v20 = vld [vmem:[%s7250_s23 + $0x140] sm:$0xff] }
  0x42   : > { %1588 = vrot.lane.b32.xlu0 %v7449_v27, %s7123_s24 }
  0x45   : > { %1594 = vrot.lane.b32.xlu1 %v7466_v42, %s7123_s24  ;;  %v7515_v42 = vsel %vm1052_vm0, %v1108_v21, %v1109_v6  ;;  %v1119_v6 = vrot.slane %v7519_v20, 1 }
  0x46   : > { %1592 = vrot.lane.b32.xlu0 %v7471_v50, %s7123_s24  ;;  %v7503_v50 = vld [vmem:[%s7250_s23 + $0x120] sm:$0xff]  ;;  %14309 = vst [vmem:[#allocation28_spill] sm:$0xff] %v7515_v42 }
  0x47   : > { %v1113_v27 = vrot.slane %v7503_v50, 1 }
  0x49   : > { %1598 = vrot.lane.b32.xlu1 %v7488_v61, %s7123_s24  ;;  %v7522_v61 = vld [vmem:[%s7250_s23 + $0x148] sm:$0x3]  ;;  %v7537_v9 = vsel %vm1052_vm0, %v1113_v27, %v1114_v43  ;;  %v1124_v27 = vrot.slane %v7541_v60, 1 }
  0x4a   : > { %1596 = vrot.lane.b32.xlu0 %v7493_v13, %s7123_s24  ;;  %v7525_v13 = vld [vmem:[%s7250_s23 + $0x138] sm:$0xff]  ;;  %v1121_v21 = vrot.slane %v7522_v61, 1  ;;  %14311 = vst [vmem:[#allocation30_spill] sm:$0xff] %v7537_v9 }
  0x4b   : > { %v1118_v4 = vrot.slane %v7525_v13, 1 }
  0x4c   : > { %v7554_v51 = vsel %vm1052_vm0, %v1119_v6, %v1121_v21 }
  0x4d   : > { %1602 = vrot.lane.b32.xlu1 %v7510_v45, %s7123_s24  ;;  %v7544_v45 = vld [vmem:[%s7250_s23 + $0x160] sm:$0x3]  ;;  %14312 = vst [vmem:[#allocation31_spill] sm:$0xff] %v7554_v51  ;;  %v7559_v57 = vsel %vm1052_vm0, %v1118_v4, %v1119_v6  ;;  %v1129_v4 = vrot.slane %v7563_v49, 1 }
  0x4e   : > { %1600 = vrot.lane.b32.xlu0 %v7515_v42, %s7123_s24  ;;  %v7547_v42 = vld [vmem:[%s7250_s23 + $0x150] sm:$0xff]  ;;  %v1126_v43 = vrot.slane %v7544_v45, 1  ;;  %14313 = vst [vmem:[#allocation32_spill] sm:$0xff] %v7559_v57 }
  0x4f   : > { %v1123_v52 = vrot.slane %v7547_v42, 1 }
  0x50   : > { %v7576_v21 = vsel %vm1052_vm0, %v1124_v27, %v1126_v43 }
  0x51   : > { %1606 = vrot.lane.b32.xlu1 %v7532_v8, %s7123_s24  ;;  %v7566_v8 = vld [vmem:[%s7250_s23 + $0x178] sm:$0x3]  ;;  %14314 = vst [vmem:[#allocation33_spill] sm:$0xff] %v7576_v21  ;;  %v7581_v44 = vsel %vm1052_vm0, %v1123_v52, %v1124_v27  ;;  %v1134_v52 = vrot.slane %v7585_v36, 1 }
  0x52   : > { %1604 = vrot.lane.b32.xlu0 %v7537_v9, %s7123_s24  ;;  %v7569_v9 = vld [vmem:[%s7250_s23 + $0x168] sm:$0xff]  ;;  %v1131_v6 = vrot.slane %v7566_v8, 1  ;;  %14315 = vst [vmem:[#allocation34_spill] sm:$0xff] %v7581_v44 }
  0x53   : > { %v1128_v41 = vrot.slane %v7569_v9, 1 }
  0x54   : > { %v7598_v43 = vsel %vm1052_vm0, %v1129_v4, %v1131_v6 }
  0x55   : > { %1610 = vrot.lane.b32.xlu1 %v7554_v51, %s7123_s24  ;;  %v7588_v51 = vld [vmem:[%s7250_s23 + $0x190] sm:$0x3]  ;;  %14316 = vst [vmem:[#allocation35_spill] sm:$0xff] %v7598_v43  ;;  %v7603_v33 = vsel %vm1052_vm0, %v1128_v41, %v1129_v4  ;;  %v1139_v41 = vrot.slane %v7607_v25, 1  ;;  %v1141_v4 = vrot.slane %v7610_v12, 1 }
  0x56   : > { %1608 = vrot.lane.b32.xlu0 %v7559_v57, %s7123_s24  ;;  %v7591_v57 = vld [vmem:[%s7250_s23 + $0x180] sm:$0xff]  ;;  %v1136_v27 = vrot.slane %v7588_v51, 1  ;;  %14317 = vst [vmem:[#allocation36_spill] sm:$0xff] %v7603_v33 }
  0x57   : > { %v1133_v28 = vrot.slane %v7591_v57, 1 }
  0x58   : > { %v7620_v6 = vsel %vm1052_vm0, %v1134_v52, %v1136_v27  ;;  %v1145_v27 = vrot.slane %v7264_v5, 2  ;;  %v1152_v5 = vrot.slane %v7268_v7, 2  ;;  %v1154_v7 = vrot.slane %v7286_v15, 2 }
  0x59   : > { %1614 = vrot.lane.b32.xlu1 %v7576_v21, %s7123_s24  ;;  %v7613_v21 = vld [vmem:[%s7250_s23 + $0x198] sm:$0xff] }
  0x5a   : > { %1612 = vrot.lane.b32.xlu0 %v7581_v44, %s7123_s24  ;;  %v7625_v44 = vsel %vm1052_vm0, %v1133_v28, %v1134_v52  ;;  %v1138_v17 = vrot.slane %v7613_v21, 1  ;;  %v1144_v28 = vrot.slane %v7259_v2, 2 }
  0x5c   : > { %v7638_v12 = vsel %vm1052_vm0, %v1138_v17, %v1139_v41  ;;  %v1149_v17 = vrot.slane %v7253_v0, 2 }
  0x5d   : > { %1618 = vrot.lane.b32.xlu1 %v7598_v43, %s7123_s24  ;;  %v1147_v43 = vrot.slane %v7273_v10, 2  ;;  %14319 = vst [vmem:[#allocation38_spill] sm:$0xff] %v7638_v12  ;;  %v1146_v10 = vsel %vm1143_vm1, %v1144_v28, %v1145_v27  ;;  %v1160_v28 = vrot.slane %v7300_v22, 2 }
  0x5e   : > { %1616 = vrot.lane.b32.xlu0 %v7603_v33, %s7123_s24  ;;  %v7633_v33 = vsel %vm1052_vm0, %v1139_v41, %v1141_v4  ;;  %v1150_v4 = vrot.slane %v7256_v1, 2  ;;  %v1155_v41 = vrot.slane %v7276_v11, 2 }
  0x5f   : > { %v1148_v52 = vsel %vm1143_vm1, %v1145_v27, %v1147_v43  ;;  %v1157_v43 = vrot.slane %v7283_v14, 2 }
  0x60   : > { %v7653_v2 = vsel %vm1143_vm1, %v1150_v4, %v1152_v5  ;;  %v7671_v14 = vsel %vm1143_vm1, %v1154_v7, %v1155_v41  ;;  %v1170_v7 = vrot.slane %v7343_v38, 2 }
  0x61   : > { %1622 = vrot.lane.b32.xlu1 %v7620_v6, %s7123_s24  ;;  %v7666_v27 = vsel %vm1143_vm1, %v1155_v41, %v1157_v43  ;;  %v1164_v41 = vrot.slane %v7327_v32, 2 }
  0x62   : > { %1620 = vrot.lane.b32.xlu0 %v7625_v44, %s7123_s24 }
  0x65   : > { %1626 = vrot.lane.b32.xlu1 %v7633_v33, %s7123_s24 }
  0x66   : > { %1624 = vrot.lane.b32.xlu0 %v7638_v12, %s7123_s24  ;;  %v7658_v12 = vsel %vm1143_vm1, %v1149_v17, %v1150_v4  ;;  %v1159_v4 = vrot.slane %v7306_v24, 2  ;;  %v1167_v17 = vrot.slane %v7324_v31, 2 }
  0x69   : > { %1666 = vrot.lane.b32.xlu1 %v1148_v52, %s7124_s25  ;;  %v1162_v52 = vrot.slane %v7303_v23, 2  ;;  %v7684_v23 = vsel %vm1143_vm1, %v1159_v4, %v1160_v28 }
  0x6a   : > { %1664 = vrot.lane.b32.xlu0 %v1146_v10, %s7124_s25  ;;  %v1165_v10 = vrot.slane %v7321_v30, 2  ;;  %14320 = vst [vmem:[#allocation39_spill] sm:$0xff] %v7684_v23 }
  0x6b   : > { %v7679_v5 = vsel %vm1143_vm1, %v1160_v28, %v1162_v52  ;;  %v1172_v52 = vrot.slane %v7346_v39, 2  ;;  %v1169_v28 = vrot.slane %v7349_v40, 2 }
  0x6c   : > { %v7692_v43 = vsel %vm1143_vm1, %v1165_v10, %v1167_v17  ;;  %v7697_v31 = vsel %vm1143_vm1, %v1164_v41, %v1165_v10  ;;  %v1175_v17 = vrot.slane %v7365_v46, 2  ;;  %v1174_v10 = vrot.slane %v7371_v48, 2 }
  0x6d   : > { %1670 = vrot.lane.b32.xlu1 %v7653_v2, %s7124_s25  ;;  %14321 = vst [vmem:[#allocation40_spill] sm:$0xff] %v7697_v31  ;;  %v7705_v4 = vsel %vm1143_vm1, %v1170_v7, %v1172_v52  ;;  %v7710_v39 = vsel %vm1143_vm1, %v1169_v28, %v1170_v7  ;;  %v1180_v52 = vrot.slane %v7387_v54, 2  ;;  %v1179_v7 = vrot.slane %v7393_v56, 2 }
  0x6e   : > { %1668 = vrot.lane.b32.xlu0 %v7658_v12, %s7124_s25  ;;  %14322 = vst [vmem:[#allocation41_spill] sm:$0xff] %v7710_v39 }
  0x71   : > { %1674 = vrot.lane.b32.xlu1 %v7666_v27, %s7124_s25 }
  0x72   : > { %1672 = vrot.lane.b32.xlu0 %v7671_v14, %s7124_s25 }
  0x75   : > { %1678 = vrot.lane.b32.xlu1 %v7679_v5, %s7124_s25 }
  0x76   : > { %1676 = vrot.lane.b32.xlu0 %v7684_v23, %s7124_s25  ;;  %v1177_v23 = vrot.slane %v7368_v47, 2  ;;  %v7723_v47 = vsel %vm1143_vm1, %v1174_v10, %v1175_v17 }
  0x77   : > { %14323 = vst [vmem:[#allocation42_spill] sm:$0xff] %v7723_v47 }
  0x78   : > { %v7718_v41 = vsel %vm1143_vm1, %v1175_v17, %v1177_v23  ;;  %v1185_v23 = vrot.slane %v7409_v62, 2  ;;  %v1184_v17 = vrot.slane %v7415_v3, 2 }
  0x79   : > { %1682 = vrot.lane.b32.xlu1 %v7692_v43, %s7124_s25 }
  0x7a   : > { %1680 = vrot.lane.b32.xlu0 %v7697_v31, %s7124_s25  ;;  %v1182_v31 = vrot.slane %v7390_v55, 2  ;;  %v7736_v55 = vsel %vm1143_vm1, %v1179_v7, %v1180_v52 }
  0x7b   : > { %14325 = vst [vmem:[#allocation44_spill] sm:$0xff] %v7736_v55 }
  0x7c   : > { %v7731_v28 = vsel %vm1143_vm1, %v1180_v52, %v1182_v31  ;;  %v1190_v31 = vrot.slane %v7431_v16, 2  ;;  %v1189_v52 = vrot.slane %v7437_v19, 2 }
  0x7d   : > { %1686 = vrot.lane.b32.xlu1 %v7705_v4, %s7124_s25  ;;  %14324 = vst [vmem:[#allocation43_spill] sm:$0xff] %v7731_v28 }
  0x7e   : > { %1684 = vrot.lane.b32.xlu0 %v7710_v39, %s7124_s25  ;;  %v1187_v39 = vrot.slane %v7412_v63, 2  ;;  %v7749_v63 = vsel %vm1143_vm1, %v1184_v17, %v1185_v23 }
  0x7f   : > { %14326 = vst [vmem:[#allocation45_spill] sm:$0xff] %v7749_v63 }
  0x80   : > { %v7744_v10 = vsel %vm1143_vm1, %v1185_v23, %v1187_v39  ;;  %v1195_v39 = vrot.slane %v7453_v34, 2  ;;  %v1194_v23 = vrot.slane %v7459_v37, 2 }
  0x81   : > { %1690 = vrot.lane.b32.xlu1 %v7718_v41, %s7124_s25 }
  0x82   : > { %1688 = vrot.lane.b32.xlu0 %v7723_v47, %s7124_s25  ;;  %v1192_v47 = vrot.slane %v7434_v18, 2  ;;  %v7762_v18 = vsel %vm1143_vm1, %v1189_v52, %v1190_v31 }
  0x83   : > { %14328 = vst [vmem:[#allocation47_spill] sm:$0xff] %v7762_v18 }
  0x84   : > { %v7757_v7 = vsel %vm1143_vm1, %v1190_v31, %v1192_v47  ;;  %v1200_v47 = vrot.slane %v7475_v53, 2  ;;  %v1199_v31 = vrot.slane %v7481_v59, 2 }
  0x85   : > { %1694 = vrot.lane.b32.xlu1 %v7731_v28, %s7124_s25  ;;  %14327 = vst [vmem:[#allocation46_spill] sm:$0xff] %v7757_v7 }
  0x86   : > { %1692 = vrot.lane.b32.xlu0 %v7736_v55, %s7124_s25  ;;  %v1197_v55 = vrot.slane %v7456_v35, 2  ;;  %v7775_v35 = vsel %vm1143_vm1, %v1194_v23, %v1195_v39 }
  0x87   : > { %14329 = vst [vmem:[#allocation48_spill] sm:$0xff] %v7775_v35 }
  0x88   : > { %v7770_v17 = vsel %vm1143_vm1, %v1195_v39, %v1197_v55  ;;  %v1205_v55 = vrot.slane %v7497_v26, 2  ;;  %v1204_v39 = vrot.slane %v7503_v50, 2 }
  0x89   : > { %1698 = vrot.lane.b32.xlu1 %v7744_v10, %s7124_s25 }
  0x8a   : > { %1696 = vrot.lane.b32.xlu0 %v7749_v63, %s7124_s25  ;;  %v1202_v63 = vrot.slane %v7478_v58, 2  ;;  %v7790_v58 = vsel %vm1143_vm1, %v1199_v31, %v1200_v47  ;;  %v1209_v31 = vrot.slane %v7525_v13, 2 }
  0x8b   : > { %14331 = vst [vmem:[#allocation50_spill] sm:$0xff] %v7790_v58 }
  0x8c   : > { %v7783_v52 = vsel %vm1143_vm1, %v1200_v47, %v1202_v63  ;;  %v7807_v47 = vsel %vm1143_vm1, %v1204_v39, %v1205_v55  ;;  %v1214_v39 = vrot.slane %v7547_v42, 2 }
  0x8d   : > { %1702 = vrot.lane.b32.xlu1 %v7757_v7, %s7124_s25  ;;  %14335 = vst [vmem:[#allocation54_spill] sm:$0xff] %v7807_v47 }
  0x8e   : > { %1700 = vrot.lane.b32.xlu0 %v7762_v18, %s7124_s25  ;;  %v1207_v18 = vrot.slane %v7500_v29, 2  ;;  %v1210_v29 = vrot.slane %v7519_v20, 2 }
  0x90   : > { %v7800_v63 = vsel %vm1143_vm1, %v1205_v55, %v1207_v18  ;;  %v7824_v55 = vsel %vm1143_vm1, %v1209_v31, %v1210_v29  ;;  %v1219_v31 = vrot.slane %v7569_v9, 2 }
  0x91   : > { %1706 = vrot.lane.b32.xlu1 %v7770_v17, %s7124_s25  ;;  %14333 = vst [vmem:[#allocation52_spill] sm:$0xff] %v7800_v63  ;;  %14338 = vst [vmem:[#allocation57_spill] sm:$0xff] %v7824_v55 }
  0x92   : > { %1704 = vrot.lane.b32.xlu0 %v7775_v35, %s7124_s25 }
  0x93   : > { %v7787_v7 = vpop.permute.xlu1 %1560 }
  0x94   : > { %14330 = vst [vmem:[#allocation49_spill] sm:$0xff] %v7787_v7  ;;  %v7793_v23 = vpop.permute.xlu0 %1556  ;;  %v1212_v7 = vrot.slane %v7522_v61, 2  ;;  %v1215_v61 = vrot.slane %v7541_v60, 2 }
  0x95   : > { %14332 = vst [vmem:[#allocation51_spill] sm:$0xff] %v7793_v23  ;;  %1710 = vrot.lane.b32.xlu1 %v7783_v52, %s7124_s25 }
  0x96   : > { %1708 = vrot.lane.b32.xlu0 %v7790_v58, %s7124_s25  ;;  %v7817_v18 = vsel %vm1143_vm1, %v1210_v29, %v1212_v7  ;;  %v7841_v29 = vsel %vm1143_vm1, %v1214_v39, %v1215_v61  ;;  %v1224_v39 = vrot.slane %v7591_v57, 2 }
  0x97   : > { %v7804_v35 = vpop.permute.xlu1 %1562  ;;  %14342 = vst [vmem:[#allocation61_spill] sm:$0xff] %v7841_v29 }
  0x98   : > { %14334 = vst [vmem:[#allocation53_spill] sm:$0xff] %v7804_v35  ;;  %v7810_v23 = vpop.permute.xlu0 %1558  ;;  %v1217_v35 = vrot.slane %v7544_v45, 2  ;;  %v1220_v45 = vrot.slane %v7563_v49, 2 }
  0x99   : > { %14336 = vst [vmem:[#allocation55_spill] sm:$0xff] %v7810_v23  ;;  %1714 = vrot.lane.b32.xlu1 %v7800_v63, %s7124_s25 }
  0x9a   : > { %1712 = vrot.lane.b32.xlu0 %v7807_v47, %s7124_s25  ;;  %v7834_v7 = vsel %vm1143_vm1, %v1215_v61, %v1217_v35  ;;  %v7858_v61 = vsel %vm1143_vm1, %v1219_v31, %v1220_v45  ;;  %v1229_v31 = vrot.slane %v7613_v21, 2 }
  0x9b   : > { %v7821_v58 = vpop.permute.xlu1 %1566  ;;  %14340 = vst [vmem:[#allocation59_spill] sm:$0xff] %v7834_v7  ;;  %14346 = vst [vmem:[#allocation65_spill] sm:$0xff] %v7858_v61 }
  0x9c   : > { %14337 = vst [vmem:[#allocation56_spill] sm:$0xff] %v7821_v58  ;;  %v7827_v23 = vpop.permute.xlu0 %1564  ;;  %v1222_v58 = vrot.slane %v7566_v8, 2  ;;  %v1225_v8 = vrot.slane %v7585_v36, 2 }
  0x9d   : > { %14339 = vst [vmem:[#allocation58_spill] sm:$0xff] %v7827_v23  ;;  %1718 = vrot.lane.b32.xlu1 %v7817_v18, %s7124_s25 }
  0x9e   : > { %1716 = vrot.lane.b32.xlu0 %v7824_v55, %s7124_s25  ;;  %v7851_v35 = vsel %vm1143_vm1, %v1220_v45, %v1222_v58  ;;  %v7875_v45 = vsel %vm1143_vm1, %v1224_v39, %v1225_v8 }
  0x9f   : > { %v7838_v47 = vpop.permute.xlu1 %1570  ;;  %14344 = vst [vmem:[#allocation63_spill] sm:$0xff] %v7851_v35  ;;  %14350 = vst [vmem:[#allocation67_spill] sm:$0xff] %v7875_v45 }
  0xa0   : > { %14341 = vst [vmem:[#allocation60_spill] sm:$0xff] %v7838_v47  ;;  %v7844_v23 = vpop.permute.xlu0 %1568  ;;  %v1227_v47 = vrot.slane %v7588_v51, 2  ;;  %v1230_v51 = vrot.slane %v7607_v25, 2 }
  0xa1   : > { %14343 = vst [vmem:[#allocation62_spill] sm:$0xff] %v7844_v23  ;;  %1722 = vrot.lane.b32.xlu1 %v7834_v7, %s7124_s25 }
  0xa2   : > { %1720 = vrot.lane.b32.xlu0 %v7841_v29, %s7124_s25  ;;  %v7868_v58 = vsel %vm1143_vm1, %v1225_v8, %v1227_v47  ;;  %v14348_v29 = vld [vmem:[#allocation37_spill] sm:$0xff] }
  0xa3   : > { %v7855_v55 = vpop.permute.xlu1 %1574 }
  0xa4   : > { %14345 = vst [vmem:[#allocation64_spill] sm:$0xff] %v7855_v55  ;;  %v7861_v23 = vpop.permute.xlu0 %1572  ;;  %v1232_v55 = vrot.slane %v14348_v29, 2  ;;  %v7890_v29 = vsel %vm1143_vm1, %v1229_v31, %v1230_v51 }
  0xa5   : > { %14347 = vst [vmem:[#allocation66_spill] sm:$0xff] %v7861_v23  ;;  %1726 = vrot.lane.b32.xlu1 %v7851_v35, %s7124_s25 }
  0xa6   : > { %1724 = vrot.lane.b32.xlu0 %v7858_v61, %s7124_s25  ;;  %v7885_v47 = vsel %vm1143_vm1, %v1230_v51, %v1232_v55 }
  0xa7   : > { %v7872_v7 = vpop.permute.xlu1 %1578 }
  0xa8   : > { %14349 = vst [vmem:[#allocation37_spill] sm:$0xff] %v7872_v7  ;;  %v7878_v23 = vpop.permute.xlu0 %1576  ;;  %v435_v7 = vld [vmem:[%s8071_s22 + $0xf0] sm:$0xff] }
  0xa9   : > { %14351 = vst [vmem:[#allocation68_spill] sm:$0xff] %v7878_v23  ;;  %1730 = vrot.lane.b32.xlu1 %v7868_v58, %s7124_s25 }
  0xaa   : > { %1728 = vrot.lane.b32.xlu0 %v7875_v45, %s7124_s25 }
  0xab   : > { %v7887_v61 = vpop.permute.xlu1 %1582 }
  0xac   : > { %14352 = vst [vmem:[#allocation69_spill] sm:$0xff] %v7887_v61  ;;  %v7892_v8 = vpop.permute.xlu0 %1580 }
  0xad   : > { %14353 = vst [vmem:[#allocation70_spill] sm:$0xff] %v7892_v8  ;;  %1734 = vrot.lane.b32.xlu1 %v7885_v47, %s7124_s25  ;;  %v14454_v8 = vld [vmem:[#allocation38_spill] sm:$0xff] }
  0xae   : > { %1732 = vrot.lane.b32.xlu0 %v7890_v29, %s7124_s25 }
  0xaf   : > { %v7898_v39 = vpop.permute.xlu1 %1586 }
  0xb0   : > { %14354 = vst [vmem:[#allocation71_spill] sm:$0xff] %v7898_v39  ;;  %v7900_v23 = vpop.permute.xlu0 %1584  ;;  %v433_v39 = vld [vmem:[%s8071_s22 + $0xe0] sm:$0xff] }
  0xb1   : > { %14355 = vst [vmem:[#allocation72_spill] sm:$0xff] %v7900_v23  ;;  %1774 = vrot.lane.b32.xlu1 %v7256_v1, %s7125_s26 }
  0xb2   : > { %1772 = vrot.lane.b32.xlu0 %v7253_v0, %s7125_s26 }
  0xb3   : > { %v7906_v55 = vpop.permute.xlu1 %1590 }
  0xb4   : > { %14356 = vst [vmem:[#allocation73_spill] sm:$0xff] %v7906_v55  ;;  %v7908_v51 = vpop.permute.xlu0 %1588 }
  0xb5   : > { %14357 = vst [vmem:[#allocation74_spill] sm:$0xff] %v7908_v51  ;;  %1778 = vrot.lane.b32.xlu1 %v7276_v11, %s7125_s26 }
  0xb6   : > { %1776 = vrot.lane.b32.xlu0 %v7286_v15, %s7125_s26 }
  0xb7   : > { %v7914_v31 = vpop.permute.xlu1 %1594 }
  0xb8   : > { %14358 = vst [vmem:[#allocation75_spill] sm:$0xff] %v7914_v31  ;;  %v7916_v23 = vpop.permute.xlu0 %1592 }
  0xb9   : > { %14359 = vst [vmem:[#allocation76_spill] sm:$0xff] %v7916_v23  ;;  %1782 = vrot.lane.b32.xlu1 %v7300_v22, %s7125_s26  ;;  %v430_v23 = vld [vmem:[%s8071_s22 + $0xc8] sm:$0xff] }
  0xba   : > { %1780 = vrot.lane.b32.xlu0 %v7306_v24, %s7125_s26 }
  0xbb   : > { %v7922_v0 = vpop.permute.xlu1 %1598 }
  0xbc   : > { %14360 = vst [vmem:[#allocation77_spill] sm:$0xff] %v7922_v0  ;;  %v7924_v1 = vpop.permute.xlu0 %1596  ;;  %v14448_v0 = vld [vmem:[#allocation35_spill] sm:$0xff] }
  0xbd   : > { %14361 = vst [vmem:[#allocation78_spill] sm:$0xff] %v7924_v1  ;;  %1786 = vrot.lane.b32.xlu1 %v7321_v30, %s7125_s26  ;;  %v14445_v1 = vld [vmem:[#allocation34_spill] sm:$0xff] }
  0xbe   : > { %1784 = vrot.lane.b32.xlu0 %v7327_v32, %s7125_s26 }
  0xbf   : > { %v7930_v11 = vpop.permute.xlu1 %1602 }
  0xc0   : > { %14362 = vst [vmem:[#allocation79_spill] sm:$0xff] %v7930_v11  ;;  %v7932_v15 = vpop.permute.xlu0 %1600 }
  0xc1   : > { %14363 = vst [vmem:[#allocation80_spill] sm:$0xff] %v7932_v15  ;;  %1790 = vrot.lane.b32.xlu1 %v7343_v38, %s7125_s26  ;;  %v426_v15 = vld [vmem:[%s8071_s22 + $0xa8] sm:$0xff] }
  0xc2   : > { %1788 = vrot.lane.b32.xlu0 %v7349_v40, %s7125_s26 }
  0xc3   : > { %v7938_v22 = vpop.permute.xlu1 %1606 }
  0xc4   : > { %14364 = vst [vmem:[#allocation81_spill] sm:$0xff] %v7938_v22  ;;  %v7940_v24 = vpop.permute.xlu0 %1604 }
  0xc5   : > { %14365 = vst [vmem:[#allocation82_spill] sm:$0xff] %v7940_v24  ;;  %1794 = vrot.lane.b32.xlu1 %v7365_v46, %s7125_s26  ;;  %v424_v24 = vld [vmem:[%s8071_s22 + $0x98] sm:$0xff] }
  0xc6   : > { %1792 = vrot.lane.b32.xlu0 %v7371_v48, %s7125_s26 }
  0xc7   : > { %v7946_v30 = vpop.permute.xlu1 %1610 }
  0xc8   : > { %14366 = vst [vmem:[#allocation83_spill] sm:$0xff] %v7946_v30  ;;  %v7948_v32 = vpop.permute.xlu0 %1608 }
  0xc9   : > { %14367 = vst [vmem:[#allocation84_spill] sm:$0xff] %v7948_v32  ;;  %1798 = vrot.lane.b32.xlu1 %v7387_v54, %s7125_s26  ;;  %v422_v32 = vld [vmem:[%s8071_s22 + $0x88] sm:$0xff] }
  0xca   : > { %1796 = vrot.lane.b32.xlu0 %v7393_v56, %s7125_s26 }
  0xcb   : > { %v7954_v38 = vpop.permute.xlu1 %1614 }
  0xcc   : > { %14368 = vst [vmem:[#allocation85_spill] sm:$0xff] %v7954_v38  ;;  %v7956_v40 = vpop.permute.xlu0 %1612 }
  0xcd   : > { %14369 = vst [vmem:[#allocation86_spill] sm:$0xff] %v7956_v40  ;;  %1802 = vrot.lane.b32.xlu1 %v7409_v62, %s7125_s26  ;;  %v420_v40 = vld [vmem:[%s8071_s22 + $0x78] sm:$0xff] }
  0xce   : > { %1800 = vrot.lane.b32.xlu0 %v7415_v3, %s7125_s26 }
  0xcf   : > { %v7962_v46 = vpop.permute.xlu1 %1618 }
  0xd0   : > { %14370 = vst [vmem:[#allocation87_spill] sm:$0xff] %v7962_v46  ;;  %v7964_v48 = vpop.permute.xlu0 %1616 }
  0xd1   : > { %14371 = vst [vmem:[#allocation88_spill] sm:$0xff] %v7964_v48  ;;  %1806 = vrot.lane.b32.xlu1 %v7431_v16, %s7125_s26  ;;  %v418_v48 = vld [vmem:[%s8071_s22 + $0x68] sm:$0xff] }
  0xd2   : > { %1804 = vrot.lane.b32.xlu0 %v7437_v19, %s7125_s26 }
  0xd3   : > { %v7970_v54 = vpop.permute.xlu1 %1622 }
  0xd4   : > { %14372 = vst [vmem:[#allocation89_spill] sm:$0xff] %v7970_v54  ;;  %v7972_v56 = vpop.permute.xlu0 %1620 }
  0xd5   : > { %14373 = vst [vmem:[#allocation90_spill] sm:$0xff] %v7972_v56  ;;  %1810 = vrot.lane.b32.xlu1 %v7453_v34, %s7125_s26  ;;  %v416_v56 = vld [vmem:[%s8071_s22 + $0x58] sm:$0xff] }
  0xd6   : > { %1808 = vrot.lane.b32.xlu0 %v7459_v37, %s7125_s26 }
  0xd7   : > { %v7978_v62 = vpop.permute.xlu1 %1626 }
  0xd8   : > { %14374 = vst [vmem:[#allocation91_spill] sm:$0xff] %v7978_v62  ;;  %v7980_v3 = vpop.permute.xlu0 %1624 }
  0xd9   : > { %14375 = vst [vmem:[#allocation92_spill] sm:$0xff] %v7980_v3  ;;  %1814 = vrot.lane.b32.xlu1 %v7475_v53, %s7125_s26  ;;  %v414_v3 = vld [vmem:[%s8071_s22 + $0x48] sm:$0xff] }
  0xda   : > { %1812 = vrot.lane.b32.xlu0 %v7481_v59, %s7125_s26 }
  0xdb   : > { %v7986_v16 = vpop.permute.xlu1 %1666 }
  0xdc   : > { %14376 = vst [vmem:[#allocation93_spill] sm:$0xff] %v7986_v16  ;;  %v7988_v19 = vpop.permute.xlu0 %1664 }
  0xdd   : > { %14377 = vst [vmem:[#allocation94_spill] sm:$0xff] %v7988_v19  ;;  %1818 = vrot.lane.b32.xlu1 %v7497_v26, %s7125_s26  ;;  %v412_v19 = vld [vmem:[%s8071_s22 + $0x38] sm:$0xff] }
  0xde   : > { %1816 = vrot.lane.b32.xlu0 %v7503_v50, %s7125_s26 }
  0xdf   : > { %v7994_v34 = vpop.permute.xlu1 %1670 }
  0xe0   : > { %14378 = vst [vmem:[#allocation95_spill] sm:$0xff] %v7994_v34  ;;  %v7996_v37 = vpop.permute.xlu0 %1668 }
  0xe1   : > { %14379 = vst [vmem:[#allocation96_spill] sm:$0xff] %v7996_v37  ;;  %1822 = vrot.lane.b32.xlu1 %v7519_v20, %s7125_s26  ;;  %v14409_v37 = vld [vmem:[#allocation16_spill] sm:$0xff] }
  0xe2   : > { %1820 = vrot.lane.b32.xlu0 %v7525_v13, %s7125_s26 }
  0xe3   : > { %v8002_v53 = vpop.permute.xlu1 %1674 }
  0xe4   : > { %14380 = vst [vmem:[#allocation97_spill] sm:$0xff] %v8002_v53  ;;  %v8004_v59 = vpop.permute.xlu0 %1672 }
  0xe5   : > { %14381 = vst [vmem:[#allocation98_spill] sm:$0xff] %v8004_v59  ;;  %1826 = vrot.lane.b32.xlu1 %v7541_v60, %s7125_s26  ;;  %v14404_v59 = vld [vmem:[#allocation13_spill] sm:$0xff] }
  0xe6   : > { %1824 = vrot.lane.b32.xlu0 %v7547_v42, %s7125_s26 }
  0xe7   : > { %v8010_v50 = vpop.permute.xlu1 %1678 }
  0xe8   : > { %14382 = vst [vmem:[#allocation99_spill] sm:$0xff] %v8010_v50  ;;  %v8012_v26 = vpop.permute.xlu0 %1676 }
  0xe9   : > { %14383 = vst [vmem:[#allocation100_spill] sm:$0xff] %v8012_v26  ;;  %1830 = vrot.lane.b32.xlu1 %v7563_v49, %s7125_s26  ;;  %v8035_v49 = vld [vmem:[%s7250_s23 + $0x1b8] sm:$0xff]  ;;  %v14401_v26 = vld [vmem:[#allocation12_spill] sm:$0xff] }
  0xea   : > { %1828 = vrot.lane.b32.xlu0 %v7569_v9, %s7125_s26  ;;  %v1238_v51 = vrot.slane %v8035_v49, 1 }
  0xeb   : > { %v8018_v20 = vpop.permute.xlu1 %1682 }
  0xec   : > { %14384 = vst [vmem:[#allocation101_spill] sm:$0xff] %v8018_v20  ;;  %v8020_v13 = vpop.permute.xlu0 %1680  ;;  %v14397_v20 = vld [vmem:[#allocation10_spill] sm:$0xff] }
  0xed   : > { %14385 = vst [vmem:[#allocation102_spill] sm:$0xff] %v8020_v13  ;;  %1834 = vrot.lane.b32.xlu1 %v7585_v36, %s7125_s26  ;;  %v8040_v13 = vld [vmem:[%s7250_s23 + $0x1b0] sm:$0xff] }
  0xee   : > { %1832 = vrot.lane.b32.xlu0 %v7591_v57, %s7125_s26 }
  0xef   : > { %v8026_v60 = vpop.permute.xlu1 %1686 }
  0xf0   : > { %14386 = vst [vmem:[#allocation103_spill] sm:$0xff] %v8026_v60  ;;  %v8028_v42 = vpop.permute.xlu0 %1684  ;;  %v14396_v60 = vld [vmem:[#allocation9_spill] sm:$0xff] }
  0xf1   : > { %14387 = vst [vmem:[#allocation104_spill] sm:$0xff] %v8028_v42  ;;  %1838 = vrot.lane.b32.xlu1 %v7607_v25, %s7125_s26 }
  0xf2   : > { %1836 = vrot.lane.b32.xlu0 %v7613_v21, %s7125_s26  ;;  %v14392_v21 = vld [vmem:[#allocation8_spill] sm:$0xff] }
  0xf3   : > { %v8037_v9 = vpop.permute.xlu1 %1690 }
  0xf4   : > { %14388 = vst [vmem:[#allocation105_spill] sm:$0xff] %v8037_v9  ;;  %v8042_v36 = vpop.permute.xlu0 %1688  ;;  %v14393_v9 = vld [vmem:[#allocation7_spill] sm:$0xff] }
  0xf5   : > { %14389 = vst [vmem:[#allocation106_spill] sm:$0xff] %v8042_v36  ;;  %1842 = vrot.lane.b32.xlu1 %v8035_v49, %s7125_s26 }
  0xf6   : > { %1840 = vrot.lane.b32.xlu0 %v8040_v13, %s7125_s26 }
  0xf7   : > { %v8048_v57 = vpop.permute.xlu1 %1694 }
  0xf8   : > { %14390 = vst [vmem:[#allocation107_spill] sm:$0xff] %v8048_v57  ;;  %v8050_v25 = vpop.permute.xlu0 %1692  ;;  %v14400_v57 = vld [vmem:[#allocation11_spill] sm:$0xff] }
  0xf9   : > { %14391 = vst [vmem:[#allocation108_spill] sm:$0xff] %v8050_v25  ;;  %1882 = vrot.lane.b32.xlu1 %v14392_v21, %s14192_s11  ;;  %v445_v25 = vld [vmem:[%s13979_s2] sm:$0xff] }
  0xfa   : > { %1880 = vrot.lane.b32.xlu0 %v14393_v9, %s14192_s11  ;;  %6615 = vmatprep.subr.mxu0 %v445_v25  ;;  %v405_v21 = vld [vmem:[%s8071_s22] sm:$0xff] }
  0xfb   : > { %v8056_v42 = vpop.permute.xlu1 %1698  ;;  %6831 = vmatprep.subr.mxu1 %v445_v25  ;;  %6616 = vmatpush3.msra.mxu0 %v445_v25 }
  0xfc   : > { %14394 = vst [vmem:[#allocation8_spill] sm:$0xff] %v8056_v42  ;;  %v8058_v36 = vpop.permute.xlu0 %1696  ;;  %6617 = vmatprep.mubr.msk.f32.mxu0 %vm453_vm2, %v405_v21  ;;  %v406_v42 = vld [vmem:[%s8071_s22 + $0x8] sm:$0xff]  ;;  %6832 = vmatpush3.msra.mxu1 %v445_v25  ;;  %v408_v21 = vld [vmem:[%s8071_s22 + $0x18] sm:$0xff] }
  0xfd   : > { %14395 = vst [vmem:[#allocation7_spill] sm:$0xff] %v8058_v36  ;;  %1886 = vrot.lane.b32.xlu1 %v14396_v60, %s14192_s11  ;;  %6618 = vmatmul.mubr.msk.f32.vlgmr.msra.gmra.mrb[0].mxu0 %vm453_vm2, %v406_v42  ;;  %v14405_v42 = vld [vmem:[#allocation14_spill] sm:$0xff] }
  0xfe   : > { %1884 = vrot.lane.b32.xlu0 %v14397_v20, %s14192_s11 }
  0xff   : > { %v8073_v9 = vpop.permute.xlu1 %1702 }
 0x100   : > { %14398 = vst [vmem:[#allocation9_spill] sm:$0xff] %v8073_v9  ;;  %v8076_v36 = vpop.permute.xlu0 %1700  ;;  %v407_v9 = vld [vmem:[%s8071_s22 + $0x10] sm:$0xff] }
 0x101   : > { %14399 = vst [vmem:[#allocation10_spill] sm:$0xff] %v8076_v36  ;;  %1890 = vrot.lane.b32.xlu1 %v14400_v57, %s14192_s11  ;;  %6620 = vmatprep.mubr.msk.f32.mxu0 %vm453_vm2, %v407_v9  ;;  %v14408_v9 = vld [vmem:[#allocation15_spill] sm:$0xff] }
 0x102   : > { %1888 = vrot.lane.b32.xlu0 %v14401_v26, %s14192_s11  ;;  %6621 = vmatmul.mubr.msk.f32.gmra.mrb[2].mxu0 %vm453_vm2, %v408_v21 }
 0x103   : > { %v8086_v50 = vpop.permute.xlu1 %1706 }
 0x104   : > { %14402 = vst [vmem:[#allocation11_spill] sm:$0xff] %v8086_v50  ;;  %v8089_v36 = vpop.permute.xlu0 %1704  ;;  %v409_v50 = vld [vmem:[%s8071_s22 + $0x20] sm:$0xff] }
 0x105   : > { %14403 = vst [vmem:[#allocation12_spill] sm:$0xff] %v8089_v36  ;;  %1894 = vrot.lane.b32.xlu1 %v14404_v59, %s14192_s11  ;;  %6623 = vmatprep.mubr.msk.f32.mxu0 %vm453_vm2, %v409_v50  ;;  %v410_v36 = vld [vmem:[%s8071_s22 + $0x28] sm:$0xff]  ;;  %v14413_v50 = vld [vmem:[#allocation18_spill] sm:$0xff] }
 0x106   : > { %1892 = vrot.lane.b32.xlu0 %v14405_v42, %s14192_s11  ;;  %6624 = vmatmul.mubr.msk.f32.gmra.mrb[4].mxu0 %vm453_vm2, %v410_v36 }
 0x107   : > { %v8097_v53 = vpop.permute.xlu1 %1710 }
 0x108   : > { %14406 = vst [vmem:[#allocation13_spill] sm:$0xff] %v8097_v53  ;;  %v8099_v25 = vpop.permute.xlu0 %1708  ;;  %v411_v53 = vld [vmem:[%s8071_s22 + $0x30] sm:$0xff] }
 0x109   : > { %14407 = vst [vmem:[#allocation14_spill] sm:$0xff] %v8099_v25  ;;  %1898 = vrot.lane.b32.xlu1 %v14408_v9, %s14192_s11  ;;  %v14412_v25 = vld [vmem:[#allocation17_spill] sm:$0xff]  ;;  %6626 = vmatprep.mubr.msk.f32.mxu0 %vm453_vm2, %v411_v53  ;;  %v14417_v53 = vld [vmem:[#allocation20_spill] sm:$0xff] }
 0x10a   : > { %1896 = vrot.lane.b32.xlu0 %v14409_v37, %s14192_s11  ;;  %6627 = vmatmul.mubr.msk.f32.gmra.mrb[6].mxu0 %vm453_vm2, %v412_v19 }
 0x10b   : > { %v8109_v21 = vpop.permute.xlu1 %1714 }
 0x10c   : > { %14410 = vst [vmem:[#allocation15_spill] sm:$0xff] %v8109_v21  ;;  %v8111_v34 = vpop.permute.xlu0 %1712  ;;  %v413_v21 = vld [vmem:[%s8071_s22 + $0x40] sm:$0xff] }
 0x10d   : > { %14411 = vst [vmem:[#allocation16_spill] sm:$0xff] %v8111_v34  ;;  %1902 = vrot.lane.b32.xlu1 %v14412_v25, %s14192_s11  ;;  %v14416_v34 = vld [vmem:[#allocation19_spill] sm:$0xff]  ;;  %6629 = vmatprep.mubr.msk.f32.mxu0 %vm453_vm2, %v413_v21  ;;  %v14421_v21 = vld [vmem:[#allocation22_spill] sm:$0xff] }
 0x10e   : > { %1900 = vrot.lane.b32.xlu0 %v14413_v50, %s14192_s11  ;;  %6630 = vmatmul.mubr.msk.f32.gmra.mrb[8].mxu0 %vm453_vm2, %v414_v3 }
 0x10f   : > { %v8121_v16 = vpop.permute.xlu1 %1718 }
 0x110   : > { %14414 = vst [vmem:[#allocation17_spill] sm:$0xff] %v8121_v16  ;;  %v8123_v36 = vpop.permute.xlu0 %1716  ;;  %v415_v16 = vld [vmem:[%s8071_s22 + $0x50] sm:$0xff] }
 0x111   : > { %14415 = vst [vmem:[#allocation18_spill] sm:$0xff] %v8123_v36  ;;  %1906 = vrot.lane.b32.xlu1 %v14416_v34, %s14192_s11  ;;  %v14420_v36 = vld [vmem:[#allocation21_spill] sm:$0xff]  ;;  %6632 = vmatprep.mubr.msk.f32.mxu0 %vm453_vm2, %v415_v16  ;;  %v14425_v16 = vld [vmem:[#allocation24_spill] sm:$0xff] }
 0x112   : > { %1904 = vrot.lane.b32.xlu0 %v14417_v53, %s14192_s11  ;;  %6633 = vmatmul.mubr.msk.f32.gmra.mrb[10].mxu0 %vm453_vm2, %v416_v56 }
 0x113   : > { %v8133_v62 = vpop.permute.xlu1 %1722 }
 0x114   : > { %14418 = vst [vmem:[#allocation19_spill] sm:$0xff] %v8133_v62  ;;  %v8135_v19 = vpop.permute.xlu0 %1720  ;;  %v417_v62 = vld [vmem:[%s8071_s22 + $0x60] sm:$0xff] }
 0x115   : > { %14419 = vst [vmem:[#allocation20_spill] sm:$0xff] %v8135_v19  ;;  %1910 = vrot.lane.b32.xlu1 %v14420_v36, %s14192_s11  ;;  %v14424_v19 = vld [vmem:[#allocation23_spill] sm:$0xff]  ;;  %6635 = vmatprep.mubr.msk.f32.mxu0 %vm453_vm2, %v417_v62  ;;  %v14429_v62 = vld [vmem:[#allocation26_spill] sm:$0xff] }
 0x116   : > { %1908 = vrot.lane.b32.xlu0 %v14421_v21, %s14192_s11  ;;  %6636 = vmatmul.mubr.msk.f32.gmra.mrb[12].mxu0 %vm453_vm2, %v418_v48 }
 0x117   : > { %v8145_v54 = vpop.permute.xlu1 %1726 }
 0x118   : > { %14422 = vst [vmem:[#allocation21_spill] sm:$0xff] %v8145_v54  ;;  %v8147_v3 = vpop.permute.xlu0 %1724  ;;  %v419_v54 = vld [vmem:[%s8071_s22 + $0x70] sm:$0xff] }
 0x119   : > { %14423 = vst [vmem:[#allocation22_spill] sm:$0xff] %v8147_v3  ;;  %1914 = vrot.lane.b32.xlu1 %v14424_v19, %s14192_s11  ;;  %v14428_v3 = vld [vmem:[#allocation25_spill] sm:$0xff]  ;;  %6638 = vmatprep.mubr.msk.f32.mxu0 %vm453_vm2, %v419_v54  ;;  %v14433_v54 = vld [vmem:[#allocation28_spill] sm:$0xff] }
 0x11a   : > { %1912 = vrot.lane.b32.xlu0 %v14425_v16, %s14192_s11  ;;  %6639 = vmatmul.mubr.msk.f32.gmra.mrb[14].mxu0 %vm453_vm2, %v420_v40 }
 0x11b   : > { %v8157_v46 = vpop.permute.xlu1 %1730 }
 0x11c   : > { %14426 = vst [vmem:[#allocation23_spill] sm:$0xff] %v8157_v46  ;;  %v8159_v56 = vpop.permute.xlu0 %1728  ;;  %v421_v46 = vld [vmem:[%s8071_s22 + $0x80] sm:$0xff] }
 0x11d   : > { %14427 = vst [vmem:[#allocation24_spill] sm:$0xff] %v8159_v56  ;;  %1918 = vrot.lane.b32.xlu1 %v14428_v3, %s14192_s11  ;;  %v14432_v56 = vld [vmem:[#allocation27_spill] sm:$0xff]  ;;  %6641 = vmatprep.mubr.msk.f32.mxu0 %vm453_vm2, %v421_v46  ;;  %v14437_v46 = vld [vmem:[#allocation30_spill] sm:$0xff] }
 0x11e   : > { %1916 = vrot.lane.b32.xlu0 %v14429_v62, %s14192_s11  ;;  %6642 = vmatmul.mubr.msk.f32.gmra.mrb[16].mxu0 %vm453_vm2, %v422_v32 }
 0x11f   : > { %v8169_v38 = vpop.permute.xlu1 %1734 }
 0x120   : > { %14430 = vst [vmem:[#allocation25_spill] sm:$0xff] %v8169_v38  ;;  %v8171_v48 = vpop.permute.xlu0 %1732  ;;  %v423_v38 = vld [vmem:[%s8071_s22 + $0x90] sm:$0xff] }
 0x121   : > { %14431 = vst [vmem:[#allocation26_spill] sm:$0xff] %v8171_v48  ;;  %1922 = vrot.lane.b32.xlu1 %v14432_v56, %s14192_s11  ;;  %v14436_v48 = vld [vmem:[#allocation29_spill] sm:$0xff]  ;;  %6644 = vmatprep.mubr.msk.f32.mxu0 %vm453_vm2, %v423_v38  ;;  %v14441_v38 = vld [vmem:[#allocation32_spill] sm:$0xff] }
 0x122   : > { %1920 = vrot.lane.b32.xlu0 %v14433_v54, %s14192_s11  ;;  %6645 = vmatmul.mubr.msk.f32.gmra.mrb[18].mxu0 %vm453_vm2, %v424_v24 }
 0x123   : > { %v8181_v30 = vpop.permute.xlu1 %1774 }
 0x124   : > { %14434 = vst [vmem:[#allocation27_spill] sm:$0xff] %v8181_v30  ;;  %v8183_v40 = vpop.permute.xlu0 %1772  ;;  %v425_v30 = vld [vmem:[%s8071_s22 + $0xa0] sm:$0xff] }
 0x125   : > { %14435 = vst [vmem:[#allocation28_spill] sm:$0xff] %v8183_v40  ;;  %1926 = vrot.lane.b32.xlu1 %v14436_v48, %s14192_s11  ;;  %v14440_v40 = vld [vmem:[#allocation31_spill] sm:$0xff]  ;;  %6647 = vmatprep.mubr.msk.f32.mxu0 %vm453_vm2, %v425_v30  ;;  %v428_v30 = vld [vmem:[%s8071_s22 + $0xb8] sm:$0xff] }
 0x126   : > { %1924 = vrot.lane.b32.xlu0 %v14437_v46, %s14192_s11  ;;  %6648 = vmatmul.mubr.msk.f32.gmra.mrb[20].mxu0 %vm453_vm2, %v426_v15 }
 0x127   : > { %v8193_v22 = vpop.permute.xlu1 %1778 }
 0x128   : > { %14438 = vst [vmem:[#allocation29_spill] sm:$0xff] %v8193_v22  ;;  %v8195_v32 = vpop.permute.xlu0 %1776  ;;  %v14444_v22 = vld [vmem:[#allocation33_spill] sm:$0xff] }
 0x129   : > { %14439 = vst [vmem:[#allocation30_spill] sm:$0xff] %v8195_v32  ;;  %1930 = vrot.lane.b32.xlu1 %v14440_v40, %s14192_s11  ;;  %v427_v32 = vld [vmem:[%s8071_s22 + $0xb0] sm:$0xff] }
 0x12a   : > { %1928 = vrot.lane.b32.xlu0 %v14441_v38, %s14192_s11  ;;  %6650 = vmatprep.mubr.msk.f32.mxu1 %vm453_vm2, %v427_v32  ;;  %v14449_v32 = vld [vmem:[#allocation36_spill] sm:$0xff] }
 0x12b   : > { %v8205_v11 = vpop.permute.xlu1 %1782  ;;  %6651 = vmatmul.mubr.msk.f32.vlgmr.msra.gmra.mrb[0].mxu1 %vm453_vm2, %v428_v30  ;;  %v8232_v30 = vld [vmem:[%s7250_s23 + $0x1c0] sm:$0x3] }
 0x12c   : > { %14442 = vst [vmem:[#allocation31_spill] sm:$0xff] %v8205_v11  ;;  %v8207_v24 = vpop.permute.xlu0 %1780 }
 0x12d   : > { %14443 = vst [vmem:[#allocation32_spill] sm:$0xff] %v8207_v24  ;;  %1934 = vrot.lane.b32.xlu1 %v14444_v22, %s14192_s11  ;;  %v429_v24 = vld [vmem:[%s8071_s22 + $0xc0] sm:$0xff] }
 0x12e   : > { %1932 = vrot.lane.b32.xlu0 %v14445_v1, %s14192_s11  ;;  %6653 = vmatprep.mubr.msk.f32.mxu1 %vm453_vm2, %v429_v24  ;;  %v432_v24 = vld [vmem:[%s8071_s22 + $0xd8] sm:$0xff] }
 0x12f   : > { %v8217_v15 = vpop.permute.xlu1 %1786  ;;  %6654 = vmatmul.mubr.msk.f32.gmra.mrb[2].mxu1 %vm453_vm2, %v430_v23  ;;  %v1240_v23 = vrot.slane %v8232_v30, 1 }
 0x130   : > { %14446 = vst [vmem:[#allocation33_spill] sm:$0xff] %v8217_v15  ;;  %v8219_v11 = vpop.permute.xlu0 %1784 }
 0x131   : > { %14447 = vst [vmem:[#allocation34_spill] sm:$0xff] %v8219_v11  ;;  %1938 = vrot.lane.b32.xlu1 %v14448_v0, %s14192_s11  ;;  %v431_v11 = vld [vmem:[%s8071_s22 + $0xd0] sm:$0xff] }
 0x132   : > { %1936 = vrot.lane.b32.xlu0 %v14449_v32, %s14192_s11  ;;  %6656 = vmatprep.mubr.msk.f32.mxu1 %vm453_vm2, %v431_v11  ;;  %v434_v11 = vld [vmem:[%s8071_s22 + $0xe8] sm:$0xff] }
 0x133   : > { %v8229_v31 = vpop.permute.xlu1 %1790  ;;  %6657 = vmatmul.mubr.msk.f32.gmra.mrb[4].mxu1 %vm453_vm2, %v432_v24  ;;  %v8259_v24 = vsel %vm1052_vm0, %v1238_v51, %v1240_v23 }
 0x134   : > { %14450 = vst [vmem:[#allocation35_spill] sm:$0xff] %v8229_v31  ;;  %v8234_v15 = vpop.permute.xlu0 %1788  ;;  %v1237_v31 = vrot.slane %v8040_v13, 1  ;;  %6659 = vmatprep.mubr.msk.f32.mxu1 %vm453_vm2, %v433_v39  ;;  %v436_v39 = vld [vmem:[%s8071_s22 + $0xf8] sm:$0xff] }
 0x135   : > { %14451 = vst [vmem:[#allocation36_spill] sm:$0xff] %v8234_v15  ;;  %1942 = vrot.lane.b32.xlu1 %v7620_v6, %s14192_s11 }
 0x136   : > { %1940 = vrot.lane.b32.xlu0 %v7625_v44, %s14192_s11 }
 0x137   : > { %v8247_v15 = vpop.permute.xlu1 %1794  ;;  %6660 = vmatmul.mubr.msk.f32.gmra.mrb[6].mxu1 %vm453_vm2, %v434_v11  ;;  %v438_v11 = vld [vmem:[%s8071_s22 + $0x108] sm:$0xff] }
 0x138   : > { %14452 = vst [vmem:[#allocation109_spill] sm:$0xff] %v8247_v15  ;;  %v8249_v55 = vpop.permute.xlu0 %1792  ;;  %6662 = vmatprep.mubr.msk.f32.mxu1 %vm453_vm2, %v435_v7 }
 0x139   : > { %14453 = vst [vmem:[#allocation110_spill] sm:$0xff] %v8249_v55  ;;  %1946 = vrot.lane.b32.xlu1 %v7633_v33, %s14192_s11  ;;  %v8265_v55 = vsel %vm1052_vm0, %v1237_v31, %v1238_v51  ;;  %v437_v31 = vld [vmem:[%s8071_s22 + $0x100] sm:$0xff] }
 0x13a   : > { %1944 = vrot.lane.b32.xlu0 %v14454_v8, %s14192_s11 }
 0x13b   : > { %v8262_v15 = vpop.permute.xlu1 %1798  ;;  %6663 = vmatmul.mubr.msk.f32.gmra.mrb[8].mxu1 %vm453_vm2, %v436_v39 }
 0x13c   : > { %14455 = vst [vmem:[#allocation38_spill] sm:$0xff] %v8262_v15  ;;  %v8267_v61 = vpop.permute.xlu0 %1796  ;;  %6665 = vmatprep.mubr.msk.f32.mxu1 %vm453_vm2, %v437_v31  ;;  %v14463_v31 = vld [vmem:[#allocation39_spill] sm:$0xff] }
 0x13d   : > { %14456 = vst [vmem:[#allocation111_spill] sm:$0xff] %v8267_v61  ;;  %1950 = vrot.lane.b32.xlu1 %v8259_v24, %s14192_s11 }
 0x13e   : > { %1948 = vrot.lane.b32.xlu0 %v8265_v55, %s14192_s11  ;;  %s15706_s11 = smov 32  }
 0x13f   : > { %v8277_v23 = vpop.permute.xlu1 %1802  ;;  %6666 = vmatmul.mubr.msk.f32.gmra.mrb[10].mxu1 %vm453_vm2, %v438_v11 }
 0x140   : > { %14457 = vst [vmem:[#allocation112_spill] sm:$0xff] %v8277_v23  ;;  %v8279_v51 = vpop.permute.xlu0 %1800  ;;  %v439_v23 = vld [vmem:[%s8071_s22 + $0x110] sm:$0xff] }
 0x141   : > { %14458 = vst [vmem:[#allocation113_spill] sm:$0xff] %v8279_v51  ;;  %1990 = vrot.lane.b32.xlu1 %v7653_v2, %s14190_s19  ;;  %6668 = vmatprep.mubr.msk.f32.mxu1 %vm453_vm2, %v439_v23  ;;  %v440_v51 = vld [vmem:[%s8071_s22 + $0x118] sm:$0xff]  ;;  %v14466_v23 = vld [vmem:[#allocation40_spill] sm:$0xff] }
 0x142   : > { %1988 = vrot.lane.b32.xlu0 %v7658_v12, %s14190_s19 }
 0x143   : > { %v8289_v7 = vpop.permute.xlu1 %1806  ;;  %6669 = vmatmul.mubr.msk.f32.gmra.mrb[12].mxu1 %vm453_vm2, %v440_v51 }
 0x144   : > { %14459 = vst [vmem:[#allocation114_spill] sm:$0xff] %v8289_v7  ;;  %v8291_v39 = vpop.permute.xlu0 %1804 }
 0x145   : > { %14460 = vst [vmem:[#allocation115_spill] sm:$0xff] %v8291_v39  ;;  %1994 = vrot.lane.b32.xlu1 %v7666_v27, %s14190_s19 }
 0x146   : > { %1992 = vrot.lane.b32.xlu0 %v7671_v14, %s14190_s19 }
 0x147   : > { %v8301_v2 = vpop.permute.xlu1 %1810 }
 0x148   : > { %14461 = vst [vmem:[#allocation116_spill] sm:$0xff] %v8301_v2  ;;  %v8303_v12 = vpop.permute.xlu0 %1808 }
 0x149   : > { %14462 = vst [vmem:[#allocation117_spill] sm:$0xff] %v8303_v12  ;;  %1998 = vrot.lane.b32.xlu1 %v7679_v5, %s14190_s19  ;;  %v14469_v12 = vld [vmem:[#allocation41_spill] sm:$0xff] }
 0x14a   : > { %1996 = vrot.lane.b32.xlu0 %v14463_v31, %s14190_s19 }
 0x14b   : > { %v8309_v11 = vpop.permute.xlu1 %1814 }
 0x14c   : > { %14464 = vst [vmem:[#allocation39_spill] sm:$0xff] %v8309_v11  ;;  %v8311_v39 = vpop.permute.xlu0 %1812 }
 0x14d   : > { %14465 = vst [vmem:[#allocation118_spill] sm:$0xff] %v8311_v39  ;;  %2002 = vrot.lane.b32.xlu1 %v7692_v43, %s14190_s19  ;;  %v14472_v39 = vld [vmem:[#allocation42_spill] sm:$0xff] }
 0x14e   : > { %2000 = vrot.lane.b32.xlu0 %v14466_v23, %s14190_s19 }
 0x14f   : > { %v8317_v51 = vpop.permute.xlu1 %1818 }
 0x150   : > { %14467 = vst [vmem:[#allocation40_spill] sm:$0xff] %v8317_v51  ;;  %v8319_v2 = vpop.permute.xlu0 %1816 }
 0x151   : > { %14468 = vst [vmem:[#allocation119_spill] sm:$0xff] %v8319_v2  ;;  %2006 = vrot.lane.b32.xlu1 %v7705_v4, %s14190_s19  ;;  %v14475_v2 = vld [vmem:[#allocation44_spill] sm:$0xff] }
 0x152   : > { %2004 = vrot.lane.b32.xlu0 %v14469_v12, %s14190_s19 }
 0x153   : > { %v8325_v7 = vpop.permute.xlu1 %1822 }
 0x154   : > { %14470 = vst [vmem:[#allocation41_spill] sm:$0xff] %v8325_v7  ;;  %v8327_v11 = vpop.permute.xlu0 %1820 }
 0x155   : > { %14471 = vst [vmem:[#allocation120_spill] sm:$0xff] %v8327_v11  ;;  %2010 = vrot.lane.b32.xlu1 %v7718_v41, %s14190_s19  ;;  %v14478_v11 = vld [vmem:[#allocation45_spill] sm:$0xff] }
 0x156   : > { %2008 = vrot.lane.b32.xlu0 %v14472_v39, %s14190_s19 }
 0x157   : > { %v8333_v61 = vpop.permute.xlu1 %1826 }
 0x158   : > { %14473 = vst [vmem:[#allocation121_spill] sm:$0xff] %v8333_v61  ;;  %v8335_v51 = vpop.permute.xlu0 %1824 }
 0x159   : > { %14474 = vst [vmem:[#allocation122_spill] sm:$0xff] %v8335_v51  ;;  %2014 = vrot.lane.b32.xlu1 %v7731_v28, %s14190_s19  ;;  %v14481_v51 = vld [vmem:[#allocation46_spill] sm:$0xff]  ;;  %v14482_v28 = vld [vmem:[#allocation47_spill] sm:$0xff] }
 0x15a   : > { %2012 = vrot.lane.b32.xlu0 %v14475_v2, %s14190_s19 }
 0x15b   : > { %v8341_v15 = vpop.permute.xlu1 %1830 }
 0x15c   : > { %14476 = vst [vmem:[#allocation123_spill] sm:$0xff] %v8341_v15  ;;  %v8343_v7 = vpop.permute.xlu0 %1828 }
 0x15d   : > { %14477 = vst [vmem:[#allocation124_spill] sm:$0xff] %v8343_v7  ;;  %2018 = vrot.lane.b32.xlu1 %v7744_v10, %s14190_s19  ;;  %v14485_v7 = vld [vmem:[#allocation48_spill] sm:$0xff] }
 0x15e   : > { %2016 = vrot.lane.b32.xlu0 %v14478_v11, %s14190_s19 }
 0x15f   : > { %v8349_v39 = vpop.permute.xlu1 %1834 }
 0x160   : > { %14479 = vst [vmem:[#allocation125_spill] sm:$0xff] %v8349_v39  ;;  %v8351_v61 = vpop.permute.xlu0 %1832 }
 0x161   : > { %14480 = vst [vmem:[#allocation126_spill] sm:$0xff] %v8351_v61  ;;  %2022 = vrot.lane.b32.xlu1 %v14481_v51, %s14190_s19  ;;  %v14488_v61 = vld [vmem:[#allocation50_spill] sm:$0xff] }
 0x162   : > { %2020 = vrot.lane.b32.xlu0 %v14482_v28, %s14190_s19 }
 0x163   : > { %v8357_v2 = vpop.permute.xlu1 %1838 }
 0x164   : > { %14483 = vst [vmem:[#allocation46_spill] sm:$0xff] %v8357_v2  ;;  %v8359_v15 = vpop.permute.xlu0 %1836 }
 0x165   : > { %14484 = vst [vmem:[#allocation127_spill] sm:$0xff] %v8359_v15  ;;  %2026 = vrot.lane.b32.xlu1 %v7770_v17, %s14190_s19  ;;  %v14491_v15 = vld [vmem:[#allocation54_spill] sm:$0xff] }
 0x166   : > { %2024 = vrot.lane.b32.xlu0 %v14485_v7, %s14190_s19 }
 0x167   : > { %v8365_v11 = vpop.permute.xlu1 %1842 }
 0x168   : > { %14486 = vst [vmem:[#allocation128_spill] sm:$0xff] %v8365_v11  ;;  %v8367_v39 = vpop.permute.xlu0 %1840 }
 0x169   : > { %14487 = vst [vmem:[#allocation129_spill] sm:$0xff] %v8367_v39  ;;  %2030 = vrot.lane.b32.xlu1 %v7783_v52, %s14190_s19  ;;  %v14494_v39 = vld [vmem:[#allocation57_spill] sm:$0xff] }
 0x16a   : > { %2028 = vrot.lane.b32.xlu0 %v14488_v61, %s14190_s19 }
 0x16b   : > { %v8373_v28 = vpop.permute.xlu1 %1882 }
 0x16c   : > { %14489 = vst [vmem:[#allocation130_spill] sm:$0xff] %v8373_v28  ;;  %v8375_v2 = vpop.permute.xlu0 %1880 }
 0x16d   : > { %14490 = vst [vmem:[#allocation131_spill] sm:$0xff] %v8375_v2  ;;  %2034 = vrot.lane.b32.xlu1 %v7800_v63, %s14190_s19  ;;  %v14497_v2 = vld [vmem:[#allocation59_spill] sm:$0xff]  ;;  %v14498_v63 = vld [vmem:[#allocation61_spill] sm:$0xff] }
 0x16e   : > { %2032 = vrot.lane.b32.xlu0 %v14491_v15, %s14190_s19 }
 0x16f   : > { %v8381_v7 = vpop.permute.xlu1 %1886 }
 0x170   : > { %14492 = vst [vmem:[#allocation132_spill] sm:$0xff] %v8381_v7  ;;  %v8383_v11 = vpop.permute.xlu0 %1884 }
 0x171   : > { %14493 = vst [vmem:[#allocation133_spill] sm:$0xff] %v8383_v11  ;;  %2038 = vrot.lane.b32.xlu1 %v7817_v18, %s14190_s19  ;;  %v14501_v11 = vld [vmem:[#allocation65_spill] sm:$0xff] }
 0x172   : > { %2036 = vrot.lane.b32.xlu0 %v14494_v39, %s14190_s19 }
 0x173   : > { %v8389_v61 = vpop.permute.xlu1 %1890 }
 0x174   : > { %14495 = vst [vmem:[#allocation134_spill] sm:$0xff] %v8389_v61  ;;  %v8391_v28 = vpop.permute.xlu0 %1888 }
 0x175   : > { %14496 = vst [vmem:[#allocation135_spill] sm:$0xff] %v8391_v28  ;;  %2042 = vrot.lane.b32.xlu1 %v14497_v2, %s14190_s19  ;;  %v1243_v28 = vrot.slane %v8035_v49, 2 }
 0x176   : > { %2040 = vrot.lane.b32.xlu0 %v14498_v63, %s14190_s19 }
 0x177   : > { %v8397_v15 = vpop.permute.xlu1 %1894 }
 0x178   : > { %14499 = vst [vmem:[#allocation59_spill] sm:$0xff] %v8397_v15  ;;  %v8399_v7 = vpop.permute.xlu0 %1892  ;;  %v1242_v15 = vrot.slane %v8040_v13, 2 }
 0x179   : > { %14500 = vst [vmem:[#allocation61_spill] sm:$0xff] %v8399_v7  ;;  %2046 = vrot.lane.b32.xlu1 %v7851_v35, %s14190_s19  ;;  %v1245_v7 = vrot.slane %v8232_v30, 2 }
 0x17a   : > { %2044 = vrot.lane.b32.xlu0 %v14501_v11, %s14190_s19  ;;  %v8430_v30 = vsel %vm1143_vm1, %v1242_v15, %v1243_v28 }
 0x17b   : > { %v8405_v39 = vpop.permute.xlu1 %1898  ;;  %14507 = vst [vmem:[#allocation141_spill] sm:$0xff] %v8430_v30 }
 0x17c   : > { %14502 = vst [vmem:[#allocation136_spill] sm:$0xff] %v8405_v39  ;;  %v8407_v61 = vpop.permute.xlu0 %1896 }
 0x17d   : > { %14503 = vst [vmem:[#allocation137_spill] sm:$0xff] %v8407_v61  ;;  %2050 = vrot.lane.b32.xlu1 %v7868_v58, %s14190_s19  ;;  %v8425_v61 = vsel %vm1143_vm1, %v1243_v28, %v1245_v7  ;;  %v6910_v7 = vld [vmem:[%s7250_s23 + $0x38] sm:$0xff]  ;;  %v6911_v28 = vld [vmem:[%s7250_s23 + $0x30] sm:$0xff] }
 0x17e   : > { %2048 = vrot.lane.b32.xlu0 %v7875_v45, %s14190_s19 }
 0x17f   : > { %v8416_v35 = vpop.permute.xlu1 %1902 }
 0x180   : > { %14504 = vst [vmem:[#allocation138_spill] sm:$0xff] %v8416_v35  ;;  %v8418_v11 = vpop.permute.xlu0 %1900 }
 0x181   : > { %14505 = vst [vmem:[#allocation139_spill] sm:$0xff] %v8418_v11  ;;  %2054 = vrot.lane.b32.xlu1 %v7885_v47, %s14190_s19 }
 0x182   : > { %2052 = vrot.lane.b32.xlu0 %v7890_v29, %s14190_s19 }
 0x183   : > { %v8427_v39 = vpop.permute.xlu1 %1906 }
 0x184   : > { %14506 = vst [vmem:[#allocation140_spill] sm:$0xff] %v8427_v39  ;;  %v8432_v45 = vpop.permute.xlu0 %1904  ;;  %v6912_v39 = vld [vmem:[%s7250_s23 + $0x50] sm:$0xff] }
 0x185   : > { %14508 = vst [vmem:[#allocation142_spill] sm:$0xff] %v8432_v45  ;;  %2058 = vrot.lane.b32.xlu1 %v8425_v61, %s14190_s19 }
 0x186   : > { %2056 = vrot.lane.b32.xlu0 %v8430_v30, %s14190_s19  ;;  %v6914_v30 = vld [vmem:[%s7250_s23 + $0x68] sm:$0xff] }
 0x187   : > { %v8438_v11 = vpop.permute.xlu1 %1910 }
 0x188   : > { %14509 = vst [vmem:[#allocation143_spill] sm:$0xff] %v8438_v11  ;;  %v8440_v35 = vpop.permute.xlu0 %1908  ;;  %v6913_v11 = vld [vmem:[%s7250_s23 + $0x48] sm:$0xff] }
 0x189   : > { %14510 = vst [vmem:[#allocation144_spill] sm:$0xff] %v8440_v35  ;;  %2098 = vrot.lane.b32.xlu1 %v6910_v7, %s14188_s12 }
 0x18a   : > { %2096 = vrot.lane.b32.xlu0 %v6911_v28, %s14188_s12  ;;  %v6915_v28 = vld [vmem:[%s7250_s23 + $0x60] sm:$0xff] }
 0x18b   : > { %v8446_v15 = vpop.permute.xlu1 %1914 }
 0x18c   : > { %14511 = vst [vmem:[#allocation145_spill] sm:$0xff] %v8446_v15  ;;  %v8448_v45 = vpop.permute.xlu0 %1912  ;;  %v6916_v15 = vld [vmem:[%s7250_s23 + $0x80] sm:$0xff] }
 0x18d   : > { %14512 = vst [vmem:[#allocation146_spill] sm:$0xff] %v8448_v45  ;;  %2102 = vrot.lane.b32.xlu1 %v6912_v39, %s14188_s12 }
 0x18e   : > { %2100 = vrot.lane.b32.xlu0 %v6913_v11, %s14188_s12  ;;  %v6917_v11 = vld [vmem:[%s7250_s23 + $0x78] sm:$0xff] }
 0x18f   : > { %v8454_v35 = vpop.permute.xlu1 %1918 }
 0x190   : > { %14513 = vst [vmem:[#allocation147_spill] sm:$0xff] %v8454_v35  ;;  %v8456_v7 = vpop.permute.xlu0 %1916  ;;  %v6918_v35 = vld [vmem:[%s7250_s23 + $0x98] sm:$0xff] }
 0x191   : > { %14514 = vst [vmem:[#allocation148_spill] sm:$0xff] %v8456_v7  ;;  %2106 = vrot.lane.b32.xlu1 %v6914_v30, %s14188_s12 }
 0x192   : > { %2104 = vrot.lane.b32.xlu0 %v6915_v28, %s14188_s12  ;;  %v6919_v28 = vld [vmem:[%s7250_s23 + $0x90] sm:$0xff] }
 0x193   : > { %v8462_v45 = vpop.permute.xlu1 %1922 }
 0x194   : > { %14515 = vst [vmem:[#allocation149_spill] sm:$0xff] %v8462_v45  ;;  %v8464_v39 = vpop.permute.xlu0 %1920  ;;  %v6920_v45 = vld [vmem:[%s7250_s23 + $0xb0] sm:$0xff] }
 0x195   : > { %14516 = vst [vmem:[#allocation150_spill] sm:$0xff] %v8464_v39  ;;  %2110 = vrot.lane.b32.xlu1 %v6916_v15, %s14188_s12 }
 0x196   : > { %2108 = vrot.lane.b32.xlu0 %v6917_v11, %s14188_s12  ;;  %v6921_v11 = vld [vmem:[%s7250_s23 + $0xa8] sm:$0xff] }
 0x197   : > { %v8470_v7 = vpop.permute.xlu1 %1926 }
 0x198   : > { %14517 = vst [vmem:[#allocation151_spill] sm:$0xff] %v8470_v7  ;;  %v8472_v30 = vpop.permute.xlu0 %1924  ;;  %v6922_v7 = vld [vmem:[%s7250_s23 + $0xc8] sm:$0xff] }
 0x199   : > { %14518 = vst [vmem:[#allocation152_spill] sm:$0xff] %v8472_v30  ;;  %2114 = vrot.lane.b32.xlu1 %v6918_v35, %s14188_s12 }
 0x19a   : > { %2112 = vrot.lane.b32.xlu0 %v6919_v28, %s14188_s12  ;;  %v6923_v28 = vld [vmem:[%s7250_s23 + $0xc0] sm:$0xff] }
 0x19b   : > { %v8478_v39 = vpop.permute.xlu1 %1930 }
 0x19c   : > { %14519 = vst [vmem:[#allocation153_spill] sm:$0xff] %v8478_v39  ;;  %v8480_v15 = vpop.permute.xlu0 %1928  ;;  %v6924_v39 = vld [vmem:[%s7250_s23 + $0xe0] sm:$0xff] }
 0x19d   : > { %14520 = vst [vmem:[#allocation154_spill] sm:$0xff] %v8480_v15  ;;  %2118 = vrot.lane.b32.xlu1 %v6920_v45, %s14188_s12 }
 0x19e   : > { %2116 = vrot.lane.b32.xlu0 %v6921_v11, %s14188_s12  ;;  %v6925_v11 = vld [vmem:[%s7250_s23 + $0xd8] sm:$0xff] }
 0x19f   : > { %v8486_v30 = vpop.permute.xlu1 %1934 }
 0x1a0   : > { %14521 = vst [vmem:[#allocation155_spill] sm:$0xff] %v8486_v30  ;;  %v8488_v35 = vpop.permute.xlu0 %1932  ;;  %v6926_v30 = vld [vmem:[%s7250_s23 + $0xf8] sm:$0xff] }
 0x1a1   : > { %14522 = vst [vmem:[#allocation156_spill] sm:$0xff] %v8488_v35  ;;  %2122 = vrot.lane.b32.xlu1 %v6922_v7, %s14188_s12 }
 0x1a2   : > { %2120 = vrot.lane.b32.xlu0 %v6923_v28, %s14188_s12  ;;  %v6927_v28 = vld [vmem:[%s7250_s23 + $0xf0] sm:$0xff] }
 0x1a3   : > { %v8494_v15 = vpop.permute.xlu1 %1938 }
 0x1a4   : > { %14523 = vst [vmem:[#allocation157_spill] sm:$0xff] %v8494_v15  ;;  %v8496_v45 = vpop.permute.xlu0 %1936  ;;  %v6928_v15 = vld [vmem:[%s7250_s23 + $0x110] sm:$0xff] }
 0x1a5   : > { %14524 = vst [vmem:[#allocation158_spill] sm:$0xff] %v8496_v45  ;;  %2126 = vrot.lane.b32.xlu1 %v6924_v39, %s14188_s12 }
 0x1a6   : > { %2124 = vrot.lane.b32.xlu0 %v6925_v11, %s14188_s12  ;;  %v6929_v11 = vld [vmem:[%s7250_s23 + $0x108] sm:$0xff] }
 0x1a7   : > { %v8502_v35 = vpop.permute.xlu1 %1942 }
 0x1a8   : > { %14525 = vst [vmem:[#allocation159_spill] sm:$0xff] %v8502_v35  ;;  %v8504_v7 = vpop.permute.xlu0 %1940  ;;  %v6930_v35 = vld [vmem:[%s7250_s23 + $0x128] sm:$0xff] }
 0x1a9   : > { %14526 = vst [vmem:[#allocation160_spill] sm:$0xff] %v8504_v7  ;;  %2130 = vrot.lane.b32.xlu1 %v6926_v30, %s14188_s12 }
 0x1aa   : > { %2128 = vrot.lane.b32.xlu0 %v6927_v28, %s14188_s12  ;;  %v6931_v28 = vld [vmem:[%s7250_s23 + $0x120] sm:$0xff] }
 0x1ab   : > { %v8510_v45 = vpop.permute.xlu1 %1946 }
 0x1ac   : > { %14527 = vst [vmem:[#allocation161_spill] sm:$0xff] %v8510_v45  ;;  %v8512_v39 = vpop.permute.xlu0 %1944  ;;  %v6932_v45 = vld [vmem:[%s7250_s23 + $0x140] sm:$0xff] }
 0x1ad   : > { %14528 = vst [vmem:[#allocation162_spill] sm:$0xff] %v8512_v39  ;;  %2134 = vrot.lane.b32.xlu1 %v6928_v15, %s14188_s12 }
 0x1ae   : > { %2132 = vrot.lane.b32.xlu0 %v6929_v11, %s14188_s12  ;;  %v6933_v11 = vld [vmem:[%s7250_s23 + $0x138] sm:$0xff] }
 0x1af   : > { %v8518_v7 = vpop.permute.xlu1 %1950 }
 0x1b0   : > { %14529 = vst [vmem:[#allocation163_spill] sm:$0xff] %v8518_v7  ;;  %v8520_v30 = vpop.permute.xlu0 %1948  ;;  %v6934_v7 = vld [vmem:[%s7250_s23 + $0x158] sm:$0xff] }
 0x1b1   : > { %14530 = vst [vmem:[#allocation164_spill] sm:$0xff] %v8520_v30  ;;  %2138 = vrot.lane.b32.xlu1 %v6930_v35, %s14188_s12 }
 0x1b2   : > { %2136 = vrot.lane.b32.xlu0 %v6931_v28, %s14188_s12  ;;  %v6935_v28 = vld [vmem:[%s7250_s23 + $0x150] sm:$0xff] }
 0x1b3   : > { %v8526_v39 = vpop.permute.xlu1 %1990 }
 0x1b4   : > { %14531 = vst [vmem:[#allocation165_spill] sm:$0xff] %v8526_v39  ;;  %v8528_v15 = vpop.permute.xlu0 %1988  ;;  %v6936_v39 = vld [vmem:[%s7250_s23 + $0x170] sm:$0xff] }
 0x1b5   : > { %14532 = vst [vmem:[#allocation166_spill] sm:$0xff] %v8528_v15  ;;  %2142 = vrot.lane.b32.xlu1 %v6932_v45, %s14188_s12 }
 0x1b6   : > { %2140 = vrot.lane.b32.xlu0 %v6933_v11, %s14188_s12  ;;  %v6937_v11 = vld [vmem:[%s7250_s23 + $0x168] sm:$0xff] }
 0x1b7   : > { %v8534_v30 = vpop.permute.xlu1 %1994 }
 0x1b8   : > { %14533 = vst [vmem:[#allocation167_spill] sm:$0xff] %v8534_v30  ;;  %v8536_v35 = vpop.permute.xlu0 %1992 }
 0x1b9   : > { %14534 = vst [vmem:[#allocation168_spill] sm:$0xff] %v8536_v35  ;;  %2146 = vrot.lane.b32.xlu1 %v6934_v7, %s14188_s12  ;;  %v6938_v7 = vld [vmem:[%s7250_s23 + $0x188] sm:$0xff] }
 0x1ba   : > { %2144 = vrot.lane.b32.xlu0 %v6935_v28, %s14188_s12  ;;  %v6939_v28 = vld [vmem:[%s7250_s23 + $0x180] sm:$0xff] }
 0x1bb   : > { %v8542_v15 = vpop.permute.xlu1 %1998 }
 0x1bc   : > { %14535 = vst [vmem:[#allocation169_spill] sm:$0xff] %v8542_v15  ;;  %v8544_v45 = vpop.permute.xlu0 %1996 }
 0x1bd   : > { %14536 = vst [vmem:[#allocation170_spill] sm:$0xff] %v8544_v45  ;;  %2150 = vrot.lane.b32.xlu1 %v6936_v39, %s14188_s12  ;;  %v6940_v39 = vld [vmem:[%s7250_s23 + $0x1a0] sm:$0xff] }
 0x1be   : > { %2148 = vrot.lane.b32.xlu0 %v6937_v11, %s14188_s12  ;;  %v6941_v11 = vld [vmem:[%s7250_s23 + $0x198] sm:$0xff] }
 0x1bf   : > { %v8550_v30 = vpop.permute.xlu1 %2002 }
 0x1c0   : > { %14537 = vst [vmem:[#allocation171_spill] sm:$0xff] %v8550_v30  ;;  %v8552_v35 = vpop.permute.xlu0 %2000 }
 0x1c1   : > { %14538 = vst [vmem:[#allocation172_spill] sm:$0xff] %v8552_v35  ;;  %2154 = vrot.lane.b32.xlu1 %v6938_v7, %s14188_s12  ;;  %v8575_v7 = vld [vmem:[%s7250_s23 + $0x1d0] sm:$0xff] }
 0x1c2   : > { %2152 = vrot.lane.b32.xlu0 %v6939_v28, %s14188_s12 }
 0x1c3   : > { %v8558_v15 = vpop.permute.xlu1 %2006 }
 0x1c4   : > { %14539 = vst [vmem:[#allocation173_spill] sm:$0xff] %v8558_v15  ;;  %v8560_v45 = vpop.permute.xlu0 %2004 }
 0x1c5   : > { %14540 = vst [vmem:[#allocation174_spill] sm:$0xff] %v8560_v45  ;;  %2158 = vrot.lane.b32.xlu1 %v6940_v39, %s14188_s12  ;;  %v8580_v45 = vld [vmem:[%s7250_s23 + $0x1c8] sm:$0xff] }
 0x1c6   : > { %2156 = vrot.lane.b32.xlu0 %v6941_v11, %s14188_s12 }
 0x1c7   : > { %v8566_v30 = vpop.permute.xlu1 %2010 }
 0x1c8   : > { %14541 = vst [vmem:[#allocation175_spill] sm:$0xff] %v8566_v30  ;;  %v8568_v35 = vpop.permute.xlu0 %2008 }
 0x1c9   : > { %14542 = vst [vmem:[#allocation176_spill] sm:$0xff] %v8568_v35  ;;  %2162 = vrot.lane.b32.xlu1 %v8035_v49, %s14188_s12 }
 0x1ca   : > { %2160 = vrot.lane.b32.xlu0 %v8040_v13, %s14188_s12  ;;  %v8599_v13 = vld [vmem:[%s13980_s3] ss:$0 sm:$0xff] }
 0x1cb   : > { %v8577_v28 = vpop.permute.xlu1 %2014 }
 0x1cc   : > { %14543 = vst [vmem:[#allocation177_spill] sm:$0xff] %v8577_v28  ;;  %v8582_v39 = vpop.permute.xlu0 %2012  ;;  %v14082_v28 = vmov 0.0  }
 0x1cd   : > { %14544 = vst [vmem:[#allocation178_spill] sm:$0xff] %v8582_v39  ;;  %2166 = vrot.lane.b32.xlu1 %v8575_v7, %s14188_s12  ;;  %860 = vst.msk [vmem:[#allocation2 + $0x11] sm:$0x1] %vm839_vm3, %v14082_v28 }
 0x1ce   : > { %2164 = vrot.lane.b32.xlu0 %v8580_v45, %s14188_s12  ;;  %840 = vst.msk [vmem:[#allocation2] sm:$0x1] %vm839_vm3, %v14082_v28  ;;  %841 = vst.msk [vmem:[#allocation2 + $0x18] sm:$0x1] %vm839_vm3, %v14082_v28  ;;  %s325_s12 = sand.u32 1, %s7105_s28  }
 0x1cf   : > { %v8588_v11 = vpop.permute.xlu1 %2018  ;;  %842 = vst.msk [vmem:[#allocation2 + $0x30] sm:$0x1] %vm839_vm3, %v14082_v28  ;;  %843 = vst.msk [vmem:[#allocation2 + $0x48] sm:$0x1] %vm839_vm3, %v14082_v28 }
 0x1d0   : > { %14545 = vst [vmem:[#allocation179_spill] sm:$0xff] %v8588_v11  ;;  %v8590_v49 = vpop.permute.xlu0 %2016  ;;  %844 = vst.msk [vmem:[#allocation2 + $0x60] sm:$0x1] %vm839_vm3, %v14082_v28 }
 0x1d1   : > { %14546 = vst [vmem:[#allocation180_spill] sm:$0xff] %v8590_v49  ;;  %2206 = vrot.lane.b32.xlu1 %v14396_v60, %s14149_s14  ;;  %845 = vst.msk [vmem:[#allocation2 + $0x78] sm:$0x1] %vm839_vm3, %v14082_v28  ;;  %v6619_v60 = vpop.f32.mrb[0].mxu0 }
 0x1d2   : > { %2204 = vrot.lane.b32.xlu0 %v14397_v20, %s14149_s14  ;;  %846 = vst.msk [vmem:[#allocation2 + $0x90] sm:$0x1] %vm839_vm3, %v14082_v28  ;;  %847 = vst.msk [vmem:[#allocation2 + $0xa8] sm:$0x1] %vm839_vm3, %v14082_v28  ;;  %v640_v49 = vpop.f32.mrb[1].mxu0 }
 0x1d3   : > { %v8601_v39 = vpop.permute.xlu1 %2022  ;;  %848 = vst.msk [vmem:[#allocation2 + $0xc0] sm:$0x1] %vm839_vm3, %v14082_v28  ;;  %849 = vst.msk [vmem:[#allocation2 + $0xd8] sm:$0x1] %vm839_vm3, %v14082_v28  ;;  %v641_v11 = vadd.f32 %v8599_v13, %v640_v49 }
 0x1d4   : > { %14547 = vst [vmem:[#allocation181_spill] sm:$0xff] %v8601_v39  ;;  %850 = vst.msk [vmem:[#allocation2 + $0xf0] sm:$0x1] %vm839_vm3, %v14082_v28  ;;  %v8755_v20 = vpop.permute.xlu0 %2020  ;;  %v646_v39 = vadd.f32 %v6619_v60, %v8599_v13 }
 0x1d5   : > { %851 = vst.msk [vmem:[#allocation2 + $0x108] sm:$0x1] %vm839_vm3, %v14082_v28  ;;  %852 = vst.msk [vmem:[#allocation2 + $0x120] sm:$0x1] %vm839_vm3, %v14082_v28  ;;  %2210 = vrot.lane.b32.xlu1 %v14400_v57, %s14149_s14  ;;  %v6622_v57 = vpop.f32.mrb[2].mxu0 }
 0x1d6   : > { %853 = vst.msk [vmem:[#allocation2 + $0x138] sm:$0x1] %vm839_vm3, %v14082_v28  ;;  %854 = vst.msk [vmem:[#allocation2 + $0x150] sm:$0x1] %vm839_vm3, %v14082_v28  ;;  %2208 = vrot.lane.b32.xlu0 %v14401_v26, %s14149_s14  ;;  %v656_v26 = vadd.f32 %v6622_v57, %v8599_v13 }
 0x1d7   : > { %855 = vst.msk [vmem:[#allocation2 + $0x168] sm:$0x1] %vm839_vm3, %v14082_v28  ;;  %856 = vst.msk [vmem:[#allocation2 + $0x180] sm:$0x1] %vm839_vm3, %v14082_v28  ;;  %v8763_v35 = vpop.permute.xlu1 %2026 }
 0x1d8   : > { %857 = vst.msk [vmem:[#allocation2 + $0x198] sm:$0x1] %vm839_vm3, %v14082_v28  ;;  %858 = vst.msk [vmem:[#allocation2 + $0x1b0] sm:$0x1] %vm839_vm3, %v14082_v28 }
 0x1d9   : > { %859 = vst.msk [vmem:[#allocation2 + $0x1c8] sm:$0x1] %vm839_vm3, %v14082_v28  ;;  %861 = vst.msk [vmem:[#allocation2 + $0x29] sm:$0x1] %vm839_vm3, %v14082_v28  ;;  %2214 = vrot.lane.b32.xlu1 %v14404_v59, %s14149_s14 }
 0x1da   : > { %862 = vst.msk [vmem:[#allocation2 + $0x41] sm:$0x1] %vm839_vm3, %v14082_v28  ;;  %863 = vst.msk [vmem:[#allocation2 + $0x59] sm:$0x1] %vm839_vm3, %v14082_v28  ;;  %2212 = vrot.lane.b32.xlu0 %v14405_v42, %s14149_s14 }
 0x1db   : > { %864 = vst.msk [vmem:[#allocation2 + $0x71] sm:$0x1] %vm839_vm3, %v14082_v28  ;;  %865 = vst.msk [vmem:[#allocation2 + $0x89] sm:$0x1] %vm839_vm3, %v14082_v28  ;;  %v8781_v60 = vpop.permute.xlu1 %2030 }
 0x1dc   : > { %866 = vst.msk [vmem:[#allocation2 + $0xa1] sm:$0x1] %vm839_vm3, %v14082_v28  ;;  %867 = vst.msk [vmem:[#allocation2 + $0xb9] sm:$0x1] %vm839_vm3, %v14082_v28 }
 0x1dd   : > { %868 = vst.msk [vmem:[#allocation2 + $0xd1] sm:$0x1] %vm839_vm3, %v14082_v28  ;;  %869 = vst.msk [vmem:[#allocation2 + $0xe9] sm:$0x1] %vm839_vm3, %v14082_v28  ;;  %2218 = vrot.lane.b32.xlu1 %v14408_v9, %s14149_s14 }
 0x1de   : > { %870 = vst.msk [vmem:[#allocation2 + $0x101] sm:$0x1] %vm839_vm3, %v14082_v28  ;;  %871 = vst.msk [vmem:[#allocation2 + $0x119] sm:$0x1] %vm839_vm3, %v14082_v28  ;;  %2216 = vrot.lane.b32.xlu0 %v14409_v37, %s14149_s14 }
 0x1df   : > { %872 = vst.msk [vmem:[#allocation2 + $0x131] sm:$0x1] %vm839_vm3, %v14082_v28  ;;  %873 = vst.msk [vmem:[#allocation2 + $0x149] sm:$0x1] %vm839_vm3, %v14082_v28 }
 0x1e0   : > { %874 = vst.msk [vmem:[#allocation2 + $0x161] sm:$0x1] %vm839_vm3, %v14082_v28  ;;  %875 = vst.msk [vmem:[#allocation2 + $0x179] sm:$0x1] %vm839_vm3, %v14082_v28 }
 0x1e1   : > { %876 = vst.msk [vmem:[#allocation2 + $0x191] sm:$0x1] %vm839_vm3, %v14082_v28  ;;  %877 = vst.msk [vmem:[#allocation2 + $0x1a9] sm:$0x1] %vm839_vm3, %v14082_v28  ;;  %2222 = vrot.lane.b32.xlu1 %v14412_v25, %s14149_s14 }
 0x1e2   : > { %878 = vst.msk [vmem:[#allocation2 + $0x1c1] sm:$0x1] %vm839_vm3, %v14082_v28  ;;  %879 = vst.msk [vmem:[#allocation2 + $0x1d9] sm:$0x1] %vm839_vm3, %v14082_v28  ;;  %2220 = vrot.lane.b32.xlu0 %v14413_v50, %s14149_s14 }
 0x1e3   : > { %4460 = vst.msk [vmem:[#allocation3] sm:$0x1] %vm839_vm3, %v14082_v28  ;;  %4461 = vst.msk [vmem:[#allocation3 + $0x18] sm:$0x1] %vm839_vm3, %v14082_v28 }
 0x1e4   : > { %4462 = vst.msk [vmem:[#allocation3 + $0x30] sm:$0x1] %vm839_vm3, %v14082_v28  ;;  %4463 = vst.msk [vmem:[#allocation3 + $0x48] sm:$0x1] %vm839_vm3, %v14082_v28 }
 0x1e5   : > { %4464 = vst.msk [vmem:[#allocation3 + $0x60] sm:$0x1] %vm839_vm3, %v14082_v28  ;;  %4465 = vst.msk [vmem:[#allocation3 + $0x78] sm:$0x1] %vm839_vm3, %v14082_v28  ;;  %2226 = vrot.lane.b32.xlu1 %v14416_v34, %s14149_s14 }
 0x1e6   : > { %4466 = vst.msk [vmem:[#allocation3 + $0x90] sm:$0x1] %vm839_vm3, %v14082_v28  ;;  %4467 = vst.msk [vmem:[#allocation3 + $0xa8] sm:$0x1] %vm839_vm3, %v14082_v28  ;;  %2224 = vrot.lane.b32.xlu0 %v14417_v53, %s14149_s14 }
 0x1e7   : > { %4468 = vst.msk [vmem:[#allocation3 + $0xc0] sm:$0x1] %vm839_vm3, %v14082_v28  ;;  %4469 = vst.msk [vmem:[#allocation3 + $0xd8] sm:$0x1] %vm839_vm3, %v14082_v28 }
 0x1e8   : > { %4470 = vst.msk [vmem:[#allocation3 + $0xf0] sm:$0x1] %vm839_vm3, %v14082_v28  ;;  %4471 = vst.msk [vmem:[#allocation3 + $0x108] sm:$0x1] %vm839_vm3, %v14082_v28 }
 0x1e9   : > { %4472 = vst.msk [vmem:[#allocation3 + $0x120] sm:$0x1] %vm839_vm3, %v14082_v28  ;;  %4473 = vst.msk [vmem:[#allocation3 + $0x138] sm:$0x1] %vm839_vm3, %v14082_v28  ;;  %2230 = vrot.lane.b32.xlu1 %v14420_v36, %s14149_s14 }
 0x1ea   : > { %4474 = vst.msk [vmem:[#allocation3 + $0x150] sm:$0x1] %vm839_vm3, %v14082_v28  ;;  %4475 = vst.msk [vmem:[#allocation3 + $0x168] sm:$0x1] %vm839_vm3, %v14082_v28  ;;  %2228 = vrot.lane.b32.xlu0 %v14421_v21, %s14149_s14 }
 0x1eb   : > { %4476 = vst.msk [vmem:[#allocation3 + $0x180] sm:$0x1] %vm839_vm3, %v14082_v28  ;;  %4477 = vst.msk [vmem:[#allocation3 + $0x198] sm:$0x1] %vm839_vm3, %v14082_v28 }
 0x1ec   : > { %4478 = vst.msk [vmem:[#allocation3 + $0x11] sm:$0x1] %vm839_vm3, %v14082_v28  ;;  %4479 = vst.msk [vmem:[#allocation3 + $0x29] sm:$0x1] %vm839_vm3, %v14082_v28 }
 0x1ed   : > { %4480 = vst.msk [vmem:[#allocation3 + $0x41] sm:$0x1] %vm839_vm3, %v14082_v28  ;;  %4481 = vst.msk [vmem:[#allocation3 + $0x59] sm:$0x1] %vm839_vm3, %v14082_v28  ;;  %2234 = vrot.lane.b32.xlu1 %v14424_v19, %s14149_s14 }
 0x1ee   : > { %4482 = vst.msk [vmem:[#allocation3 + $0x71] sm:$0x1] %vm839_vm3, %v14082_v28  ;;  %4483 = vst.msk [vmem:[#allocation3 + $0x89] sm:$0x1] %vm839_vm3, %v14082_v28  ;;  %2232 = vrot.lane.b32.xlu0 %v14425_v16, %s14149_s14 }
 0x1ef   : > { %4484 = vst.msk [vmem:[#allocation3 + $0xa1] sm:$0x1] %vm839_vm3, %v14082_v28  ;;  %4485 = vst.msk [vmem:[#allocation3 + $0xb9] sm:$0x1] %vm839_vm3, %v14082_v28 }
 0x1f0   : > { %4486 = vst.msk [vmem:[#allocation3 + $0xd1] sm:$0x1] %vm839_vm3, %v14082_v28  ;;  %4487 = vst.msk [vmem:[#allocation3 + $0xe9] sm:$0x1] %vm839_vm3, %v14082_v28 }
 0x1f1   : > { %4488 = vst.msk [vmem:[#allocation3 + $0x101] sm:$0x1] %vm839_vm3, %v14082_v28  ;;  %4489 = vst.msk [vmem:[#allocation3 + $0x119] sm:$0x1] %vm839_vm3, %v14082_v28  ;;  %2238 = vrot.lane.b32.xlu1 %v14428_v3, %s14149_s14 }
 0x1f2   : > { %4490 = vst.msk [vmem:[#allocation3 + $0x131] sm:$0x1] %vm839_vm3, %v14082_v28  ;;  %4491 = vst.msk [vmem:[#allocation3 + $0x149] sm:$0x1] %vm839_vm3, %v14082_v28  ;;  %2236 = vrot.lane.b32.xlu0 %v14429_v62, %s14149_s14 }
 0x1f3   : > { %4492 = vst.msk [vmem:[#allocation3 + $0x161] sm:$0x1] %vm839_vm3, %v14082_v28  ;;  %4493 = vst.msk [vmem:[#allocation3 + $0x179] sm:$0x1] %vm839_vm3, %v14082_v28 }
 0x1f4   : > { %4494 = vst.msk [vmem:[#allocation3 + $0x191] sm:$0x1] %vm839_vm3, %v14082_v28  ;;  %4495 = vst.msk [vmem:[#allocation3 + $0x1a9] sm:$0x1] %vm839_vm3, %v14082_v28  ;;  %v8766_v28 = vpop.permute.xlu0 %2024  ;;  %vm3618_vm3 = vcmask 424960  }
 0x1f5   : > { %14548 = vst [vmem:[#allocation182_spill] sm:$0xff] %v8755_v20  ;;  %14549 = vst [vmem:[#allocation183_spill] sm:$0xff] %v8763_v35  ;;  %v14551_v20 = vmov 0.0   ;;  %2242 = vrot.lane.b32.xlu1 %v14432_v56, %s14149_s14 }
 0x1f6   : > { %882 = vst.msk [vmem:[#allocation2 + $0x9] sm:$0xff] %vm880_vm5, %v646_v39  ;;  %14550 = vst [vmem:[#allocation184_spill] sm:$0xff] %v8766_v28  ;;  %v650_v39 = vpop.f32.mrb[3].mxu0  ;;  %2240 = vrot.lane.b32.xlu0 %v14433_v54, %s14149_s14 }
 0x1f7   : > { %927 = vst.msk [vmem:[#allocation2 + $0x10] sm:$0x3] %vm926_vm4, %v14551_v20  ;;  %v651_v49 = vadd.f32 %v8599_v13, %v650_v39  ;;  %14552 = vst [vmem:[#allocation185_spill] sm:$0xff] %v8781_v60  ;;  %v6625_v59 = vpop.f32.mrb[4].mxu0 }
 0x1f8   : > { %881 = vst.msk [vmem:[#allocation2 + $0x1] sm:$0xff] %vm880_vm5, %v641_v11  ;;  %884 = vst.msk [vmem:[#allocation2 + $0x21] sm:$0xff] %vm880_vm5, %v656_v26  ;;  %v8784_v11 = vpop.permute.xlu0 %2028  ;;  %v666_v42 = vadd.f32 %v6625_v59, %v8599_v13  ;;  %v660_v57 = vpop.f32.mrb[5].mxu0 }
 0x1f9   : > { %924 = vst.msk [vmem:[#allocation2] sm:$0xff] %vm880_vm5, %v14551_v20  ;;  %925 = vst.msk [vmem:[#allocation2 + $0x8] sm:$0xff] %vm880_vm5, %v14551_v20  ;;  %v8798_v26 = vpop.permute.xlu1 %2034  ;;  %v661_v39 = vadd.f32 %v8599_v13, %v660_v57  ;;  %v6628_v9 = vpop.f32.mrb[6].mxu0  ;;  %2246 = vrot.lane.b32.xlu1 %v14436_v48, %s14149_s14 }
 0x1fa   : > { %14553 = vst [vmem:[#allocation186_spill] sm:$0xff] %v8784_v11  ;;  %930 = vst.msk [vmem:[#allocation2 + $0x28] sm:$0x3] %vm926_vm4, %v14551_v20  ;;  %v676_v37 = vadd.f32 %v6628_v9, %v8599_v13  ;;  %v670_v59 = vpop.f32.mrb[7].mxu0  ;;  %2244 = vrot.lane.b32.xlu0 %v14437_v46, %s14149_s14 }
 0x1fb   : > { %883 = vst.msk [vmem:[#allocation2 + $0x19] sm:$0xff] %vm880_vm5, %v651_v49  ;;  %14554 = vst [vmem:[#allocation187_spill] sm:$0xff] %v8798_v26  ;;  %v671_v57 = vadd.f32 %v8599_v13, %v670_v59  ;;  %v6631_v25 = vpop.f32.mrb[8].mxu0 }
 0x1fc   : > { %928 = vst.msk [vmem:[#allocation2 + $0x18] sm:$0xff] %vm880_vm5, %v14551_v20  ;;  %929 = vst.msk [vmem:[#allocation2 + $0x20] sm:$0xff] %vm880_vm5, %v14551_v20  ;;  %v8801_v49 = vpop.permute.xlu0 %2032  ;;  %v686_v50 = vadd.f32 %v6631_v25, %v8599_v13 }
 0x1fd   : > { %14555 = vst [vmem:[#allocation188_spill] sm:$0xff] %v8801_v49  ;;  %886 = vst.msk [vmem:[#allocation2 + $0x39] sm:$0xff] %vm880_vm5, %v666_v42  ;;  %v8810_v11 = vpop.permute.xlu1 %2038  ;;  %v680_v42 = vpop.f32.mrb[9].mxu0  ;;  %2250 = vrot.lane.b32.xlu1 %v14440_v40, %s14149_s14 }
 0x1fe   : > { %885 = vst.msk [vmem:[#allocation2 + $0x31] sm:$0xff] %vm880_vm5, %v661_v39  ;;  %14556 = vst [vmem:[#allocation189_spill] sm:$0xff] %v8810_v11  ;;  %v681_v9 = vadd.f32 %v8599_v13, %v680_v42  ;;  %v6634_v34 = vpop.f32.mrb[10].mxu0  ;;  %2248 = vrot.lane.b32.xlu0 %v14441_v38, %s14149_s14  ;;  %v6652_v40 = vpop.f32.mrb[0].mxu1 }
 0x1ff   : > { %888 = vst.msk [vmem:[#allocation2 + $0x51] sm:$0xff] %vm880_vm5, %v676_v37  ;;  %887 = vst.msk [vmem:[#allocation2 + $0x49] sm:$0xff] %vm880_vm5, %v671_v57  ;;  %v696_v53 = vadd.f32 %v6634_v34, %v8599_v13  ;;  %v690_v37 = vpop.f32.mrb[11].mxu0  ;;  %v756_v38 = vadd.f32 %v6652_v40, %v8599_v13 }
 0x200   : > { %v8813_v26 = vpop.permute.xlu0 %2036  ;;  %890 = vst.msk [vmem:[#allocation2 + $0x69] sm:$0xff] %vm880_vm5, %v686_v50  ;;  %889 = vst.msk [vmem:[#allocation2 + $0x61] sm:$0xff] %vm880_vm5, %v681_v9  ;;  %v691_v25 = vadd.f32 %v8599_v13, %v690_v37  ;;  %v6637_v36 = vpop.f32.mrb[12].mxu0 }
 0x201   : > { %14557 = vst [vmem:[#allocation190_spill] sm:$0xff] %v8813_v26  ;;  %v8822_v39 = vpop.permute.xlu1 %2042  ;;  %892 = vst.msk [vmem:[#allocation2 + $0x81] sm:$0xff] %vm880_vm5, %v696_v53  ;;  %v706_v21 = vadd.f32 %v6637_v36, %v8599_v13  ;;  %v700_v50 = vpop.f32.mrb[13].mxu0  ;;  %2254 = vrot.lane.b32.xlu1 %v14444_v22, %s14149_s14 }
 0x202   : > { %14558 = vst [vmem:[#allocation191_spill] sm:$0xff] %v8822_v39  ;;  %891 = vst.msk [vmem:[#allocation2 + $0x79] sm:$0xff] %vm880_vm5, %v691_v25  ;;  %v701_v34 = vadd.f32 %v8599_v13, %v700_v50  ;;  %v6640_v19 = vpop.f32.mrb[14].mxu0  ;;  %2252 = vrot.lane.b32.xlu0 %v14445_v1, %s14149_s14 }
 0x203   : > { %894 = vst.msk [vmem:[#allocation2 + $0x99] sm:$0xff] %vm880_vm5, %v706_v21  ;;  %v716_v16 = vadd.f32 %v6640_v19, %v8599_v13  ;;  %v710_v53 = vpop.f32.mrb[15].mxu0  ;;  %904 = vst.msk [vmem:[#allocation2 + $0x111] sm:$0xff] %vm880_vm5, %v756_v38 }
 0x204   : > { %v8825_v59 = vpop.permute.xlu0 %2040  ;;  %893 = vst.msk [vmem:[#allocation2 + $0x91] sm:$0xff] %vm880_vm5, %v701_v34  ;;  %v711_v36 = vadd.f32 %v8599_v13, %v710_v53  ;;  %v6643_v3 = vpop.f32.mrb[16].mxu0 }
 0x205   : > { %14559 = vst [vmem:[#allocation192_spill] sm:$0xff] %v8825_v59  ;;  %v8834_v57 = vpop.permute.xlu1 %2046  ;;  %896 = vst.msk [vmem:[#allocation2 + $0xb1] sm:$0xff] %vm880_vm5, %v716_v16  ;;  %v726_v62 = vadd.f32 %v6643_v3, %v8599_v13  ;;  %v720_v21 = vpop.f32.mrb[17].mxu0  ;;  %2258 = vrot.lane.b32.xlu1 %v14448_v0, %s14149_s14 }
 0x206   : > { %14560 = vst [vmem:[#allocation193_spill] sm:$0xff] %v8834_v57  ;;  %895 = vst.msk [vmem:[#allocation2 + $0xa9] sm:$0xff] %vm880_vm5, %v711_v36  ;;  %v721_v19 = vadd.f32 %v8599_v13, %v720_v21  ;;  %v6646_v56 = vpop.f32.mrb[18].mxu0  ;;  %2256 = vrot.lane.b32.xlu0 %v14449_v32, %s14149_s14 }
 0x207   : > { %898 = vst.msk [vmem:[#allocation2 + $0xc9] sm:$0xff] %vm880_vm5, %v726_v62  ;;  %v736_v54 = vadd.f32 %v6646_v56, %v8599_v13  ;;  %v730_v16 = vpop.f32.mrb[19].mxu0  ;;  %v9400_v57 = vld [vmem:[#allocation2 + $0x70] sm:$0x3] }
 0x208   : > { %v8837_v42 = vpop.permute.xlu0 %2044  ;;  %897 = vst.msk [vmem:[#allocation2 + $0xc1] sm:$0xff] %vm880_vm5, %v721_v19  ;;  %v731_v3 = vadd.f32 %v8599_v13, %v730_v16  ;;  %v6649_v48 = vpop.f32.mrb[20].mxu0  ;;  %v1337_v39 = vrot.slane %v9400_v57, 1  ;;  %v9419_v26 = vld [vmem:[#allocation2 + $0x88] sm:$0x3] }
 0x209   : > { %14561 = vst [vmem:[#allocation194_spill] sm:$0xff] %v8837_v42  ;;  %v8846_v9 = vpop.permute.xlu1 %2050  ;;  %900 = vst.msk [vmem:[#allocation2 + $0xe1] sm:$0xff] %vm880_vm5, %v736_v54  ;;  %v746_v46 = vadd.f32 %v6649_v48, %v8599_v13  ;;  %v740_v62 = vpop.f32.mrb[21].mxu0  ;;  %2262 = vrot.lane.b32.xlu1 %v7620_v6, %s14149_s14  ;;  %v1342_v49 = vrot.slane %v9419_v26, 1 }
 0x20a   : > { %14562 = vst [vmem:[#allocation195_spill] sm:$0xff] %v8846_v9  ;;  %899 = vst.msk [vmem:[#allocation2 + $0xd9] sm:$0xff] %vm880_vm5, %v731_v3  ;;  %v741_v56 = vadd.f32 %v8599_v13, %v740_v62  ;;  %v750_v54 = vpop.f32.mrb[1].mxu1  ;;  %2260 = vrot.lane.b32.xlu0 %v7625_v44, %s14149_s14  ;;  %v1251_v44 = vrot.slane %v8575_v7, 1  ;;  %v9438_v60 = vld [vmem:[#allocation2 + $0xa0] sm:$0x3] }
 0x20b   : > { %902 = vst.msk [vmem:[#allocation2 + $0xf9] sm:$0xff] %vm880_vm5, %v746_v46  ;;  %v751_v48 = vadd.f32 %v8599_v13, %v750_v54  ;;  %v6655_v22 = vpop.f32.mrb[2].mxu1  ;;  %v1347_v35 = vrot.slane %v9438_v60, 1 }
 0x20c   : > { %v8849_v37 = vpop.permute.xlu0 %2048  ;;  %901 = vst.msk [vmem:[#allocation2 + $0xf1] sm:$0xff] %vm880_vm5, %v741_v56  ;;  %v766_v1 = vadd.f32 %v6655_v22, %v8599_v13  ;;  %v760_v46 = vpop.f32.mrb[3].mxu1  ;;  %v8933_v22 = vld [vmem:[%s7250_s23 + $0x1d8] sm:$0x3] }
 0x20d   : > { %14563 = vst [vmem:[#allocation196_spill] sm:$0xff] %v8849_v37  ;;  %v8858_v25 = vpop.permute.xlu1 %2054  ;;  %903 = vst.msk [vmem:[#allocation2 + $0x109] sm:$0xff] %vm880_vm5, %v751_v48  ;;  %v761_v40 = vadd.f32 %v8599_v13, %v760_v46  ;;  %v6658_v0 = vpop.f32.mrb[4].mxu1  ;;  %2266 = vrot.lane.b32.xlu1 %v7633_v33, %s14149_s14  ;;  %v9457_v30 = vld [vmem:[#allocation2 + $0xb8] sm:$0x3] }
 0x20e   : > { %14564 = vst [vmem:[#allocation197_spill] sm:$0xff] %v8858_v25  ;;  %906 = vst.msk [vmem:[#allocation2 + $0x129] sm:$0xff] %vm880_vm5, %v766_v1  ;;  %v776_v32 = vadd.f32 %v6658_v0, %v8599_v13  ;;  %v770_v38 = vpop.f32.mrb[5].mxu1  ;;  %2264 = vrot.lane.b32.xlu0 %v14454_v8, %s14149_s14  ;;  %v1253_v1 = vrot.slane %v8933_v22, 1 }
 0x20f   : > { %905 = vst.msk [vmem:[#allocation2 + $0x121] sm:$0xff] %vm880_vm5, %v761_v40  ;;  %v771_v46 = vadd.f32 %v8599_v13, %v770_v38  ;;  %v6661_v6 = vpop.f32.mrb[6].mxu1  ;;  %v1250_v38 = vrot.slane %v8580_v45, 1 }
 0x210   : > { %v8861_v50 = vpop.permute.xlu0 %2052  ;;  %908 = vst.msk [vmem:[#allocation2 + $0x141] sm:$0xff] %vm880_vm5, %v776_v32  ;;  %v786_v40 = vadd.f32 %v6661_v6, %v8599_v13  ;;  %v780_v0 = vpop.f32.mrb[7].mxu1 }
 0x211   : > { %14565 = vst [vmem:[#allocation198_spill] sm:$0xff] %v8861_v50  ;;  %v8870_v34 = vpop.permute.xlu1 %2058  ;;  %907 = vst.msk [vmem:[#allocation2 + $0x139] sm:$0xff] %vm880_vm5, %v771_v46  ;;  %v781_v32 = vadd.f32 %v8599_v13, %v780_v0  ;;  %2270 = vrot.lane.b32.xlu1 %v8259_v24, %s14149_s14  ;;  %v6664_v8 = vpop.f32.mrb[8].mxu1  ;;  %v1254_v46 = vsel %vm1052_vm0, %v1251_v44, %v1253_v1  ;;  %v1252_v0 = vsel %vm1052_vm0, %v1250_v38, %v1251_v44 }
 0x212   : > { %14566 = vst [vmem:[#allocation199_spill] sm:$0xff] %v8870_v34  ;;  %910 = vst.msk [vmem:[#allocation2 + $0x159] sm:$0xff] %vm880_vm5, %v786_v40  ;;  %2268 = vrot.lane.b32.xlu0 %v8265_v55, %s14149_s14  ;;  %v796_v6 = vadd.f32 %v6664_v8, %v8599_v13 }
 0x213   : > { %909 = vst.msk [vmem:[#allocation2 + $0x151] sm:$0xff] %vm880_vm5, %v781_v32 }
 0x214   : > { %v8873_v53 = vpop.permute.xlu0 %2056  ;;  %912 = vst.msk [vmem:[#allocation2 + $0x171] sm:$0xff] %vm880_vm5, %v796_v6  ;;  %v441_v6 = vld [vmem:[%s8071_s22 + $0x120] sm:$0xff] }
 0x215   : > { %14567 = vst [vmem:[#allocation200_spill] sm:$0xff] %v8873_v53  ;;  %v8882_v36 = vpop.permute.xlu1 %2098  ;;  %2274 = vrot.lane.b32.xlu1 %v1254_v46, %s14149_s14  ;;  %6671 = vmatprep.mubr.msk.f32.mxu1 %vm453_vm2, %v441_v6 }
 0x216   : > { %14568 = vst [vmem:[#allocation201_spill] sm:$0xff] %v8882_v36  ;;  %2272 = vrot.lane.b32.xlu0 %v1252_v0, %s14149_s14  ;;  %s7136_s14 = smov 52  }
 0x218   : > { %v8885_v21 = vpop.permute.xlu0 %2096 }
 0x219   : > { %14569 = vst [vmem:[#allocation202_spill] sm:$0xff] %v8885_v21  ;;  %v8894_v19 = vpop.permute.xlu1 %2102  ;;  %2314 = vrot.lane.b32.xlu1 %v7666_v27, %s14147_s21  ;;  %v442_v27 = vld [vmem:[%s8071_s22 + $0x128] sm:$0xff] }
 0x21a   : > { %14570 = vst [vmem:[#allocation203_spill] sm:$0xff] %v8894_v19  ;;  %2312 = vrot.lane.b32.xlu0 %v7671_v14, %s14147_s21  ;;  %6672 = vmatmul.mubr.msk.f32.gmra.mrb[14].mxu1 %vm453_vm2, %v442_v27  ;;  %v9345_v19 = vld [vmem:[#allocation2 + $0x28] sm:$0x3] }
 0x21b   : > { %v1322_v53 = vrot.slane %v9345_v19, 1 }
 0x21c   : > { %v8897_v16 = vpop.permute.xlu0 %2100 }
 0x21d   : > { %14571 = vst [vmem:[#allocation204_spill] sm:$0xff] %v8897_v16  ;;  %v8906_v3 = vpop.permute.xlu1 %2106  ;;  %2318 = vrot.lane.b32.xlu1 %v7679_v5, %s14147_s21 }
 0x21e   : > { %14572 = vst [vmem:[#allocation205_spill] sm:$0xff] %v8906_v3  ;;  %2316 = vrot.lane.b32.xlu0 %v14463_v31, %s14147_s21 }
 0x220   : > { %v8909_v62 = vpop.permute.xlu0 %2104 }
 0x221   : > { %14573 = vst [vmem:[#allocation206_spill] sm:$0xff] %v8909_v62  ;;  %v8918_v56 = vpop.permute.xlu1 %2110  ;;  %2322 = vrot.lane.b32.xlu1 %v7692_v43, %s14147_s21  ;;  %v14592_v43 = vld [vmem:[#allocation42_spill] sm:$0xff] }
 0x222   : > { %14574 = vst [vmem:[#allocation207_spill] sm:$0xff] %v8918_v56  ;;  %2320 = vrot.lane.b32.xlu0 %v14466_v23, %s14147_s21 }
 0x224   : > { %v8921_v54 = vpop.permute.xlu0 %2108 }
 0x225   : > { %14575 = vst [vmem:[#allocation208_spill] sm:$0xff] %v8921_v54  ;;  %v8930_v48 = vpop.permute.xlu1 %2114  ;;  %2326 = vrot.lane.b32.xlu1 %v7705_v4, %s14147_s21  ;;  %v14596_v4 = vld [vmem:[#allocation44_spill] sm:$0xff] }
 0x226   : > { %14576 = vst [vmem:[#allocation209_spill] sm:$0xff] %v8930_v48  ;;  %2324 = vrot.lane.b32.xlu0 %v14469_v12, %s14147_s21 }
 0x228   : > { %v8936_v54 = vpop.permute.xlu0 %2112 }
 0x229   : > { %14577 = vst [vmem:[#allocation210_spill] sm:$0xff] %v8936_v54  ;;  %v8948_v54 = vpop.permute.xlu1 %2118  ;;  %2330 = vrot.lane.b32.xlu1 %v7718_v41, %s14147_s21  ;;  %v14599_v41 = vld [vmem:[#allocation45_spill] sm:$0xff] }
 0x22a   : > { %14578 = vst [vmem:[#allocation211_spill] sm:$0xff] %v8948_v54  ;;  %v790_v54 = vpop.f32.mrb[9].mxu1  ;;  %2328 = vrot.lane.b32.xlu0 %v14592_v43, %s14147_s21 }
 0x22b   : > { %v791_v40 = vadd.f32 %v8599_v13, %v790_v54  ;;  %v6667_v55 = vpop.f32.mrb[10].mxu1 }
 0x22c   : > { %v8951_v33 = vpop.permute.xlu0 %2116  ;;  %v806_v24 = vadd.f32 %v6667_v55, %v8599_v13  ;;  %v800_v1 = vpop.f32.mrb[11].mxu1 }
 0x22d   : > { %14579 = vst [vmem:[#allocation212_spill] sm:$0xff] %v8951_v33  ;;  %v8961_v48 = vpop.permute.xlu1 %2122  ;;  %911 = vst.msk [vmem:[#allocation2 + $0x169] sm:$0xff] %vm880_vm5, %v791_v40  ;;  %v801_v44 = vadd.f32 %v8599_v13, %v800_v1  ;;  %v6670_v38 = vpop.f32.mrb[12].mxu1 }
 0x22e   : > { %14580 = vst [vmem:[#allocation213_spill] sm:$0xff] %v8961_v48  ;;  %914 = vst.msk [vmem:[#allocation2 + $0x189] sm:$0xff] %vm880_vm5, %v806_v24  ;;  %v816_v8 = vadd.f32 %v6670_v38, %v8599_v13  ;;  %v810_v46 = vpop.f32.mrb[13].mxu1  ;;  %v14595_v38 = vld [vmem:[#allocation43_spill] sm:$0xff]  ;;  %2332 = vrot.lane.b32.xlu0 %v14596_v4, %s14147_s21  ;;  %v9328_v48 = vld [vmem:[#allocation2 + $0x10] sm:$0x3] }
 0x22f   : > { %913 = vst.msk [vmem:[#allocation2 + $0x181] sm:$0xff] %vm880_vm5, %v801_v44  ;;  %v811_v40 = vadd.f32 %v8599_v13, %v810_v46  ;;  %2334 = vrot.lane.b32.xlu1 %v14595_v38, %s14147_s21  ;;  %v1317_v62 = vrot.slane %v9328_v48, 1 }
 0x230   : > { %v8965_v33 = vpop.permute.xlu0 %2120  ;;  %916 = vst.msk [vmem:[#allocation2 + $0x1a1] sm:$0xff] %vm880_vm5, %v816_v8 }
 0x231   : > { %14581 = vst [vmem:[#allocation214_spill] sm:$0xff] %v8965_v33  ;;  %v8972_v32 = vpop.permute.xlu1 %2126  ;;  %915 = vst.msk [vmem:[#allocation2 + $0x199] sm:$0xff] %vm880_vm5, %v811_v40  ;;  %v14602_v40 = vld [vmem:[#allocation47_spill] sm:$0xff] }
 0x232   : > { %14582 = vst [vmem:[#allocation215_spill] sm:$0xff] %v8972_v32  ;;  %2336 = vrot.lane.b32.xlu0 %v14599_v41, %s14147_s21 }
 0x233   : > { %2338 = vrot.lane.b32.xlu1 %v7744_v10, %s14147_s21  ;;  %v14605_v10 = vld [vmem:[#allocation48_spill] sm:$0xff] }
 0x234   : > { %v8975_v54 = vpop.permute.xlu0 %2124 }
 0x235   : > { %14583 = vst [vmem:[#allocation216_spill] sm:$0xff] %v8975_v54  ;;  %v8985_v0 = vpop.permute.xlu1 %2130  ;;  %v9314_v54 = vld [vmem:[#allocation2 + $0x168] sm:$0xff] }
 0x236   : > { %14584 = vst [vmem:[#allocation217_spill] sm:$0xff] %v8985_v0  ;;  %2340 = vrot.lane.b32.xlu0 %v14602_v40, %s14147_s21  ;;  %v9326_v33 = vld [vmem:[#allocation2 + $0x180] sm:$0xff] }
 0x237   : > { %2342 = vrot.lane.b32.xlu1 %v14481_v51, %s14147_s21  ;;  %v14608_v51 = vld [vmem:[#allocation50_spill] sm:$0xff] }
 0x238   : > { %v8989_v55 = vpop.permute.xlu0 %2128  ;;  %v9343_v16 = vld [vmem:[#allocation2 + $0x198] sm:$0xff] }
 0x239   : > { %14585 = vst [vmem:[#allocation218_spill] sm:$0xff] %v8989_v55  ;;  %v8999_v14 = vpop.permute.xlu1 %2134  ;;  %v9302_v55 = vld [vmem:[#allocation2 + $0x150] sm:$0xff] }
 0x23a   : > { %14586 = vst [vmem:[#allocation219_spill] sm:$0xff] %v8999_v14  ;;  %2344 = vrot.lane.b32.xlu0 %v14605_v10, %s14147_s21 }
 0x23b   : > { %2346 = vrot.lane.b32.xlu1 %v7770_v17, %s14147_s21  ;;  %v14612_v17 = vld [vmem:[#allocation54_spill] sm:$0xff] }
 0x23c   : > { %v9001_v13 = vpop.permute.xlu0 %2132 }
 0x23d   : > { %14587 = vst [vmem:[#allocation220_spill] sm:$0xff] %v9001_v13  ;;  %v9007_v24 = vpop.permute.xlu1 %2138  ;;  %v9290_v13 = vld [vmem:[#allocation2 + $0x138] sm:$0xff] }
 0x23e   : > { %14588 = vst [vmem:[#allocation221_spill] sm:$0xff] %v9007_v24  ;;  %2348 = vrot.lane.b32.xlu0 %v14608_v51, %s14147_s21 }
 0x23f   : > { %2350 = vrot.lane.b32.xlu1 %v7783_v52, %s14147_s21  ;;  %v14615_v52 = vld [vmem:[#allocation57_spill] sm:$0xff] }
 0x240   : > { %v9009_v5 = vpop.permute.xlu0 %2136 }
 0x241   : > { %14589 = vst [vmem:[#allocation222_spill] sm:$0xff] %v9009_v5  ;;  %v9015_v31 = vpop.permute.xlu1 %2142  ;;  %v9278_v5 = vld [vmem:[#allocation2 + $0x120] sm:$0xff] }
 0x242   : > { %14590 = vst [vmem:[#allocation223_spill] sm:$0xff] %v9015_v31  ;;  %2352 = vrot.lane.b32.xlu0 %v14612_v17, %s14147_s21 }
 0x244   : > { %v9017_v1 = vpop.permute.xlu0 %2140 }
 0x245   : > { %14591 = vst [vmem:[#allocation224_spill] sm:$0xff] %v9017_v1  ;;  %v9023_v23 = vpop.permute.xlu1 %2146  ;;  %v9266_v1 = vld [vmem:[#allocation2 + $0x108] sm:$0xff] }
 0x246   : > { %14593 = vst [vmem:[#allocation42_spill] sm:$0xff] %v9023_v23  ;;  %2356 = vrot.lane.b32.xlu0 %v14615_v52, %s14147_s21 }
 0x248   : > { %v9025_v44 = vpop.permute.xlu0 %2144 }
 0x249   : > { %14594 = vst [vmem:[#allocation225_spill] sm:$0xff] %v9025_v44  ;;  %v9031_v12 = vpop.permute.xlu1 %2150  ;;  %v9254_v44 = vld [vmem:[#allocation2 + $0xf0] sm:$0xff] }
 0x24a   : > { %14597 = vst [vmem:[#allocation43_spill] sm:$0xff] %v9031_v12  ;;  %2360 = vrot.lane.b32.xlu0 %v14498_v63, %s14147_s21 }
 0x24c   : > { %v9033_v8 = vpop.permute.xlu0 %2148 }
 0x24d   : > { %14598 = vst [vmem:[#allocation44_spill] sm:$0xff] %v9033_v8  ;;  %v9039_v46 = vpop.permute.xlu1 %2154  ;;  %v9242_v8 = vld [vmem:[#allocation2 + $0xd8] sm:$0xff] }
 0x24e   : > { %14600 = vst [vmem:[#allocation45_spill] sm:$0xff] %v9039_v46 }
 0x250   : > { %v9041_v6 = vpop.permute.xlu0 %2152 }
 0x251   : > { %14601 = vst [vmem:[#allocation226_spill] sm:$0xff] %v9041_v6  ;;  %v9047_v27 = vpop.permute.xlu1 %2158  ;;  %v9230_v6 = vld [vmem:[#allocation2 + $0xc0] sm:$0xff] }
 0x252   : > { %14603 = vst [vmem:[#allocation47_spill] sm:$0xff] %v9047_v27 }
 0x254   : > { %v9049_v43 = vpop.permute.xlu0 %2156 }
 0x255   : > { %14604 = vst [vmem:[#allocation227_spill] sm:$0xff] %v9049_v43  ;;  %v9055_v38 = vpop.permute.xlu1 %2162  ;;  %v14611_v43 = vld [vmem:[#allocation52_spill] sm:$0xff] }
 0x256   : > { %14606 = vst [vmem:[#allocation48_spill] sm:$0xff] %v9055_v38  ;;  %2354 = vrot.lane.b32.xlu1 %v14611_v43, %s14147_s21 }
 0x258   : > { %v9057_v4 = vpop.permute.xlu0 %2160 }
 0x259   : > { %14607 = vst [vmem:[#allocation228_spill] sm:$0xff] %v9057_v4  ;;  %v9063_v41 = vpop.permute.xlu1 %2166  ;;  %v9218_v4 = vld [vmem:[#allocation2 + $0xa8] sm:$0xff] }
 0x25a   : > { %14609 = vst [vmem:[#allocation50_spill] sm:$0xff] %v9063_v41  ;;  %2358 = vrot.lane.b32.xlu1 %v7817_v18, %s14147_s21  ;;  %v14621_v18 = vld [vmem:[#allocation65_spill] sm:$0xff] }
 0x25b   : > { %2364 = vrot.lane.b32.xlu0 %v14621_v18, %s14147_s21  ;;  %v1258_v18 = vrot.slane %v8933_v22, 2 }
 0x25c   : > { %v9065_v40 = vpop.permute.xlu0 %2164 }
 0x25d   : > { %14610 = vst [vmem:[#allocation229_spill] sm:$0xff] %v9065_v40  ;;  %v9071_v10 = vpop.permute.xlu1 %2206 }
 0x25e   : > { %14613 = vst [vmem:[#allocation52_spill] sm:$0xff] %v9071_v10  ;;  %2362 = vrot.lane.b32.xlu1 %v14497_v2, %s14147_s21  ;;  %v14624_v2 = vld [vmem:[#allocation67_spill] sm:$0xff]  ;;  %v9206_v10 = vld [vmem:[#allocation2 + $0x90] sm:$0xff] }
 0x25f   : > { %2368 = vrot.lane.b32.xlu0 %v14624_v2, %s14147_s21  ;;  %v14629_v2 = vld [vmem:[#allocation141_spill] sm:$0xff] }
 0x260   : > { %v9073_v38 = vpop.permute.xlu0 %2204 }
 0x261   : > { %14614 = vst [vmem:[#allocation54_spill] sm:$0xff] %v9073_v38  ;;  %v9079_v51 = vpop.permute.xlu1 %2210  ;;  %v14620_v38 = vld [vmem:[#allocation63_spill] sm:$0xff] }
 0x262   : > { %14616 = vst [vmem:[#allocation57_spill] sm:$0xff] %v9079_v51  ;;  %2366 = vrot.lane.b32.xlu1 %v14620_v38, %s14147_s21  ;;  %v1256_v38 = vrot.slane %v8575_v7, 2 }
 0x263   : > { %2372 = vrot.lane.b32.xlu0 %v7890_v29, %s14147_s21 }
 0x264   : > { %v9081_v41 = vpop.permute.xlu0 %2208 }
 0x265   : > { %14617 = vst [vmem:[#allocation230_spill] sm:$0xff] %v9081_v41  ;;  %v9087_v43 = vpop.permute.xlu1 %2214 }
 0x266   : > { %14618 = vst [vmem:[#allocation231_spill] sm:$0xff] %v9087_v43  ;;  %2370 = vrot.lane.b32.xlu1 %v7868_v58, %s14147_s21 }
 0x267   : > { %2376 = vrot.lane.b32.xlu0 %v14629_v2, %s14147_s21 }
 0x268   : > { %v9089_v17 = vpop.permute.xlu0 %2212 }
 0x269   : > { %14619 = vst [vmem:[#allocation232_spill] sm:$0xff] %v9089_v17  ;;  %v9095_v52 = vpop.permute.xlu1 %2218  ;;  %v9194_v17 = vld [vmem:[#allocation2 + $0x78] sm:$0xff] }
 0x26a   : > { %14622 = vst [vmem:[#allocation63_spill] sm:$0xff] %v9095_v52  ;;  %2374 = vrot.lane.b32.xlu1 %v7885_v47, %s14147_s21  ;;  %v1259_v47 = vsel %vm1143_vm1, %v1256_v38, %v1258_v18  ;;  %v9146_v18 = vld [vmem:[#allocation2 + $0x18] sm:$0xff] }
 0x26c   : > { %v9097_v51 = vpop.permute.xlu0 %2216 }
 0x26d   : > { %14623 = vst [vmem:[#allocation65_spill] sm:$0xff] %v9097_v51  ;;  %v9103_v63 = vpop.permute.xlu1 %2222  ;;  %v1255_v51 = vrot.slane %v8580_v45, 2  ;;  %v9130_v45 = vld [vmem:[#allocation2 + $0x8] sm:$0xff] }
 0x26e   : > { %14625 = vst [vmem:[#allocation67_spill] sm:$0xff] %v9103_v63  ;;  %2378 = vrot.lane.b32.xlu1 %v8425_v61, %s14147_s21  ;;  %v9134_v61 = vld [vmem:[#allocation2] sm:$0xff] }
 0x26f   : > { %v1257_v29 = vsel %vm1143_vm1, %v1255_v51, %v1256_v38  ;;  %v9142_v51 = vld [vmem:[#allocation2 + $0x20] sm:$0xff] }
 0x270   : > { %v9105_v43 = vpop.permute.xlu0 %2220  ;;  %2380 = vrot.lane.b32.xlu0 %v1257_v29, %s14147_s21  ;;  %v1320_v21 = vrot.slane %v9142_v51, 1 }
 0x271   : > { %14626 = vst [vmem:[#allocation233_spill] sm:$0xff] %v9105_v43  ;;  %v9114_v58 = vpop.permute.xlu1 %2226 }
 0x272   : > { %14627 = vst [vmem:[#allocation234_spill] sm:$0xff] %v9114_v58  ;;  %2382 = vrot.lane.b32.xlu1 %v1259_v47, %s14147_s21  ;;  %v9154_v47 = vld [vmem:[#allocation2 + $0x38] sm:$0xff]  ;;  %v9182_v58 = vld [vmem:[#allocation2 + $0x60] sm:$0xff]  ;;  %v9367_v37 = vsel %vm1052_vm0, %v1320_v21, %v1322_v53  ;;  %s7137_s21 = smov 56  }
 0x273   : > { %14670 = vst [vmem:[#allocation275_spill] sm:$0xff] %v9367_v37 }
 0x274   : > { %v9116_v52 = vpop.permute.xlu0 %2224  ;;  %2420 = vrot.lane.b32.xlu0 %v9134_v61, %s7132_s16 }
 0x275   : > { %14628 = vst [vmem:[#allocation235_spill] sm:$0xff] %v9116_v52  ;;  %v9123_v7 = vpop.permute.xlu1 %2230 }
 0x276   : > { %14630 = vst [vmem:[#allocation141_spill] sm:$0xff] %v9123_v7  ;;  %2422 = vrot.lane.b32.xlu1 %v9130_v45, %s7132_s16 }
 0x278   : > { %v9126_v43 = vpop.permute.xlu0 %2228  ;;  %2424 = vrot.lane.b32.xlu0 %v9146_v18, %s7132_s16 }
 0x279   : > { %14631 = vst [vmem:[#allocation236_spill] sm:$0xff] %v9126_v43  ;;  %v9132_v22 = vpop.permute.xlu1 %2234  ;;  %v9170_v43 = vld [vmem:[#allocation2 + $0x48] sm:$0xff] }
 0x27a   : > { %14632 = vst [vmem:[#allocation237_spill] sm:$0xff] %v9132_v22  ;;  %2426 = vrot.lane.b32.xlu1 %v9142_v51, %s7132_s16  ;;  %v1329_v42 = vrot.slane %v9170_v43, 1 }
 0x27c   : > { %v9136_v52 = vpop.permute.xlu0 %2232 }
 0x27d   : > { %14633 = vst [vmem:[#allocation238_spill] sm:$0xff] %v9136_v52  ;;  %v9144_v38 = vpop.permute.xlu1 %2238  ;;  %v9158_v52 = vld [vmem:[#allocation2 + $0x30] sm:$0xff] }
 0x27e   : > { %14634 = vst [vmem:[#allocation239_spill] sm:$0xff] %v9144_v38  ;;  %2430 = vrot.lane.b32.xlu1 %v9154_v47, %s7132_s16  ;;  %2428 = vrot.lane.b32.xlu0 %v9158_v52, %s7132_s16 }
 0x280   : > { %v9148_v2 = vpop.permute.xlu0 %2236 }
 0x281   : > { %14635 = vst [vmem:[#allocation240_spill] sm:$0xff] %v9148_v2  ;;  %v9156_v29 = vpop.permute.xlu1 %2242  ;;  %v9166_v2 = vld [vmem:[#allocation2 + $0x50] sm:$0xff] }
 0x282   : > { %14636 = vst [vmem:[#allocation241_spill] sm:$0xff] %v9156_v29  ;;  %2434 = vrot.lane.b32.xlu1 %v9166_v2, %s7132_s16  ;;  %2432 = vrot.lane.b32.xlu0 %v9170_v43, %s7132_s16 }
 0x284   : > { %v9160_v22 = vpop.permute.xlu0 %2240 }
 0x285   : > { %14637 = vst [vmem:[#allocation242_spill] sm:$0xff] %v9160_v22  ;;  %v9168_v38 = vpop.permute.xlu1 %2246  ;;  %v9178_v22 = vld [vmem:[#allocation2 + $0x68] sm:$0xff] }
 0x286   : > { %14638 = vst [vmem:[#allocation243_spill] sm:$0xff] %v9168_v38  ;;  %2438 = vrot.lane.b32.xlu1 %v9178_v22, %s7132_s16  ;;  %2436 = vrot.lane.b32.xlu0 %v9182_v58, %s7132_s16  ;;  %v1335_v59 = vrot.slane %v9178_v22, 1 }
 0x288   : > { %v9172_v7 = vpop.permute.xlu0 %2244 }
 0x289   : > { %14639 = vst [vmem:[#allocation244_spill] sm:$0xff] %v9172_v7  ;;  %v9180_v29 = vpop.permute.xlu1 %2250  ;;  %v9190_v7 = vld [vmem:[#allocation2 + $0x80] sm:$0xff] }
 0x28a   : > { %14640 = vst [vmem:[#allocation245_spill] sm:$0xff] %v9180_v29  ;;  %2442 = vrot.lane.b32.xlu1 %v9190_v7, %s7132_s16  ;;  %2440 = vrot.lane.b32.xlu0 %v9194_v17, %s7132_s16  ;;  %v1340_v11 = vrot.slane %v9190_v7, 1 }
 0x28c   : > { %v9184_v63 = vpop.permute.xlu0 %2248 }
 0x28d   : > { %14641 = vst [vmem:[#allocation246_spill] sm:$0xff] %v9184_v63  ;;  %v9192_v38 = vpop.permute.xlu1 %2254  ;;  %v9202_v63 = vld [vmem:[#allocation2 + $0x98] sm:$0xff] }
 0x28e   : > { %14642 = vst [vmem:[#allocation247_spill] sm:$0xff] %v9192_v38  ;;  %2446 = vrot.lane.b32.xlu1 %v9202_v63, %s7132_s16  ;;  %2444 = vrot.lane.b32.xlu0 %v9206_v10, %s7132_s16  ;;  %v1345_v28 = vrot.slane %v9202_v63, 1 }
 0x290   : > { %v9196_v41 = vpop.permute.xlu0 %2252 }
 0x291   : > { %14643 = vst [vmem:[#allocation248_spill] sm:$0xff] %v9196_v41  ;;  %v9204_v29 = vpop.permute.xlu1 %2258  ;;  %v9214_v41 = vld [vmem:[#allocation2 + $0xb0] sm:$0xff] }
 0x292   : > { %14644 = vst [vmem:[#allocation249_spill] sm:$0xff] %v9204_v29  ;;  %2450 = vrot.lane.b32.xlu1 %v9214_v41, %s7132_s16  ;;  %2448 = vrot.lane.b32.xlu0 %v9218_v4, %s7132_s16  ;;  %v1350_v15 = vrot.slane %v9214_v41, 1 }
 0x294   : > { %v9208_v40 = vpop.permute.xlu0 %2256 }
 0x295   : > { %14645 = vst [vmem:[#allocation250_spill] sm:$0xff] %v9208_v40  ;;  %v9216_v38 = vpop.permute.xlu1 %2262  ;;  %v9226_v40 = vld [vmem:[#allocation2 + $0xc8] sm:$0xff] }
 0x296   : > { %14646 = vst [vmem:[#allocation251_spill] sm:$0xff] %v9216_v38  ;;  %2454 = vrot.lane.b32.xlu1 %v9226_v40, %s7132_s16  ;;  %2452 = vrot.lane.b32.xlu0 %v9230_v6, %s7132_s16 }
 0x298   : > { %v9220_v27 = vpop.permute.xlu0 %2260 }
 0x299   : > { %14647 = vst [vmem:[#allocation252_spill] sm:$0xff] %v9220_v27  ;;  %v9228_v29 = vpop.permute.xlu1 %2266  ;;  %v9238_v27 = vld [vmem:[#allocation2 + $0xe0] sm:$0xff] }
 0x29a   : > { %14648 = vst [vmem:[#allocation253_spill] sm:$0xff] %v9228_v29  ;;  %2458 = vrot.lane.b32.xlu1 %v9238_v27, %s7132_s16  ;;  %2456 = vrot.lane.b32.xlu0 %v9242_v8, %s7132_s16 }
 0x29c   : > { %v9232_v46 = vpop.permute.xlu0 %2264 }
 0x29d   : > { %14649 = vst [vmem:[#allocation254_spill] sm:$0xff] %v9232_v46  ;;  %v9240_v38 = vpop.permute.xlu1 %2270  ;;  %v9250_v46 = vld [vmem:[#allocation2 + $0xf8] sm:$0xff] }
 0x29e   : > { %14650 = vst [vmem:[#allocation255_spill] sm:$0xff] %v9240_v38  ;;  %2462 = vrot.lane.b32.xlu1 %v9250_v46, %s7132_s16  ;;  %2460 = vrot.lane.b32.xlu0 %v9254_v44, %s7132_s16 }
 0x2a0   : > { %v9244_v12 = vpop.permute.xlu0 %2268 }
 0x2a1   : > { %14651 = vst [vmem:[#allocation256_spill] sm:$0xff] %v9244_v12  ;;  %v9252_v29 = vpop.permute.xlu1 %2274  ;;  %v9262_v12 = vld [vmem:[#allocation2 + $0x110] sm:$0xff] }
 0x2a2   : > { %14652 = vst [vmem:[#allocation257_spill] sm:$0xff] %v9252_v29  ;;  %2466 = vrot.lane.b32.xlu1 %v9262_v12, %s7132_s16  ;;  %2464 = vrot.lane.b32.xlu0 %v9266_v1, %s7132_s16 }
 0x2a4   : > { %v9256_v23 = vpop.permute.xlu0 %2272 }
 0x2a5   : > { %14653 = vst [vmem:[#allocation258_spill] sm:$0xff] %v9256_v23  ;;  %v9264_v38 = vpop.permute.xlu1 %2314  ;;  %v9274_v23 = vld [vmem:[#allocation2 + $0x128] sm:$0xff] }
 0x2a6   : > { %14654 = vst [vmem:[#allocation259_spill] sm:$0xff] %v9264_v38  ;;  %2470 = vrot.lane.b32.xlu1 %v9274_v23, %s7132_s16  ;;  %2468 = vrot.lane.b32.xlu0 %v9278_v5, %s7132_s16 }
 0x2a8   : > { %v9268_v31 = vpop.permute.xlu0 %2312 }
 0x2a9   : > { %14655 = vst [vmem:[#allocation260_spill] sm:$0xff] %v9268_v31  ;;  %v9276_v29 = vpop.permute.xlu1 %2318  ;;  %v9286_v31 = vld [vmem:[#allocation2 + $0x140] sm:$0xff] }
 0x2aa   : > { %14656 = vst [vmem:[#allocation261_spill] sm:$0xff] %v9276_v29  ;;  %2474 = vrot.lane.b32.xlu1 %v9286_v31, %s7132_s16  ;;  %2472 = vrot.lane.b32.xlu0 %v9290_v13, %s7132_s16 }
 0x2ac   : > { %v9280_v24 = vpop.permute.xlu0 %2316 }
 0x2ad   : > { %14657 = vst [vmem:[#allocation262_spill] sm:$0xff] %v9280_v24  ;;  %v9288_v38 = vpop.permute.xlu1 %2322  ;;  %v9298_v24 = vld [vmem:[#allocation2 + $0x158] sm:$0xff] }
 0x2ae   : > { %14658 = vst [vmem:[#allocation263_spill] sm:$0xff] %v9288_v38  ;;  %2478 = vrot.lane.b32.xlu1 %v9298_v24, %s7132_s16  ;;  %2476 = vrot.lane.b32.xlu0 %v9302_v55, %s7132_s16 }
 0x2b0   : > { %v9292_v14 = vpop.permute.xlu0 %2320 }
 0x2b1   : > { %14659 = vst [vmem:[#allocation264_spill] sm:$0xff] %v9292_v14  ;;  %v9300_v29 = vpop.permute.xlu1 %2326  ;;  %v9310_v14 = vld [vmem:[#allocation2 + $0x170] sm:$0xff] }
 0x2b2   : > { %14660 = vst [vmem:[#allocation265_spill] sm:$0xff] %v9300_v29  ;;  %2482 = vrot.lane.b32.xlu1 %v9310_v14, %s7132_s16  ;;  %2480 = vrot.lane.b32.xlu0 %v9314_v54, %s7132_s16 }
 0x2b4   : > { %v9304_v0 = vpop.permute.xlu0 %2324 }
 0x2b5   : > { %14661 = vst [vmem:[#allocation266_spill] sm:$0xff] %v9304_v0  ;;  %v9312_v38 = vpop.permute.xlu1 %2330  ;;  %v9322_v0 = vld [vmem:[#allocation2 + $0x188] sm:$0xff] }
 0x2b6   : > { %14662 = vst [vmem:[#allocation267_spill] sm:$0xff] %v9312_v38  ;;  %2486 = vrot.lane.b32.xlu1 %v9322_v0, %s7132_s16  ;;  %2484 = vrot.lane.b32.xlu0 %v9326_v33, %s7132_s16  ;;  %v9337_v38 = vld [vmem:[#allocation2 + $0x1a0] sm:$0xff] }
 0x2b8   : > { %v9316_v32 = vpop.permute.xlu0 %2328 }
 0x2b9   : > { %14663 = vst [vmem:[#allocation268_spill] sm:$0xff] %v9316_v32  ;;  %v9324_v29 = vpop.permute.xlu1 %2334  ;;  %v1315_v32 = vrot.slane %v9130_v45, 1 }
 0x2ba   : > { %14664 = vst [vmem:[#allocation269_spill] sm:$0xff] %v9324_v29  ;;  %v1314_v29 = vrot.slane %v9134_v61, 1  ;;  %2490 = vrot.lane.b32.xlu1 %v9337_v38, %s7132_s16  ;;  %2488 = vrot.lane.b32.xlu0 %v9343_v16, %s7132_s16  ;;  %s7134_s16 = smov 44  }
 0x2bb   : > { %v1318_v36 = vsel %vm1052_vm0, %v1315_v32, %v1317_v62 }
 0x2bc   : > { %v9330_v56 = vpop.permute.xlu0 %2332  ;;  %v1316_v50 = vsel %vm1052_vm0, %v1314_v29, %v1315_v32  ;;  %v1325_v32 = vrot.slane %v9154_v47, 1 }
 0x2bd   : > { %14665 = vst [vmem:[#allocation270_spill] sm:$0xff] %v9330_v56  ;;  %v9341_v3 = vpop.permute.xlu1 %2338 }
 0x2be   : > { %14666 = vst [vmem:[#allocation271_spill] sm:$0xff] %v9341_v3  ;;  %v1319_v3 = vrot.slane %v9146_v18, 1  ;;  %2530 = vrot.lane.b32.xlu1 %v1318_v36, %s7133_s20  ;;  %2528 = vrot.lane.b32.xlu0 %v1316_v50, %s7133_s20  ;;  %v1324_v36 = vrot.slane %v9158_v52, 1  ;;  %v9381_v50 = vld [vmem:[#allocation2 + $0x58] sm:$0x3] }
 0x2c0   : > { %v9347_v56 = vpop.permute.xlu0 %2336  ;;  %v9372_v9 = vsel %vm1052_vm0, %v1319_v3, %v1320_v21 }
 0x2c1   : > { %14667 = vst [vmem:[#allocation272_spill] sm:$0xff] %v9347_v56  ;;  %v9357_v34 = vpop.permute.xlu1 %2342  ;;  %v9363_v56 = vld [vmem:[#allocation2 + $0x40] sm:$0x3]  ;;  %14672 = vst [vmem:[#allocation277_spill] sm:$0xff] %v9372_v9 }
 0x2c2   : > { %14668 = vst [vmem:[#allocation273_spill] sm:$0xff] %v9357_v34  ;;  %v1327_v29 = vrot.slane %v9363_v56, 1  ;;  %2534 = vrot.lane.b32.xlu1 %v9367_v37, %s7133_s20  ;;  %2532 = vrot.lane.b32.xlu0 %v9372_v9, %s7133_s20  ;;  %v1385_v9 = vrot.slane %v9298_v24, 1  ;;  %v1390_v37 = vrot.slane %v9310_v14, 1 }
 0x2c4   : > { %v9360_v25 = vpop.permute.xlu0 %2340  ;;  %v9390_v3 = vsel %vm1052_vm0, %v1325_v32, %v1327_v29 }
 0x2c5   : > { %14669 = vst [vmem:[#allocation274_spill] sm:$0xff] %v9360_v25  ;;  %v9369_v62 = vpop.permute.xlu1 %2346  ;;  %14676 = vst [vmem:[#allocation281_spill] sm:$0xff] %v9390_v3  ;;  %v9397_v25 = vsel %vm1052_vm0, %v1324_v36, %v1325_v32  ;;  %v1334_v36 = vrot.slane %v9182_v58, 1 }
 0x2c6   : > { %14671 = vst [vmem:[#allocation276_spill] sm:$0xff] %v9369_v62  ;;  %v1332_v62 = vrot.slane %v9381_v50, 1  ;;  %2538 = vrot.lane.b32.xlu1 %v9390_v3, %s7133_s20  ;;  %14677 = vst [vmem:[#allocation282_spill] sm:$0xff] %v9397_v25  ;;  %2536 = vrot.lane.b32.xlu0 %v9397_v25, %s7133_s20  ;;  %v1375_v25 = vrot.slane %v9274_v23, 1  ;;  %v1380_v3 = vrot.slane %v9286_v31, 1 }
 0x2c8   : > { %v9374_v34 = vpop.permute.xlu0 %2344 }
 0x2c9   : > { %14673 = vst [vmem:[#allocation278_spill] sm:$0xff] %v9374_v34  ;;  %v9385_v53 = vpop.permute.xlu1 %2350  ;;  %v1330_v34 = vrot.slane %v9166_v2, 1 }
 0x2ca   : > { %14674 = vst [vmem:[#allocation279_spill] sm:$0xff] %v9385_v53 }
 0x2cb   : > { %v9409_v53 = vsel %vm1052_vm0, %v1330_v34, %v1332_v62  ;;  %v9416_v32 = vsel %vm1052_vm0, %v1329_v42, %v1330_v34  ;;  %v9435_v42 = vsel %vm1052_vm0, %v1334_v36, %v1335_v59  ;;  %v1339_v34 = vrot.slane %v9194_v17, 1 }
 0x2cc   : > { %v9387_v21 = vpop.permute.xlu0 %2348  ;;  %14680 = vst [vmem:[#allocation285_spill] sm:$0xff] %v9409_v53  ;;  %2542 = vrot.lane.b32.xlu1 %v9409_v53, %s7133_s20  ;;  %14681 = vst [vmem:[#allocation286_spill] sm:$0xff] %v9416_v32  ;;  %2540 = vrot.lane.b32.xlu0 %v9416_v32, %s7133_s20  ;;  %v1344_v36 = vrot.slane %v9206_v10, 1  ;;  %v1365_v32 = vrot.slane %v9250_v46, 1  ;;  %v1370_v53 = vrot.slane %v9262_v12, 1 }
 0x2cd   : > { %14675 = vst [vmem:[#allocation280_spill] sm:$0xff] %v9387_v21  ;;  %v9404_v21 = vpop.permute.xlu1 %2354  ;;  %14685 = vst [vmem:[#allocation290_spill] sm:$0xff] %v9435_v42 }
 0x2ce   : > { %14678 = vst [vmem:[#allocation283_spill] sm:$0xff] %v9404_v21  ;;  %v9428_v21 = vsel %vm1052_vm0, %v1335_v59, %v1337_v39  ;;  %v9454_v59 = vsel %vm1052_vm0, %v1339_v34, %v1340_v11  ;;  %v1349_v34 = vrot.slane %v9218_v4, 1 }
 0x2cf   : > { %14684 = vst [vmem:[#allocation289_spill] sm:$0xff] %v9428_v21  ;;  %14689 = vst [vmem:[#allocation294_spill] sm:$0xff] %v9454_v59 }
 0x2d0   : > { %v9406_v29 = vpop.permute.xlu0 %2352  ;;  %2546 = vrot.lane.b32.xlu1 %v9428_v21, %s7133_s20  ;;  %2544 = vrot.lane.b32.xlu0 %v9435_v42, %s7133_s20  ;;  %v1355_v42 = vrot.slane %v9226_v40, 1  ;;  %v1360_v21 = vrot.slane %v9238_v27, 1 }
 0x2d1   : > { %14679 = vst [vmem:[#allocation284_spill] sm:$0xff] %v9406_v29  ;;  %v9423_v29 = vpop.permute.xlu1 %2358 }
 0x2d2   : > { %14682 = vst [vmem:[#allocation287_spill] sm:$0xff] %v9423_v29  ;;  %v9447_v29 = vsel %vm1052_vm0, %v1340_v11, %v1342_v49  ;;  %v9473_v11 = vsel %vm1052_vm0, %v1344_v36, %v1345_v28  ;;  %v1354_v36 = vrot.slane %v9230_v6, 1 }
 0x2d3   : > { %14688 = vst [vmem:[#allocation293_spill] sm:$0xff] %v9447_v29  ;;  %14693 = vst [vmem:[#allocation298_spill] sm:$0xff] %v9473_v11 }
 0x2d4   : > { %v9425_v62 = vpop.permute.xlu0 %2356  ;;  %2550 = vrot.lane.b32.xlu1 %v9447_v29, %s7133_s20  ;;  %2548 = vrot.lane.b32.xlu0 %v9454_v59, %s7133_s20  ;;  %v1352_v29 = vrot.slane %v9457_v30, 1  ;;  %v9476_v59 = vld [vmem:[#allocation2 + $0xd0] sm:$0x3] }
 0x2d5   : > { %14683 = vst [vmem:[#allocation288_spill] sm:$0xff] %v9425_v62  ;;  %v9442_v62 = vpop.permute.xlu1 %2362 }
 0x2d6   : > { %14686 = vst [vmem:[#allocation291_spill] sm:$0xff] %v9442_v62  ;;  %v9466_v62 = vsel %vm1052_vm0, %v1345_v28, %v1347_v35  ;;  %v9492_v28 = vsel %vm1052_vm0, %v1349_v34, %v1350_v15  ;;  %v1359_v34 = vrot.slane %v9242_v8, 1 }
 0x2d7   : > { %14692 = vst [vmem:[#allocation297_spill] sm:$0xff] %v9466_v62  ;;  %14697 = vst [vmem:[#allocation302_spill] sm:$0xff] %v9492_v28 }
 0x2d8   : > { %v9444_v39 = vpop.permute.xlu0 %2360  ;;  %2554 = vrot.lane.b32.xlu1 %v9466_v62, %s7133_s20  ;;  %2552 = vrot.lane.b32.xlu0 %v9473_v11, %s7133_s20  ;;  %v1357_v62 = vrot.slane %v9476_v59, 1  ;;  %v9495_v11 = vld [vmem:[#allocation2 + $0xe8] sm:$0x3] }
 0x2d9   : > { %14687 = vst [vmem:[#allocation292_spill] sm:$0xff] %v9444_v39  ;;  %v9461_v39 = vpop.permute.xlu1 %2366 }
 0x2da   : > { %14690 = vst [vmem:[#allocation295_spill] sm:$0xff] %v9461_v39  ;;  %v9485_v39 = vsel %vm1052_vm0, %v1350_v15, %v1352_v29  ;;  %v9511_v15 = vsel %vm1052_vm0, %v1354_v36, %v1355_v42  ;;  %v1364_v36 = vrot.slane %v9254_v44, 1 }
 0x2db   : > { %14696 = vst [vmem:[#allocation301_spill] sm:$0xff] %v9485_v39  ;;  %14701 = vst [vmem:[#allocation306_spill] sm:$0xff] %v9511_v15 }
 0x2dc   : > { %v9463_v49 = vpop.permute.xlu0 %2364  ;;  %2558 = vrot.lane.b32.xlu1 %v9485_v39, %s7133_s20  ;;  %2556 = vrot.lane.b32.xlu0 %v9492_v28, %s7133_s20  ;;  %v1362_v39 = vrot.slane %v9495_v11, 1  ;;  %v9514_v28 = vld [vmem:[#allocation2 + $0x100] sm:$0x3] }
 0x2dd   : > { %14691 = vst [vmem:[#allocation296_spill] sm:$0xff] %v9463_v49  ;;  %v9480_v49 = vpop.permute.xlu1 %2370 }
 0x2de   : > { %14694 = vst [vmem:[#allocation299_spill] sm:$0xff] %v9480_v49  ;;  %v9504_v49 = vsel %vm1052_vm0, %v1355_v42, %v1357_v62  ;;  %v9530_v42 = vsel %vm1052_vm0, %v1359_v34, %v1360_v21  ;;  %v1369_v34 = vrot.slane %v9266_v1, 1 }
 0x2df   : > { %14700 = vst [vmem:[#allocation305_spill] sm:$0xff] %v9504_v49  ;;  %14705 = vst [vmem:[#allocation310_spill] sm:$0xff] %v9530_v42 }
 0x2e0   : > { %v9482_v35 = vpop.permute.xlu0 %2368  ;;  %2562 = vrot.lane.b32.xlu1 %v9504_v49, %s7133_s20  ;;  %2560 = vrot.lane.b32.xlu0 %v9511_v15, %s7133_s20  ;;  %v1367_v49 = vrot.slane %v9514_v28, 1  ;;  %v9533_v15 = vld [vmem:[#allocation2 + $0x118] sm:$0x3] }
 0x2e1   : > { %14695 = vst [vmem:[#allocation300_spill] sm:$0xff] %v9482_v35  ;;  %v9499_v35 = vpop.permute.xlu1 %2374 }
 0x2e2   : > { %14698 = vst [vmem:[#allocation303_spill] sm:$0xff] %v9499_v35  ;;  %v9523_v35 = vsel %vm1052_vm0, %v1360_v21, %v1362_v39  ;;  %v9549_v21 = vsel %vm1052_vm0, %v1364_v36, %v1365_v32  ;;  %v1374_v36 = vrot.slane %v9278_v5, 1 }
 0x2e3   : > { %14704 = vst [vmem:[#allocation309_spill] sm:$0xff] %v9523_v35  ;;  %14709 = vst [vmem:[#allocation314_spill] sm:$0xff] %v9549_v21 }
 0x2e4   : > { %v9501_v29 = vpop.permute.xlu0 %2372  ;;  %2566 = vrot.lane.b32.xlu1 %v9523_v35, %s7133_s20  ;;  %2564 = vrot.lane.b32.xlu0 %v9530_v42, %s7133_s20  ;;  %v1372_v35 = vrot.slane %v9533_v15, 1  ;;  %v9552_v42 = vld [vmem:[#allocation2 + $0x130] sm:$0x3] }
 0x2e5   : > { %14699 = vst [vmem:[#allocation304_spill] sm:$0xff] %v9501_v29  ;;  %v9518_v29 = vpop.permute.xlu1 %2378 }
 0x2e6   : > { %14702 = vst [vmem:[#allocation307_spill] sm:$0xff] %v9518_v29  ;;  %v9542_v29 = vsel %vm1052_vm0, %v1365_v32, %v1367_v49  ;;  %v9568_v32 = vsel %vm1052_vm0, %v1369_v34, %v1370_v53  ;;  %v1379_v34 = vrot.slane %v9290_v13, 1 }
 0x2e7   : > { %14708 = vst [vmem:[#allocation313_spill] sm:$0xff] %v9542_v29  ;;  %14713 = vst [vmem:[#allocation318_spill] sm:$0xff] %v9568_v32 }
 0x2e8   : > { %v9520_v62 = vpop.permute.xlu0 %2376  ;;  %2570 = vrot.lane.b32.xlu1 %v9542_v29, %s7133_s20  ;;  %2568 = vrot.lane.b32.xlu0 %v9549_v21, %s7133_s20  ;;  %v1377_v29 = vrot.slane %v9552_v42, 1  ;;  %v9571_v21 = vld [vmem:[#allocation2 + $0x148] sm:$0x3] }
 0x2e9   : > { %14703 = vst [vmem:[#allocation308_spill] sm:$0xff] %v9520_v62  ;;  %v9537_v62 = vpop.permute.xlu1 %2382 }
 0x2ea   : > { %14706 = vst [vmem:[#allocation311_spill] sm:$0xff] %v9537_v62  ;;  %v9561_v62 = vsel %vm1052_vm0, %v1370_v53, %v1372_v35  ;;  %v9587_v53 = vsel %vm1052_vm0, %v1374_v36, %v1375_v25  ;;  %v1384_v36 = vrot.slane %v9302_v55, 1 }
 0x2eb   : > { %14712 = vst [vmem:[#allocation317_spill] sm:$0xff] %v9561_v62  ;;  %14717 = vst [vmem:[#allocation322_spill] sm:$0xff] %v9587_v53 }
 0x2ec   : > { %v9539_v39 = vpop.permute.xlu0 %2380  ;;  %2574 = vrot.lane.b32.xlu1 %v9561_v62, %s7133_s20  ;;  %2572 = vrot.lane.b32.xlu0 %v9568_v32, %s7133_s20  ;;  %v1382_v62 = vrot.slane %v9571_v21, 1  ;;  %v9590_v32 = vld [vmem:[#allocation2 + $0x160] sm:$0x3] }
 0x2ed   : > { %14707 = vst [vmem:[#allocation312_spill] sm:$0xff] %v9539_v39  ;;  %v9556_v39 = vpop.permute.xlu1 %2422 }
 0x2ee   : > { %14710 = vst [vmem:[#allocation315_spill] sm:$0xff] %v9556_v39  ;;  %v9580_v39 = vsel %vm1052_vm0, %v1375_v25, %v1377_v29  ;;  %v9606_v25 = vsel %vm1052_vm0, %v1379_v34, %v1380_v3  ;;  %v1389_v34 = vrot.slane %v9314_v54, 1 }
 0x2ef   : > { %14716 = vst [vmem:[#allocation321_spill] sm:$0xff] %v9580_v39  ;;  %14721 = vst [vmem:[#allocation326_spill] sm:$0xff] %v9606_v25 }
 0x2f0   : > { %v9558_v49 = vpop.permute.xlu0 %2420  ;;  %2578 = vrot.lane.b32.xlu1 %v9580_v39, %s7133_s20  ;;  %2576 = vrot.lane.b32.xlu0 %v9587_v53, %s7133_s20  ;;  %v1387_v39 = vrot.slane %v9590_v32, 1  ;;  %v9609_v53 = vld [vmem:[#allocation2 + $0x178] sm:$0x3] }
 0x2f1   : > { %14711 = vst [vmem:[#allocation316_spill] sm:$0xff] %v9558_v49  ;;  %v9575_v49 = vpop.permute.xlu1 %2426  ;;  %14722 = vst [vmem:[#allocation327_spill] sm:$0xff] %v9609_v53 }
 0x2f2   : > { %14714 = vst [vmem:[#allocation319_spill] sm:$0xff] %v9575_v49  ;;  %v9599_v49 = vsel %vm1052_vm0, %v1380_v3, %v1382_v62  ;;  %v9625_v3 = vsel %vm1052_vm0, %v1384_v36, %v1385_v9  ;;  %v1394_v36 = vrot.slane %v9326_v33, 1 }
 0x2f3   : > { %14720 = vst [vmem:[#allocation325_spill] sm:$0xff] %v9599_v49  ;;  %14726 = vst [vmem:[#allocation331_spill] sm:$0xff] %v9625_v3 }
 0x2f4   : > { %v9577_v35 = vpop.permute.xlu0 %2424  ;;  %2582 = vrot.lane.b32.xlu1 %v9599_v49, %s7133_s20  ;;  %2580 = vrot.lane.b32.xlu0 %v9606_v25, %s7133_s20  ;;  %v1392_v49 = vrot.slane %v9609_v53, 1  ;;  %v9628_v25 = vld [vmem:[#allocation2 + $0x190] sm:$0x3]  ;;  %v1395_v53 = vrot.slane %v9322_v0, 1 }
 0x2f5   : > { %14715 = vst [vmem:[#allocation320_spill] sm:$0xff] %v9577_v35  ;;  %v9594_v35 = vpop.permute.xlu1 %2430  ;;  %14727 = vst [vmem:[#allocation332_spill] sm:$0xff] %v9628_v25 }
 0x2f6   : > { %14718 = vst [vmem:[#allocation323_spill] sm:$0xff] %v9594_v35  ;;  %v9618_v35 = vsel %vm1052_vm0, %v1385_v9, %v1387_v39  ;;  %v9644_v9 = vsel %vm1052_vm0, %v1389_v34, %v1390_v37  ;;  %v1399_v34 = vrot.slane %v9343_v16, 1 }
 0x2f7   : > { %14725 = vst [vmem:[#allocation330_spill] sm:$0xff] %v9618_v35  ;;  %14731 = vst [vmem:[#allocation336_spill] sm:$0xff] %v9644_v9 }
 0x2f8   : > { %v9596_v29 = vpop.permute.xlu0 %2428  ;;  %2586 = vrot.lane.b32.xlu1 %v9618_v35, %s7133_s20  ;;  %2584 = vrot.lane.b32.xlu0 %v9625_v3, %s7133_s20  ;;  %v1397_v35 = vrot.slane %v9628_v25, 1  ;;  %v9647_v3 = vld [vmem:[#allocation2 + $0x1a8] sm:$0x3]  ;;  %v1400_v25 = vrot.slane %v9337_v38, 1 }
 0x2f9   : > { %14719 = vst [vmem:[#allocation324_spill] sm:$0xff] %v9596_v29  ;;  %v9613_v29 = vpop.permute.xlu1 %2434  ;;  %14732 = vst [vmem:[#allocation337_spill] sm:$0xff] %v9647_v3 }
 0x2fa   : > { %14723 = vst [vmem:[#allocation328_spill] sm:$0xff] %v9613_v29  ;;  %v9637_v29 = vsel %vm1052_vm0, %v1390_v37, %v1392_v49  ;;  %v9663_v37 = vsel %vm1052_vm0, %v1394_v36, %v1395_v53  ;;  %v1409_v36 = vrot.slane %v9146_v18, 2 }
 0x2fb   : > { %14730 = vst [vmem:[#allocation335_spill] sm:$0xff] %v9637_v29  ;;  %14736 = vst [vmem:[#allocation341_spill] sm:$0xff] %v9663_v37 }
 0x2fc   : > { %v9615_v62 = vpop.permute.xlu0 %2432  ;;  %2590 = vrot.lane.b32.xlu1 %v9637_v29, %s7133_s20  ;;  %2588 = vrot.lane.b32.xlu0 %v9644_v9, %s7133_s20  ;;  %v1402_v29 = vrot.slane %v9647_v3, 1  ;;  %v1405_v9 = vrot.slane %v9130_v45, 2  ;;  %v1410_v45 = vrot.slane %v9142_v51, 2 }
 0x2fd   : > { %14724 = vst [vmem:[#allocation329_spill] sm:$0xff] %v9615_v62  ;;  %v9632_v62 = vpop.permute.xlu1 %2438 }
 0x2fe   : > { %14728 = vst [vmem:[#allocation333_spill] sm:$0xff] %v9632_v62  ;;  %v9656_v62 = vsel %vm1052_vm0, %v1395_v53, %v1397_v35  ;;  %v1407_v35 = vrot.slane %v9328_v48, 2  ;;  %v9681_v53 = vsel %vm1052_vm0, %v1399_v34, %v1400_v25  ;;  %v9698_v34 = vld [vmem:[%s13980_s3] ss:$0 sm:$0xff] }
 0x2ff   : > { %14735 = vst [vmem:[#allocation340_spill] sm:$0xff] %v9656_v62  ;;  %14740 = vst [vmem:[#allocation345_spill] sm:$0xff] %v9681_v53 }
 0x300   : > { %v9634_v39 = vpop.permute.xlu0 %2436  ;;  %2594 = vrot.lane.b32.xlu1 %v9656_v62, %s7133_s20  ;;  %2592 = vrot.lane.b32.xlu0 %v9663_v37, %s7133_s20  ;;  %v9676_v62 = vsel %vm1052_vm0, %v1400_v25, %v1402_v29  ;;  %v1408_v48 = vsel %vm1143_vm1, %v1405_v9, %v1407_v35  ;;  %v6673_v25 = vpop.f32.mrb[14].mxu1 }
 0x301   : > { %14729 = vst [vmem:[#allocation334_spill] sm:$0xff] %v9634_v39  ;;  %v9651_v39 = vpop.permute.xlu1 %2442  ;;  %14739 = vst [vmem:[#allocation344_spill] sm:$0xff] %v9676_v62  ;;  %v820_v35 = vpop.f32.mrb[15].mxu1 }
 0x302   : > { %14733 = vst [vmem:[#allocation338_spill] sm:$0xff] %v9651_v39 }
 0x304   : > { %v9653_v49 = vpop.permute.xlu0 %2440  ;;  %2598 = vrot.lane.b32.xlu1 %v9676_v62, %s7133_s20  ;;  %2596 = vrot.lane.b32.xlu0 %v9681_v53, %s7133_s20  ;;  %s7138_s20 = smov 60  }
 0x305   : > { %14734 = vst [vmem:[#allocation339_spill] sm:$0xff] %v9653_v49  ;;  %v1404_v49 = vrot.slane %v9134_v61, 2  ;;  %v9671_v39 = vpop.permute.xlu1 %2446  ;;  %v1412_v61 = vrot.slane %v9345_v19, 2  ;;  %v826_v19 = vadd.f32 %v9698_v34, %v6673_v25  ;;  %v1415_v25 = vrot.slane %v9154_v47, 2 }
 0x306   : > { %14737 = vst [vmem:[#allocation342_spill] sm:$0xff] %v9671_v39 }
 0x307   : > { %918 = vst.msk [vmem:[#allocation2 + $0x1b9] sm:$0xff] %vm880_vm5, %v826_v19 }
 0x308   : > { %v9673_v3 = vpop.permute.xlu0 %2444  ;;  %2638 = vrot.lane.b32.xlu1 %v1408_v48, %s7134_s16  ;;  %v9710_v48 = vsel %vm1143_vm1, %v1409_v36, %v1410_v45  ;;  %934 = vst.msk [vmem:[#allocation2 + $0x1c0] sm:$0x3] %vm926_vm4, %v14551_v20 }
 0x309   : > { %14738 = vst [vmem:[#allocation343_spill] sm:$0xff] %v9673_v3  ;;  %v9689_v29 = vpop.permute.xlu1 %2450  ;;  %v1406_v3 = vsel %vm1143_vm1, %v1404_v49, %v1405_v9  ;;  %v821_v9 = vadd.f32 %v9698_v34, %v820_v35  ;;  %v443_v49 = vld [vmem:[%s8071_s22 + $0x130] sm:$0xff]  ;;  %v1420_v35 = vrot.slane %v9166_v2, 2 }
 0x30a   : > { %14741 = vst [vmem:[#allocation346_spill] sm:$0xff] %v9689_v29  ;;  %2636 = vrot.lane.b32.xlu0 %v1406_v3, %s7134_s16  ;;  %v9703_v29 = vsel %vm1143_vm1, %v1410_v45, %v1412_v61  ;;  %6674 = vmatprep.mubr.msk.f32.mxu1 %vm453_vm2, %v443_v49  ;;  %v1417_v3 = vrot.slane %v9363_v56, 2  ;;  %v444_v61 = vld [vmem:[%s8071_s22 + $0x138] sm:$0xff]  ;;  %v1414_v45 = vrot.slane %v9158_v52, 2  ;;  %s7135_s22 = smov 48  }
 0x30b   : > { %917 = vst.msk [vmem:[#allocation2 + $0x1b1] sm:$0xff] %vm880_vm5, %v821_v9  ;;  %6675 = vmatmul.mubr.msk.f32.gmra.mrb[16].mxu1 %vm453_vm2, %v444_v61  ;;  %v1422_v9 = vrot.slane %v9381_v50, 2  ;;  %v1419_v61 = vrot.slane %v9170_v43, 2  ;;  %v1425_v50 = vrot.slane %v9178_v22, 2 }
 0x30c   : > { %v9692_v39 = vpop.permute.xlu0 %2448  ;;  %2642 = vrot.lane.b32.xlu1 %v9703_v29, %s7134_s16  ;;  %932 = vst.msk [vmem:[#allocation2 + $0x1b0] sm:$0xff] %vm880_vm5, %v14551_v20  ;;  %933 = vst.msk [vmem:[#allocation2 + $0x1b8] sm:$0xff] %vm880_vm5, %v14551_v20  ;;  %v9737_v19 = vsel %vm1143_vm1, %v1415_v25, %v1417_v3  ;;  %v9744_v49 = vsel %vm1143_vm1, %v1414_v45, %v1415_v25  ;;  %v1424_v45 = vrot.slane %v9182_v58, 2 }
 0x30d   : > { %14742 = vst [vmem:[#allocation347_spill] sm:$0xff] %v9692_v39  ;;  %v9707_v39 = vpop.permute.xlu1 %2454  ;;  %v9754_v3 = vsel %vm1143_vm1, %v1420_v35, %v1422_v9  ;;  %v9761_v25 = vsel %vm1143_vm1, %v1419_v61, %v1420_v35  ;;  %v1429_v61 = vrot.slane %v9194_v17, 2 }
 0x30e   : > { %14743 = vst [vmem:[#allocation348_spill] sm:$0xff] %v9707_v39  ;;  %2640 = vrot.lane.b32.xlu0 %v9710_v48, %s7134_s16  ;;  %14749 = vst [vmem:[#allocation354_spill] sm:$0xff] %v9761_v25  ;;  %v1432_v39 = vrot.slane %v9419_v26, 2  ;;  %v9778_v35 = vsel %vm1143_vm1, %v1424_v45, %v1425_v50  ;;  %v1435_v26 = vrot.slane %v9202_v63, 2  ;;  %v1434_v45 = vrot.slane %v9206_v10, 2 }
 0x30f   : > { %14752 = vst [vmem:[#allocation357_spill] sm:$0xff] %v9778_v35 }
 0x310   : > { %v9714_v53 = vpop.permute.xlu0 %2452  ;;  %2646 = vrot.lane.b32.xlu1 %v9737_v19, %s7134_s16 }
 0x311   : > { %14744 = vst [vmem:[#allocation349_spill] sm:$0xff] %v9714_v53  ;;  %v9732_v56 = vpop.permute.xlu1 %2458  ;;  %v1427_v53 = vrot.slane %v9400_v57, 2  ;;  %v1430_v57 = vrot.slane %v9190_v7, 2 }
 0x312   : > { %14745 = vst [vmem:[#allocation350_spill] sm:$0xff] %v9732_v56  ;;  %2644 = vrot.lane.b32.xlu0 %v9744_v49, %s7134_s16 }
 0x313   : > { %v9771_v9 = vsel %vm1143_vm1, %v1425_v50, %v1427_v53  ;;  %v9788_v53 = vsel %vm1143_vm1, %v1430_v57, %v1432_v39  ;;  %v9795_v50 = vsel %vm1143_vm1, %v1429_v61, %v1430_v57  ;;  %v9812_v57 = vsel %vm1143_vm1, %v1434_v45, %v1435_v26 }
 0x314   : > { %v9734_v36 = vpop.permute.xlu0 %2456  ;;  %2650 = vrot.lane.b32.xlu1 %v9754_v3, %s7134_s16  ;;  %14755 = vst [vmem:[#allocation360_spill] sm:$0xff] %v9795_v50  ;;  %14758 = vst [vmem:[#allocation363_spill] sm:$0xff] %v9812_v57  ;;  %v1439_v61 = vrot.slane %v9218_v4, 2  ;;  %v1444_v45 = vrot.slane %v9230_v6, 2 }
 0x315   : > { %14746 = vst [vmem:[#allocation351_spill] sm:$0xff] %v9734_v36  ;;  %v9749_v56 = vpop.permute.xlu1 %2462 }
 0x316   : > { %14747 = vst [vmem:[#allocation352_spill] sm:$0xff] %v9749_v56  ;;  %2648 = vrot.lane.b32.xlu0 %v9761_v25, %s7134_s16  ;;  %v1437_v25 = vrot.slane %v9438_v60, 2  ;;  %v1440_v60 = vrot.slane %v9214_v41, 2 }
 0x318   : > { %v9751_v36 = vpop.permute.xlu0 %2460  ;;  %2654 = vrot.lane.b32.xlu1 %v9771_v9, %s7134_s16  ;;  %v9805_v39 = vsel %vm1143_vm1, %v1435_v26, %v1437_v25  ;;  %v9829_v26 = vsel %vm1143_vm1, %v1439_v61, %v1440_v60  ;;  %v1449_v61 = vrot.slane %v9242_v8, 2 }
 0x319   : > { %14748 = vst [vmem:[#allocation353_spill] sm:$0xff] %v9751_v36  ;;  %v9766_v56 = vpop.permute.xlu1 %2466  ;;  %14761 = vst [vmem:[#allocation366_spill] sm:$0xff] %v9829_v26 }
 0x31a   : > { %14750 = vst [vmem:[#allocation355_spill] sm:$0xff] %v9766_v56  ;;  %2652 = vrot.lane.b32.xlu0 %v9778_v35, %s7134_s16  ;;  %v1442_v35 = vrot.slane %v9457_v30, 2  ;;  %v1445_v30 = vrot.slane %v9226_v40, 2 }
 0x31c   : > { %v9768_v36 = vpop.permute.xlu0 %2464  ;;  %2658 = vrot.lane.b32.xlu1 %v9788_v53, %s7134_s16  ;;  %v9822_v25 = vsel %vm1143_vm1, %v1440_v60, %v1442_v35  ;;  %v9846_v60 = vsel %vm1143_vm1, %v1444_v45, %v1445_v30  ;;  %v1454_v45 = vrot.slane %v9254_v44, 2 }
 0x31d   : > { %14751 = vst [vmem:[#allocation356_spill] sm:$0xff] %v9768_v36  ;;  %v9783_v56 = vpop.permute.xlu1 %2470  ;;  %14764 = vst [vmem:[#allocation369_spill] sm:$0xff] %v9846_v60 }
 0x31e   : > { %14753 = vst [vmem:[#allocation358_spill] sm:$0xff] %v9783_v56  ;;  %2656 = vrot.lane.b32.xlu0 %v9795_v50, %s7134_s16  ;;  %v1447_v50 = vrot.slane %v9476_v59, 2  ;;  %v1450_v59 = vrot.slane %v9238_v27, 2 }
 0x320   : > { %v9785_v36 = vpop.permute.xlu0 %2468  ;;  %2662 = vrot.lane.b32.xlu1 %v9805_v39, %s7134_s16  ;;  %v9839_v35 = vsel %vm1143_vm1, %v1445_v30, %v1447_v50  ;;  %v9863_v30 = vsel %vm1143_vm1, %v1449_v61, %v1450_v59  ;;  %v1459_v61 = vrot.slane %v9266_v1, 2 }
 0x321   : > { %14754 = vst [vmem:[#allocation359_spill] sm:$0xff] %v9785_v36  ;;  %v9800_v56 = vpop.permute.xlu1 %2474  ;;  %14767 = vst [vmem:[#allocation372_spill] sm:$0xff] %v9863_v30 }
 0x322   : > { %14756 = vst [vmem:[#allocation361_spill] sm:$0xff] %v9800_v56  ;;  %2660 = vrot.lane.b32.xlu0 %v9812_v57, %s7134_s16  ;;  %v1452_v57 = vrot.slane %v9495_v11, 2  ;;  %v1455_v11 = vrot.slane %v9250_v46, 2 }
 0x324   : > { %v9802_v36 = vpop.permute.xlu0 %2472  ;;  %2666 = vrot.lane.b32.xlu1 %v9822_v25, %s7134_s16  ;;  %v9856_v50 = vsel %vm1143_vm1, %v1450_v59, %v1452_v57  ;;  %v9880_v59 = vsel %vm1143_vm1, %v1454_v45, %v1455_v11  ;;  %v1464_v45 = vrot.slane %v9278_v5, 2 }
 0x325   : > { %14757 = vst [vmem:[#allocation362_spill] sm:$0xff] %v9802_v36  ;;  %v9817_v56 = vpop.permute.xlu1 %2478  ;;  %14770 = vst [vmem:[#allocation375_spill] sm:$0xff] %v9880_v59 }
 0x326   : > { %14759 = vst [vmem:[#allocation364_spill] sm:$0xff] %v9817_v56  ;;  %2664 = vrot.lane.b32.xlu0 %v9829_v26, %s7134_s16  ;;  %v1457_v26 = vrot.slane %v9514_v28, 2  ;;  %v1460_v28 = vrot.slane %v9262_v12, 2 }
 0x328   : > { %v9819_v36 = vpop.permute.xlu0 %2476  ;;  %2670 = vrot.lane.b32.xlu1 %v9839_v35, %s7134_s16  ;;  %v9873_v57 = vsel %vm1143_vm1, %v1455_v11, %v1457_v26  ;;  %v9897_v11 = vsel %vm1143_vm1, %v1459_v61, %v1460_v28  ;;  %v1469_v61 = vrot.slane %v9290_v13, 2 }
 0x329   : > { %14760 = vst [vmem:[#allocation365_spill] sm:$0xff] %v9819_v36  ;;  %v9834_v56 = vpop.permute.xlu1 %2482  ;;  %14773 = vst [vmem:[#allocation378_spill] sm:$0xff] %v9897_v11 }
 0x32a   : > { %14762 = vst [vmem:[#allocation367_spill] sm:$0xff] %v9834_v56  ;;  %2668 = vrot.lane.b32.xlu0 %v9846_v60, %s7134_s16  ;;  %v1462_v60 = vrot.slane %v9533_v15, 2  ;;  %v1465_v15 = vrot.slane %v9274_v23, 2 }
 0x32c   : > { %v9836_v36 = vpop.permute.xlu0 %2480  ;;  %2674 = vrot.lane.b32.xlu1 %v9856_v50, %s7134_s16  ;;  %v9890_v26 = vsel %vm1143_vm1, %v1460_v28, %v1462_v60  ;;  %v9914_v28 = vsel %vm1143_vm1, %v1464_v45, %v1465_v15  ;;  %v1474_v45 = vrot.slane %v9302_v55, 2 }
 0x32d   : > { %14763 = vst [vmem:[#allocation368_spill] sm:$0xff] %v9836_v36  ;;  %v9851_v56 = vpop.permute.xlu1 %2486  ;;  %14777 = vst [vmem:[#allocation382_spill] sm:$0xff] %v9914_v28 }
 0x32e   : > { %14765 = vst [vmem:[#allocation370_spill] sm:$0xff] %v9851_v56  ;;  %2672 = vrot.lane.b32.xlu0 %v9863_v30, %s7134_s16  ;;  %v1467_v30 = vrot.slane %v9552_v42, 2  ;;  %v1470_v42 = vrot.slane %v9286_v31, 2 }
 0x330   : > { %v9853_v36 = vpop.permute.xlu0 %2484  ;;  %2678 = vrot.lane.b32.xlu1 %v9873_v57, %s7134_s16  ;;  %v9907_v60 = vsel %vm1143_vm1, %v1465_v15, %v1467_v30  ;;  %v9931_v15 = vsel %vm1143_vm1, %v1469_v61, %v1470_v42  ;;  %v1479_v61 = vrot.slane %v9314_v54, 2 }
 0x331   : > { %14766 = vst [vmem:[#allocation371_spill] sm:$0xff] %v9853_v36  ;;  %v9868_v56 = vpop.permute.xlu1 %2490  ;;  %14776 = vst [vmem:[#allocation381_spill] sm:$0xff] %v9907_v60 }
 0x332   : > { %14768 = vst [vmem:[#allocation373_spill] sm:$0xff] %v9868_v56  ;;  %2676 = vrot.lane.b32.xlu0 %v9880_v59, %s7134_s16  ;;  %v1472_v59 = vrot.slane %v9571_v21, 2  ;;  %v1475_v21 = vrot.slane %v9298_v24, 2  ;;  %14781 = vst [vmem:[#allocation386_spill] sm:$0xff] %v9931_v15 }
 0x334   : > { %v9870_v36 = vpop.permute.xlu0 %2488  ;;  %2682 = vrot.lane.b32.xlu1 %v9890_v26, %s7134_s16  ;;  %v9924_v30 = vsel %vm1143_vm1, %v1470_v42, %v1472_v59  ;;  %v9948_v42 = vsel %vm1143_vm1, %v1474_v45, %v1475_v21  ;;  %v1484_v45 = vrot.slane %v9326_v33, 2 }
 0x335   : > { %14769 = vst [vmem:[#allocation374_spill] sm:$0xff] %v9870_v36  ;;  %v9885_v56 = vpop.permute.xlu1 %2530  ;;  %14780 = vst [vmem:[#allocation385_spill] sm:$0xff] %v9924_v30 }
 0x336   : > { %14771 = vst [vmem:[#allocation376_spill] sm:$0xff] %v9885_v56  ;;  %2680 = vrot.lane.b32.xlu0 %v9897_v11, %s7134_s16  ;;  %v1477_v11 = vrot.slane %v9590_v32, 2  ;;  %v1480_v32 = vrot.slane %v9310_v14, 2 }
 0x338   : > { %v9887_v36 = vpop.permute.xlu0 %2528  ;;  %2686 = vrot.lane.b32.xlu1 %v9907_v60, %s7134_s16  ;;  %v9941_v59 = vsel %vm1143_vm1, %v1475_v21, %v1477_v11  ;;  %v9965_v21 = vsel %vm1143_vm1, %v1479_v61, %v1480_v32  ;;  %v1489_v61 = vrot.slane %v9343_v16, 2 }
 0x339   : > { %14772 = vst [vmem:[#allocation377_spill] sm:$0xff] %v9887_v36  ;;  %v9902_v56 = vpop.permute.xlu1 %2534  ;;  %14784 = vst [vmem:[#allocation389_spill] sm:$0xff] %v9941_v59 }
 0x33a   : > { %14774 = vst [vmem:[#allocation379_spill] sm:$0xff] %v9902_v56  ;;  %2684 = vrot.lane.b32.xlu0 %v9914_v28, %s7134_s16  ;;  %v14785_v28 = vld [vmem:[#allocation327_spill] sm:$0xff] }
 0x33b   : > { %v1482_v60 = vrot.slane %v14785_v28, 2  ;;  %14786 = vst [vmem:[#allocation327_spill] sm:$0xff] %v9948_v42  ;;  %v1485_v28 = vrot.slane %v9322_v0, 2 }
 0x33c   : > { %v9904_v36 = vpop.permute.xlu0 %2532  ;;  %2690 = vrot.lane.b32.xlu1 %v9924_v30, %s7134_s16 }
 0x33d   : > { %14775 = vst [vmem:[#allocation380_spill] sm:$0xff] %v9904_v36  ;;  %v9919_v56 = vpop.permute.xlu1 %2538  ;;  %v9958_v11 = vsel %vm1143_vm1, %v1480_v32, %v1482_v60  ;;  %v9982_v32 = vsel %vm1143_vm1, %v1484_v45, %v1485_v28 }
 0x33e   : > { %14778 = vst [vmem:[#allocation383_spill] sm:$0xff] %v9919_v56  ;;  %2688 = vrot.lane.b32.xlu0 %v9931_v15, %s7134_s16  ;;  %v14789_v15 = vld [vmem:[#allocation332_spill] sm:$0xff] }
 0x33f   : > { %v1487_v30 = vrot.slane %v14789_v15, 2  ;;  %v1490_v15 = vrot.slane %v9337_v38, 2 }
 0x340   : > { %v9921_v36 = vpop.permute.xlu0 %2536  ;;  %2694 = vrot.lane.b32.xlu1 %v9941_v59, %s7134_s16 }
 0x341   : > { %14779 = vst [vmem:[#allocation384_spill] sm:$0xff] %v9921_v36  ;;  %v9936_v56 = vpop.permute.xlu1 %2542  ;;  %v9975_v60 = vsel %vm1143_vm1, %v1485_v28, %v1487_v30 }
 0x342   : > { %14782 = vst [vmem:[#allocation387_spill] sm:$0xff] %v9936_v56  ;;  %2692 = vrot.lane.b32.xlu0 %v9948_v42, %s7134_s16  ;;  %v14792_v42 = vld [vmem:[#allocation337_spill] sm:$0xff] }
 0x343   : > { %v1492_v59 = vrot.slane %v14792_v42, 2  ;;  %v9997_v42 = vsel %vm1143_vm1, %v1489_v61, %v1490_v15 }
 0x344   : > { %v9938_v36 = vpop.permute.xlu0 %2540  ;;  %2698 = vrot.lane.b32.xlu1 %v9958_v11, %s7134_s16 }
 0x345   : > { %14783 = vst [vmem:[#allocation388_spill] sm:$0xff] %v9938_v36  ;;  %v9953_v56 = vpop.permute.xlu1 %2546  ;;  %v9992_v30 = vsel %vm1143_vm1, %v1490_v15, %v1492_v59 }
 0x346   : > { %14787 = vst [vmem:[#allocation390_spill] sm:$0xff] %v9953_v56  ;;  %2696 = vrot.lane.b32.xlu0 %v9965_v21, %s7134_s16 }
 0x348   : > { %v9955_v36 = vpop.permute.xlu0 %2544  ;;  %2702 = vrot.lane.b32.xlu1 %v9975_v60, %s7134_s16 }
 0x349   : > { %14788 = vst [vmem:[#allocation391_spill] sm:$0xff] %v9955_v36  ;;  %v9970_v56 = vpop.permute.xlu1 %2550 }
 0x34a   : > { %14790 = vst [vmem:[#allocation332_spill] sm:$0xff] %v9970_v56  ;;  %2700 = vrot.lane.b32.xlu0 %v9982_v32, %s7134_s16 }
 0x34c   : > { %v9972_v36 = vpop.permute.xlu0 %2548  ;;  %2706 = vrot.lane.b32.xlu1 %v9992_v30, %s7134_s16 }
 0x34d   : > { %14791 = vst [vmem:[#allocation392_spill] sm:$0xff] %v9972_v36  ;;  %v9987_v56 = vpop.permute.xlu1 %2554 }
 0x34e   : > { %14793 = vst [vmem:[#allocation337_spill] sm:$0xff] %v9987_v56  ;;  %2704 = vrot.lane.b32.xlu0 %v9997_v42, %s7134_s16  ;;  %s6491_s16 = sshll.u32 %s7113_s30, 7  ;;  %s7141_s30 = smov [#allocation4]  }
 0x350   : > { %v9989_v36 = vpop.permute.xlu0 %2552  ;;  %2746 = vrot.lane.b32.xlu1 %v9142_v51, %s7135_s22 }
 0x351   : > { %14794 = vst [vmem:[#allocation393_spill] sm:$0xff] %v9989_v36  ;;  %v10001_v28 = vpop.permute.xlu1 %2558 }
 0x352   : > { %14795 = vst [vmem:[#allocation394_spill] sm:$0xff] %v10001_v28  ;;  %2744 = vrot.lane.b32.xlu0 %v9146_v18, %s7135_s22  ;;  %v14874_v28 = vld [vmem:[#allocation318_spill] sm:$0xff] }
 0x354   : > { %v10003_v45 = vpop.permute.xlu0 %2556  ;;  %2750 = vrot.lane.b32.xlu1 %v9154_v47, %s7135_s22 }
 0x355   : > { %14796 = vst [vmem:[#allocation395_spill] sm:$0xff] %v10003_v45  ;;  %v10009_v59 = vpop.permute.xlu1 %2562 }
 0x356   : > { %14797 = vst [vmem:[#allocation396_spill] sm:$0xff] %v10009_v59  ;;  %2748 = vrot.lane.b32.xlu0 %v9158_v52, %s7135_s22  ;;  %v14866_v59 = vld [vmem:[#allocation310_spill] sm:$0xff] }
 0x358   : > { %v10011_v36 = vpop.permute.xlu0 %2560  ;;  %2754 = vrot.lane.b32.xlu1 %v9166_v2, %s7135_s22 }
 0x359   : > { %14798 = vst [vmem:[#allocation397_spill] sm:$0xff] %v10011_v36  ;;  %v10017_v15 = vpop.permute.xlu1 %2566 }
 0x35a   : > { %14799 = vst [vmem:[#allocation398_spill] sm:$0xff] %v10017_v15  ;;  %2752 = vrot.lane.b32.xlu0 %v9170_v43, %s7135_s22  ;;  %v14858_v15 = vld [vmem:[#allocation302_spill] sm:$0xff] }
 0x35c   : > { %v10019_v61 = vpop.permute.xlu0 %2564  ;;  %2758 = vrot.lane.b32.xlu1 %v9178_v22, %s7135_s22 }
 0x35d   : > { %14800 = vst [vmem:[#allocation399_spill] sm:$0xff] %v10019_v61  ;;  %v10025_v51 = vpop.permute.xlu1 %2570 }
 0x35e   : > { %14801 = vst [vmem:[#allocation400_spill] sm:$0xff] %v10025_v51  ;;  %2756 = vrot.lane.b32.xlu0 %v9182_v58, %s7135_s22  ;;  %v14850_v51 = vld [vmem:[#allocation294_spill] sm:$0xff] }
 0x360   : > { %v10027_v18 = vpop.permute.xlu0 %2568  ;;  %2762 = vrot.lane.b32.xlu1 %v9190_v7, %s7135_s22 }
 0x361   : > { %14802 = vst [vmem:[#allocation401_spill] sm:$0xff] %v10027_v18  ;;  %v10033_v52 = vpop.permute.xlu1 %2574  ;;  %v14849_v18 = vld [vmem:[#allocation293_spill] sm:$0xff] }
 0x362   : > { %14803 = vst [vmem:[#allocation402_spill] sm:$0xff] %v10033_v52  ;;  %2760 = vrot.lane.b32.xlu0 %v9194_v17, %s7135_s22 }
 0x364   : > { %v10035_v47 = vpop.permute.xlu0 %2572  ;;  %2766 = vrot.lane.b32.xlu1 %v9202_v63, %s7135_s22 }
 0x365   : > { %14804 = vst [vmem:[#allocation403_spill] sm:$0xff] %v10035_v47  ;;  %v10041_v43 = vpop.permute.xlu1 %2578 }
 0x366   : > { %14805 = vst [vmem:[#allocation404_spill] sm:$0xff] %v10041_v43  ;;  %2764 = vrot.lane.b32.xlu0 %v9206_v10, %s7135_s22  ;;  %v14846_v43 = vld [vmem:[#allocation290_spill] sm:$0xff] }
 0x368   : > { %v10043_v2 = vpop.permute.xlu0 %2576  ;;  %2770 = vrot.lane.b32.xlu1 %v9214_v41, %s7135_s22 }
 0x369   : > { %14806 = vst [vmem:[#allocation405_spill] sm:$0xff] %v10043_v2  ;;  %v10049_v58 = vpop.permute.xlu1 %2582  ;;  %v14845_v2 = vld [vmem:[#allocation289_spill] sm:$0xff] }
 0x36a   : > { %14807 = vst [vmem:[#allocation406_spill] sm:$0xff] %v10049_v58  ;;  %2768 = vrot.lane.b32.xlu0 %v9218_v4, %s7135_s22 }
 0x36c   : > { %v10051_v22 = vpop.permute.xlu0 %2580  ;;  %2774 = vrot.lane.b32.xlu1 %v9226_v40, %s7135_s22 }
 0x36d   : > { %14808 = vst [vmem:[#allocation407_spill] sm:$0xff] %v10051_v22  ;;  %v10057_v17 = vpop.permute.xlu1 %2586  ;;  %v14841_v22 = vld [vmem:[#allocation285_spill] sm:$0xff] }
 0x36e   : > { %14809 = vst [vmem:[#allocation408_spill] sm:$0xff] %v10057_v17  ;;  %2772 = vrot.lane.b32.xlu0 %v9230_v6, %s7135_s22 }
 0x370   : > { %v10059_v7 = vpop.permute.xlu0 %2584  ;;  %2778 = vrot.lane.b32.xlu1 %v9238_v27, %s7135_s22 }
 0x371   : > { %14810 = vst [vmem:[#allocation409_spill] sm:$0xff] %v10059_v7  ;;  %v10065_v10 = vpop.permute.xlu1 %2590 }
 0x372   : > { %14811 = vst [vmem:[#allocation410_spill] sm:$0xff] %v10065_v10  ;;  %2776 = vrot.lane.b32.xlu0 %v9242_v8, %s7135_s22  ;;  %v14838_v10 = vld [vmem:[#allocation282_spill] sm:$0xff] }
 0x374   : > { %v10067_v63 = vpop.permute.xlu0 %2588  ;;  %2782 = vrot.lane.b32.xlu1 %v9250_v46, %s7135_s22 }
 0x375   : > { %14812 = vst [vmem:[#allocation411_spill] sm:$0xff] %v10067_v63  ;;  %v10073_v4 = vpop.permute.xlu1 %2594  ;;  %v14837_v63 = vld [vmem:[#allocation281_spill] sm:$0xff] }
 0x376   : > { %14813 = vst [vmem:[#allocation412_spill] sm:$0xff] %v10073_v4  ;;  %2780 = vrot.lane.b32.xlu0 %v9254_v44, %s7135_s22 }
 0x378   : > { %v10075_v41 = vpop.permute.xlu0 %2592  ;;  %2786 = vrot.lane.b32.xlu1 %v9262_v12, %s7135_s22 }
 0x379   : > { %14814 = vst [vmem:[#allocation413_spill] sm:$0xff] %v10075_v41  ;;  %v10081_v6 = vpop.permute.xlu1 %2598 }
 0x37a   : > { %14815 = vst [vmem:[#allocation414_spill] sm:$0xff] %v10081_v6  ;;  %2784 = vrot.lane.b32.xlu0 %v9266_v1, %s7135_s22  ;;  %v14834_v6 = vld [vmem:[#allocation277_spill] sm:$0xff] }
 0x37c   : > { %v10083_v40 = vpop.permute.xlu0 %2596  ;;  %2790 = vrot.lane.b32.xlu1 %v9274_v23, %s7135_s22 }
 0x37d   : > { %14816 = vst [vmem:[#allocation415_spill] sm:$0xff] %v10083_v40  ;;  %v10089_v8 = vpop.permute.xlu1 %2638  ;;  %v10141_v40 = vld [vmem:[#allocation2 + $0x1b0] sm:$0xff] }
 0x37e   : > { %14817 = vst [vmem:[#allocation416_spill] sm:$0xff] %v10089_v8  ;;  %2788 = vrot.lane.b32.xlu0 %v9278_v5, %s7135_s22 }
 0x380   : > { %v10091_v27 = vpop.permute.xlu0 %2636  ;;  %2794 = vrot.lane.b32.xlu1 %v9286_v31, %s7135_s22 }
 0x381   : > { %14818 = vst [vmem:[#allocation417_spill] sm:$0xff] %v10091_v27  ;;  %v10097_v44 = vpop.permute.xlu1 %2642 }
 0x382   : > { %14819 = vst [vmem:[#allocation418_spill] sm:$0xff] %v10097_v44  ;;  %2792 = vrot.lane.b32.xlu0 %v9290_v13, %s7135_s22 }
 0x384   : > { %v10099_v46 = vpop.permute.xlu0 %2640  ;;  %2798 = vrot.lane.b32.xlu1 %v9298_v24, %s7135_s22 }
 0x385   : > { %14820 = vst [vmem:[#allocation419_spill] sm:$0xff] %v10099_v46  ;;  %v10105_v1 = vpop.permute.xlu1 %2646  ;;  %v14893_v46 = vld [vmem:[#allocation340_spill] sm:$0xff] }
 0x386   : > { %14821 = vst [vmem:[#allocation420_spill] sm:$0xff] %v10105_v1  ;;  %2796 = vrot.lane.b32.xlu0 %v9302_v55, %s7135_s22  ;;  %v14889_v1 = vld [vmem:[#allocation335_spill] sm:$0xff] }
 0x388   : > { %v10107_v12 = vpop.permute.xlu0 %2644  ;;  %2802 = vrot.lane.b32.xlu1 %v9310_v14, %s7135_s22 }
 0x389   : > { %14822 = vst [vmem:[#allocation421_spill] sm:$0xff] %v10107_v12  ;;  %v10113_v5 = vpop.permute.xlu1 %2650 }
 0x38a   : > { %14823 = vst [vmem:[#allocation422_spill] sm:$0xff] %v10113_v5  ;;  %2800 = vrot.lane.b32.xlu0 %v9314_v54, %s7135_s22  ;;  %v10137_v54 = vld [vmem:[#allocation2 + $0x1b8] sm:$0xff] }
 0x38b   : > { %v1498_v44 = vrot.slane %v10137_v54, 1 }
 0x38c   : > { %v10115_v23 = vpop.permute.xlu0 %2648  ;;  %2806 = vrot.lane.b32.xlu1 %v9322_v0, %s7135_s22 }
 0x38d   : > { %14824 = vst [vmem:[#allocation423_spill] sm:$0xff] %v10115_v23  ;;  %v10121_v13 = vpop.permute.xlu1 %2654  ;;  %v14886_v23 = vld [vmem:[#allocation331_spill] sm:$0xff] }
 0x38e   : > { %14825 = vst [vmem:[#allocation424_spill] sm:$0xff] %v10121_v13  ;;  %2804 = vrot.lane.b32.xlu0 %v9326_v33, %s7135_s22  ;;  %v14885_v13 = vld [vmem:[#allocation330_spill] sm:$0xff] }
 0x390   : > { %v10123_v31 = vpop.permute.xlu0 %2652  ;;  %2810 = vrot.lane.b32.xlu1 %v9337_v38, %s7135_s22 }
 0x391   : > { %14826 = vst [vmem:[#allocation425_spill] sm:$0xff] %v10123_v31  ;;  %v10129_v55 = vpop.permute.xlu1 %2658 }
 0x392   : > { %14827 = vst [vmem:[#allocation426_spill] sm:$0xff] %v10129_v55  ;;  %2808 = vrot.lane.b32.xlu0 %v9343_v16, %s7135_s22  ;;  %v14833_v16 = vld [vmem:[#allocation275_spill] sm:$0xff] }
 0x394   : > { %v10131_v24 = vpop.permute.xlu0 %2656  ;;  %2814 = vrot.lane.b32.xlu1 %v10137_v54, %s7135_s22 }
 0x395   : > { %14828 = vst [vmem:[#allocation427_spill] sm:$0xff] %v10131_v24  ;;  %v10139_v14 = vpop.permute.xlu1 %2662  ;;  %v14882_v24 = vld [vmem:[#allocation326_spill] sm:$0xff] }
 0x396   : > { %14829 = vst [vmem:[#allocation428_spill] sm:$0xff] %v10139_v14  ;;  %2812 = vrot.lane.b32.xlu0 %v10141_v40, %s7135_s22  ;;  %v14878_v14 = vld [vmem:[#allocation322_spill] sm:$0xff] }
 0x398   : > { %v10143_v0 = vpop.permute.xlu0 %2660  ;;  %2854 = vrot.lane.b32.xlu1 %v14833_v16, %s7136_s14  ;;  %v14842_v16 = vld [vmem:[#allocation286_spill] sm:$0xff] }
 0x399   : > { %14830 = vst [vmem:[#allocation429_spill] sm:$0xff] %v10143_v0  ;;  %v10149_v33 = vpop.permute.xlu1 %2666 }
 0x39a   : > { %14831 = vst [vmem:[#allocation430_spill] sm:$0xff] %v10149_v33  ;;  %2852 = vrot.lane.b32.xlu0 %v14834_v6, %s7136_s14  ;;  %v14870_v33 = vld [vmem:[#allocation314_spill] sm:$0xff] }
 0x39c   : > { %v10151_v38 = vpop.permute.xlu0 %2664  ;;  %2858 = vrot.lane.b32.xlu1 %v14837_v63, %s7136_s14 }
 0x39d   : > { %14832 = vst [vmem:[#allocation431_spill] sm:$0xff] %v10151_v38  ;;  %v10157_v41 = vpop.permute.xlu1 %2670 }
 0x39e   : > { %14835 = vst [vmem:[#allocation275_spill] sm:$0xff] %v10157_v41  ;;  %2856 = vrot.lane.b32.xlu0 %v14838_v10, %s7136_s14  ;;  %v14862_v41 = vld [vmem:[#allocation306_spill] sm:$0xff] }
 0x3a0   : > { %v10159_v4 = vpop.permute.xlu0 %2668  ;;  %2862 = vrot.lane.b32.xlu1 %v14841_v22, %s7136_s14 }
 0x3a1   : > { %14836 = vst [vmem:[#allocation277_spill] sm:$0xff] %v10159_v4  ;;  %v10165_v7 = vpop.permute.xlu1 %2674 }
 0x3a2   : > { %14839 = vst [vmem:[#allocation281_spill] sm:$0xff] %v10165_v7  ;;  %2860 = vrot.lane.b32.xlu0 %v14842_v16, %s7136_s14  ;;  %v14854_v7 = vld [vmem:[#allocation298_spill] sm:$0xff] }
 0x3a4   : > { %v10167_v17 = vpop.permute.xlu0 %2672  ;;  %2866 = vrot.lane.b32.xlu1 %v14845_v2, %s7136_s14 }
 0x3a5   : > { %14840 = vst [vmem:[#allocation282_spill] sm:$0xff] %v10167_v17  ;;  %v10173_v6 = vpop.permute.xlu1 %2678 }
 0x3a6   : > { %14843 = vst [vmem:[#allocation285_spill] sm:$0xff] %v10173_v6  ;;  %2864 = vrot.lane.b32.xlu0 %v14846_v43, %s7136_s14 }
 0x3a8   : > { %v10175_v58 = vpop.permute.xlu0 %2676  ;;  %2870 = vrot.lane.b32.xlu1 %v14849_v18, %s7136_s14 }
 0x3a9   : > { %14844 = vst [vmem:[#allocation286_spill] sm:$0xff] %v10175_v58  ;;  %v10181_v47 = vpop.permute.xlu1 %2682  ;;  %v14853_v58 = vld [vmem:[#allocation297_spill] sm:$0xff] }
 0x3aa   : > { %14847 = vst [vmem:[#allocation289_spill] sm:$0xff] %v10181_v47  ;;  %2868 = vrot.lane.b32.xlu0 %v14850_v51, %s7136_s14 }
 0x3ac   : > { %v10183_v52 = vpop.permute.xlu0 %2680  ;;  %2874 = vrot.lane.b32.xlu1 %v14853_v58, %s7136_s14 }
 0x3ad   : > { %14848 = vst [vmem:[#allocation290_spill] sm:$0xff] %v10183_v52  ;;  %v10189_v17 = vpop.permute.xlu1 %2686  ;;  %v14857_v52 = vld [vmem:[#allocation301_spill] sm:$0xff] }
 0x3ae   : > { %14851 = vst [vmem:[#allocation293_spill] sm:$0xff] %v10189_v17  ;;  %2872 = vrot.lane.b32.xlu0 %v14854_v7, %s7136_s14 }
 0x3b0   : > { %v10191_v6 = vpop.permute.xlu0 %2684  ;;  %2878 = vrot.lane.b32.xlu1 %v14857_v52, %s7136_s14 }
 0x3b1   : > { %14852 = vst [vmem:[#allocation294_spill] sm:$0xff] %v10191_v6  ;;  %v10197_v61 = vpop.permute.xlu1 %2690  ;;  %v14861_v6 = vld [vmem:[#allocation305_spill] sm:$0xff] }
 0x3b2   : > { %14855 = vst [vmem:[#allocation297_spill] sm:$0xff] %v10197_v61  ;;  %2876 = vrot.lane.b32.xlu0 %v14858_v15, %s7136_s14 }
 0x3b4   : > { %v10199_v47 = vpop.permute.xlu0 %2688  ;;  %2882 = vrot.lane.b32.xlu1 %v14861_v6, %s7136_s14 }
 0x3b5   : > { %14856 = vst [vmem:[#allocation298_spill] sm:$0xff] %v10199_v47  ;;  %v10205_v4 = vpop.permute.xlu1 %2694  ;;  %v14865_v47 = vld [vmem:[#allocation309_spill] sm:$0xff] }
 0x3b6   : > { %14859 = vst [vmem:[#allocation301_spill] sm:$0xff] %v10205_v4  ;;  %2880 = vrot.lane.b32.xlu0 %v14862_v41, %s7136_s14 }
 0x3b8   : > { %v10207_v17 = vpop.permute.xlu0 %2692  ;;  %2886 = vrot.lane.b32.xlu1 %v14865_v47, %s7136_s14 }
 0x3b9   : > { %14860 = vst [vmem:[#allocation302_spill] sm:$0xff] %v10207_v17  ;;  %v10213_v36 = vpop.permute.xlu1 %2698  ;;  %v14869_v17 = vld [vmem:[#allocation313_spill] sm:$0xff] }
 0x3ba   : > { %14863 = vst [vmem:[#allocation305_spill] sm:$0xff] %v10213_v36  ;;  %2884 = vrot.lane.b32.xlu0 %v14866_v59, %s7136_s14 }
 0x3bc   : > { %v10215_v61 = vpop.permute.xlu0 %2696  ;;  %2890 = vrot.lane.b32.xlu1 %v14869_v17, %s7136_s14 }
 0x3bd   : > { %14864 = vst [vmem:[#allocation306_spill] sm:$0xff] %v10215_v61  ;;  %v10221_v38 = vpop.permute.xlu1 %2702  ;;  %v14873_v61 = vld [vmem:[#allocation317_spill] sm:$0xff] }
 0x3be   : > { %14867 = vst [vmem:[#allocation309_spill] sm:$0xff] %v10221_v38  ;;  %2888 = vrot.lane.b32.xlu0 %v14870_v33, %s7136_s14 }
 0x3c0   : > { %v10223_v4 = vpop.permute.xlu0 %2700  ;;  %2894 = vrot.lane.b32.xlu1 %v14873_v61, %s7136_s14 }
 0x3c1   : > { %14868 = vst [vmem:[#allocation310_spill] sm:$0xff] %v10223_v4  ;;  %v10229_v45 = vpop.permute.xlu1 %2706  ;;  %v14877_v4 = vld [vmem:[#allocation321_spill] sm:$0xff] }
 0x3c2   : > { %14871 = vst [vmem:[#allocation313_spill] sm:$0xff] %v10229_v45  ;;  %2892 = vrot.lane.b32.xlu0 %v14874_v28, %s7136_s14  ;;  %v6947_v28 = vld [vmem:[#allocation2 + $0x68] sm:$0xff] }
 0x3c4   : > { %v10231_v36 = vpop.permute.xlu0 %2704  ;;  %2898 = vrot.lane.b32.xlu1 %v14877_v4, %s7136_s14  ;;  %v6943_v4 = vld [vmem:[#allocation2 + $0x38] sm:$0xff] }
 0x3c5   : > { %14872 = vst [vmem:[#allocation314_spill] sm:$0xff] %v10231_v36  ;;  %v10237_v0 = vpop.permute.xlu1 %2746  ;;  %v14881_v36 = vld [vmem:[#allocation325_spill] sm:$0xff] }
 0x3c6   : > { %14875 = vst [vmem:[#allocation317_spill] sm:$0xff] %v10237_v0  ;;  %2896 = vrot.lane.b32.xlu0 %v14878_v14, %s7136_s14 }
 0x3c8   : > { %v10239_v38 = vpop.permute.xlu0 %2744  ;;  %2902 = vrot.lane.b32.xlu1 %v14881_v36, %s7136_s14 }
 0x3c9   : > { %14876 = vst [vmem:[#allocation432_spill] sm:$0xff] %v10239_v38  ;;  %v10245_v56 = vpop.permute.xlu1 %2750 }
 0x3ca   : > { %14879 = vst [vmem:[#allocation433_spill] sm:$0xff] %v10245_v56  ;;  %2900 = vrot.lane.b32.xlu0 %v14882_v24, %s7136_s14 }
 0x3cc   : > { %v10247_v45 = vpop.permute.xlu0 %2748  ;;  %2906 = vrot.lane.b32.xlu1 %v14885_v13, %s7136_s14 }
 0x3cd   : > { %14880 = vst [vmem:[#allocation434_spill] sm:$0xff] %v10247_v45  ;;  %v10253_v55 = vpop.permute.xlu1 %2754  ;;  %v14890_v45 = vld [vmem:[#allocation336_spill] sm:$0xff] }
 0x3ce   : > { %14883 = vst [vmem:[#allocation435_spill] sm:$0xff] %v10253_v55  ;;  %2904 = vrot.lane.b32.xlu0 %v14886_v23, %s7136_s14  ;;  %v10271_v55 = vld [vmem:[#allocation2 + $0x1c0] sm:$0x3] }
 0x3cf   : > { %v14943_v23 = vld [vmem:[#allocation327_spill] sm:$0xff] }
 0x3d0   : > { %v10255_v31 = vpop.permute.xlu0 %2752  ;;  %2910 = vrot.lane.b32.xlu1 %v14889_v1, %s7136_s14 }
 0x3d1   : > { %14884 = vst [vmem:[#allocation436_spill] sm:$0xff] %v10255_v31  ;;  %v10261_v5 = vpop.permute.xlu1 %2758 }
 0x3d2   : > { %14887 = vst [vmem:[#allocation437_spill] sm:$0xff] %v10261_v5  ;;  %2908 = vrot.lane.b32.xlu0 %v14890_v45, %s7136_s14  ;;  %v1497_v5 = vrot.slane %v10141_v40, 1  ;;  %v14939_v45 = vld [vmem:[#allocation386_spill] sm:$0xff] }
 0x3d4   : > { %v10263_v12 = vpop.permute.xlu0 %2756  ;;  %2914 = vrot.lane.b32.xlu1 %v14893_v46, %s7136_s14  ;;  %v10296_v8 = vsel %vm1052_vm0, %v1497_v5, %v1498_v44 }
 0x3d5   : > { %14888 = vst [vmem:[#allocation438_spill] sm:$0xff] %v10263_v12  ;;  %v10269_v56 = vpop.permute.xlu1 %2762  ;;  %v1500_v12 = vrot.slane %v10271_v55, 1  ;;  %14899 = vst [vmem:[#allocation445_spill] sm:$0xff] %v10296_v8 }
 0x3d6   : > { %14891 = vst [vmem:[#allocation439_spill] sm:$0xff] %v10269_v56  ;;  %2912 = vrot.lane.b32.xlu0 %v9663_v37, %s7136_s14 }
 0x3d7   : > { %v10291_v56 = vsel %vm1052_vm0, %v1498_v44, %v1500_v12 }
 0x3d8   : > { %v10273_v31 = vpop.permute.xlu0 %2760  ;;  %2918 = vrot.lane.b32.xlu1 %v9676_v62, %s7136_s14  ;;  %14897 = vst [vmem:[#allocation443_spill] sm:$0xff] %v10291_v56  ;;  %v14935_v62 = vld [vmem:[#allocation382_spill] sm:$0xff] }
 0x3d9   : > { %14892 = vst [vmem:[#allocation440_spill] sm:$0xff] %v10273_v31  ;;  %v10282_v38 = vpop.permute.xlu1 %2766  ;;  %v14896_v31 = vld [vmem:[#allocation345_spill] sm:$0xff] }
 0x3da   : > { %14894 = vst [vmem:[#allocation441_spill] sm:$0xff] %v10282_v38  ;;  %2916 = vrot.lane.b32.xlu0 %v14896_v31, %s7136_s14 }
 0x3dc   : > { %v10284_v0 = vpop.permute.xlu0 %2764  ;;  %2922 = vrot.lane.b32.xlu1 %v10291_v56, %s7136_s14 }
 0x3dd   : > { %14895 = vst [vmem:[#allocation442_spill] sm:$0xff] %v10284_v0  ;;  %v10293_v27 = vpop.permute.xlu1 %2770 }
 0x3de   : > { %14898 = vst [vmem:[#allocation444_spill] sm:$0xff] %v10293_v27  ;;  %2920 = vrot.lane.b32.xlu0 %v10296_v8, %s7136_s14  ;;  %v6676_v31 = vpop.f32.mrb[16].mxu1  ;;  %s7139_s14 = smov 64  }
 0x3df   : > { %v836_v44 = vadd.f32 %v9698_v34, %v6676_v31  ;;  %v830_v12 = vpop.f32.mrb[17].mxu1 }
 0x3e0   : > { %v10298_v37 = vpop.permute.xlu0 %2768  ;;  %2962 = vrot.lane.b32.xlu1 %v9703_v29, %s7137_s21  ;;  %v831_v5 = vadd.f32 %v9698_v34, %v830_v12  ;;  %v14910_v12 = vld [vmem:[#allocation357_spill] sm:$0xff] }
 0x3e1   : > { %14900 = vst [vmem:[#allocation446_spill] sm:$0xff] %v10298_v37  ;;  %v10304_v0 = vpop.permute.xlu1 %2774  ;;  %920 = vst.msk [vmem:[#allocation2 + $0x1d1] sm:$0xff] %vm880_vm5, %v836_v44 }
 0x3e2   : > { %14901 = vst [vmem:[#allocation447_spill] sm:$0xff] %v10304_v0  ;;  %2960 = vrot.lane.b32.xlu0 %v9710_v48, %s7137_s21  ;;  %937 = vst.msk [vmem:[#allocation2 + $0x1d8] sm:$0x3] %vm926_vm4, %v14551_v20  ;;  %v14907_v48 = vld [vmem:[#allocation354_spill] sm:$0xff] }
 0x3e3   : > { %919 = vst.msk [vmem:[#allocation2 + $0x1c9] sm:$0xff] %vm880_vm5, %v831_v5 }
 0x3e4   : > { %v10306_v38 = vpop.permute.xlu0 %2772  ;;  %2966 = vrot.lane.b32.xlu1 %v9737_v19, %s7137_s21  ;;  %935 = vst.msk [vmem:[#allocation2 + $0x1c8] sm:$0xff] %vm880_vm5, %v14551_v20  ;;  %936 = vst.msk [vmem:[#allocation2 + $0x1d0] sm:$0xff] %vm880_vm5, %v14551_v20 }
 0x3e5   : > { %14902 = vst [vmem:[#allocation448_spill] sm:$0xff] %v10306_v38  ;;  %v10314_v37 = vpop.permute.xlu1 %2778 }
 0x3e6   : > { %14903 = vst [vmem:[#allocation449_spill] sm:$0xff] %v10314_v37  ;;  %2964 = vrot.lane.b32.xlu0 %v9744_v49, %s7137_s21 }
 0x3e8   : > { %v10317_v0 = vpop.permute.xlu0 %2776  ;;  %2970 = vrot.lane.b32.xlu1 %v9754_v3, %s7137_s21 }
 0x3e9   : > { %14904 = vst [vmem:[#allocation450_spill] sm:$0xff] %v10317_v0  ;;  %v10330_v29 = vpop.permute.xlu1 %2782 }
 0x3ea   : > { %14905 = vst [vmem:[#allocation451_spill] sm:$0xff] %v10330_v29  ;;  %2968 = vrot.lane.b32.xlu0 %v14907_v48, %s7137_s21 }
 0x3ec   : > { %v10332_v34 = vpop.permute.xlu0 %2780  ;;  %2974 = vrot.lane.b32.xlu1 %v9771_v9, %s7137_s21 }
 0x3ed   : > { %14906 = vst [vmem:[#allocation452_spill] sm:$0xff] %v10332_v34  ;;  %v10338_v31 = vpop.permute.xlu1 %2786  ;;  %v14913_v34 = vld [vmem:[#allocation360_spill] sm:$0xff] }
 0x3ee   : > { %14908 = vst [vmem:[#allocation354_spill] sm:$0xff] %v10338_v31  ;;  %2972 = vrot.lane.b32.xlu0 %v14910_v12, %s7137_s21 }
 0x3f0   : > { %v10340_v44 = vpop.permute.xlu0 %2784  ;;  %2978 = vrot.lane.b32.xlu1 %v9788_v53, %s7137_s21 }
 0x3f1   : > { %14909 = vst [vmem:[#allocation453_spill] sm:$0xff] %v10340_v44  ;;  %v10346_v5 = vpop.permute.xlu1 %2790  ;;  %v14916_v44 = vld [vmem:[#allocation363_spill] sm:$0xff] }
 0x3f2   : > { %14911 = vst [vmem:[#allocation357_spill] sm:$0xff] %v10346_v5  ;;  %2976 = vrot.lane.b32.xlu0 %v14913_v34, %s7137_s21 }
 0x3f4   : > { %v10348_v20 = vpop.permute.xlu0 %2788  ;;  %2982 = vrot.lane.b32.xlu1 %v9805_v39, %s7137_s21 }
 0x3f5   : > { %14912 = vst [vmem:[#allocation454_spill] sm:$0xff] %v10348_v20  ;;  %v10354_v29 = vpop.permute.xlu1 %2794  ;;  %v14919_v20 = vld [vmem:[#allocation366_spill] sm:$0xff] }
 0x3f6   : > { %14914 = vst [vmem:[#allocation360_spill] sm:$0xff] %v10354_v29  ;;  %2980 = vrot.lane.b32.xlu0 %v14916_v44, %s7137_s21 }
 0x3f8   : > { %v10356_v31 = vpop.permute.xlu0 %2792  ;;  %2986 = vrot.lane.b32.xlu1 %v9822_v25, %s7137_s21 }
 0x3f9   : > { %14915 = vst [vmem:[#allocation455_spill] sm:$0xff] %v10356_v31  ;;  %v10362_v0 = vpop.permute.xlu1 %2798  ;;  %v14922_v31 = vld [vmem:[#allocation369_spill] sm:$0xff] }
 0x3fa   : > { %14917 = vst [vmem:[#allocation363_spill] sm:$0xff] %v10362_v0  ;;  %2984 = vrot.lane.b32.xlu0 %v14919_v20, %s7137_s21 }
 0x3fc   : > { %v10364_v5 = vpop.permute.xlu0 %2796  ;;  %2990 = vrot.lane.b32.xlu1 %v9839_v35, %s7137_s21 }
 0x3fd   : > { %14918 = vst [vmem:[#allocation456_spill] sm:$0xff] %v10364_v5  ;;  %v10370_v37 = vpop.permute.xlu1 %2802  ;;  %v14925_v5 = vld [vmem:[#allocation372_spill] sm:$0xff] }
 0x3fe   : > { %14920 = vst [vmem:[#allocation366_spill] sm:$0xff] %v10370_v37  ;;  %2988 = vrot.lane.b32.xlu0 %v14922_v31, %s7137_s21 }
 0x400   : > { %v10372_v29 = vpop.permute.xlu0 %2800  ;;  %2994 = vrot.lane.b32.xlu1 %v9856_v50, %s7137_s21 }
 0x401   : > { %14921 = vst [vmem:[#allocation457_spill] sm:$0xff] %v10372_v29  ;;  %v10378_v38 = vpop.permute.xlu1 %2806  ;;  %v14928_v29 = vld [vmem:[#allocation375_spill] sm:$0xff] }
 0x402   : > { %14923 = vst [vmem:[#allocation369_spill] sm:$0xff] %v10378_v38  ;;  %2992 = vrot.lane.b32.xlu0 %v14925_v5, %s7137_s21 }
 0x404   : > { %v10380_v0 = vpop.permute.xlu0 %2804  ;;  %2998 = vrot.lane.b32.xlu1 %v9873_v57, %s7137_s21 }
 0x405   : > { %14924 = vst [vmem:[#allocation458_spill] sm:$0xff] %v10380_v0  ;;  %v10386_v27 = vpop.permute.xlu1 %2810  ;;  %v14931_v0 = vld [vmem:[#allocation378_spill] sm:$0xff] }
 0x406   : > { %14926 = vst [vmem:[#allocation372_spill] sm:$0xff] %v10386_v27  ;;  %2996 = vrot.lane.b32.xlu0 %v14928_v29, %s7137_s21 }
 0x408   : > { %v10388_v37 = vpop.permute.xlu0 %2808  ;;  %3002 = vrot.lane.b32.xlu1 %v9890_v26, %s7137_s21 }
 0x409   : > { %14927 = vst [vmem:[#allocation459_spill] sm:$0xff] %v10388_v37  ;;  %v10394_v8 = vpop.permute.xlu1 %2814  ;;  %v14934_v37 = vld [vmem:[#allocation381_spill] sm:$0xff] }
 0x40a   : > { %14929 = vst [vmem:[#allocation375_spill] sm:$0xff] %v10394_v8  ;;  %3000 = vrot.lane.b32.xlu0 %v14931_v0, %s7137_s21 }
 0x40c   : > { %v10396_v38 = vpop.permute.xlu0 %2812  ;;  %3006 = vrot.lane.b32.xlu1 %v14934_v37, %s7137_s21 }
 0x40d   : > { %14930 = vst [vmem:[#allocation460_spill] sm:$0xff] %v10396_v38  ;;  %v10402_v56 = vpop.permute.xlu1 %2854  ;;  %v14938_v38 = vld [vmem:[#allocation385_spill] sm:$0xff] }
 0x40e   : > { %14932 = vst [vmem:[#allocation378_spill] sm:$0xff] %v10402_v56  ;;  %3004 = vrot.lane.b32.xlu0 %v14935_v62, %s7137_s21 }
 0x410   : > { %v10404_v27 = vpop.permute.xlu0 %2852  ;;  %3010 = vrot.lane.b32.xlu1 %v14938_v38, %s7137_s21 }
 0x411   : > { %14933 = vst [vmem:[#allocation461_spill] sm:$0xff] %v10404_v27  ;;  %v10410_v46 = vpop.permute.xlu1 %2858  ;;  %v14942_v27 = vld [vmem:[#allocation389_spill] sm:$0xff] }
 0x412   : > { %14936 = vst [vmem:[#allocation381_spill] sm:$0xff] %v10410_v46  ;;  %3008 = vrot.lane.b32.xlu0 %v14939_v45, %s7137_s21 }
 0x414   : > { %v10412_v8 = vpop.permute.xlu0 %2856  ;;  %3014 = vrot.lane.b32.xlu1 %v14942_v27, %s7137_s21 }
 0x415   : > { %14937 = vst [vmem:[#allocation382_spill] sm:$0xff] %v10412_v8  ;;  %v10418_v1 = vpop.permute.xlu1 %2862 }
 0x416   : > { %14940 = vst [vmem:[#allocation385_spill] sm:$0xff] %v10418_v1  ;;  %3012 = vrot.lane.b32.xlu0 %v14943_v23, %s7137_s21 }
 0x418   : > { %v10420_v56 = vpop.permute.xlu0 %2860  ;;  %3018 = vrot.lane.b32.xlu1 %v9958_v11, %s7137_s21 }
 0x419   : > { %14941 = vst [vmem:[#allocation386_spill] sm:$0xff] %v10420_v56  ;;  %v10426_v13 = vpop.permute.xlu1 %2866  ;;  %v1503_v56 = vrot.slane %v10137_v54, 2 }
 0x41a   : > { %14944 = vst [vmem:[#allocation389_spill] sm:$0xff] %v10426_v13  ;;  %3016 = vrot.lane.b32.xlu0 %v9965_v21, %s7137_s21  ;;  %v1502_v13 = vrot.slane %v10141_v40, 2 }
 0x41c   : > { %v10428_v46 = vpop.permute.xlu0 %2864  ;;  %3022 = vrot.lane.b32.xlu1 %v9975_v60, %s7137_s21  ;;  %v10459_v14 = vsel %vm1143_vm1, %v1502_v13, %v1503_v56 }
 0x41d   : > { %14945 = vst [vmem:[#allocation327_spill] sm:$0xff] %v10428_v46  ;;  %v10434_v8 = vpop.permute.xlu1 %2870  ;;  %v1505_v46 = vrot.slane %v10271_v55, 2 }
 0x41e   : > { %14946 = vst [vmem:[#allocation462_spill] sm:$0xff] %v10434_v8  ;;  %3020 = vrot.lane.b32.xlu0 %v9982_v32, %s7137_s21 }
 0x420   : > { %v10436_v1 = vpop.permute.xlu0 %2868  ;;  %3026 = vrot.lane.b32.xlu1 %v9992_v30, %s7137_s21 }
 0x421   : > { %14947 = vst [vmem:[#allocation463_spill] sm:$0xff] %v10436_v1  ;;  %v10445_v24 = vpop.permute.xlu1 %2874  ;;  %v10454_v1 = vsel %vm1143_vm1, %v1503_v56, %v1505_v46  ;;  %v6944_v46 = vld [vmem:[#allocation2 + $0x30] sm:$0xff] }
 0x422   : > { %14948 = vst [vmem:[#allocation464_spill] sm:$0xff] %v10445_v24  ;;  %3024 = vrot.lane.b32.xlu0 %v9997_v42, %s7137_s21 }
 0x424   : > { %v10447_v36 = vpop.permute.xlu0 %2872  ;;  %3030 = vrot.lane.b32.xlu1 %v10454_v1, %s7137_s21 }
 0x425   : > { %14949 = vst [vmem:[#allocation465_spill] sm:$0xff] %v10447_v36  ;;  %v10456_v8 = vpop.permute.xlu1 %2878 }
 0x426   : > { %14950 = vst [vmem:[#allocation466_spill] sm:$0xff] %v10456_v8  ;;  %3028 = vrot.lane.b32.xlu0 %v10459_v14, %s7137_s21  ;;  %v6946_v8 = vld [vmem:[#allocation2 + $0x48] sm:$0xff] }
 0x428   : > { %v10461_v55 = vpop.permute.xlu0 %2876  ;;  %3070 = vrot.lane.b32.xlu1 %v6943_v4, %s7138_s20  ;;  %v6948_v4 = vld [vmem:[#allocation2 + $0x60] sm:$0xff] }
 0x429   : > { %14951 = vst [vmem:[#allocation467_spill] sm:$0xff] %v10461_v55  ;;  %v10467_v36 = vpop.permute.xlu1 %2882  ;;  %v6945_v55 = vld [vmem:[#allocation2 + $0x50] sm:$0xff] }
 0x42a   : > { %14952 = vst [vmem:[#allocation468_spill] sm:$0xff] %v10467_v36  ;;  %3068 = vrot.lane.b32.xlu0 %v6944_v46, %s7138_s20 }
 0x42c   : > { %v10469_v24 = vpop.permute.xlu0 %2880  ;;  %3074 = vrot.lane.b32.xlu1 %v6945_v55, %s7138_s20  ;;  %v6950_v55 = vld [vmem:[#allocation2 + $0x78] sm:$0xff] }
 0x42d   : > { %14953 = vst [vmem:[#allocation469_spill] sm:$0xff] %v10469_v24  ;;  %v10473_v56 = vpop.permute.xlu1 %2886 }
 0x42e   : > { %14954 = vst [vmem:[#allocation470_spill] sm:$0xff] %v10473_v56  ;;  %3072 = vrot.lane.b32.xlu0 %v6946_v8, %s7138_s20 }
 0x430   : > { %v10475_v13 = vpop.permute.xlu0 %2884  ;;  %3078 = vrot.lane.b32.xlu1 %v6947_v28, %s7138_s20  ;;  %v6952_v28 = vld [vmem:[#allocation2 + $0x90] sm:$0xff] }
 0x431   : > { %14955 = vst [vmem:[#allocation471_spill] sm:$0xff] %v10475_v13  ;;  %v10479_v36 = vpop.permute.xlu1 %2890  ;;  %v6949_v13 = vld [vmem:[#allocation2 + $0x80] sm:$0xff] }
 0x432   : > { %14956 = vst [vmem:[#allocation472_spill] sm:$0xff] %v10479_v36  ;;  %3076 = vrot.lane.b32.xlu0 %v6948_v4, %s7138_s20 }
 0x434   : > { %v10481_v24 = vpop.permute.xlu0 %2888  ;;  %3082 = vrot.lane.b32.xlu1 %v6949_v13, %s7138_s20  ;;  %v6954_v13 = vld [vmem:[#allocation2 + $0xa8] sm:$0xff] }
 0x435   : > { %14957 = vst [vmem:[#allocation473_spill] sm:$0xff] %v10481_v24  ;;  %v10485_v46 = vpop.permute.xlu1 %2894  ;;  %v6951_v24 = vld [vmem:[#allocation2 + $0x98] sm:$0xff] }
 0x436   : > { %14958 = vst [vmem:[#allocation474_spill] sm:$0xff] %v10485_v46  ;;  %3080 = vrot.lane.b32.xlu0 %v6950_v55, %s7138_s20 }
 0x438   : > { %v10487_v56 = vpop.permute.xlu0 %2892  ;;  %3086 = vrot.lane.b32.xlu1 %v6951_v24, %s7138_s20  ;;  %v6956_v24 = vld [vmem:[#allocation2 + $0xc0] sm:$0xff] }
 0x439   : > { %14959 = vst [vmem:[#allocation475_spill] sm:$0xff] %v10487_v56  ;;  %v10491_v8 = vpop.permute.xlu1 %2898  ;;  %v6953_v56 = vld [vmem:[#allocation2 + $0xb0] sm:$0xff] }
 0x43a   : > { %14960 = vst [vmem:[#allocation476_spill] sm:$0xff] %v10491_v8  ;;  %3084 = vrot.lane.b32.xlu0 %v6952_v28, %s7138_s20 }
 0x43c   : > { %v10493_v36 = vpop.permute.xlu0 %2896  ;;  %3090 = vrot.lane.b32.xlu1 %v6953_v56, %s7138_s20  ;;  %v6958_v56 = vld [vmem:[#allocation2 + $0xd8] sm:$0xff] }
 0x43d   : > { %14961 = vst [vmem:[#allocation477_spill] sm:$0xff] %v10493_v36  ;;  %v10497_v4 = vpop.permute.xlu1 %2902  ;;  %v6955_v36 = vld [vmem:[#allocation2 + $0xc8] sm:$0xff] }
 0x43e   : > { %14962 = vst [vmem:[#allocation478_spill] sm:$0xff] %v10497_v4  ;;  %3088 = vrot.lane.b32.xlu0 %v6954_v13, %s7138_s20 }
 0x440   : > { %v10499_v46 = vpop.permute.xlu0 %2900  ;;  %3094 = vrot.lane.b32.xlu1 %v6955_v36, %s7138_s20  ;;  %v6960_v36 = vld [vmem:[#allocation2 + $0xf0] sm:$0xff] }
 0x441   : > { %14963 = vst [vmem:[#allocation479_spill] sm:$0xff] %v10499_v46  ;;  %v10503_v55 = vpop.permute.xlu1 %2906  ;;  %v6957_v46 = vld [vmem:[#allocation2 + $0xe0] sm:$0xff] }
 0x442   : > { %14964 = vst [vmem:[#allocation480_spill] sm:$0xff] %v10503_v55  ;;  %3092 = vrot.lane.b32.xlu0 %v6956_v24, %s7138_s20 }
 0x444   : > { %v10505_v8 = vpop.permute.xlu0 %2904  ;;  %3098 = vrot.lane.b32.xlu1 %v6957_v46, %s7138_s20  ;;  %v6962_v46 = vld [vmem:[#allocation2 + $0x108] sm:$0xff] }
 0x445   : > { %14965 = vst [vmem:[#allocation481_spill] sm:$0xff] %v10505_v8  ;;  %v10509_v28 = vpop.permute.xlu1 %2910  ;;  %v6959_v8 = vld [vmem:[#allocation2 + $0xf8] sm:$0xff] }
 0x446   : > { %14966 = vst [vmem:[#allocation482_spill] sm:$0xff] %v10509_v28  ;;  %3096 = vrot.lane.b32.xlu0 %v6958_v56, %s7138_s20 }
 0x448   : > { %v10511_v4 = vpop.permute.xlu0 %2908  ;;  %3102 = vrot.lane.b32.xlu1 %v6959_v8, %s7138_s20  ;;  %v6964_v8 = vld [vmem:[#allocation2 + $0x120] sm:$0xff] }
 0x449   : > { %14967 = vst [vmem:[#allocation483_spill] sm:$0xff] %v10511_v4  ;;  %v10515_v13 = vpop.permute.xlu1 %2914  ;;  %v6961_v4 = vld [vmem:[#allocation2 + $0x110] sm:$0xff] }
 0x44a   : > { %14968 = vst [vmem:[#allocation484_spill] sm:$0xff] %v10515_v13  ;;  %3100 = vrot.lane.b32.xlu0 %v6960_v36, %s7138_s20 }
 0x44c   : > { %v10517_v55 = vpop.permute.xlu0 %2912  ;;  %3106 = vrot.lane.b32.xlu1 %v6961_v4, %s7138_s20  ;;  %v6966_v4 = vld [vmem:[#allocation2 + $0x138] sm:$0xff] }
 0x44d   : > { %14969 = vst [vmem:[#allocation485_spill] sm:$0xff] %v10517_v55  ;;  %v10521_v24 = vpop.permute.xlu1 %2918  ;;  %v6963_v55 = vld [vmem:[#allocation2 + $0x128] sm:$0xff] }
 0x44e   : > { %14970 = vst [vmem:[#allocation486_spill] sm:$0xff] %v10521_v24  ;;  %3104 = vrot.lane.b32.xlu0 %v6962_v46, %s7138_s20 }
 0x450   : > { %v10523_v28 = vpop.permute.xlu0 %2916  ;;  %3110 = vrot.lane.b32.xlu1 %v6963_v55, %s7138_s20  ;;  %v6968_v55 = vld [vmem:[#allocation2 + $0x150] sm:$0xff] }
 0x451   : > { %14971 = vst [vmem:[#allocation487_spill] sm:$0xff] %v10523_v28  ;;  %v10527_v56 = vpop.permute.xlu1 %2922  ;;  %v6965_v28 = vld [vmem:[#allocation2 + $0x140] sm:$0xff] }
 0x452   : > { %14972 = vst [vmem:[#allocation488_spill] sm:$0xff] %v10527_v56  ;;  %3108 = vrot.lane.b32.xlu0 %v6964_v8, %s7138_s20 }
 0x454   : > { %v10529_v13 = vpop.permute.xlu0 %2920  ;;  %3114 = vrot.lane.b32.xlu1 %v6965_v28, %s7138_s20  ;;  %v6970_v28 = vld [vmem:[#allocation2 + $0x168] sm:$0xff] }
 0x455   : > { %14973 = vst [vmem:[#allocation489_spill] sm:$0xff] %v10529_v13  ;;  %v10533_v36 = vpop.permute.xlu1 %2962  ;;  %v6967_v13 = vld [vmem:[#allocation2 + $0x158] sm:$0xff] }
 0x456   : > { %14974 = vst [vmem:[#allocation490_spill] sm:$0xff] %v10533_v36  ;;  %3112 = vrot.lane.b32.xlu0 %v6966_v4, %s7138_s20 }
 0x458   : > { %v10535_v24 = vpop.permute.xlu0 %2960  ;;  %3118 = vrot.lane.b32.xlu1 %v6967_v13, %s7138_s20  ;;  %v6972_v13 = vld [vmem:[#allocation2 + $0x180] sm:$0xff] }
 0x459   : > { %14975 = vst [vmem:[#allocation491_spill] sm:$0xff] %v10535_v24  ;;  %v10539_v46 = vpop.permute.xlu1 %2966  ;;  %v6969_v24 = vld [vmem:[#allocation2 + $0x170] sm:$0xff] }
 0x45a   : > { %14976 = vst [vmem:[#allocation492_spill] sm:$0xff] %v10539_v46  ;;  %3116 = vrot.lane.b32.xlu0 %v6968_v55, %s7138_s20 }
 0x45c   : > { %v10541_v56 = vpop.permute.xlu0 %2964  ;;  %3122 = vrot.lane.b32.xlu1 %v6969_v24, %s7138_s20  ;;  %v6974_v24 = vld [vmem:[#allocation2 + $0x198] sm:$0xff] }
 0x45d   : > { %14977 = vst [vmem:[#allocation493_spill] sm:$0xff] %v10541_v56  ;;  %v10545_v8 = vpop.permute.xlu1 %2970  ;;  %v6971_v56 = vld [vmem:[#allocation2 + $0x188] sm:$0xff] }
 0x45e   : > { %14978 = vst [vmem:[#allocation494_spill] sm:$0xff] %v10545_v8  ;;  %3120 = vrot.lane.b32.xlu0 %v6970_v28, %s7138_s20 }
 0x460   : > { %v10547_v36 = vpop.permute.xlu0 %2968  ;;  %3126 = vrot.lane.b32.xlu1 %v6971_v56, %s7138_s20  ;;  %v10571_v56 = vld [vmem:[#allocation2 + $0x1d0] sm:$0xff] }
 0x461   : > { %14979 = vst [vmem:[#allocation495_spill] sm:$0xff] %v10547_v36  ;;  %v10551_v4 = vpop.permute.xlu1 %2974  ;;  %v6973_v36 = vld [vmem:[#allocation2 + $0x1a0] sm:$0xff] }
 0x462   : > { %14980 = vst [vmem:[#allocation496_spill] sm:$0xff] %v10551_v4  ;;  %3124 = vrot.lane.b32.xlu0 %v6972_v13, %s7138_s20 }
 0x464   : > { %v10553_v46 = vpop.permute.xlu0 %2972  ;;  %3130 = vrot.lane.b32.xlu1 %v6973_v36, %s7138_s20 }
 0x465   : > { %v10557_v55 = vpop.permute.xlu1 %2978 }
 0x466   : > { %14981 = vst [vmem:[#allocation497_spill] sm:$0xff] %v10557_v55  ;;  %3128 = vrot.lane.b32.xlu0 %v6974_v24, %s7138_s20 }
 0x468   : > { %v10559_v8 = vpop.permute.xlu0 %2976  ;;  %3134 = vrot.lane.b32.xlu1 %v10137_v54, %s7138_s20 }
 0x469   : > { %14982 = vst [vmem:[#allocation498_spill] sm:$0xff] %v10559_v8  ;;  %v10563_v28 = vpop.permute.xlu1 %2982  ;;  %v10575_v8 = vld [vmem:[#allocation2 + $0x1c8] sm:$0xff] }
 0x46a   : > { %14983 = vst [vmem:[#allocation499_spill] sm:$0xff] %v10563_v28  ;;  %3132 = vrot.lane.b32.xlu0 %v10141_v40, %s7138_s20  ;;  %v15074_v28 = vld [vmem:[#allocation92_spill] sm:$0xff] }
 0x46c   : > { %v10565_v4 = vpop.permute.xlu0 %2980  ;;  %3138 = vrot.lane.b32.xlu1 %v10571_v56, %s7138_s20 }
 0x46d   : > { %14984 = vst [vmem:[#allocation500_spill] sm:$0xff] %v10565_v4  ;;  %v10573_v13 = vpop.permute.xlu1 %2986  ;;  %v7010_v4 = vld [vmem:[%s7250_s23 + $0x198] sm:$0xff] }
 0x46e   : > { %14985 = vst [vmem:[#allocation501_spill] sm:$0xff] %v10573_v13  ;;  %3136 = vrot.lane.b32.xlu0 %v10575_v8, %s7138_s20  ;;  %s6372_s20 = sshll.u32 %s325_s12, 3 }
 0x46f   : > { %s327_s22 = scalar_lea.vmem [#allocation4], %s6372_s20 }
 0x470   : > { %v10577_v36 = vpop.permute.xlu0 %2984  ;;  %3731 = vrot.lane.b32.xlu1 %v9737_v19, %s7123_s24 }
 0x471   : > { %14986 = vst [vmem:[#allocation502_spill] sm:$0xff] %v10577_v36  ;;  %v10583_v24 = vpop.permute.xlu1 %2990 }
 0x472   : > { %14987 = vst [vmem:[#allocation503_spill] sm:$0xff] %v10583_v24  ;;  %3729 = vrot.lane.b32.xlu0 %v9744_v49, %s7123_s24 }
 0x474   : > { %v10585_v54 = vpop.permute.xlu0 %2988  ;;  %3735 = vrot.lane.b32.xlu1 %v9754_v3, %s7123_s24 }
 0x475   : > { %14988 = vst [vmem:[#allocation504_spill] sm:$0xff] %v10585_v54  ;;  %v10591_v40 = vpop.permute.xlu1 %2994 }
 0x476   : > { %14989 = vst [vmem:[#allocation505_spill] sm:$0xff] %v10591_v40  ;;  %3733 = vrot.lane.b32.xlu0 %v14907_v48, %s7123_s24  ;;  %v15067_v40 = vld [vmem:[#allocation86_spill] sm:$0xff] }
 0x478   : > { %v10593_v13 = vpop.permute.xlu0 %2992  ;;  %3739 = vrot.lane.b32.xlu1 %v9771_v9, %s7123_s24 }
 0x479   : > { %14990 = vst [vmem:[#allocation506_spill] sm:$0xff] %v10593_v13  ;;  %v10599_v36 = vpop.permute.xlu1 %2998  ;;  %v7004_v13 = vld [vmem:[%s7250_s23 + $0x150] sm:$0xff] }
 0x47a   : > { %14991 = vst [vmem:[#allocation507_spill] sm:$0xff] %v10599_v36  ;;  %3737 = vrot.lane.b32.xlu0 %v14910_v12, %s7123_s24 }
 0x47c   : > { %v10601_v24 = vpop.permute.xlu0 %2996  ;;  %3743 = vrot.lane.b32.xlu1 %v9788_v53, %s7123_s24 }
 0x47d   : > { %14992 = vst [vmem:[#allocation508_spill] sm:$0xff] %v10601_v24  ;;  %v10607_v19 = vpop.permute.xlu1 %3002 }
 0x47e   : > { %14993 = vst [vmem:[#allocation509_spill] sm:$0xff] %v10607_v19  ;;  %3741 = vrot.lane.b32.xlu0 %v14913_v34, %s7123_s24  ;;  %v6996_v19 = vld [vmem:[%s7250_s23 + $0xf0] sm:$0xff] }
 0x480   : > { %v10609_v49 = vpop.permute.xlu0 %3000  ;;  %3747 = vrot.lane.b32.xlu1 %v9805_v39, %s7123_s24 }
 0x481   : > { %14994 = vst [vmem:[#allocation510_spill] sm:$0xff] %v10609_v49  ;;  %v10615_v3 = vpop.permute.xlu1 %3006  ;;  %v6995_v49 = vld [vmem:[%s7250_s23 + $0xf8] sm:$0xff] }
 0x482   : > { %14995 = vst [vmem:[#allocation511_spill] sm:$0xff] %v10615_v3  ;;  %3745 = vrot.lane.b32.xlu0 %v14916_v44, %s7123_s24 }
 0x484   : > { %v10617_v48 = vpop.permute.xlu0 %3004  ;;  %3751 = vrot.lane.b32.xlu1 %v9822_v25, %s7123_s24 }
 0x485   : > { %14996 = vst [vmem:[#allocation512_spill] sm:$0xff] %v10617_v48  ;;  %v10623_v9 = vpop.permute.xlu1 %3010 }
 0x486   : > { %14997 = vst [vmem:[#allocation513_spill] sm:$0xff] %v10623_v9  ;;  %3749 = vrot.lane.b32.xlu0 %v14919_v20, %s7123_s24 }
 0x488   : > { %v10625_v12 = vpop.permute.xlu0 %3008  ;;  %3755 = vrot.lane.b32.xlu1 %v9839_v35, %s7123_s24 }
 0x489   : > { %14998 = vst [vmem:[#allocation514_spill] sm:$0xff] %v10625_v12  ;;  %v10631_v53 = vpop.permute.xlu1 %3014 }
 0x48a   : > { %14999 = vst [vmem:[#allocation515_spill] sm:$0xff] %v10631_v53  ;;  %3753 = vrot.lane.b32.xlu0 %v14922_v31, %s7123_s24 }
 0x48c   : > { %v10633_v34 = vpop.permute.xlu0 %3012  ;;  %3759 = vrot.lane.b32.xlu1 %v9856_v50, %s7123_s24 }
 0x48d   : > { %15000 = vst [vmem:[#allocation516_spill] sm:$0xff] %v10633_v34  ;;  %v10639_v39 = vpop.permute.xlu1 %3018 }
 0x48e   : > { %15001 = vst [vmem:[#allocation517_spill] sm:$0xff] %v10639_v39  ;;  %3757 = vrot.lane.b32.xlu0 %v14925_v5, %s7123_s24  ;;  %v4061_v39 = vld [vmem:[%s13981_s4 + $0x38] sm:$0xff] }
 0x490   : > { %v10641_v44 = vpop.permute.xlu0 %3016  ;;  %3763 = vrot.lane.b32.xlu1 %v9873_v57, %s7123_s24 }
 0x491   : > { %15002 = vst [vmem:[#allocation518_spill] sm:$0xff] %v10641_v44  ;;  %v10647_v20 = vpop.permute.xlu1 %3022 }
 0x492   : > { %15003 = vst [vmem:[#allocation519_spill] sm:$0xff] %v10647_v20  ;;  %3761 = vrot.lane.b32.xlu0 %v14928_v29, %s7123_s24 }
 0x494   : > { %v10649_v25 = vpop.permute.xlu0 %3020  ;;  %3767 = vrot.lane.b32.xlu1 %v9890_v26, %s7123_s24 }
 0x495   : > { %15004 = vst [vmem:[#allocation520_spill] sm:$0xff] %v10649_v25  ;;  %v10655_v35 = vpop.permute.xlu1 %3026  ;;  %v4059_v25 = vld [vmem:[%s13981_s4 + $0x28] sm:$0xff] }
 0x496   : > { %15005 = vst [vmem:[#allocation521_spill] sm:$0xff] %v10655_v35  ;;  %3765 = vrot.lane.b32.xlu0 %v14931_v0, %s7123_s24  ;;  %v4058_v35 = vld [vmem:[%s13981_s4 + $0x20] sm:$0xff] }
 0x497   : > { %v6815_v20 = vpack.c.bf16 %v4059_v25, %v4058_v35 }
 0x498   : > { %v10657_v31 = vpop.permute.xlu0 %3024  ;;  %3771 = vrot.lane.b32.xlu1 %v14934_v37, %s7123_s24 }
 0x499   : > { %15006 = vst [vmem:[#allocation522_spill] sm:$0xff] %v10657_v31  ;;  %v10663_v50 = vpop.permute.xlu1 %3030 }
 0x49a   : > { %15007 = vst [vmem:[#allocation523_spill] sm:$0xff] %v10663_v50  ;;  %3769 = vrot.lane.b32.xlu0 %v14935_v62, %s7123_s24 }
 0x49c   : > { %v10665_v5 = vpop.permute.xlu0 %3028  ;;  %3775 = vrot.lane.b32.xlu1 %v14938_v38, %s7123_s24 }
 0x49d   : > { %15008 = vst [vmem:[#allocation524_spill] sm:$0xff] %v10665_v5  ;;  %v10671_v57 = vpop.permute.xlu1 %3070  ;;  %v10714_v5 = vld [vmem:[#allocation2 + $0x1d8] sm:$0x3] }
 0x49e   : > { %3773 = vrot.lane.b32.xlu0 %v14939_v45, %s7123_s24 }
 0x4a0   : > { %v10673_v29 = vpop.permute.xlu0 %3068  ;;  %3779 = vrot.lane.b32.xlu1 %v14942_v27, %s7123_s24  ;;  %v4054_v27 = vld [vmem:[%s13981_s4] sm:$0xff] }
 0x4a1   : > { %v10679_v26 = vpop.permute.xlu1 %3074 }
 0x4a2   : > { %3777 = vrot.lane.b32.xlu0 %v14943_v23, %s7123_s24 }
 0x4a4   : > { %v10681_v0 = vpop.permute.xlu0 %3072  ;;  %3783 = vrot.lane.b32.xlu1 %v9958_v11, %s7123_s24  ;;  %v4055_v11 = vld [vmem:[%s13981_s4 + $0x8] sm:$0xff] }
 0x4a5   : > { %v10687_v62 = vpop.permute.xlu1 %3078 }
 0x4a6   : > { %3781 = vrot.lane.b32.xlu0 %v9965_v21, %s7123_s24  ;;  %v4056_v21 = vld [vmem:[%s13981_s4 + $0x10] sm:$0xff] }
 0x4a8   : > { %v10689_v37 = vpop.permute.xlu0 %3076  ;;  %3787 = vrot.lane.b32.xlu1 %v9975_v60, %s7123_s24  ;;  %v6807_v60 = vpack.c.bf16 %v4055_v11, %v4054_v27  ;;  %v1552_v27 = vrot.slane %v10571_v56, 2  ;;  %v1554_v11 = vrot.slane %v10714_v5, 2 }
 0x4a9   : > { %v10695_v45 = vpop.permute.xlu1 %3082 }
 0x4aa   : > { %3785 = vrot.lane.b32.xlu0 %v9982_v32, %s7123_s24  ;;  %v4057_v32 = vld [vmem:[%s13981_s4 + $0x18] sm:$0xff]  ;;  %6808 = vmatprep.subr.bf16.mxu1 %v6807_v60 }
 0x4ab   : > { %v6811_v31 = vpack.c.bf16 %v4057_v32, %v4056_v21  ;;  %6810 = vmatpush3.bf16.msra.mxu1 %v6807_v60  ;;  %v1551_v21 = vrot.slane %v10575_v8, 2 }
 0x4ac   : > { %v10697_v38 = vpop.permute.xlu0 %3080  ;;  %3791 = vrot.lane.b32.xlu1 %v9992_v30, %s7123_s24  ;;  %v4060_v30 = vld [vmem:[%s13981_s4 + $0x30] sm:$0xff] }
 0x4ad   : > { %v10712_v23 = vpop.permute.xlu1 %3086  ;;  %6812 = vmatprep.subr.bf16.mxu1 %v6811_v31  ;;  %v1553_v35 = vsel %vm1143_vm1, %v1551_v21, %v1552_v27  ;;  %v6819_v60 = vpack.c.bf16 %v4061_v39, %v4060_v30 }
 0x4ae   : > { %15009 = vst [vmem:[#allocation525_spill] sm:$0xff] %v10712_v23  ;;  %3789 = vrot.lane.b32.xlu0 %v9997_v42, %s7123_s24  ;;  %v1555_v42 = vsel %vm1143_vm1, %v1552_v27, %v1554_v11  ;;  %v15107_v23 = vld [vmem:[#allocation19_spill] sm:$0xff] }
 0x4af   : > { %6814 = vmatpush3.bf16.msra.mxu1 %v6811_v31  ;;  %v4062_v31 = vld [vmem:[%s13981_s4 + $0x40] sm:$0xff] }
 0x4b0   : > { %v10719_v50 = vpop.permute.xlu0 %3084  ;;  %3795 = vrot.lane.b32.xlu1 %v10454_v1, %s7123_s24  ;;  %6816 = vmatprep.subr.bf16.mxu1 %v6815_v20 }
 0x4b1   : > { %15010 = vst [vmem:[#allocation526_spill] sm:$0xff] %v10719_v50  ;;  %v10734_v32 = vpop.permute.xlu1 %3090 }
 0x4b2   : > { %15011 = vst [vmem:[#allocation527_spill] sm:$0xff] %v10734_v32  ;;  %3793 = vrot.lane.b32.xlu0 %v10459_v14, %s7123_s24  ;;  %v7009_v32 = vld [vmem:[%s7250_s23 + $0x1a0] sm:$0xff] }
 0x4b3   : > { %6818 = vmatpush3.bf16.msra.mxu1 %v6815_v20 }
 0x4b4   : > { %v10736_v44 = vpop.permute.xlu0 %3088  ;;  %3799 = vrot.lane.b32.xlu1 %v1555_v42, %s7123_s24  ;;  %6820 = vmatprep.subr.bf16.mxu1 %v6819_v60 }
 0x4b5   : > { %15012 = vst [vmem:[#allocation528_spill] sm:$0xff] %v10736_v44  ;;  %v10749_v25 = vpop.permute.xlu1 %3094  ;;  %v15072_v44 = vld [vmem:[#allocation321_spill] sm:$0xff] }
 0x4b6   : > { %15013 = vst [vmem:[#allocation529_spill] sm:$0xff] %v10749_v25  ;;  %3797 = vrot.lane.b32.xlu0 %v1553_v35, %s7123_s24  ;;  %v7008_v25 = vld [vmem:[%s7250_s23 + $0x180] sm:$0xff] }
 0x4b7   : > { %6822 = vmatpush3.bf16.msra.mxu1 %v6819_v60 }
 0x4b8   : > { %v10752_v34 = vpop.permute.xlu0 %3092  ;;  %6693 = vmatprep.subr.mxu1 %v4062_v31 }
 0x4b9   : > { %15014 = vst [vmem:[#allocation530_spill] sm:$0xff] %v10752_v34  ;;  %v10756_v1 = vpop.permute.xlu1 %3098 }
 0x4ba   : > { %15015 = vst [vmem:[#allocation531_spill] sm:$0xff] %v10756_v1  ;;  %v15069_v1 = vld [vmem:[#allocation88_spill] sm:$0xff] }
 0x4bb   : > { %6694 = vmatpush3.msra.mxu1 %v4062_v31 }
 0x4bc   : > { %v10758_v14 = vpop.permute.xlu0 %3096 }
 0x4bd   : > { %15016 = vst [vmem:[#allocation532_spill] sm:$0xff] %v10758_v14  ;;  %v10763_v27 = vpop.permute.xlu1 %3102  ;;  %v15068_v14 = vld [vmem:[#allocation87_spill] sm:$0xff] }
 0x4be   : > { %15017 = vst [vmem:[#allocation533_spill] sm:$0xff] %v10763_v27  ;;  %v7003_v27 = vld [vmem:[%s7250_s23 + $0x158] sm:$0xff] }
 0x4c0   : > { %v10765_v39 = vpop.permute.xlu0 %3100 }
 0x4c1   : > { %15018 = vst [vmem:[#allocation534_spill] sm:$0xff] %v10765_v39  ;;  %v10767_v11 = vpop.permute.xlu1 %3106 }
 0x4c2   : > { %15019 = vst [vmem:[#allocation535_spill] sm:$0xff] %v10767_v11 }
 0x4c4   : > { %v10769_v21 = vpop.permute.xlu0 %3104 }
 0x4c5   : > { %15020 = vst [vmem:[#allocation536_spill] sm:$0xff] %v10769_v21  ;;  %v10771_v20 = vpop.permute.xlu1 %3110  ;;  %v6997_v21 = vld [vmem:[%s7250_s23 + $0x110] sm:$0xff] }
 0x4c6   : > { %15021 = vst [vmem:[#allocation537_spill] sm:$0xff] %v10771_v20 }
 0x4c8   : > { %v10773_v30 = vpop.permute.xlu0 %3108 }
 0x4c9   : > { %15022 = vst [vmem:[#allocation538_spill] sm:$0xff] %v10773_v30  ;;  %v10775_v42 = vpop.permute.xlu1 %3114 }
 0x4ca   : > { %15023 = vst [vmem:[#allocation539_spill] sm:$0xff] %v10775_v42 }
 0x4cc   : > { %v10777_v35 = vpop.permute.xlu0 %3112 }
 0x4cd   : > { %15024 = vst [vmem:[#allocation540_spill] sm:$0xff] %v10777_v35  ;;  %v10779_v53 = vpop.permute.xlu1 %3118 }
 0x4ce   : > { %15025 = vst [vmem:[#allocation541_spill] sm:$0xff] %v10779_v53 }
 0x4d0   : > { %v10781_v60 = vpop.permute.xlu0 %3116 }
 0x4d1   : > { %15026 = vst [vmem:[#allocation542_spill] sm:$0xff] %v10781_v60  ;;  %v10783_v12 = vpop.permute.xlu1 %3122 }
 0x4d2   : > { %15027 = vst [vmem:[#allocation543_spill] sm:$0xff] %v10783_v12 }
 0x4d4   : > { %v10785_v9 = vpop.permute.xlu0 %3120 }
 0x4d5   : > { %15028 = vst [vmem:[#allocation544_spill] sm:$0xff] %v10785_v9  ;;  %v10787_v31 = vpop.permute.xlu1 %3126 }
 0x4d6   : > { %15029 = vst [vmem:[#allocation545_spill] sm:$0xff] %v10787_v31 }
 0x4d8   : > { %v10789_v48 = vpop.permute.xlu0 %3124 }
 0x4d9   : > { %15030 = vst [vmem:[#allocation546_spill] sm:$0xff] %v10789_v48  ;;  %v10791_v3 = vpop.permute.xlu1 %3130 }
 0x4da   : > { %15031 = vst [vmem:[#allocation547_spill] sm:$0xff] %v10791_v3 }
 0x4dc   : > { %v10793_v20 = vpop.permute.xlu0 %3128 }
 0x4dd   : > { %15032 = vst [vmem:[#allocation548_spill] sm:$0xff] %v10793_v20  ;;  %v10795_v30 = vpop.permute.xlu1 %3134 }
 0x4de   : > { %15033 = vst [vmem:[#allocation549_spill] sm:$0xff] %v10795_v30 }
 0x4e0   : > { %v10797_v42 = vpop.permute.xlu0 %3132 }
 0x4e1   : > { %15034 = vst [vmem:[#allocation550_spill] sm:$0xff] %v10797_v42  ;;  %v10799_v35 = vpop.permute.xlu1 %3138 }
 0x4e2   : > { %15035 = vst [vmem:[#allocation551_spill] sm:$0xff] %v10799_v35 }
 0x4e4   : > { %v10801_v53 = vpop.permute.xlu0 %3136 }
 0x4e5   : > { %15036 = vst [vmem:[#allocation552_spill] sm:$0xff] %v10801_v53  ;;  %v3732_v60 = vpop.permute.xlu1 %3731 }
 0x4e6   : > { %v3838_v9 = vsel %vm880_vm5, %v14837_v63, %v3732_v60 }
 0x4e7   : > { %3911 = vrot.lane.b32.xlu1 %v3838_v9, %s7139_s14 }
 0x4e8   : > { %v3730_v12 = vpop.permute.xlu0 %3729 }
 0x4e9   : > { %v3837_v48 = vsel %vm880_vm5, %v14838_v10, %v3730_v12  ;;  %v3736_v30 = vpop.permute.xlu1 %3735 }
 0x4ea   : > { %3909 = vrot.lane.b32.xlu0 %v3837_v48, %s7139_s14  ;;  %v3840_v42 = vsel %vm880_vm5, %v14841_v22, %v3736_v30 }
 0x4eb   : > { %3915 = vrot.lane.b32.xlu1 %v3840_v42, %s7139_s14 }
 0x4ec   : > { %v3734_v35 = vpop.permute.xlu0 %3733 }
 0x4ed   : > { %v3839_v53 = vsel %vm880_vm5, %v14842_v16, %v3734_v35  ;;  %v3740_v63 = vpop.permute.xlu1 %3739 }
 0x4ee   : > { %3913 = vrot.lane.b32.xlu0 %v3839_v53, %s7139_s14  ;;  %v3842_v10 = vsel %vm880_vm5, %v14845_v2, %v3740_v63 }
 0x4ef   : > { %3919 = vrot.lane.b32.xlu1 %v3842_v10, %s7139_s14 }
 0x4f0   : > { %v3738_v12 = vpop.permute.xlu0 %3737 }
 0x4f1   : > { %v3841_v48 = vsel %vm880_vm5, %v14846_v43, %v3738_v12  ;;  %v3744_v22 = vpop.permute.xlu1 %3743 }
 0x4f2   : > { %3917 = vrot.lane.b32.xlu0 %v3841_v48, %s7139_s14  ;;  %v3844_v16 = vsel %vm880_vm5, %v14849_v18, %v3744_v22 }
 0x4f3   : > { %3923 = vrot.lane.b32.xlu1 %v3844_v16, %s7139_s14  ;;  %v6976_v16 = vld [vmem:[%s7250_s23] sm:$0xff] }
 0x4f4   : > { %v3742_v9 = vpop.permute.xlu0 %3741 }
 0x4f5   : > { %v3843_v53 = vsel %vm880_vm5, %v14850_v51, %v3742_v9  ;;  %v3748_v2 = vpop.permute.xlu1 %3747  ;;  %v15038_v9 = vld [vmem:[#allocation51_spill] sm:$0xff] }
 0x4f6   : > { %3921 = vrot.lane.b32.xlu0 %v3843_v53, %s7139_s14  ;;  %v3846_v43 = vsel %vm880_vm5, %v14853_v58, %v3748_v2  ;;  %v6977_v53 = vld [vmem:[%s7250_s23 + $0x20] sm:$0xff]  ;;  %v15039_v2 = vld [vmem:[#allocation53_spill] sm:$0xff] }
 0x4f7   : > { %3927 = vrot.lane.b32.xlu1 %v3846_v43, %s7139_s14 }
 0x4f8   : > { %v3746_v30 = vpop.permute.xlu0 %3745 }
 0x4f9   : > { %v3845_v42 = vsel %vm880_vm5, %v14854_v7, %v3746_v30  ;;  %v3752_v18 = vpop.permute.xlu1 %3751  ;;  %v6978_v30 = vld [vmem:[%s7250_s23 + $0x8] sm:$0xff] }
 0x4fa   : > { %3925 = vrot.lane.b32.xlu0 %v3845_v42, %s7139_s14  ;;  %v3848_v51 = vsel %vm880_vm5, %v14857_v52, %v3752_v18  ;;  %v15040_v42 = vld [vmem:[#allocation55_spill] sm:$0xff] }
 0x4fb   : > { %3931 = vrot.lane.b32.xlu1 %v3848_v51, %s7139_s14  ;;  %v10869_v18 = vsel %vm880_vm5, %v6978_v30, %v15040_v42  ;;  %v6979_v51 = vld [vmem:[%s7250_s23 + $0x38] sm:$0xff] }
 0x4fc   : > { %v3750_v35 = vpop.permute.xlu0 %3749  ;;  %v15046_v30 = vld [vmem:[#allocation66_spill] sm:$0xff] }
 0x4fd   : > { %v3847_v60 = vsel %vm880_vm5, %v14858_v15, %v3750_v35  ;;  %v3756_v58 = vpop.permute.xlu1 %3755  ;;  %v15041_v35 = vld [vmem:[#allocation56_spill] sm:$0xff] }
 0x4fe   : > { %3929 = vrot.lane.b32.xlu0 %v3847_v60, %s7139_s14  ;;  %v3850_v7 = vsel %vm880_vm5, %v14861_v6, %v3756_v58  ;;  %v15037_v6 = vld [vmem:[#allocation49_spill] sm:$0xff]  ;;  %v10874_v60 = vsel %vm880_vm5, %v6979_v51, %v15041_v35  ;;  %v6985_v51 = vld [vmem:[%s7250_s23 + $0x80] sm:$0xff] }
 0x4ff   : > { %3935 = vrot.lane.b32.xlu1 %v3850_v7, %s7139_s14  ;;  %v6980_v58 = vld [vmem:[%s7250_s23 + $0x30] sm:$0xff]  ;;  %v15042_v7 = vld [vmem:[#allocation58_spill] sm:$0xff] }
 0x500   : > { %v3754_v63 = vpop.permute.xlu0 %3753  ;;  %v15047_v35 = vld [vmem:[#allocation37_spill] sm:$0xff] }
 0x501   : > { %v3849_v10 = vsel %vm880_vm5, %v14862_v41, %v3754_v63  ;;  %v3760_v15 = vpop.permute.xlu1 %3759  ;;  %v6975_v41 = vld [vmem:[%s7250_s23 + $0x18] sm:$0xff]  ;;  %v10879_v63 = vsel %vm880_vm5, %v6980_v58, %v15042_v7  ;;  %v10909_v58 = vsel %vm880_vm5, %v6985_v51, %v15047_v35  ;;  %v6990_v51 = vld [vmem:[%s7250_s23 + $0xa8] sm:$0xff] }
 0x502   : > { %3933 = vrot.lane.b32.xlu0 %v3849_v10, %s7139_s14  ;;  %v3852_v52 = vsel %vm880_vm5, %v14865_v47, %v3760_v15  ;;  %v10854_v22 = vsel %vm880_vm5, %v6975_v41, %v15037_v6  ;;  %v10859_v47 = vsel %vm880_vm5, %v6976_v16, %v15038_v9  ;;  %v6982_v41 = vld [vmem:[%s7250_s23 + $0x48] sm:$0xff]  ;;  %v15044_v6 = vld [vmem:[#allocation62_spill] sm:$0xff] }
 0x503   : > { %3939 = vrot.lane.b32.xlu1 %v3852_v52, %s7139_s14  ;;  %v6981_v52 = vld [vmem:[%s7250_s23 + $0x50] sm:$0xff]  ;;  %v10891_v16 = vsel %vm880_vm5, %v6982_v41, %v15044_v6  ;;  %v6983_v9 = vld [vmem:[%s7250_s23 + $0x68] sm:$0xff]  ;;  %v6986_v7 = vld [vmem:[%s7250_s23 + $0x78] sm:$0xff] }
 0x504   : > { %v3758_v12 = vpop.permute.xlu0 %3757  ;;  %v6988_v41 = vld [vmem:[%s7250_s23 + $0x90] sm:$0xff]  ;;  %v15050_v6 = vld [vmem:[#allocation70_spill] sm:$0xff]  ;;  %v15052_v35 = vld [vmem:[#allocation72_spill] sm:$0xff] }
 0x505   : > { %v3851_v48 = vsel %vm880_vm5, %v14866_v59, %v3758_v12  ;;  %v10864_v59 = vsel %vm880_vm5, %v6977_v53, %v15039_v2  ;;  %v3764_v43 = vpop.permute.xlu1 %3763  ;;  %v15043_v12 = vld [vmem:[#allocation60_spill] sm:$0xff] }
 0x506   : > { %3937 = vrot.lane.b32.xlu0 %v3851_v48, %s7139_s14  ;;  %v3854_v10 = vsel %vm880_vm5, %v14869_v17, %v3764_v43  ;;  %v10886_v48 = vsel %vm880_vm5, %v6981_v52, %v15043_v12  ;;  %v15045_v53 = vld [vmem:[#allocation64_spill] sm:$0xff]  ;;  %v6984_v43 = vld [vmem:[%s7250_s23 + $0x60] sm:$0xff] }
 0x507   : > { %v10896_v2 = vsel %vm880_vm5, %v6983_v9, %v15045_v53  ;;  %3943 = vrot.lane.b32.xlu1 %v3854_v10, %s7139_s14  ;;  %v10904_v42 = vsel %vm880_vm5, %v6984_v43, %v15046_v30  ;;  %v15048_v52 = vld [vmem:[#allocation68_spill] sm:$0xff]  ;;  %v15049_v10 = vld [vmem:[#allocation69_spill] sm:$0xff]  ;;  %v10925_v9 = vsel %vm880_vm5, %v6988_v41, %v15050_v6  ;;  %v15051_v43 = vld [vmem:[#allocation71_spill] sm:$0xff] }
 0x508   : > { %v3762_v15 = vpop.permute.xlu0 %3761  ;;  %v10914_v12 = vsel %vm880_vm5, %v6986_v7, %v15048_v52  ;;  %v6989_v53 = vld [vmem:[%s7250_s23 + $0xb0] sm:$0xff]  ;;  %v10935_v7 = vsel %vm880_vm5, %v6990_v51, %v15052_v35  ;;  %v6991_v52 = vld [vmem:[%s7250_s23 + $0xc8] sm:$0xff]  ;;  %v6992_v41 = vld [vmem:[%s7250_s23 + $0xc0] sm:$0xff] }
 0x509   : > { %v3853_v17 = vsel %vm880_vm5, %v14870_v33, %v3762_v15  ;;  %v6987_v33 = vld [vmem:[%s7250_s23 + $0x98] sm:$0xff]  ;;  %v10930_v30 = vsel %vm880_vm5, %v6989_v53, %v15051_v43  ;;  %v6993_v53 = vld [vmem:[%s7250_s23 + $0xe0] sm:$0xff]  ;;  %v15056_v35 = vld [vmem:[#allocation76_spill] sm:$0xff] }
 0x50a   : > { %v10919_v15 = vsel %vm880_vm5, %v6987_v33, %v15049_v10  ;;  %3941 = vrot.lane.b32.xlu0 %v3853_v17, %s7139_s14  ;;  %v15053_v17 = vld [vmem:[#allocation73_spill] sm:$0xff]  ;;  %v3768_v10 = vpop.permute.xlu1 %3767  ;;  %v15054_v6 = vld [vmem:[#allocation74_spill] sm:$0xff]  ;;  %v15055_v43 = vld [vmem:[#allocation75_spill] sm:$0xff] }
 0x50b   : > { %v10940_v33 = vsel %vm880_vm5, %v6991_v52, %v15053_v17  ;;  %v10945_v20 = vsel %vm880_vm5, %v6992_v41, %v15054_v6  ;;  %v10950_v3 = vsel %vm880_vm5, %v6993_v53, %v15055_v43  ;;  %v6994_v51 = vld [vmem:[%s7250_s23 + $0xd8] sm:$0xff]  ;;  %v3856_v52 = vsel %vm880_vm5, %v14873_v61, %v3768_v10  ;;  %v15057_v41 = vld [vmem:[#allocation77_spill] sm:$0xff] }
 0x50c   : > { %v10955_v31 = vsel %vm880_vm5, %v6994_v51, %v15056_v35  ;;  %v3766_v17 = vpop.permute.xlu0 %3765  ;;  %v10962_v6 = vsel %vm880_vm5, %v6995_v49, %v15057_v41  ;;  %v15058_v53 = vld [vmem:[#allocation78_spill] sm:$0xff]  ;;  %v15059_v51 = vld [vmem:[#allocation79_spill] sm:$0xff]  ;;  %3947 = vrot.lane.b32.xlu1 %v3856_v52, %s7139_s14  ;;  %v6998_v49 = vld [vmem:[%s7250_s23 + $0x108] sm:$0xff] }
 0x50d   : > { %v10967_v43 = vsel %vm880_vm5, %v6996_v19, %v15058_v53  ;;  %v10972_v35 = vsel %vm880_vm5, %v6997_v21, %v15059_v51  ;;  %v15060_v61 = vld [vmem:[#allocation318_spill] sm:$0xff]  ;;  %v15061_v41 = vld [vmem:[#allocation80_spill] sm:$0xff]  ;;  %v15062_v53 = vld [vmem:[#allocation81_spill] sm:$0xff] }
 0x50e   : > { %v3855_v10 = vsel %vm880_vm5, %v15060_v61, %v3766_v17  ;;  %v10980_v11 = vsel %vm880_vm5, %v6998_v49, %v15061_v41  ;;  %v6999_v19 = vld [vmem:[%s7250_s23 + $0x128] sm:$0xff]  ;;  %v7000_v21 = vld [vmem:[%s7250_s23 + $0x120] sm:$0xff]  ;;  %v15063_v51 = vld [vmem:[#allocation82_spill] sm:$0xff] }
 0x50f   : > { %v10985_v24 = vsel %vm880_vm5, %v6999_v19, %v15062_v53  ;;  %v3200_v36 = vsel %vm880_vm5, %v7000_v21, %v15063_v51  ;;  %v7001_v17 = vld [vmem:[%s7250_s23 + $0x140] sm:$0xff]  ;;  %3945 = vrot.lane.b32.xlu0 %v3855_v10, %s7139_s14  ;;  %v7002_v49 = vld [vmem:[%s7250_s23 + $0x138] sm:$0xff]  ;;  %v15065_v41 = vld [vmem:[#allocation84_spill] sm:$0xff]  ;;  %v3204_v21 = vsel %vm880_vm5, %v7004_v13, %v15067_v40 }
 0x510   : > { %v15064_v61 = vld [vmem:[#allocation83_spill] sm:$0xff]  ;;  %v3202_v39 = vsel %vm880_vm5, %v7002_v49, %v15065_v41  ;;  %v15066_v19 = vld [vmem:[#allocation85_spill] sm:$0xff]  ;;  %v7006_v10 = vld [vmem:[%s7250_s23 + $0x168] sm:$0xff]  ;;  %v3770_v40 = vpop.permute.xlu0 %3769 }
 0x511   : > { %v10993_v52 = vsel %vm880_vm5, %v7001_v17, %v15064_v61  ;;  %v3205_v53 = vsel %vm880_vm5, %v7003_v27, %v15066_v19  ;;  %v7005_v51 = vld [vmem:[%s7250_s23 + $0x170] sm:$0xff]  ;;  %v3772_v61 = vpop.permute.xlu1 %3771  ;;  %v3206_v54 = vsel %vm880_vm5, %v7006_v10, %v15069_v1  ;;  %v7007_v49 = vld [vmem:[%s7250_s23 + $0x188] sm:$0xff]  ;;  %v15071_v27 = vld [vmem:[#allocation90_spill] sm:$0xff]  ;;  %v3210_v1 = vsel %vm880_vm5, %v7010_v4, %v15074_v28 }
 0x512   : > { %v3207_v17 = vsel %vm880_vm5, %v7005_v51, %v15068_v14  ;;  %v15070_v41 = vld [vmem:[#allocation89_spill] sm:$0xff]  ;;  %v3208_v19 = vsel %vm880_vm5, %v7008_v25, %v15071_v27  ;;  %v3858_v13 = vsel %vm880_vm5, %v15072_v44, %v3772_v61  ;;  %v15073_v14 = vld [vmem:[#allocation91_spill] sm:$0xff]  ;;  %v15077_v27 = vld [vmem:[#allocation94_spill] sm:$0xff] }
 0x513   : > { %v3209_v34 = vsel %vm880_vm5, %v7007_v49, %v15070_v41  ;;  %v3211_v51 = vsel %vm880_vm5, %v7009_v32, %v15073_v14  ;;  %v15075_v10 = vld [vmem:[#allocation93_spill] sm:$0xff]  ;;  %v15076_v41 = vld [vmem:[#allocation322_spill] sm:$0xff]  ;;  %3951 = vrot.lane.b32.xlu1 %v3858_v13, %s7139_s14  ;;  %v3212_v44 = vsel %vm453_vm2, %v10859_v47, %v15077_v27  ;;  %v15078_v61 = vld [vmem:[#allocation95_spill] sm:$0xff] }
 0x514   : > { %v3213_v49 = vsel %vm453_vm2, %v10869_v18, %v15075_v10  ;;  %v3857_v25 = vsel %vm880_vm5, %v15076_v41, %v3770_v40  ;;  %v3215_v32 = vsel %vm453_vm2, %v10864_v59, %v15078_v61  ;;  %v15079_v14 = vld [vmem:[#allocation96_spill] sm:$0xff]  ;;  %v15080_v28 = vld [vmem:[#allocation97_spill] sm:$0xff]  ;;  %v15081_v40 = vld [vmem:[#allocation98_spill] sm:$0xff] }
 0x515   : > { %v3214_v4 = vsel %vm453_vm2, %v10854_v22, %v15079_v14  ;;  %v3217_v18 = vsel %vm453_vm2, %v10874_v60, %v15080_v28  ;;  %3949 = vrot.lane.b32.xlu0 %v3857_v25, %s7139_s14  ;;  %v3216_v13 = vsel %vm453_vm2, %v10879_v63, %v15081_v40  ;;  %v15082_v10 = vld [vmem:[#allocation99_spill] sm:$0xff]  ;;  %v15083_v41 = vld [vmem:[#allocation100_spill] sm:$0xff]  ;;  %v15084_v27 = vld [vmem:[#allocation101_spill] sm:$0xff]  ;;  %v3776_v61 = vpop.permute.xlu1 %3775 }
 0x516   : > { %v3219_v47 = vsel %vm453_vm2, %v10886_v48, %v15082_v10  ;;  %v3218_v59 = vsel %vm453_vm2, %v10891_v16, %v15083_v41  ;;  %v3221_v22 = vsel %vm453_vm2, %v10896_v2, %v15084_v27  ;;  %v15085_v60 = vld [vmem:[#allocation102_spill] sm:$0xff]  ;;  %v15086_v14 = vld [vmem:[#allocation103_spill] sm:$0xff]  ;;  %v15087_v28 = vld [vmem:[#allocation104_spill] sm:$0xff]  ;;  %v3774_v10 = vpop.permute.xlu0 %3773 }
 0x517   : > { %v3220_v25 = vsel %vm453_vm2, %v10904_v42, %v15085_v60  ;;  %v3223_v63 = vsel %vm453_vm2, %v10909_v58, %v15086_v14  ;;  %v3222_v48 = vsel %vm453_vm2, %v10914_v12, %v15087_v28  ;;  %v15088_v40 = vld [vmem:[#allocation325_spill] sm:$0xff]  ;;  %v15090_v27 = vld [vmem:[#allocation106_spill] sm:$0xff]  ;;  %v15091_v60 = vld [vmem:[#allocation107_spill] sm:$0xff] }
 0x518   : > { %v3860_v16 = vsel %vm880_vm5, %v15088_v40, %v3776_v61  ;;  %v15089_v41 = vld [vmem:[#allocation105_spill] sm:$0xff]  ;;  %v3224_v42 = vsel %vm453_vm2, %v10925_v9, %v15090_v27  ;;  %v3227_v58 = vsel %vm453_vm2, %v10930_v30, %v15091_v60  ;;  %v15092_v14 = vld [vmem:[#allocation326_spill] sm:$0xff]  ;;  %v15093_v12 = vld [vmem:[#allocation108_spill] sm:$0xff] }
 0x519   : > { %v3225_v2 = vsel %vm453_vm2, %v10919_v15, %v15089_v41  ;;  %v3859_v50 = vsel %vm880_vm5, %v15092_v14, %v3774_v10  ;;  %3955 = vrot.lane.b32.xlu1 %v3860_v16, %s7139_s14  ;;  %v3226_v61 = vsel %vm453_vm2, %v10935_v7, %v15093_v12  ;;  %v15094_v28 = vld [vmem:[#allocation8_spill] sm:$0xff]  ;;  %v15095_v40 = vld [vmem:[#allocation7_spill] sm:$0xff]  ;;  %v15096_v41 = vld [vmem:[#allocation9_spill] sm:$0xff]  ;;  %v3780_v12 = vpop.permute.xlu1 %3779 }
 0x51a   : > { %v3229_v15 = vsel %vm453_vm2, %v10940_v33, %v15094_v28  ;;  %v3228_v9 = vsel %vm453_vm2, %v10945_v20, %v15095_v40  ;;  %v3231_v30 = vsel %vm453_vm2, %v10950_v3, %v15096_v41  ;;  %3953 = vrot.lane.b32.xlu0 %v3859_v50, %s7139_s14  ;;  %v15097_v10 = vld [vmem:[#allocation10_spill] sm:$0xff]  ;;  %v15098_v27 = vld [vmem:[#allocation11_spill] sm:$0xff]  ;;  %v15099_v60 = vld [vmem:[#allocation12_spill] sm:$0xff] }
 0x51b   : > { %v3230_v16 = vsel %vm453_vm2, %v10955_v31, %v15097_v10  ;;  %v3233_v7 = vsel %vm453_vm2, %v10962_v6, %v15098_v27  ;;  %v3232_v33 = vsel %vm453_vm2, %v10967_v43, %v15099_v60  ;;  %v15100_v14 = vld [vmem:[#allocation13_spill] sm:$0xff]  ;;  %v15101_v3 = vld [vmem:[#allocation14_spill] sm:$0xff]  ;;  %v15102_v28 = vld [vmem:[#allocation15_spill] sm:$0xff]  ;;  %v3778_v43 = vpop.permute.xlu0 %3777 }
 0x51c   : > { %v3235_v20 = vsel %vm453_vm2, %v10972_v35, %v15100_v14  ;;  %v3234_v50 = vsel %vm453_vm2, %v10980_v11, %v15101_v3  ;;  %v3237_v31 = vsel %vm453_vm2, %v10985_v24, %v15102_v28  ;;  %v15103_v40 = vld [vmem:[#allocation16_spill] sm:$0xff]  ;;  %v15104_v41 = vld [vmem:[#allocation330_spill] sm:$0xff]  ;;  %v15105_v27 = vld [vmem:[#allocation17_spill] sm:$0xff]  ;;  %v3241_v11 = vsel %vm453_vm2, %v3205_v53, %v15107_v23 }
 0x51d   : > { %v3236_v6 = vsel %vm453_vm2, %v3200_v36, %v15103_v40  ;;  %v3862_v10 = vsel %vm880_vm5, %v15104_v41, %v3780_v12  ;;  %v3239_v35 = vsel %vm453_vm2, %v10993_v52, %v15105_v27  ;;  %v15106_v60 = vld [vmem:[#allocation18_spill] sm:$0xff]  ;;  %v15108_v3 = vld [vmem:[#allocation331_spill] sm:$0xff]  ;;  %v15109_v36 = vld [vmem:[#allocation20_spill] sm:$0xff] }
 0x51e   : > { %v3238_v14 = vsel %vm453_vm2, %v3202_v39, %v15106_v60  ;;  %v3861_v24 = vsel %vm880_vm5, %v15108_v3, %v3778_v43  ;;  %3959 = vrot.lane.b32.xlu1 %v3862_v10, %s7139_s14  ;;  %v3240_v28 = vsel %vm453_vm2, %v3204_v21, %v15109_v36  ;;  %v15110_v12 = vld [vmem:[#allocation21_spill] sm:$0xff]  ;;  %v15111_v41 = vld [vmem:[#allocation22_spill] sm:$0xff]  ;;  %v15112_v27 = vld [vmem:[#allocation23_spill] sm:$0xff]  ;;  %v3784_v36 = vpop.permute.xlu1 %3783 }
 0x51f   : > { %v3243_v40 = vsel %vm453_vm2, %v3207_v17, %v15110_v12  ;;  %v3242_v52 = vsel %vm453_vm2, %v3206_v54, %v15111_v41  ;;  %v3245_v39 = vsel %vm453_vm2, %v3209_v34, %v15112_v27  ;;  %3957 = vrot.lane.b32.xlu0 %v3861_v24, %s7139_s14  ;;  %v15113_v23 = vld [vmem:[#allocation24_spill] sm:$0xff]  ;;  %v15114_v43 = vld [vmem:[#allocation25_spill] sm:$0xff]  ;;  %v15115_v60 = vld [vmem:[#allocation26_spill] sm:$0xff] }
 0x520   : > { %v3244_v53 = vsel %vm453_vm2, %v3208_v19, %v15113_v23  ;;  %v3247_v10 = vsel %vm453_vm2, %v3211_v51, %v15114_v43  ;;  %v3246_v21 = vsel %vm453_vm2, %v3210_v1, %v15115_v60  ;;  %v15116_v3 = vld [vmem:[#allocation27_spill] sm:$0xff]  ;;  %v15117_v12 = vld [vmem:[#allocation28_spill] sm:$0xff]  ;;  %v15118_v41 = vld [vmem:[#allocation29_spill] sm:$0xff]  ;;  %v3782_v23 = vpop.permute.xlu0 %3781 }
 0x521   : > { %v3250_v17 = vsel %vm3248_vm6, %v3213_v49, %v15116_v3  ;;  %v3249_v54 = vsel %vm3248_vm6, %v3212_v44, %v15117_v12  ;;  %v3252_v34 = vsel %vm3248_vm6, %v3215_v32, %v15118_v41  ;;  %v15119_v24 = vld [vmem:[#allocation30_spill] sm:$0xff]  ;;  %v15120_v19 = vld [vmem:[#allocation335_spill] sm:$0xff]  ;;  %v15122_v60 = vld [vmem:[#allocation32_spill] sm:$0xff] }
 0x522   : > { %v3251_v27 = vsel %vm3248_vm6, %v3214_v4, %v15119_v24  ;;  %v3864_v51 = vsel %vm880_vm5, %v15120_v19, %v3784_v36  ;;  %v15121_v43 = vld [vmem:[#allocation31_spill] sm:$0xff]  ;;  %v3253_v49 = vsel %vm3248_vm6, %v3216_v13, %v15122_v60  ;;  %v15123_v3 = vld [vmem:[#allocation33_spill] sm:$0xff]  ;;  %v15124_v12 = vld [vmem:[#allocation336_spill] sm:$0xff] }
 0x523   : > { %v3254_v1 = vsel %vm3248_vm6, %v3217_v18, %v15121_v43  ;;  %v3256_v44 = vsel %vm3248_vm6, %v3219_v47, %v15123_v3  ;;  %v3863_v32 = vsel %vm880_vm5, %v15124_v12, %v3782_v23  ;;  %3963 = vrot.lane.b32.xlu1 %v3864_v51, %s7139_s14  ;;  %v15125_v4 = vld [vmem:[#allocation34_spill] sm:$0xff]  ;;  %v15126_v24 = vld [vmem:[#allocation35_spill] sm:$0xff]  ;;  %v15127_v19 = vld [vmem:[#allocation36_spill] sm:$0xff] }
 0x524   : > { %v3255_v41 = vsel %vm3248_vm6, %v3218_v59, %v15125_v4  ;;  %v3258_v36 = vsel %vm3248_vm6, %v3221_v22, %v15126_v24  ;;  %v3257_v18 = vsel %vm3248_vm6, %v3220_v25, %v15127_v19  ;;  %v15128_v43 = vld [vmem:[#allocation109_spill] sm:$0xff]  ;;  %3961 = vrot.lane.b32.xlu0 %v3863_v32, %s7139_s14  ;;  %v15129_v47 = vld [vmem:[#allocation110_spill] sm:$0xff]  ;;  %v15131_v3 = vld [vmem:[#allocation111_spill] sm:$0xff]  ;;  %v3788_v4 = vpop.permute.xlu1 %3787 }
 0x525   : > { %v3260_v13 = vsel %vm3248_vm6, %v3223_v63, %v15128_v43  ;;  %v3259_v60 = vsel %vm3248_vm6, %v3222_v48, %v15129_v47  ;;  %v15130_v23 = vld [vmem:[#allocation38_spill] sm:$0xff]  ;;  %v3261_v59 = vsel %vm3248_vm6, %v3224_v42, %v15131_v3  ;;  %v15132_v12 = vld [vmem:[#allocation112_spill] sm:$0xff]  ;;  %v15133_v24 = vld [vmem:[#allocation113_spill] sm:$0xff] }
 0x526   : > { %v3262_v51 = vsel %vm3248_vm6, %v3225_v2, %v15130_v23  ;;  %v3264_v22 = vsel %vm3248_vm6, %v3227_v58, %v15132_v12  ;;  %v3263_v25 = vsel %vm3248_vm6, %v3226_v61, %v15133_v24  ;;  %v15134_v19 = vld [vmem:[#allocation114_spill] sm:$0xff]  ;;  %v15135_v32 = vld [vmem:[#allocation115_spill] sm:$0xff]  ;;  %v15136_v48 = vld [vmem:[#allocation340_spill] sm:$0xff]  ;;  %v3786_v2 = vpop.permute.xlu0 %3785 }
 0x527   : > { %v3266_v63 = vsel %vm3248_vm6, %v3229_v15, %v15134_v19  ;;  %v3265_v43 = vsel %vm3248_vm6, %v3228_v9, %v15135_v32  ;;  %v3866_v47 = vsel %vm880_vm5, %v15136_v48, %v3788_v4  ;;  %v15137_v23 = vld [vmem:[#allocation116_spill] sm:$0xff]  ;;  %v15138_v3 = vld [vmem:[#allocation117_spill] sm:$0xff]  ;;  %v15139_v12 = vld [vmem:[#allocation39_spill] sm:$0xff] }
 0x528   : > { %v3268_v42 = vsel %vm3248_vm6, %v3231_v30, %v15137_v23  ;;  %v3267_v58 = vsel %vm3248_vm6, %v3230_v16, %v15138_v3  ;;  %v3270_v55 = vsel %vm3248_vm6, %v3233_v7, %v15139_v12  ;;  %v15140_v61 = vld [vmem:[#allocation341_spill] sm:$0xff]  ;;  %3967 = vrot.lane.b32.xlu1 %v3866_v47, %s7139_s14  ;;  %v15141_v15 = vld [vmem:[#allocation118_spill] sm:$0xff]  ;;  %v15142_v19 = vld [vmem:[#allocation40_spill] sm:$0xff] }
 0x529   : > { %v3865_v24 = vsel %vm880_vm5, %v15140_v61, %v3786_v2  ;;  %v3269_v9 = vsel %vm3248_vm6, %v3232_v33, %v15141_v15  ;;  %v3272_v4 = vsel %vm3248_vm6, %v3235_v20, %v15142_v19  ;;  %v15143_v32 = vld [vmem:[#allocation119_spill] sm:$0xff]  ;;  %v15144_v48 = vld [vmem:[#allocation41_spill] sm:$0xff]  ;;  %v15145_v7 = vld [vmem:[#allocation120_spill] sm:$0xff]  ;;  %v3792_v61 = vpop.permute.xlu1 %3791 }
 0x52a   : > { %v3271_v30 = vsel %vm3248_vm6, %v3234_v50, %v15143_v32  ;;  %v3274_v16 = vsel %vm3248_vm6, %v3237_v31, %v15144_v48  ;;  %3965 = vrot.lane.b32.xlu0 %v3865_v24, %s7139_s14  ;;  %v3273_v23 = vsel %vm3248_vm6, %v3236_v6, %v15145_v7  ;;  %v15146_v2 = vld [vmem:[#allocation121_spill] sm:$0xff]  ;;  %v15147_v3 = vld [vmem:[#allocation122_spill] sm:$0xff]  ;;  %v15148_v12 = vld [vmem:[#allocation123_spill] sm:$0xff] }
 0x52b   : > { %v3276_v47 = vsel %vm3248_vm6, %v3239_v35, %v15146_v2  ;;  %v3275_v33 = vsel %vm3248_vm6, %v3238_v14, %v15147_v3  ;;  %v3278_v20 = vsel %vm3248_vm6, %v3241_v11, %v15148_v12  ;;  %v15149_v15 = vld [vmem:[#allocation124_spill] sm:$0xff]  ;;  %v15150_v19 = vld [vmem:[#allocation125_spill] sm:$0xff]  ;;  %v15151_v24 = vld [vmem:[#allocation126_spill] sm:$0xff]  ;;  %v3790_v35 = vpop.permute.xlu0 %3789  ;;  %v1511_v2 = vrot.slane %v10571_v56, 1 }
 0x52c   : > { %v3277_v50 = vsel %vm3248_vm6, %v3240_v28, %v15149_v15  ;;  %v3280_v31 = vsel %vm3248_vm6, %v3243_v40, %v15150_v19  ;;  %v3279_v32 = vsel %vm3248_vm6, %v3242_v52, %v15151_v24  ;;  %v15152_v6 = vld [vmem:[#allocation344_spill] sm:$0xff]  ;;  %v15153_v7 = vld [vmem:[#allocation46_spill] sm:$0xff]  ;;  %v15154_v11 = vld [vmem:[#allocation345_spill] sm:$0xff]  ;;  %v1513_v28 = vrot.slane %v10714_v5, 1 }
 0x52d   : > { %v3868_v48 = vsel %vm880_vm5, %v15152_v6, %v3792_v61  ;;  %v3282_v14 = vsel %vm3248_vm6, %v3245_v39, %v15153_v7  ;;  %v3867_v3 = vsel %vm880_vm5, %v15154_v11, %v3790_v35  ;;  %v15155_v40 = vld [vmem:[#allocation127_spill] sm:$0xff]  ;;  %v15156_v52 = vld [vmem:[#allocation128_spill] sm:$0xff]  ;;  %v15157_v61 = vld [vmem:[#allocation129_spill] sm:$0xff]  ;;  %v1510_v39 = vrot.slane %v10575_v8, 1  ;;  %v3796_v7 = vpop.permute.xlu1 %3795 }
 0x52e   : > { %3971 = vrot.lane.b32.xlu1 %v3868_v48, %s7139_s14  ;;  %v3281_v12 = vsel %vm3248_vm6, %v3244_v53, %v15155_v40  ;;  %v3284_v15 = vsel %vm3248_vm6, %v3247_v10, %v15156_v52  ;;  %v3283_v19 = vsel %vm3248_vm6, %v3246_v21, %v15157_v61  ;;  %3969 = vrot.lane.b32.xlu0 %v3867_v3, %s7139_s14  ;;  %v15158_v56 = vld [vmem:[#allocation130_spill] sm:$0xff]  ;;  %v15159_v6 = vld [vmem:[#allocation131_spill] sm:$0xff]  ;;  %v15160_v48 = vld [vmem:[#allocation132_spill] sm:$0xff] }
 0x52f   : > { %v3287_v24 = vsel %vm3285_vm7, %v3250_v17, %v15158_v56  ;;  %v3286_v5 = vsel %vm3285_vm7, %v3249_v54, %v15159_v6  ;;  %v3289_v53 = vsel %vm3285_vm7, %v3252_v34, %v15160_v48  ;;  %v15161_v35 = vld [vmem:[#allocation133_spill] sm:$0xff]  ;;  %v15162_v11 = vld [vmem:[#allocation134_spill] sm:$0xff]  ;;  %v15163_v40 = vld [vmem:[#allocation135_spill] sm:$0xff]  ;;  %v3794_v54 = vpop.permute.xlu0 %3793 }
 0x530   : > { %v3288_v10 = vsel %vm3285_vm7, %v3251_v27, %v15161_v35  ;;  %v3291_v21 = vsel %vm3285_vm7, %v3254_v1, %v15162_v11  ;;  %v3290_v8 = vsel %vm3285_vm7, %v3253_v49, %v15163_v40  ;;  %v15164_v3 = vld [vmem:[#allocation59_spill] sm:$0xff]  ;;  %v15166_v56 = vld [vmem:[#allocation61_spill] sm:$0xff]  ;;  %v15167_v6 = vld [vmem:[#allocation136_spill] sm:$0xff]  ;;  %v1514_v1 = vsel %vm1052_vm0, %v1511_v2, %v1513_v28 }
 0x531   : > { %v3293_v52 = vsel %vm3285_vm7, %v3256_v44, %v15164_v3  ;;  %v15165_v17 = vld [vmem:[#allocation443_spill] sm:$0xff]  ;;  %v3292_v34 = vsel %vm3285_vm7, %v3255_v41, %v15166_v56  ;;  %v3295_v27 = vsel %vm3285_vm7, %v3258_v36, %v15167_v6  ;;  %v15168_v48 = vld [vmem:[#allocation445_spill] sm:$0xff]  ;;  %v15170_v11 = vld [vmem:[#allocation138_spill] sm:$0xff]  ;;  %v1512_v41 = vsel %vm1052_vm0, %v1510_v39, %v1511_v2 }
 0x532   : > { %v3870_v61 = vsel %vm880_vm5, %v15165_v17, %v3796_v7  ;;  %v3869_v35 = vsel %vm880_vm5, %v15168_v48, %v3794_v54  ;;  %v15169_v49 = vld [vmem:[#allocation137_spill] sm:$0xff]  ;;  %v3297_v7 = vsel %vm3285_vm7, %v3260_v13, %v15170_v11  ;;  %v15171_v40 = vld [vmem:[#allocation139_spill] sm:$0xff]  ;;  %v15172_v36 = vld [vmem:[#allocation140_spill] sm:$0xff]  ;;  %v3800_v13 = vpop.permute.xlu1 %3799 }
 0x533   : > { %3975 = vrot.lane.b32.xlu1 %v3870_v61, %s7139_s14  ;;  %v3294_v44 = vsel %vm3285_vm7, %v3257_v18, %v15169_v49  ;;  %v3296_v3 = vsel %vm3285_vm7, %v3259_v60, %v15171_v40  ;;  %3973 = vrot.lane.b32.xlu0 %v3869_v35, %s7139_s14  ;;  %v3299_v17 = vsel %vm3285_vm7, %v3262_v51, %v15172_v36  ;;  %v15173_v54 = vld [vmem:[#allocation142_spill] sm:$0xff]  ;;  %v15174_v28 = vld [vmem:[#allocation143_spill] sm:$0xff]  ;;  %v15175_v18 = vld [vmem:[#allocation144_spill] sm:$0xff]  ;;  %v3798_v11 = vpop.permute.xlu0 %3797 }
 0x534   : > { %v3298_v61 = vsel %vm3285_vm7, %v3261_v59, %v15173_v54  ;;  %v3301_v56 = vsel %vm3285_vm7, %v3264_v22, %v15174_v28  ;;  %v3300_v6 = vsel %vm3285_vm7, %v3263_v25, %v15175_v18  ;;  %v15176_v48 = vld [vmem:[#allocation145_spill] sm:$0xff]  ;;  %v15177_v49 = vld [vmem:[#allocation146_spill] sm:$0xff]  ;;  %v15178_v2 = vld [vmem:[#allocation147_spill] sm:$0xff]  ;;  %v3872_v51 = vsel %vm880_vm5, %v1514_v1, %v3800_v13 }
 0x535   : > { %v3303_v60 = vsel %vm3285_vm7, %v3266_v63, %v15176_v48  ;;  %v3302_v35 = vsel %vm3285_vm7, %v3265_v43, %v15177_v49  ;;  %v3305_v39 = vsel %vm3285_vm7, %v3268_v42, %v15178_v2  ;;  %v15179_v59 = vld [vmem:[#allocation148_spill] sm:$0xff]  ;;  %v15180_v22 = vld [vmem:[#allocation149_spill] sm:$0xff]  ;;  %v15181_v25 = vld [vmem:[#allocation150_spill] sm:$0xff]  ;;  %v3871_v63 = vsel %vm880_vm5, %v1512_v41, %v3798_v11 }
 0x536   : > { %v3304_v40 = vsel %vm3285_vm7, %v3267_v58, %v15179_v59  ;;  %v3307_v36 = vsel %vm3285_vm7, %v3270_v55, %v15180_v22  ;;  %v3306_v54 = vsel %vm3285_vm7, %v3269_v9, %v15181_v25  ;;  %v15182_v43 = vld [vmem:[#allocation151_spill] sm:$0xff]  ;;  %v15183_v42 = vld [vmem:[#allocation152_spill] sm:$0xff]  ;;  %v15184_v18 = vld [vmem:[#allocation153_spill] sm:$0xff] }
 0x537   : > { %3979 = vrot.lane.b32.xlu1 %v3872_v51, %s7139_s14  ;;  %v3309_v28 = vsel %vm3285_vm7, %v3272_v4, %v15182_v43  ;;  %v3308_v1 = vsel %vm3285_vm7, %v3271_v30, %v15183_v42  ;;  %v3311_v13 = vsel %vm3285_vm7, %v3274_v16, %v15184_v18  ;;  %v15185_v58 = vld [vmem:[#allocation154_spill] sm:$0xff]  ;;  %3977 = vrot.lane.b32.xlu0 %v3871_v63, %s7139_s14  ;;  %v15186_v55 = vld [vmem:[#allocation155_spill] sm:$0xff]  ;;  %v15187_v41 = vld [vmem:[#allocation156_spill] sm:$0xff]  ;;  %s15696_s14 = smov 20  }
 0x538   : > { %v3310_v48 = vsel %vm3285_vm7, %v3273_v23, %v15185_v58  ;;  %v3313_v9 = vsel %vm3285_vm7, %v3276_v47, %v15186_v55  ;;  %v3312_v49 = vsel %vm3285_vm7, %v3275_v33, %v15187_v41  ;;  %v15188_v2 = vld [vmem:[#allocation157_spill] sm:$0xff]  ;;  %v15189_v51 = vld [vmem:[#allocation158_spill] sm:$0xff]  ;;  %v15190_v11 = vld [vmem:[#allocation159_spill] sm:$0xff] }
 0x539   : > { %v3315_v4 = vsel %vm3285_vm7, %v3278_v20, %v15188_v2  ;;  %v3314_v30 = vsel %vm3285_vm7, %v3277_v50, %v15189_v51  ;;  %v3317_v16 = vsel %vm3285_vm7, %v3280_v31, %v15190_v11  ;;  %v15191_v59 = vld [vmem:[#allocation160_spill] sm:$0xff]  ;;  %v15192_v22 = vld [vmem:[#allocation161_spill] sm:$0xff]  ;;  %v15193_v47 = vld [vmem:[#allocation162_spill] sm:$0xff] }
 0x53a   : > { %v3316_v23 = vsel %vm3285_vm7, %v3279_v32, %v15191_v59  ;;  %v3319_v25 = vsel %vm3285_vm7, %v3282_v14, %v15192_v22  ;;  %v3318_v63 = vsel %vm3285_vm7, %v3281_v12, %v15193_v47  ;;  %v15194_v33 = vld [vmem:[#allocation163_spill] sm:$0xff]  ;;  %v15195_v20 = vld [vmem:[#allocation164_spill] sm:$0xff]  ;;  %v15196_v50 = vld [vmem:[#allocation165_spill] sm:$0xff] }
 0x53b   : > { %v3321_v43 = vsel %vm3285_vm7, %v3284_v15, %v15194_v33  ;;  %v3320_v42 = vsel %vm3285_vm7, %v3283_v19, %v15195_v20  ;;  %v3324_v18 = vsel %vm14197_vm8, %v3287_v24, %v15196_v50  ;;  %v15197_v58 = vld [vmem:[#allocation166_spill] sm:$0xff]  ;;  %v15198_v55 = vld [vmem:[#allocation167_spill] sm:$0xff]  ;;  %v15199_v41 = vld [vmem:[#allocation168_spill] sm:$0xff] }
 0x53c   : > { %v3323_v31 = vsel %vm14197_vm8, %v3286_v5, %v15197_v58  ;;  %v3326_v32 = vsel %vm14197_vm8, %v3289_v53, %v15198_v55  ;;  %v3325_v14 = vsel %vm14197_vm8, %v3288_v10, %v15199_v41  ;;  %v15200_v2 = vld [vmem:[#allocation169_spill] sm:$0xff]  ;;  %v15201_v51 = vld [vmem:[#allocation170_spill] sm:$0xff]  ;;  %v15202_v11 = vld [vmem:[#allocation171_spill] sm:$0xff] }
 0x53d   : > { %v3328_v12 = vsel %vm14197_vm8, %v3291_v21, %v15200_v2  ;;  %v3327_v15 = vsel %vm14197_vm8, %v3290_v8, %v15201_v51  ;;  %v3330_v19 = vsel %vm14197_vm8, %v3293_v52, %v15202_v11  ;;  %v15203_v59 = vld [vmem:[#allocation172_spill] sm:$0xff]  ;;  %v15204_v22 = vld [vmem:[#allocation173_spill] sm:$0xff]  ;;  %v15205_v47 = vld [vmem:[#allocation174_spill] sm:$0xff] }
 0x53e   : > { %v3329_v24 = vsel %vm14197_vm8, %v3292_v34, %v15203_v59  ;;  %v3332_v5 = vsel %vm14197_vm8, %v3295_v27, %v15204_v22  ;;  %v3331_v53 = vsel %vm14197_vm8, %v3294_v44, %v15205_v47  ;;  %v15206_v33 = vld [vmem:[#allocation175_spill] sm:$0xff]  ;;  %v15207_v20 = vld [vmem:[#allocation176_spill] sm:$0xff]  ;;  %v15208_v50 = vld [vmem:[#allocation177_spill] sm:$0xff] }
 0x53f   : > { %v3334_v10 = vsel %vm14197_vm8, %v3297_v7, %v15206_v33  ;;  %v3333_v21 = vsel %vm14197_vm8, %v3296_v3, %v15207_v20  ;;  %v3336_v8 = vsel %vm14197_vm8, %v3299_v17, %v15208_v50  ;;  %v15209_v58 = vld [vmem:[#allocation178_spill] sm:$0xff]  ;;  %v15210_v55 = vld [vmem:[#allocation179_spill] sm:$0xff]  ;;  %v15211_v41 = vld [vmem:[#allocation180_spill] sm:$0xff] }
 0x540   : > { %v3335_v52 = vsel %vm14197_vm8, %v3298_v61, %v15209_v58  ;;  %v3338_v34 = vsel %vm14197_vm8, %v3301_v56, %v15210_v55  ;;  %v3337_v27 = vsel %vm14197_vm8, %v3300_v6, %v15211_v41  ;;  %v15212_v2 = vld [vmem:[#allocation181_spill] sm:$0xff]  ;;  %v15213_v51 = vld [vmem:[#allocation182_spill] sm:$0xff]  ;;  %v15214_v11 = vld [vmem:[#allocation183_spill] sm:$0xff] }
 0x541   : > { %v3340_v44 = vsel %vm14197_vm8, %v3303_v60, %v15212_v2  ;;  %v3339_v7 = vsel %vm14197_vm8, %v3302_v35, %v15213_v51  ;;  %v3342_v3 = vsel %vm14197_vm8, %v3305_v39, %v15214_v11  ;;  %v15215_v59 = vld [vmem:[#allocation184_spill] sm:$0xff]  ;;  %v15216_v22 = vld [vmem:[#allocation185_spill] sm:$0xff]  ;;  %v15217_v47 = vld [vmem:[#allocation186_spill] sm:$0xff] }
 0x542   : > { %v3341_v17 = vsel %vm14197_vm8, %v3304_v40, %v15215_v59  ;;  %v3344_v61 = vsel %vm14197_vm8, %v3307_v36, %v15216_v22  ;;  %v3343_v56 = vsel %vm14197_vm8, %v3306_v54, %v15217_v47  ;;  %v15218_v33 = vld [vmem:[#allocation187_spill] sm:$0xff]  ;;  %v15219_v20 = vld [vmem:[#allocation188_spill] sm:$0xff]  ;;  %v15220_v50 = vld [vmem:[#allocation189_spill] sm:$0xff] }
 0x543   : > { %v3346_v6 = vsel %vm14197_vm8, %v3309_v28, %v15218_v33  ;;  %v3345_v60 = vsel %vm14197_vm8, %v3308_v1, %v15219_v20  ;;  %v3348_v35 = vsel %vm14197_vm8, %v3311_v13, %v15220_v50  ;;  %v15221_v58 = vld [vmem:[#allocation190_spill] sm:$0xff]  ;;  %v15222_v55 = vld [vmem:[#allocation191_spill] sm:$0xff]  ;;  %v15223_v41 = vld [vmem:[#allocation192_spill] sm:$0xff] }
 0x544   : > { %v3347_v39 = vsel %vm14197_vm8, %v3310_v48, %v15221_v58  ;;  %v3350_v40 = vsel %vm14197_vm8, %v3313_v9, %v15222_v55  ;;  %v3349_v36 = vsel %vm14197_vm8, %v3312_v49, %v15223_v41  ;;  %v15224_v2 = vld [vmem:[#allocation193_spill] sm:$0xff]  ;;  %v15225_v51 = vld [vmem:[#allocation194_spill] sm:$0xff]  ;;  %v15226_v1 = vld [vmem:[#allocation195_spill] sm:$0xff] }
 0x545   : > { %v3352_v54 = vsel %vm14197_vm8, %v3315_v4, %v15224_v2  ;;  %v3351_v28 = vsel %vm14197_vm8, %v3314_v30, %v15225_v51  ;;  %v3354_v11 = vsel %vm14197_vm8, %v3317_v16, %v15226_v1  ;;  %v15227_v13 = vld [vmem:[#allocation196_spill] sm:$0xff]  ;;  %v15228_v48 = vld [vmem:[#allocation197_spill] sm:$0xff]  ;;  %v15229_v9 = vld [vmem:[#allocation198_spill] sm:$0xff] }
 0x546   : > { %v3353_v59 = vsel %vm14197_vm8, %v3316_v23, %v15227_v13  ;;  %v3356_v22 = vsel %vm14197_vm8, %v3319_v25, %v15228_v48  ;;  %v3355_v47 = vsel %vm14197_vm8, %v3318_v63, %v15229_v9  ;;  %v15230_v49 = vld [vmem:[#allocation199_spill] sm:$0xff]  ;;  %v15231_v4 = vld [vmem:[#allocation200_spill] sm:$0xff]  ;;  %v15232_v30 = vld [vmem:[#allocation201_spill] sm:$0xff] }
 0x547   : > { %v3358_v33 = vsel %vm14197_vm8, %v3321_v43, %v15230_v49  ;;  %v3357_v20 = vsel %vm14197_vm8, %v3320_v42, %v15231_v4  ;;  %v3361_v50 = vsel %vm14195_vm9, %v3324_v18, %v15232_v30  ;;  %v15233_v58 = vld [vmem:[#allocation202_spill] sm:$0xff]  ;;  %v15234_v55 = vld [vmem:[#allocation203_spill] sm:$0xff]  ;;  %v15235_v41 = vld [vmem:[#allocation204_spill] sm:$0xff]  ;;  %vm4070_vm8 = vcmask 588800  }
 0x548   : > { %v3360_v16 = vsel %vm14195_vm9, %v3323_v31, %v15233_v58  ;;  %v3363_v23 = vsel %vm14195_vm9, %v3326_v32, %v15234_v55  ;;  %v3362_v25 = vsel %vm14195_vm9, %v3325_v14, %v15235_v41  ;;  %v15236_v2 = vld [vmem:[#allocation205_spill] sm:$0xff]  ;;  %v15237_v51 = vld [vmem:[#allocation206_spill] sm:$0xff]  ;;  %v15238_v1 = vld [vmem:[#allocation207_spill] sm:$0xff] }
 0x549   : > { %v3365_v63 = vsel %vm14195_vm9, %v3328_v12, %v15236_v2  ;;  %v3364_v43 = vsel %vm14195_vm9, %v3327_v15, %v15237_v51  ;;  %v3367_v42 = vsel %vm14195_vm9, %v3330_v19, %v15238_v1  ;;  %v15239_v13 = vld [vmem:[#allocation208_spill] sm:$0xff]  ;;  %v15240_v48 = vld [vmem:[#allocation209_spill] sm:$0xff]  ;;  %v15241_v9 = vld [vmem:[#allocation210_spill] sm:$0xff] }
 0x54a   : > { %v3366_v18 = vsel %vm14195_vm9, %v3329_v24, %v15239_v13  ;;  %v3369_v31 = vsel %vm14195_vm9, %v3332_v5, %v15240_v48  ;;  %v3368_v32 = vsel %vm14195_vm9, %v3331_v53, %v15241_v9  ;;  %v15242_v49 = vld [vmem:[#allocation211_spill] sm:$0xff]  ;;  %v15243_v4 = vld [vmem:[#allocation212_spill] sm:$0xff]  ;;  %v15244_v30 = vld [vmem:[#allocation213_spill] sm:$0xff] }
 0x54b   : > { %v3371_v14 = vsel %vm14195_vm9, %v3334_v10, %v15242_v49  ;;  %v3370_v12 = vsel %vm14195_vm9, %v3333_v21, %v15243_v4  ;;  %v3373_v15 = vsel %vm14195_vm9, %v3336_v8, %v15244_v30  ;;  %v15245_v58 = vld [vmem:[#allocation214_spill] sm:$0xff]  ;;  %v15246_v55 = vld [vmem:[#allocation215_spill] sm:$0xff]  ;;  %v15247_v41 = vld [vmem:[#allocation216_spill] sm:$0xff] }
 0x54c   : > { %v3372_v19 = vsel %vm14195_vm9, %v3335_v52, %v15245_v58  ;;  %v3375_v24 = vsel %vm14195_vm9, %v3338_v34, %v15246_v55  ;;  %v3374_v5 = vsel %vm14195_vm9, %v3337_v27, %v15247_v41  ;;  %v15248_v2 = vld [vmem:[#allocation217_spill] sm:$0xff]  ;;  %v15249_v51 = vld [vmem:[#allocation218_spill] sm:$0xff]  ;;  %v15250_v1 = vld [vmem:[#allocation219_spill] sm:$0xff] }
 0x54d   : > { %v3377_v53 = vsel %vm14195_vm9, %v3340_v44, %v15248_v2  ;;  %v3376_v10 = vsel %vm14195_vm9, %v3339_v7, %v15249_v51  ;;  %v3379_v21 = vsel %vm14195_vm9, %v3342_v3, %v15250_v1  ;;  %v15251_v13 = vld [vmem:[#allocation220_spill] sm:$0xff]  ;;  %v15252_v48 = vld [vmem:[#allocation221_spill] sm:$0xff]  ;;  %v15253_v9 = vld [vmem:[#allocation222_spill] sm:$0xff] }
 0x54e   : > { %v3378_v8 = vsel %vm14195_vm9, %v3341_v17, %v15251_v13  ;;  %v3381_v52 = vsel %vm14195_vm9, %v3344_v61, %v15252_v48  ;;  %v3380_v34 = vsel %vm14195_vm9, %v3343_v56, %v15253_v9  ;;  %v15254_v49 = vld [vmem:[#allocation223_spill] sm:$0xff]  ;;  %v15255_v4 = vld [vmem:[#allocation224_spill] sm:$0xff]  ;;  %v15256_v30 = vld [vmem:[#allocation42_spill] sm:$0xff] }
 0x54f   : > { %v3383_v27 = vsel %vm14195_vm9, %v3346_v6, %v15254_v49  ;;  %v3382_v44 = vsel %vm14195_vm9, %v3345_v60, %v15255_v4  ;;  %v3385_v7 = vsel %vm14195_vm9, %v3348_v35, %v15256_v30  ;;  %v15257_v58 = vld [vmem:[#allocation225_spill] sm:$0xff]  ;;  %v15258_v55 = vld [vmem:[#allocation43_spill] sm:$0xff]  ;;  %v15259_v41 = vld [vmem:[#allocation44_spill] sm:$0xff] }
 0x550   : > { %v3384_v3 = vsel %vm14195_vm9, %v3347_v39, %v15257_v58  ;;  %v3387_v17 = vsel %vm14195_vm9, %v3350_v40, %v15258_v55  ;;  %v3386_v61 = vsel %vm14195_vm9, %v3349_v36, %v15259_v41  ;;  %v15260_v2 = vld [vmem:[#allocation45_spill] sm:$0xff]  ;;  %v15261_v51 = vld [vmem:[#allocation226_spill] sm:$0xff]  ;;  %v15262_v60 = vld [vmem:[#allocation47_spill] sm:$0xff] }
 0x551   : > { %v3389_v56 = vsel %vm14195_vm9, %v3352_v54, %v15260_v2  ;;  %v3388_v6 = vsel %vm14195_vm9, %v3351_v28, %v15261_v51  ;;  %v3391_v1 = vsel %vm14195_vm9, %v3354_v11, %v15262_v60  ;;  %v15263_v35 = vld [vmem:[#allocation227_spill] sm:$0xff]  ;;  %v15264_v39 = vld [vmem:[#allocation48_spill] sm:$0xff]  ;;  %v15266_v36 = vld [vmem:[#allocation50_spill] sm:$0xff] }
 0x552   : > { %v3390_v13 = vsel %vm14195_vm9, %v3353_v59, %v15263_v35  ;;  %v3393_v48 = vsel %vm14195_vm9, %v3356_v22, %v15264_v39  ;;  %v15265_v40 = vld [vmem:[#allocation228_spill] sm:$0xff]  ;;  %v3395_v49 = vsel %vm14195_vm9, %v3358_v33, %v15266_v36  ;;  %v15267_v54 = vld [vmem:[#allocation229_spill] sm:$0xff]  ;;  %v15269_v58 = vld [vmem:[#allocation54_spill] sm:$0xff] }
 0x553   : > { %v3392_v9 = vsel %vm14195_vm9, %v3355_v47, %v15265_v40  ;;  %v3394_v4 = vsel %vm14195_vm9, %v3357_v20, %v15267_v54  ;;  %v15268_v28 = vld [vmem:[#allocation52_spill] sm:$0xff]  ;;  %v3397_v11 = vsel %vm14194_vm10, %v3360_v16, %v15269_v58  ;;  %v15270_v55 = vld [vmem:[#allocation57_spill] sm:$0xff]  ;;  %v15271_v41 = vld [vmem:[#allocation230_spill] sm:$0xff]  ;;  %vm3692_vm9 = vcmask 490496  }
 0x554   : > { %v3398_v30 = vsel %vm14194_vm10, %v3361_v50, %v15268_v28  ;;  %v3400_v59 = vsel %vm14194_vm10, %v3363_v23, %v15270_v55  ;;  %v3399_v22 = vsel %vm14194_vm10, %v3362_v25, %v15271_v41  ;;  %v15272_v2 = vld [vmem:[#allocation231_spill] sm:$0xff]  ;;  %v15273_v51 = vld [vmem:[#allocation232_spill] sm:$0xff]  ;;  %v15275_v35 = vld [vmem:[#allocation65_spill] sm:$0xff] }
 0x555   : > { %v3402_v47 = vsel %vm14194_vm10, %v3365_v63, %v15272_v2  ;;  %v3401_v33 = vsel %vm14194_vm10, %v3364_v43, %v15273_v51  ;;  %v15274_v60 = vld [vmem:[#allocation63_spill] sm:$0xff]  ;;  %v3403_v50 = vsel %vm14194_vm10, %v3366_v18, %v15275_v35  ;;  %v15277_v40 = vld [vmem:[#allocation233_spill] sm:$0xff]  ;;  %v15278_v36 = vld [vmem:[#allocation234_spill] sm:$0xff] }
 0x556   : > { %v3404_v20 = vsel %vm14194_vm10, %v3367_v42, %v15274_v60  ;;  %v15276_v39 = vld [vmem:[#allocation67_spill] sm:$0xff]  ;;  %v3405_v23 = vsel %vm14194_vm10, %v3368_v32, %v15277_v40  ;;  %v3408_v25 = vsel %vm14194_vm10, %v3371_v14, %v15278_v36  ;;  %v15280_v28 = vld [vmem:[#allocation141_spill] sm:$0xff]  ;;  %v15281_v58 = vld [vmem:[#allocation236_spill] sm:$0xff] }
 0x557   : > { %v3406_v16 = vsel %vm14194_vm10, %v3369_v31, %v15276_v39  ;;  %v15279_v54 = vld [vmem:[#allocation235_spill] sm:$0xff]  ;;  %v3410_v43 = vsel %vm14194_vm10, %v3373_v15, %v15280_v28  ;;  %v3409_v42 = vsel %vm14194_vm10, %v3372_v19, %v15281_v58  ;;  %v15282_v55 = vld [vmem:[#allocation237_spill] sm:$0xff]  ;;  %v15283_v41 = vld [vmem:[#allocation238_spill] sm:$0xff] }
 0x558   : > { %v3407_v63 = vsel %vm14194_vm10, %v3370_v12, %v15279_v54  ;;  %v3412_v18 = vsel %vm14194_vm10, %v3375_v24, %v15282_v55  ;;  %v3411_v31 = vsel %vm14194_vm10, %v3374_v5, %v15283_v41  ;;  %v15284_v2 = vld [vmem:[#allocation239_spill] sm:$0xff]  ;;  %v15285_v51 = vld [vmem:[#allocation240_spill] sm:$0xff]  ;;  %v15286_v60 = vld [vmem:[#allocation241_spill] sm:$0xff] }
 0x559   : > { %v3414_v32 = vsel %vm14194_vm10, %v3377_v53, %v15284_v2  ;;  %v3413_v14 = vsel %vm14194_vm10, %v3376_v10, %v15285_v51  ;;  %v3416_v12 = vsel %vm14194_vm10, %v3379_v21, %v15286_v60  ;;  %v15287_v35 = vld [vmem:[#allocation242_spill] sm:$0xff]  ;;  %v15288_v39 = vld [vmem:[#allocation243_spill] sm:$0xff]  ;;  %v15289_v40 = vld [vmem:[#allocation244_spill] sm:$0xff] }
 0x55a   : > { %v3415_v15 = vsel %vm14194_vm10, %v3378_v8, %v15287_v35  ;;  %v3418_v19 = vsel %vm14194_vm10, %v3381_v52, %v15288_v39  ;;  %v3417_v24 = vsel %vm14194_vm10, %v3380_v34, %v15289_v40  ;;  %v15290_v36 = vld [vmem:[#allocation245_spill] sm:$0xff]  ;;  %v15291_v54 = vld [vmem:[#allocation246_spill] sm:$0xff]  ;;  %v15292_v28 = vld [vmem:[#allocation247_spill] sm:$0xff] }
 0x55b   : > { %v3420_v5 = vsel %vm14194_vm10, %v3383_v27, %v15290_v36  ;;  %v3419_v53 = vsel %vm14194_vm10, %v3382_v44, %v15291_v54  ;;  %v3422_v10 = vsel %vm14194_vm10, %v3385_v7, %v15292_v28  ;;  %v15293_v58 = vld [vmem:[#allocation248_spill] sm:$0xff]  ;;  %v15294_v55 = vld [vmem:[#allocation249_spill] sm:$0xff]  ;;  %v15295_v41 = vld [vmem:[#allocation250_spill] sm:$0xff] }
 0x55c   : > { %v3421_v21 = vsel %vm14194_vm10, %v3384_v3, %v15293_v58  ;;  %v3424_v8 = vsel %vm14194_vm10, %v3387_v17, %v15294_v55  ;;  %v3423_v52 = vsel %vm14194_vm10, %v3386_v61, %v15295_v41  ;;  %v15296_v2 = vld [vmem:[#allocation251_spill] sm:$0xff]  ;;  %v15297_v51 = vld [vmem:[#allocation252_spill] sm:$0xff]  ;;  %v15298_v44 = vld [vmem:[#allocation253_spill] sm:$0xff] }
 0x55d   : > { %v3426_v34 = vsel %vm14194_vm10, %v3389_v56, %v15296_v2  ;;  %v3425_v27 = vsel %vm14194_vm10, %v3388_v6, %v15297_v51  ;;  %v3428_v60 = vsel %vm14194_vm10, %v3391_v1, %v15298_v44  ;;  %v15299_v7 = vld [vmem:[#allocation254_spill] sm:$0xff]  ;;  %v15300_v3 = vld [vmem:[#allocation255_spill] sm:$0xff]  ;;  %v15301_v17 = vld [vmem:[#allocation256_spill] sm:$0xff] }
 0x55e   : > { %v3427_v35 = vsel %vm14194_vm10, %v3390_v13, %v15299_v7  ;;  %v3430_v39 = vsel %vm14194_vm10, %v3393_v48, %v15300_v3  ;;  %v3429_v40 = vsel %vm14194_vm10, %v3392_v9, %v15301_v17  ;;  %v15302_v61 = vld [vmem:[#allocation257_spill] sm:$0xff]  ;;  %v15303_v56 = vld [vmem:[#allocation258_spill] sm:$0xff]  ;;  %v15304_v6 = vld [vmem:[#allocation259_spill] sm:$0xff] }
 0x55f   : > { %v3432_v36 = vsel %vm14194_vm10, %v3395_v49, %v15302_v61  ;;  %v3431_v54 = vsel %vm14194_vm10, %v3394_v4, %v15303_v56  ;;  %v3435_v28 = vsel %vm14196_vm11, %v3398_v30, %v15304_v6  ;;  %v15305_v58 = vld [vmem:[#allocation260_spill] sm:$0xff]  ;;  %v15306_v55 = vld [vmem:[#allocation261_spill] sm:$0xff]  ;;  %v15307_v41 = vld [vmem:[#allocation262_spill] sm:$0xff]  ;;  %vm3655_vm10 = vcmask 457728  }
 0x560   : > { %v3434_v1 = vsel %vm14196_vm11, %v3397_v11, %v15305_v58  ;;  %v3437_v13 = vsel %vm14196_vm11, %v3400_v59, %v15306_v55  ;;  %v3436_v48 = vsel %vm14196_vm11, %v3399_v22, %v15307_v41  ;;  %v15308_v2 = vld [vmem:[#allocation263_spill] sm:$0xff]  ;;  %v15309_v49 = vld [vmem:[#allocation264_spill] sm:$0xff]  ;;  %v15310_v4 = vld [vmem:[#allocation265_spill] sm:$0xff] }
 0x561   : > { %v11542_v9 = vsel %vm14196_vm11, %v3402_v47, %v15308_v2  ;;  %v11546_v51 = vsel %vm14196_vm11, %v3401_v33, %v15309_v49  ;;  %v11550_v30 = vsel %vm14196_vm11, %v3404_v20, %v15310_v4  ;;  %v15311_v44 = vld [vmem:[#allocation266_spill] sm:$0xff]  ;;  %v15312_v59 = vld [vmem:[#allocation267_spill] sm:$0xff]  ;;  %v15313_v22 = vld [vmem:[#allocation268_spill] sm:$0xff] }
 0x562   : > { %v11554_v11 = vsel %vm14196_vm11, %v3403_v50, %v15311_v44  ;;  %v11558_v7 = vsel %vm14196_vm11, %v3406_v16, %v15312_v59  ;;  %v11562_v47 = vsel %vm14196_vm11, %v3405_v23, %v15313_v22  ;;  %v15314_v3 = vld [vmem:[#allocation269_spill] sm:$0xff]  ;;  %v15315_v17 = vld [vmem:[#allocation270_spill] sm:$0xff]  ;;  %v15316_v61 = vld [vmem:[#allocation271_spill] sm:$0xff] }
 0x563   : > { %v11566_v33 = vsel %vm14196_vm11, %v3408_v25, %v15314_v3  ;;  %v11570_v20 = vsel %vm14196_vm11, %v3407_v63, %v15315_v17  ;;  %v11574_v50 = vsel %vm14196_vm11, %v3410_v43, %v15316_v61  ;;  %v15317_v56 = vld [vmem:[#allocation272_spill] sm:$0xff]  ;;  %v15318_v6 = vld [vmem:[#allocation273_spill] sm:$0xff]  ;;  %v15319_v58 = vld [vmem:[#allocation274_spill] sm:$0xff] }
 0x564   : > { %v11578_v16 = vsel %vm14196_vm11, %v3409_v42, %v15317_v56  ;;  %v11582_v23 = vsel %vm14196_vm11, %v3412_v18, %v15318_v6  ;;  %v11586_v25 = vsel %vm14196_vm11, %v3411_v31, %v15319_v58  ;;  %v15320_v55 = vld [vmem:[#allocation276_spill] sm:$0xff]  ;;  %v15321_v41 = vld [vmem:[#allocation278_spill] sm:$0xff]  ;;  %v15322_v2 = vld [vmem:[#allocation279_spill] sm:$0xff] }
 0x565   : > { %v11590_v63 = vsel %vm14196_vm11, %v3414_v32, %v15320_v55  ;;  %v11594_v43 = vsel %vm14196_vm11, %v3413_v14, %v15321_v41  ;;  %v11598_v42 = vsel %vm14196_vm11, %v3416_v12, %v15322_v2  ;;  %v15323_v49 = vld [vmem:[#allocation280_spill] sm:$0xff]  ;;  %v15324_v4 = vld [vmem:[#allocation283_spill] sm:$0xff] }
 0x566   : > { %v11602_v18 = vsel %vm14196_vm11, %v3415_v15, %v15323_v49  ;;  %v11606_v31 = vsel %vm14196_vm11, %v3418_v19, %v15324_v4  ;;  %v15325_v44 = vld [vmem:[#allocation284_spill] sm:$0xff]  ;;  %v15326_v59 = vld [vmem:[#allocation287_spill] sm:$0xff] }
 0x567   : > { %v11610_v32 = vsel %vm14196_vm11, %v3417_v24, %v15325_v44  ;;  %v11614_v14 = vsel %vm14196_vm11, %v3420_v5, %v15326_v59  ;;  %v15327_v22 = vld [vmem:[#allocation288_spill] sm:$0xff]  ;;  %v15328_v3 = vld [vmem:[#allocation291_spill] sm:$0xff] }
 0x568   : > { %v11618_v12 = vsel %vm14196_vm11, %v3419_v53, %v15327_v22  ;;  %v11622_v15 = vsel %vm14196_vm11, %v3422_v10, %v15328_v3  ;;  %v15329_v17 = vld [vmem:[#allocation292_spill] sm:$0xff]  ;;  %v15330_v61 = vld [vmem:[#allocation295_spill] sm:$0xff] }
 0x569   : > { %v11626_v19 = vsel %vm14196_vm11, %v3421_v21, %v15329_v17  ;;  %v11630_v24 = vsel %vm14196_vm11, %v3424_v8, %v15330_v61  ;;  %v15331_v56 = vld [vmem:[#allocation296_spill] sm:$0xff]  ;;  %v15332_v6 = vld [vmem:[#allocation299_spill] sm:$0xff] }
 0x56a   : > { %v11634_v5 = vsel %vm14196_vm11, %v3423_v52, %v15331_v56  ;;  %v11638_v53 = vsel %vm14196_vm11, %v3426_v34, %v15332_v6  ;;  %v15333_v58 = vld [vmem:[#allocation300_spill] sm:$0xff]  ;;  %v15334_v55 = vld [vmem:[#allocation303_spill] sm:$0xff] }
 0x56b   : > { %v11642_v10 = vsel %vm14196_vm11, %v3425_v27, %v15333_v58  ;;  %v11646_v21 = vsel %vm14196_vm11, %v3428_v60, %v15334_v55  ;;  %v15335_v41 = vld [vmem:[#allocation304_spill] sm:$0xff]  ;;  %v15336_v2 = vld [vmem:[#allocation307_spill] sm:$0xff]  ;;  %v15346_v58 = vld [vmem:[#allocation417_spill] sm:$0xff] }
 0x56c   : > { %v11650_v8 = vsel %vm14196_vm11, %v3427_v35, %v15335_v41  ;;  %v11654_v52 = vsel %vm14196_vm11, %v3430_v39, %v15336_v2  ;;  %v15337_v49 = vld [vmem:[#allocation308_spill] sm:$0xff]  ;;  %v15338_v4 = vld [vmem:[#allocation315_spill] sm:$0xff]  ;;  %v15347_v55 = vld [vmem:[#allocation317_spill] sm:$0xff] }
 0x56d   : > { %v11658_v34 = vsel %vm14196_vm11, %v3429_v40, %v15337_v49  ;;  %v3472_v27 = vsel %vm3470_vm12, %v3435_v28, %v15338_v4  ;;  %v15339_v44 = vld [vmem:[#allocation311_spill] sm:$0xff]  ;;  %v15340_v59 = vld [vmem:[#allocation316_spill] sm:$0xff]  ;;  %v15343_v40 = vld [vmem:[#allocation377_spill] sm:$0xff] }
 0x56e   : > { %v11664_v60 = vsel %vm14196_vm11, %v3432_v36, %v15339_v44  ;;  %v3471_v35 = vsel %vm3470_vm12, %v3434_v1, %v15340_v59  ;;  %v15341_v22 = vld [vmem:[#allocation376_spill] sm:$0xff]  ;;  %v15345_v36 = vld [vmem:[#allocation319_spill] sm:$0xff] }
 0x56f   : > { %v3509_v3 = vsel %vm3507_vm13, %v3472_v27, %v15341_v22  ;;  %v15342_v39 = vld [vmem:[#allocation312_spill] sm:$0xff]  ;;  %v3508_v61 = vsel %vm3507_vm13, %v3471_v35, %v15343_v40  ;;  %v3474_v6 = vsel %vm3470_vm12, %v3437_v13, %v15345_v36  ;;  %v15350_v27 = vld [vmem:[#allocation378_spill] sm:$0xff]  ;;  %v15351_v59 = vld [vmem:[#allocation379_spill] sm:$0xff] }
 0x570   : > { %v11672_v17 = vsel %vm14196_vm11, %v3431_v54, %v15342_v39  ;;  %v15344_v28 = vld [vmem:[#allocation416_spill] sm:$0xff]  ;;  %v3545_v1 = vsel %vm3544_vm14, %v3508_v61, %v15346_v58  ;;  %vm4017_vm11 = vcmask 523264   ;;  %v3511_v13 = vsel %vm3507_vm13, %v3474_v6, %v15351_v59  ;;  %v15354_v40 = vld [vmem:[#allocation490_spill] sm:$0xff]  ;;  %v15357_v6 = vld [vmem:[#allocation419_spill] sm:$0xff] }
 0x571   : > { %v3546_v56 = vsel %vm3544_vm14, %v3509_v3, %v15344_v28  ;;  %v15348_v2 = vld [vmem:[#allocation320_spill] sm:$0xff]  ;;  %v15353_v3 = vld [vmem:[#allocation461_spill] sm:$0xff]  ;;  %v15360_v59 = vld [vmem:[#allocation434_spill] sm:$0xff] }
 0x572   : > { %v3583_v41 = vsel %vm3581_vm15, %v3546_v56, %v15347_v55  ;;  %v3473_v54 = vsel %vm3470_vm12, %v3436_v48, %v15348_v2  ;;  %v15349_v49 = vld [vmem:[#allocation432_spill] sm:$0xff]  ;;  %v15355_v48 = vld [vmem:[#allocation418_spill] sm:$0xff]  ;;  %v15356_v56 = vld [vmem:[#allocation491_spill] sm:$0xff] }
 0x573   : > { %v3582_v4 = vsel %vm3581_vm15, %v3545_v1, %v15349_v49  ;;  %v3620_v44 = vsel %vm3618_vm3, %v3583_v41, %v15350_v27  ;;  %v15352_v35 = vld [vmem:[#allocation380_spill] sm:$0xff]  ;;  %v3548_v28 = vsel %vm3544_vm14, %v3511_v13, %v15355_v48  ;;  %v3912_v1 = vpop.permute.xlu1 %3911  ;;  %v15358_v41 = vld [vmem:[#allocation433_spill] sm:$0xff]  ;;  %v15359_v27 = vld [vmem:[#allocation323_spill] sm:$0xff] }
 0x574   : > { %v3510_v22 = vsel %vm3507_vm13, %v3473_v54, %v15352_v35  ;;  %v3619_v39 = vsel %vm3618_vm3, %v3582_v4, %v15353_v3  ;;  %v3657_v61 = vsel %vm3655_vm10, %v3620_v44, %v15354_v40  ;;  %v3585_v2 = vsel %vm3581_vm15, %v3548_v28, %v15358_v41  ;;  %v3910_v4 = vpop.permute.xlu0 %3909  ;;  %v15361_v13 = vld [vmem:[#allocation381_spill] sm:$0xff]  ;;  %v15362_v3 = vld [vmem:[#allocation324_spill] sm:$0xff] }
 0x575   : > { %v3656_v36 = vsel %vm3655_vm10, %v3619_v39, %v15356_v56  ;;  %v3694_v58 = vsel %vm3692_vm9, %v3657_v61, %v10671_v57  ;;  %v3547_v55 = vsel %vm3544_vm14, %v3510_v22, %v15357_v6  ;;  %v3476_v44 = vsel %vm3470_vm12, %v11542_v9, %v15359_v27  ;;  %v15364_v61 = vld [vmem:[#allocation382_spill] sm:$0xff]  ;;  %v15365_v28 = vld [vmem:[#allocation492_spill] sm:$0xff]  ;;  %v15368_v6 = vld [vmem:[#allocation493_spill] sm:$0xff] }
 0x576   : > { %v3693_v54 = vsel %vm3692_vm9, %v3656_v36, %v10673_v29  ;;  %v4019_v49 = vsel %vm4017_vm11, %v3694_v58, %v3912_v1  ;;  %v3584_v57 = vsel %vm3581_vm15, %v3547_v55, %v15360_v59  ;;  %v3622_v35 = vsel %vm3618_vm3, %v3585_v2, %v15361_v13  ;;  %v15363_v29 = vld [vmem:[#allocation383_spill] sm:$0xff]  ;;  %v15366_v56 = vld [vmem:[#allocation384_spill] sm:$0xff]  ;;  %v15369_v2 = vld [vmem:[#allocation421_spill] sm:$0xff] }
 0x577   : > { %v4018_v22 = vsel %vm4017_vm11, %v3693_v54, %v3910_v4  ;;  %v3475_v39 = vsel %vm3470_vm12, %v11546_v51, %v15362_v3  ;;  %v3513_v40 = vsel %vm3507_vm13, %v3476_v44, %v15363_v29  ;;  %v3621_v48 = vsel %vm3618_vm3, %v3584_v57, %v15364_v61  ;;  %v15367_v58 = vld [vmem:[#allocation420_spill] sm:$0xff]  ;;  %v3916_v41 = vpop.permute.xlu1 %3915  ;;  %v15370_v4 = vld [vmem:[#allocation435_spill] sm:$0xff]  ;;  %v15374_v29 = vld [vmem:[#allocation329_spill] sm:$0xff] }
 0x578   : > { %v3659_v9 = vsel %vm3655_vm10, %v3622_v35, %v15365_v28  ;;  %6695 = vmatprep.mubr.msk.f32.mxu1 %vm4070_vm8, %v4018_v22  ;;  %v3512_v36 = vsel %vm3507_vm13, %v3475_v39, %v15366_v56  ;;  %v3550_v1 = vsel %vm3544_vm14, %v3513_v40, %v15367_v58  ;;  %v3658_v51 = vsel %vm3655_vm10, %v3621_v48, %v15368_v6  ;;  %v3914_v57 = vpop.permute.xlu0 %3913  ;;  %v15371_v13 = vld [vmem:[#allocation328_spill] sm:$0xff]  ;;  %v15373_v22 = vld [vmem:[#allocation385_spill] sm:$0xff]  ;;  %v15376_v48 = vld [vmem:[#allocation386_spill] sm:$0xff] }
 0x579   : > { %v3696_v55 = vsel %vm3692_vm9, %v3659_v9, %v10679_v26  ;;  %6696 = vmatmul.mubr.msk.f32.vlgmr.msra.gmra.mrb[18].mxu1 %vm4070_vm8, %v4019_v49  ;;  %v3549_v54 = vsel %vm3544_vm14, %v3512_v36, %v15369_v2  ;;  %v3587_v27 = vsel %vm3581_vm15, %v3550_v1, %v15370_v4  ;;  %v3695_v44 = vsel %vm3692_vm9, %v3658_v51, %v10681_v0  ;;  %v15372_v26 = vld [vmem:[#allocation436_spill] sm:$0xff]  ;;  %v15375_v0 = vld [vmem:[#allocation387_spill] sm:$0xff]  ;;  %v15377_v9 = vld [vmem:[#allocation494_spill] sm:$0xff] }
 0x57a   : > { %v4021_v59 = vsel %vm4017_vm11, %v3696_v55, %v3916_v41  ;;  %v3478_v35 = vsel %vm3470_vm12, %v11550_v30, %v15371_v13  ;;  %v3586_v49 = vsel %vm3581_vm15, %v3549_v54, %v15372_v26  ;;  %v3624_v3 = vsel %vm3618_vm3, %v3587_v27, %v15373_v22  ;;  %v15378_v56 = vld [vmem:[#allocation388_spill] sm:$0xff]  ;;  %v15379_v58 = vld [vmem:[#allocation422_spill] sm:$0xff]  ;;  %v15380_v6 = vld [vmem:[#allocation495_spill] sm:$0xff] }
 0x57b   : > { %v4020_v39 = vsel %vm4017_vm11, %v3695_v44, %v3914_v57  ;;  %v3477_v40 = vsel %vm3470_vm12, %v11554_v11, %v15374_v29  ;;  %v3515_v61 = vsel %vm3507_vm13, %v3478_v35, %v15375_v0  ;;  %v3623_v28 = vsel %vm3618_vm3, %v3586_v49, %v15376_v48  ;;  %v3920_v55 = vpop.permute.xlu1 %3919  ;;  %v15381_v41 = vld [vmem:[#allocation423_spill] sm:$0xff]  ;;  %v15382_v54 = vld [vmem:[#allocation437_spill] sm:$0xff] }
 0x57c   : > { %v3661_v30 = vsel %vm3655_vm10, %v3624_v3, %v15377_v9  ;;  %6698 = vmatprep.mubr.msk.f32.mxu1 %vm4070_vm8, %v4020_v39  ;;  %v3514_v36 = vsel %vm3507_vm13, %v3477_v40, %v15378_v56  ;;  %v3552_v1 = vsel %vm3544_vm14, %v3515_v61, %v15379_v58  ;;  %v3660_v11 = vsel %vm3655_vm10, %v3623_v28, %v15380_v6  ;;  %v3918_v57 = vpop.permute.xlu0 %3917  ;;  %v15383_v13 = vld [vmem:[#allocation333_spill] sm:$0xff]  ;;  %v15386_v3 = vld [vmem:[#allocation334_spill] sm:$0xff]  ;;  %v15388_v40 = vld [vmem:[#allocation327_spill] sm:$0xff] }
 0x57d   : > { %v3698_v51 = vsel %vm3692_vm9, %v3661_v30, %v10687_v62  ;;  %6699 = vmatmul.mubr.msk.f32.gmra.mrb[20].mxu1 %vm4070_vm8, %v4021_v59  ;;  %v3551_v2 = vsel %vm3544_vm14, %v3514_v36, %v15381_v41  ;;  %v3589_v4 = vsel %vm3581_vm15, %v3552_v1, %v15382_v54  ;;  %v3697_v27 = vsel %vm3692_vm9, %v3660_v11, %v10689_v37  ;;  %v15384_v62 = vld [vmem:[#allocation438_spill] sm:$0xff]  ;;  %v15385_v26 = vld [vmem:[#allocation389_spill] sm:$0xff]  ;;  %v15389_v61 = vld [vmem:[#allocation496_spill] sm:$0xff] }
 0x57e   : > { %v4023_v44 = vsel %vm4017_vm11, %v3698_v51, %v3920_v55  ;;  %v3480_v35 = vsel %vm3470_vm12, %v11558_v7, %v15383_v13  ;;  %v3588_v59 = vsel %vm3581_vm15, %v3551_v2, %v15384_v62  ;;  %v3626_v49 = vsel %vm3618_vm3, %v3589_v4, %v15385_v26  ;;  %v15387_v37 = vld [vmem:[#allocation390_spill] sm:$0xff]  ;;  %v15390_v48 = vld [vmem:[#allocation391_spill] sm:$0xff]  ;;  %v15391_v9 = vld [vmem:[#allocation424_spill] sm:$0xff] }
 0x57f   : > { %v4022_v22 = vsel %vm4017_vm11, %v3697_v27, %v3918_v57  ;;  %v3479_v39 = vsel %vm3470_vm12, %v11562_v47, %v15386_v3  ;;  %v3517_v29 = vsel %vm3507_vm13, %v3480_v35, %v15387_v37  ;;  %v3625_v0 = vsel %vm3618_vm3, %v3588_v59, %v15388_v40  ;;  %v3924_v36 = vpop.permute.xlu1 %3923  ;;  %v15392_v58 = vld [vmem:[#allocation425_spill] sm:$0xff]  ;;  %v15393_v6 = vld [vmem:[#allocation439_spill] sm:$0xff]  ;;  %v15394_v2 = vld [vmem:[#allocation338_spill] sm:$0xff] }
 0x580   : > { %v3663_v7 = vsel %vm3655_vm10, %v3626_v49, %v15389_v61  ;;  %6701 = vmatprep.mubr.msk.f32.mxu1 %vm4070_vm8, %v4022_v22  ;;  %v3516_v28 = vsel %vm3507_vm13, %v3479_v39, %v15390_v48  ;;  %v3554_v30 = vsel %vm3544_vm14, %v3517_v29, %v15391_v9  ;;  %v3662_v47 = vsel %vm3655_vm10, %v3625_v0, %v10553_v46  ;;  %v3922_v41 = vpop.permute.xlu0 %3921  ;;  %v15396_v4 = vld [vmem:[#allocation462_spill] sm:$0xff]  ;;  %v15397_v57 = vld [vmem:[#allocation339_spill] sm:$0xff]  ;;  %v15400_v26 = vld [vmem:[#allocation497_spill] sm:$0xff] }
 0x581   : > { %v3700_v56 = vsel %vm3692_vm9, %v3663_v7, %v10695_v45  ;;  %6702 = vmatmul.mubr.msk.f32.gmra.mrb[22].mxu1 %vm4070_vm8, %v4023_v44  ;;  %v3553_v1 = vsel %vm3544_vm14, %v3516_v28, %v15392_v58  ;;  %v3591_v11 = vsel %vm3581_vm15, %v3554_v30, %v15393_v6  ;;  %v3699_v51 = vsel %vm3692_vm9, %v3662_v47, %v10697_v38  ;;  %v15395_v45 = vld [vmem:[#allocation440_spill] sm:$0xff]  ;;  %v15399_v62 = vld [vmem:[#allocation463_spill] sm:$0xff]  ;;  %v15402_v3 = vld [vmem:[#allocation426_spill] sm:$0xff] }
 0x582   : > { %v4025_v55 = vsel %vm4017_vm11, %v3700_v56, %v3924_v36  ;;  %v3482_v46 = vsel %vm3470_vm12, %v11566_v33, %v15394_v2  ;;  %v3590_v54 = vsel %vm3581_vm15, %v3553_v1, %v15395_v45  ;;  %v3628_v27 = vsel %vm3618_vm3, %v3591_v11, %v15396_v4  ;;  %v15398_v38 = vld [vmem:[#allocation332_spill] sm:$0xff]  ;;  %v15403_v37 = vld [vmem:[#allocation498_spill] sm:$0xff]  ;;  %v15404_v29 = vld [vmem:[#allocation525_spill] sm:$0xff] }
 0x583   : > { %v4024_v44 = vsel %vm4017_vm11, %v3699_v51, %v3922_v41  ;;  %v3481_v13 = vsel %vm3470_vm12, %v11570_v20, %v15397_v57  ;;  %v3519_v35 = vsel %vm3507_vm13, %v3482_v46, %v15398_v38  ;;  %v3627_v59 = vsel %vm3618_vm3, %v3590_v54, %v15399_v62  ;;  %v15401_v49 = vld [vmem:[#allocation392_spill] sm:$0xff]  ;;  %v3928_v0 = vpop.permute.xlu1 %3927  ;;  %v15405_v61 = vld [vmem:[#allocation427_spill] sm:$0xff]  ;;  %v15406_v48 = vld [vmem:[#allocation441_spill] sm:$0xff] }
 0x584   : > { %v3665_v33 = vsel %vm3655_vm10, %v3628_v27, %v15400_v26  ;;  %6704 = vmatprep.mubr.msk.f32.mxu1 %vm4070_vm8, %v4024_v44  ;;  %v3518_v22 = vsel %vm3507_vm13, %v3481_v13, %v15401_v49  ;;  %v3556_v39 = vsel %vm3544_vm14, %v3519_v35, %v15402_v3  ;;  %v3664_v20 = vsel %vm3655_vm10, %v3627_v59, %v15403_v37  ;;  %v15407_v9 = vld [vmem:[#allocation526_spill] sm:$0xff]  ;;  %v3926_v56 = vpop.permute.xlu0 %3925  ;;  %v15410_v11 = vld [vmem:[#allocation464_spill] sm:$0xff]  ;;  %v15411_v41 = vld [vmem:[#allocation343_spill] sm:$0xff] }
 0x585   : > { %v3702_v40 = vsel %vm3692_vm9, %v3665_v33, %v15404_v29  ;;  %6705 = vmatmul.mubr.msk.f32.gmra.mrb[24].mxu1 %vm4070_vm8, %v4025_v55  ;;  %v3555_v7 = vsel %vm3544_vm14, %v3518_v22, %v15405_v61  ;;  %v3593_v28 = vsel %vm3581_vm15, %v3556_v39, %v15406_v48  ;;  %v3701_v30 = vsel %vm3692_vm9, %v3664_v20, %v15407_v9  ;;  %v15408_v36 = vld [vmem:[#allocation342_spill] sm:$0xff]  ;;  %v15412_v46 = vld [vmem:[#allocation337_spill] sm:$0xff]  ;;  %v15414_v27 = vld [vmem:[#allocation499_spill] sm:$0xff] }
 0x586   : > { %v4027_v47 = vsel %vm4017_vm11, %v3702_v40, %v3928_v0  ;;  %v3484_v58 = vsel %vm3470_vm12, %v11574_v50, %v15408_v36  ;;  %v15409_v1 = vld [vmem:[#allocation442_spill] sm:$0xff]  ;;  %v3630_v51 = vsel %vm3618_vm3, %v3593_v28, %v15410_v11  ;;  %v4026_v55 = vsel %vm4017_vm11, %v3701_v30, %v3926_v56  ;;  %v15413_v54 = vld [vmem:[#allocation465_spill] sm:$0xff]  ;;  %v15416_v13 = vld [vmem:[#allocation428_spill] sm:$0xff] }
 0x587   : > { %v3592_v6 = vsel %vm3581_vm15, %v3555_v7, %v15409_v1  ;;  %v3483_v2 = vsel %vm3470_vm12, %v11578_v16, %v15411_v41  ;;  %v3521_v45 = vsel %vm3507_vm13, %v3484_v58, %v15412_v46  ;;  %v3667_v50 = vsel %vm3655_vm10, %v3630_v51, %v15414_v27  ;;  %6707 = vmatprep.mubr.msk.f32.mxu1 %vm4070_vm8, %v4026_v55  ;;  %v15415_v44 = vld [vmem:[#allocation393_spill] sm:$0xff]  ;;  %v15417_v35 = vld [vmem:[#allocation500_spill] sm:$0xff]  ;;  %v15418_v62 = vld [vmem:[#allocation527_spill] sm:$0xff]  ;;  %v3932_v26 = vpop.permute.xlu1 %3931 }
 0x588   : > { %v3629_v4 = vsel %vm3618_vm3, %v3592_v6, %v15413_v54  ;;  %v3520_v57 = vsel %vm3507_vm13, %v3483_v2, %v15415_v44  ;;  %v3558_v38 = vsel %vm3544_vm14, %v3521_v45, %v15416_v13  ;;  %v3704_v59 = vsel %vm3692_vm9, %v3667_v50, %v15418_v62  ;;  %v15419_v33 = vld [vmem:[#allocation429_spill] sm:$0xff]  ;;  %v15420_v22 = vld [vmem:[#allocation444_spill] sm:$0xff]  ;;  %v3930_v29 = vpop.permute.xlu0 %3929  ;;  %v15422_v40 = vld [vmem:[#allocation346_spill] sm:$0xff] }
 0x589   : > { %v3666_v16 = vsel %vm3655_vm10, %v3629_v4, %v15417_v35  ;;  %6708 = vmatmul.mubr.msk.f32.gmra.mrb[26].mxu1 %vm4070_vm8, %v4027_v47  ;;  %v3557_v49 = vsel %vm3544_vm14, %v3520_v57, %v15419_v33  ;;  %v3595_v3 = vsel %vm3581_vm15, %v3558_v38, %v15420_v22  ;;  %v15421_v39 = vld [vmem:[#allocation528_spill] sm:$0xff]  ;;  %v4029_v20 = vsel %vm4017_vm11, %v3704_v59, %v3932_v26  ;;  %v15423_v61 = vld [vmem:[#allocation446_spill] sm:$0xff]  ;;  %v15425_v30 = vld [vmem:[#allocation347_spill] sm:$0xff] }
 0x58a   : > { %v3703_v37 = vsel %vm3692_vm9, %v3666_v16, %v15421_v39  ;;  %v3486_v0 = vsel %vm3470_vm12, %v11582_v23, %v15422_v40  ;;  %v3594_v7 = vsel %vm3581_vm15, %v3557_v49, %v15423_v61  ;;  %v15424_v48 = vld [vmem:[#allocation466_spill] sm:$0xff]  ;;  %v3485_v47 = vsel %vm3470_vm12, %v11586_v25, %v15425_v30  ;;  %v15427_v58 = vld [vmem:[#allocation467_spill] sm:$0xff]  ;;  %v15428_v6 = vld [vmem:[#allocation501_spill] sm:$0xff] }
 0x58b   : > { %v3632_v28 = vsel %vm3618_vm3, %v3595_v3, %v15424_v48  ;;  %v4028_v9 = vsel %vm4017_vm11, %v3703_v37, %v3930_v29  ;;  %v15426_v56 = vld [vmem:[#allocation394_spill] sm:$0xff]  ;;  %v3631_v1 = vsel %vm3618_vm3, %v3594_v7, %v15427_v58  ;;  %v15429_v11 = vld [vmem:[#allocation395_spill] sm:$0xff]  ;;  %v15432_v46 = vld [vmem:[#allocation529_spill] sm:$0xff]  ;;  %v3936_v54 = vpop.permute.xlu1 %3935 }
 0x58c   : > { %v3523_v36 = vsel %vm3507_vm13, %v3486_v0, %v15426_v56  ;;  %v3669_v23 = vsel %vm3655_vm10, %v3632_v28, %v15428_v6  ;;  %6710 = vmatprep.mubr.msk.f32.mxu1 %vm4070_vm8, %v4028_v9  ;;  %v3522_v51 = vsel %vm3507_vm13, %v3485_v47, %v15429_v11  ;;  %v15430_v55 = vld [vmem:[#allocation430_spill] sm:$0xff]  ;;  %v15433_v4 = vld [vmem:[#allocation431_spill] sm:$0xff]  ;;  %v3934_v35 = vpop.permute.xlu0 %3933  ;;  %v15436_v16 = vld [vmem:[#allocation348_spill] sm:$0xff] }
 0x58d   : > { %v3560_v41 = vsel %vm3544_vm14, %v3523_v36, %v15430_v55  ;;  %v15431_v2 = vld [vmem:[#allocation502_spill] sm:$0xff]  ;;  %v3706_v45 = vsel %vm3692_vm9, %v3669_v23, %v15432_v46  ;;  %6711 = vmatmul.mubr.msk.f32.gmra.mrb[28].mxu1 %vm4070_vm8, %v4029_v20  ;;  %v3559_v27 = vsel %vm3544_vm14, %v3522_v51, %v15433_v4  ;;  %v15434_v50 = vld [vmem:[#allocation447_spill] sm:$0xff]  ;;  %v3488_v62 = vsel %vm3470_vm12, %v11590_v63, %v15436_v16  ;;  %v15437_v59 = vld [vmem:[#allocation448_spill] sm:$0xff] }
 0x58e   : > { %v3668_v25 = vsel %vm3655_vm10, %v3631_v1, %v15431_v2  ;;  %v3597_v44 = vsel %vm3581_vm15, %v3560_v41, %v15434_v50  ;;  %v15435_v57 = vld [vmem:[#allocation530_spill] sm:$0xff]  ;;  %v4031_v38 = vsel %vm4017_vm11, %v3706_v45, %v3936_v54  ;;  %v3596_v26 = vsel %vm3581_vm15, %v3559_v27, %v15437_v59  ;;  %v15438_v33 = vld [vmem:[#allocation468_spill] sm:$0xff]  ;;  %v15439_v3 = vld [vmem:[#allocation349_spill] sm:$0xff] }
 0x58f   : > { %v3705_v13 = vsel %vm3692_vm9, %v3668_v25, %v15435_v57  ;;  %v3634_v49 = vsel %vm3618_vm3, %v3597_v44, %v15438_v33  ;;  %v3487_v39 = vsel %vm3470_vm12, %v11594_v43, %v15439_v3  ;;  %v15440_v37 = vld [vmem:[#allocation396_spill] sm:$0xff]  ;;  %v15441_v29 = vld [vmem:[#allocation469_spill] sm:$0xff]  ;;  %v15442_v0 = vld [vmem:[#allocation503_spill] sm:$0xff]  ;;  %v3940_v56 = vpop.permute.xlu1 %3939 }
 0x590   : > { %v4030_v22 = vsel %vm4017_vm11, %v3705_v13, %v3934_v35  ;;  %v3525_v20 = vsel %vm3507_vm13, %v3488_v62, %v15440_v37  ;;  %v3633_v40 = vsel %vm3618_vm3, %v3596_v26, %v15441_v29  ;;  %v3671_v63 = vsel %vm3655_vm10, %v3634_v49, %v15442_v0  ;;  %v15443_v61 = vld [vmem:[#allocation397_spill] sm:$0xff]  ;;  %v15444_v48 = vld [vmem:[#allocation275_spill] sm:$0xff]  ;;  %v15445_v9 = vld [vmem:[#allocation504_spill] sm:$0xff]  ;;  %v3938_v55 = vpop.permute.xlu0 %3937 }
 0x591   : > { %6713 = vmatprep.mubr.msk.f32.mxu1 %vm4070_vm8, %v4030_v22  ;;  %v3524_v7 = vsel %vm3507_vm13, %v3487_v39, %v15443_v61  ;;  %v3562_v28 = vsel %vm3544_vm14, %v3525_v20, %v15444_v48  ;;  %v3670_v43 = vsel %vm3655_vm10, %v3633_v40, %v15445_v9  ;;  %v15446_v30 = vld [vmem:[#allocation531_spill] sm:$0xff]  ;;  %v15447_v36 = vld [vmem:[#allocation277_spill] sm:$0xff]  ;;  %v15449_v23 = vld [vmem:[#allocation532_spill] sm:$0xff] }
 0x592   : > { %v3708_v47 = vsel %vm3692_vm9, %v3671_v63, %v15446_v30  ;;  %6714 = vmatmul.mubr.msk.f32.gmra.mrb[30].mxu1 %vm4070_vm8, %v4031_v38  ;;  %v3561_v58 = vsel %vm3544_vm14, %v3524_v7, %v15447_v36  ;;  %v15448_v1 = vld [vmem:[#allocation449_spill] sm:$0xff]  ;;  %v3707_v11 = vsel %vm3692_vm9, %v3670_v43, %v15449_v23  ;;  %v15450_v41 = vld [vmem:[#allocation350_spill] sm:$0xff]  ;;  %v15453_v27 = vld [vmem:[#allocation351_spill] sm:$0xff] }
 0x593   : > { %v3599_v6 = vsel %vm3581_vm15, %v3562_v28, %v15448_v1  ;;  %v4033_v51 = vsel %vm4017_vm11, %v3708_v47, %v3940_v56  ;;  %v3490_v2 = vsel %vm3470_vm12, %v11598_v42, %v15450_v41  ;;  %v15451_v25 = vld [vmem:[#allocation450_spill] sm:$0xff]  ;;  %v4032_v4 = vsel %vm4017_vm11, %v3707_v11, %v3938_v55  ;;  %v15455_v13 = vld [vmem:[#allocation471_spill] sm:$0xff]  ;;  %v15456_v35 = vld [vmem:[#allocation505_spill] sm:$0xff]  ;;  %v3944_v3 = vpop.permute.xlu1 %3943 }
 0x594   : > { %v3598_v46 = vsel %vm3581_vm15, %v3561_v58, %v15451_v25  ;;  %v15452_v45 = vld [vmem:[#allocation470_spill] sm:$0xff]  ;;  %v3489_v50 = vsel %vm3470_vm12, %v11602_v18, %v15453_v27  ;;  %6716 = vmatprep.mubr.msk.f32.mxu1 %vm4070_vm8, %v4032_v4  ;;  %v15457_v16 = vld [vmem:[#allocation399_spill] sm:$0xff]  ;;  %v15458_v59 = vld [vmem:[#allocation281_spill] sm:$0xff]  ;;  %v3942_v61 = vpop.permute.xlu0 %3941 }
 0x595   : > { %v3636_v54 = vsel %vm3618_vm3, %v3599_v6, %v15452_v45  ;;  %v15454_v44 = vld [vmem:[#allocation398_spill] sm:$0xff]  ;;  %v3635_v38 = vsel %vm3618_vm3, %v3598_v46, %v15455_v13  ;;  %v3526_v62 = vsel %vm3507_vm13, %v3489_v50, %v15457_v16  ;;  %v15460_v49 = vld [vmem:[#allocation533_spill] sm:$0xff]  ;;  %v15462_v20 = vld [vmem:[#allocation451_spill] sm:$0xff] }
 0x596   : > { %v3527_v57 = vsel %vm3507_vm13, %v3490_v2, %v15454_v44  ;;  %v3673_v42 = vsel %vm3655_vm10, %v3636_v54, %v15456_v35  ;;  %v15459_v33 = vld [vmem:[#allocation506_spill] sm:$0xff]  ;;  %6717 = vmatmul.mubr.msk.f32.gmra.mrb[32].mxu1 %vm4070_vm8, %v4033_v51  ;;  %v15464_v7 = vld [vmem:[#allocation352_spill] sm:$0xff]  ;;  %v15467_v56 = vld [vmem:[#allocation353_spill] sm:$0xff] }
 0x597   : > { %v3564_v26 = vsel %vm3544_vm14, %v3527_v57, %v15458_v59  ;;  %v3672_v18 = vsel %vm3655_vm10, %v3635_v38, %v15459_v33  ;;  %v3710_v22 = vsel %vm3692_vm9, %v3673_v42, %v15460_v49  ;;  %v15461_v39 = vld [vmem:[#allocation282_spill] sm:$0xff]  ;;  %v3492_v48 = vsel %vm3470_vm12, %v11606_v31, %v15464_v7  ;;  %v15465_v28 = vld [vmem:[#allocation452_spill] sm:$0xff]  ;;  %v15469_v6 = vld [vmem:[#allocation473_spill] sm:$0xff]  ;;  %v3948_v54 = vpop.permute.xlu1 %3947 }
 0x598   : > { %v3563_v37 = vsel %vm3544_vm14, %v3526_v62, %v15461_v39  ;;  %v3601_v29 = vsel %vm3581_vm15, %v3564_v26, %v15462_v20  ;;  %v15463_v40 = vld [vmem:[#allocation534_spill] sm:$0xff]  ;;  %v4035_v63 = vsel %vm4017_vm11, %v3710_v22, %v3944_v3  ;;  %v15466_v43 = vld [vmem:[#allocation472_spill] sm:$0xff]  ;;  %v3491_v36 = vsel %vm3470_vm12, %v11610_v32, %v15467_v56  ;;  %v15470_v11 = vld [vmem:[#allocation507_spill] sm:$0xff]  ;;  %v3946_v35 = vpop.permute.xlu0 %3945 }
 0x599   : > { %v3709_v0 = vsel %vm3692_vm9, %v3672_v18, %v15463_v40  ;;  %v3600_v9 = vsel %vm3581_vm15, %v3563_v37, %v15465_v28  ;;  %v3638_v30 = vsel %vm3618_vm3, %v3601_v29, %v15466_v43  ;;  %v15468_v58 = vld [vmem:[#allocation400_spill] sm:$0xff]  ;;  %v15471_v51 = vld [vmem:[#allocation401_spill] sm:$0xff]  ;;  %v15474_v46 = vld [vmem:[#allocation535_spill] sm:$0xff] }
 0x59a   : > { %v4034_v47 = vsel %vm4017_vm11, %v3709_v0, %v3942_v61  ;;  %v3529_v1 = vsel %vm3507_vm13, %v3492_v48, %v15468_v58  ;;  %v3637_v23 = vsel %vm3618_vm3, %v3600_v9, %v15469_v6  ;;  %v3675_v31 = vsel %vm3655_vm10, %v3638_v30, %v15470_v11  ;;  %v15472_v41 = vld [vmem:[#allocation285_spill] sm:$0xff]  ;;  %v15473_v25 = vld [vmem:[#allocation508_spill] sm:$0xff]  ;;  %v15475_v4 = vld [vmem:[#allocation286_spill] sm:$0xff] }
 0x59b   : > { %6719 = vmatprep.mubr.msk.f32.mxu1 %vm4070_vm8, %v4034_v47  ;;  %v3528_v55 = vsel %vm3507_vm13, %v3491_v36, %v15471_v51  ;;  %v3566_v2 = vsel %vm3544_vm14, %v3529_v1, %v15472_v41  ;;  %v3674_v32 = vsel %vm3655_vm10, %v3637_v23, %v15473_v25  ;;  %v3712_v45 = vsel %vm3692_vm9, %v3675_v31, %v15474_v46  ;;  %v15476_v50 = vld [vmem:[#allocation354_spill] sm:$0xff]  ;;  %v15477_v57 = vld [vmem:[#allocation536_spill] sm:$0xff]  ;;  %v15478_v42 = vld [vmem:[#allocation355_spill] sm:$0xff]  ;;  %v3952_v9 = vpop.permute.xlu1 %3951 }
 0x59c   : > { %6720 = vmatmul.mubr.msk.f32.gmra.mrb[34].mxu1 %vm4070_vm8, %v4035_v63  ;;  %v3565_v27 = vsel %vm3544_vm14, %v3528_v55, %v15475_v4  ;;  %v3603_v44 = vsel %vm3581_vm15, %v3566_v2, %v15476_v50  ;;  %v3711_v13 = vsel %vm3692_vm9, %v3674_v32, %v15477_v57  ;;  %v4037_v38 = vsel %vm4017_vm11, %v3712_v45, %v3948_v54  ;;  %v15479_v62 = vld [vmem:[#allocation453_spill] sm:$0xff]  ;;  %v15480_v26 = vld [vmem:[#allocation474_spill] sm:$0xff]  ;;  %v15481_v49 = vld [vmem:[#allocation356_spill] sm:$0xff]  ;;  %v3950_v6 = vpop.permute.xlu0 %3949 }
 0x59d   : > { %v3494_v16 = vsel %vm3470_vm12, %v11614_v14, %v15478_v42  ;;  %v3602_v59 = vsel %vm3581_vm15, %v3565_v27, %v15479_v62  ;;  %v3640_v33 = vsel %vm3618_vm3, %v3603_v44, %v15480_v26  ;;  %v4036_v18 = vsel %vm4017_vm11, %v3711_v13, %v3946_v35  ;;  %v15482_v3 = vld [vmem:[#allocation402_spill] sm:$0xff]  ;;  %v15483_v37 = vld [vmem:[#allocation475_spill] sm:$0xff]  ;;  %v15484_v29 = vld [vmem:[#allocation509_spill] sm:$0xff] }
 0x59e   : > { %v3493_v22 = vsel %vm3470_vm12, %v11618_v12, %v15481_v49  ;;  %v3531_v39 = vsel %vm3507_vm13, %v3494_v16, %v15482_v3  ;;  %v3639_v20 = vsel %vm3618_vm3, %v3602_v59, %v15483_v37  ;;  %v3677_v14 = vsel %vm3655_vm10, %v3640_v33, %v15484_v29  ;;  %6722 = vmatprep.mubr.msk.f32.mxu1 %vm4070_vm8, %v4036_v18  ;;  %v15485_v40 = vld [vmem:[#allocation403_spill] sm:$0xff]  ;;  %v15486_v63 = vld [vmem:[#allocation289_spill] sm:$0xff]  ;;  %v15487_v7 = vld [vmem:[#allocation510_spill] sm:$0xff] }
 0x59f   : > { %v3530_v0 = vsel %vm3507_vm13, %v3493_v22, %v15485_v40  ;;  %v3568_v61 = vsel %vm3544_vm14, %v3531_v39, %v15486_v63  ;;  %v3676_v12 = vsel %vm3655_vm10, %v3639_v20, %v15487_v7  ;;  %v15488_v48 = vld [vmem:[#allocation537_spill] sm:$0xff]  ;;  %v15489_v43 = vld [vmem:[#allocation290_spill] sm:$0xff]  ;;  %v15494_v55 = vld [vmem:[#allocation476_spill] sm:$0xff]  ;;  %v3956_v16 = vpop.permute.xlu1 %3955 }
 0x5a0   : > { %v3714_v28 = vsel %vm3692_vm9, %v3677_v14, %v15488_v48  ;;  %6723 = vmatmul.mubr.msk.f32.gmra.mrb[36].mxu1 %vm4070_vm8, %v4037_v38  ;;  %v3567_v30 = vsel %vm3544_vm14, %v3530_v0, %v15489_v43  ;;  %v15490_v47 = vld [vmem:[#allocation357_spill] sm:$0xff]  ;;  %v15491_v36 = vld [vmem:[#allocation538_spill] sm:$0xff]  ;;  %v15495_v25 = vld [vmem:[#allocation359_spill] sm:$0xff]  ;;  %v3954_v3 = vpop.permute.xlu0 %3953 }
 0x5a1   : > { %v3605_v56 = vsel %vm3581_vm15, %v3568_v61, %v15490_v47  ;;  %v3713_v58 = vsel %vm3692_vm9, %v3676_v12, %v15491_v36  ;;  %v4039_v1 = vsel %vm4017_vm11, %v3714_v28, %v3952_v9  ;;  %v15492_v23 = vld [vmem:[#allocation358_spill] sm:$0xff]  ;;  %v3495_v32 = vsel %vm3470_vm12, %v11626_v19, %v15495_v25  ;;  %v15496_v46 = vld [vmem:[#allocation404_spill] sm:$0xff]  ;;  %v15497_v54 = vld [vmem:[#allocation477_spill] sm:$0xff] }
 0x5a2   : > { %v3496_v11 = vsel %vm3470_vm12, %v11622_v15, %v15492_v23  ;;  %v15493_v31 = vld [vmem:[#allocation454_spill] sm:$0xff]  ;;  %v3642_v41 = vsel %vm3618_vm3, %v3605_v56, %v15494_v55  ;;  %v4038_v2 = vsel %vm4017_vm11, %v3713_v58, %v3950_v6  ;;  %v15498_v27 = vld [vmem:[#allocation511_spill] sm:$0xff]  ;;  %v15499_v50 = vld [vmem:[#allocation405_spill] sm:$0xff] }
 0x5a3   : > { %v3604_v51 = vsel %vm3581_vm15, %v3567_v30, %v15493_v31  ;;  %v3533_v45 = vsel %vm3507_vm13, %v3496_v11, %v15496_v46  ;;  %v3679_v15 = vsel %vm3655_vm10, %v3642_v41, %v15498_v27  ;;  %6725 = vmatprep.mubr.msk.f32.mxu1 %vm4070_vm8, %v4038_v2  ;;  %v3532_v44 = vsel %vm3507_vm13, %v3495_v32, %v15499_v50  ;;  %v15500_v57 = vld [vmem:[#allocation293_spill] sm:$0xff]  ;;  %v15501_v38 = vld [vmem:[#allocation512_spill] sm:$0xff]  ;;  %v15502_v35 = vld [vmem:[#allocation539_spill] sm:$0xff]  ;;  %v3960_v6 = vpop.permute.xlu1 %3959 }
 0x5a4   : > { %v3641_v4 = vsel %vm3618_vm3, %v3604_v51, %v15497_v54  ;;  %v3570_v13 = vsel %vm3544_vm14, %v3533_v45, %v15500_v57  ;;  %v3716_v42 = vsel %vm3692_vm9, %v3679_v15, %v15502_v35  ;;  %6726 = vmatmul.mubr.msk.f32.gmra.mrb[38].mxu1 %vm4070_vm8, %v4039_v1  ;;  %v15503_v62 = vld [vmem:[#allocation294_spill] sm:$0xff]  ;;  %v15504_v26 = vld [vmem:[#allocation360_spill] sm:$0xff]  ;;  %v15506_v39 = vld [vmem:[#allocation361_spill] sm:$0xff]  ;;  %v3958_v25 = vpop.permute.xlu0 %3957 }
 0x5a5   : > { %v3678_v19 = vsel %vm3655_vm10, %v3641_v4, %v15501_v38  ;;  %v3569_v59 = vsel %vm3544_vm14, %v3532_v44, %v15503_v62  ;;  %v3607_v33 = vsel %vm3581_vm15, %v3570_v13, %v15504_v26  ;;  %v15505_v18 = vld [vmem:[#allocation540_spill] sm:$0xff]  ;;  %v4041_v22 = vsel %vm4017_vm11, %v3716_v42, %v3956_v16  ;;  %v15507_v20 = vld [vmem:[#allocation455_spill] sm:$0xff]  ;;  %v15508_v14 = vld [vmem:[#allocation478_spill] sm:$0xff] }
 0x5a6   : > { %v3715_v49 = vsel %vm3692_vm9, %v3678_v19, %v15505_v18  ;;  %v3498_v37 = vsel %vm3470_vm12, %v11630_v24, %v15506_v39  ;;  %v3606_v29 = vsel %vm3581_vm15, %v3569_v59, %v15507_v20  ;;  %v3644_v40 = vsel %vm3618_vm3, %v3607_v33, %v15508_v14  ;;  %v15509_v63 = vld [vmem:[#allocation362_spill] sm:$0xff]  ;;  %v15511_v48 = vld [vmem:[#allocation479_spill] sm:$0xff]  ;;  %v15512_v9 = vld [vmem:[#allocation513_spill] sm:$0xff] }
 0x5a7   : > { %v4040_v0 = vsel %vm4017_vm11, %v3715_v49, %v3954_v3  ;;  %v3497_v61 = vsel %vm3470_vm12, %v11634_v5, %v15509_v63  ;;  %v15510_v7 = vld [vmem:[#allocation406_spill] sm:$0xff]  ;;  %v3643_v28 = vsel %vm3618_vm3, %v3606_v29, %v15511_v48  ;;  %v3681_v24 = vsel %vm3655_vm10, %v3644_v40, %v15512_v9  ;;  %v15513_v43 = vld [vmem:[#allocation407_spill] sm:$0xff]  ;;  %v15514_v47 = vld [vmem:[#allocation297_spill] sm:$0xff]  ;;  %v3964_v49 = vpop.permute.xlu1 %3963 }
 0x5a8   : > { %v3535_v12 = vsel %vm3507_vm13, %v3498_v37, %v15510_v7  ;;  %6728 = vmatprep.mubr.msk.f32.mxu1 %vm4070_vm8, %v4040_v0  ;;  %v3534_v30 = vsel %vm3507_vm13, %v3497_v61, %v15513_v43  ;;  %v15515_v36 = vld [vmem:[#allocation514_spill] sm:$0xff]  ;;  %v15516_v58 = vld [vmem:[#allocation541_spill] sm:$0xff]  ;;  %v15518_v31 = vld [vmem:[#allocation363_spill] sm:$0xff]  ;;  %v3962_v40 = vpop.permute.xlu0 %3961 }
 0x5a9   : > { %v3572_v56 = vsel %vm3544_vm14, %v3535_v12, %v15514_v47  ;;  %v3680_v5 = vsel %vm3655_vm10, %v3643_v28, %v15515_v36  ;;  %v3718_v1 = vsel %vm3692_vm9, %v3681_v24, %v15516_v58  ;;  %6729 = vmatmul.mubr.msk.f32.gmra.mrb[40].mxu1 %vm4070_vm8, %v4041_v22  ;;  %v15517_v23 = vld [vmem:[#allocation298_spill] sm:$0xff]  ;;  %v15520_v32 = vld [vmem:[#allocation364_spill] sm:$0xff]  ;;  %v15523_v50 = vld [vmem:[#allocation365_spill] sm:$0xff] }
 0x5aa   : > { %v3571_v11 = vsel %vm3544_vm14, %v3534_v30, %v15517_v23  ;;  %v3609_v51 = vsel %vm3581_vm15, %v3572_v56, %v15518_v31  ;;  %v15519_v55 = vld [vmem:[#allocation542_spill] sm:$0xff]  ;;  %v4043_v2 = vsel %vm4017_vm11, %v3718_v1, %v3960_v6  ;;  %v3500_v46 = vsel %vm3470_vm12, %v11638_v53, %v15520_v32  ;;  %v15521_v45 = vld [vmem:[#allocation456_spill] sm:$0xff]  ;;  %v15525_v38 = vld [vmem:[#allocation481_spill] sm:$0xff] }
 0x5ab   : > { %v3717_v41 = vsel %vm3692_vm9, %v3680_v5, %v15519_v55  ;;  %v3608_v54 = vsel %vm3581_vm15, %v3571_v11, %v15521_v45  ;;  %v15522_v4 = vld [vmem:[#allocation480_spill] sm:$0xff]  ;;  %v3499_v44 = vsel %vm3470_vm12, %v11642_v10, %v15523_v50  ;;  %v15526_v35 = vld [vmem:[#allocation515_spill] sm:$0xff]  ;;  %v15527_v42 = vld [vmem:[#allocation409_spill] sm:$0xff] }
 0x5ac   : > { %v3646_v27 = vsel %vm3618_vm3, %v3609_v51, %v15522_v4  ;;  %v4042_v15 = vsel %vm4017_vm11, %v3717_v41, %v3958_v25  ;;  %v15524_v57 = vld [vmem:[#allocation408_spill] sm:$0xff]  ;;  %v3645_v19 = vsel %vm3618_vm3, %v3608_v54, %v15525_v38  ;;  %v3536_v16 = vsel %vm3507_vm13, %v3499_v44, %v15527_v42  ;;  %v15528_v62 = vld [vmem:[#allocation301_spill] sm:$0xff]  ;;  %v15530_v33 = vld [vmem:[#allocation543_spill] sm:$0xff]  ;;  %v3968_v51 = vpop.permute.xlu1 %3967  ;;  %v3966_v54 = vpop.permute.xlu0 %3965 }
 0x5ad   : > { %v3537_v13 = vsel %vm3507_vm13, %v3500_v46, %v15524_v57  ;;  %v3683_v53 = vsel %vm3655_vm10, %v3646_v27, %v15526_v35  ;;  %6731 = vmatprep.mubr.msk.f32.mxu1 %vm4070_vm8, %v4042_v15  ;;  %v15529_v26 = vld [vmem:[#allocation516_spill] sm:$0xff]  ;;  %v15531_v22 = vld [vmem:[#allocation302_spill] sm:$0xff]  ;;  %v15534_v0 = vld [vmem:[#allocation367_spill] sm:$0xff] }
 0x5ae   : > { %v3574_v59 = vsel %vm3544_vm14, %v3537_v13, %v15528_v62  ;;  %v3682_v10 = vsel %vm3655_vm10, %v3645_v19, %v15529_v26  ;;  %v3720_v18 = vsel %vm3692_vm9, %v3683_v53, %v15530_v33  ;;  %6732 = vmatmul.mubr.msk.f32.gmra.mrb[42].mxu1 %vm4070_vm8, %v4043_v2  ;;  %v3573_v3 = vsel %vm3544_vm14, %v3536_v16, %v15531_v22  ;;  %v15532_v39 = vld [vmem:[#allocation366_spill] sm:$0xff]  ;;  %v15533_v20 = vld [vmem:[#allocation544_spill] sm:$0xff]  ;;  %v15535_v61 = vld [vmem:[#allocation457_spill] sm:$0xff] }
 0x5af   : > { %v3611_v37 = vsel %vm3581_vm15, %v3574_v59, %v15532_v39  ;;  %v3719_v29 = vsel %vm3692_vm9, %v3682_v10, %v15533_v20  ;;  %v4045_v14 = vsel %vm4017_vm11, %v3720_v18, %v3964_v49  ;;  %v3502_v63 = vsel %vm3470_vm12, %v11646_v21, %v15534_v0  ;;  %v15536_v12 = vld [vmem:[#allocation482_spill] sm:$0xff]  ;;  %v15537_v9 = vld [vmem:[#allocation368_spill] sm:$0xff]  ;;  %v15539_v47 = vld [vmem:[#allocation483_spill] sm:$0xff] }
 0x5b0   : > { %v3610_v7 = vsel %vm3581_vm15, %v3573_v3, %v15535_v61  ;;  %v3648_v48 = vsel %vm3618_vm3, %v3611_v37, %v15536_v12  ;;  %v4044_v28 = vsel %vm4017_vm11, %v3719_v29, %v3962_v40  ;;  %v3501_v24 = vsel %vm3470_vm12, %v11650_v8, %v15537_v9  ;;  %v15538_v43 = vld [vmem:[#allocation410_spill] sm:$0xff]  ;;  %v15540_v36 = vld [vmem:[#allocation517_spill] sm:$0xff]  ;;  %v15541_v5 = vld [vmem:[#allocation411_spill] sm:$0xff]  ;;  %v3972_v3 = vpop.permute.xlu1 %3971 }
 0x5b1   : > { %v3539_v30 = vsel %vm3507_vm13, %v3502_v63, %v15538_v43  ;;  %v3647_v56 = vsel %vm3618_vm3, %v3610_v7, %v15539_v47  ;;  %v3685_v21 = vsel %vm3655_vm10, %v3648_v48, %v15540_v36  ;;  %6734 = vmatprep.mubr.msk.f32.mxu1 %vm4070_vm8, %v4044_v28  ;;  %v3538_v58 = vsel %vm3507_vm13, %v3501_v24, %v15541_v5  ;;  %v15542_v1 = vld [vmem:[#allocation305_spill] sm:$0xff]  ;;  %v15543_v23 = vld [vmem:[#allocation518_spill] sm:$0xff]  ;;  %v15550_v44 = vld [vmem:[#allocation484_spill] sm:$0xff]  ;;  %v3970_v63 = vpop.permute.xlu0 %3969 }
 0x5b2   : > { %v3576_v6 = vsel %vm3544_vm14, %v3539_v30, %v15542_v1  ;;  %v3684_v8 = vsel %vm3655_vm10, %v3647_v56, %v15543_v23  ;;  %v15544_v11 = vld [vmem:[#allocation545_spill] sm:$0xff]  ;;  %6735 = vmatmul.mubr.msk.f32.gmra.mrb[44].mxu1 %vm4070_vm8, %v4045_v14  ;;  %v15545_v55 = vld [vmem:[#allocation306_spill] sm:$0xff]  ;;  %v15551_v38 = vld [vmem:[#allocation371_spill] sm:$0xff] }
 0x5b3   : > { %v3722_v31 = vsel %vm3692_vm9, %v3685_v21, %v15544_v11  ;;  %v3575_v41 = vsel %vm3544_vm14, %v3538_v58, %v15545_v55  ;;  %v15546_v2 = vld [vmem:[#allocation369_spill] sm:$0xff]  ;;  %v15547_v32 = vld [vmem:[#allocation546_spill] sm:$0xff]  ;;  %v3503_v19 = vsel %vm3470_vm12, %v11658_v34, %v15551_v38  ;;  %v15552_v35 = vld [vmem:[#allocation412_spill] sm:$0xff] }
 0x5b4   : > { %v3613_v25 = vsel %vm3581_vm15, %v3576_v6, %v15546_v2  ;;  %v3721_v46 = vsel %vm3692_vm9, %v3684_v8, %v15547_v32  ;;  %v4047_v45 = vsel %vm4017_vm11, %v3722_v31, %v3968_v51  ;;  %v15548_v4 = vld [vmem:[#allocation370_spill] sm:$0xff]  ;;  %v15553_v42 = vld [vmem:[#allocation485_spill] sm:$0xff]  ;;  %v15554_v62 = vld [vmem:[#allocation519_spill] sm:$0xff]  ;;  %v3976_v51 = vpop.permute.xlu1 %3975 }
 0x5b5   : > { %v3504_v27 = vsel %vm3470_vm12, %v11654_v52, %v15548_v4  ;;  %v15549_v15 = vld [vmem:[#allocation458_spill] sm:$0xff]  ;;  %v3650_v57 = vsel %vm3618_vm3, %v3613_v25, %v15550_v44  ;;  %v4046_v13 = vsel %vm4017_vm11, %v3721_v46, %v3966_v54  ;;  %v15555_v59 = vld [vmem:[#allocation413_spill] sm:$0xff]  ;;  %v15557_v18 = vld [vmem:[#allocation520_spill] sm:$0xff]  ;;  %v3974_v54 = vpop.permute.xlu0 %3973 }
 0x5b6   : > { %v3612_v50 = vsel %vm3581_vm15, %v3575_v41, %v15549_v15  ;;  %v3541_v53 = vsel %vm3507_vm13, %v3504_v27, %v15552_v35  ;;  %v3687_v52 = vsel %vm3655_vm10, %v3650_v57, %v15554_v62  ;;  %6737 = vmatprep.mubr.msk.f32.mxu1 %vm4070_vm8, %v4046_v13  ;;  %v3540_v26 = vsel %vm3507_vm13, %v3503_v19, %v15555_v59  ;;  %v15556_v10 = vld [vmem:[#allocation309_spill] sm:$0xff]  ;;  %v15558_v49 = vld [vmem:[#allocation547_spill] sm:$0xff]  ;;  %v15559_v39 = vld [vmem:[#allocation310_spill] sm:$0xff] }
 0x5b7   : > { %v3649_v16 = vsel %vm3618_vm3, %v3612_v50, %v15553_v42  ;;  %v3578_v33 = vsel %vm3544_vm14, %v3541_v53, %v15556_v10  ;;  %v3724_v22 = vsel %vm3692_vm9, %v3687_v52, %v15558_v49  ;;  %6738 = vmatmul.mubr.msk.f32.gmra.mrb[46].mxu1 %vm4070_vm8, %v4047_v45  ;;  %v3577_v37 = vsel %vm3544_vm14, %v3540_v26, %v15559_v39  ;;  %v15560_v20 = vld [vmem:[#allocation372_spill] sm:$0xff]  ;;  %v15562_v61 = vld [vmem:[#allocation373_spill] sm:$0xff]  ;;  %v15563_v12 = vld [vmem:[#allocation459_spill] sm:$0xff] }
 0x5b8   : > { %v3686_v34 = vsel %vm3655_vm10, %v3649_v16, %v15557_v18  ;;  %v3615_v29 = vsel %vm3581_vm15, %v3578_v33, %v15560_v20  ;;  %v15561_v14 = vld [vmem:[#allocation548_spill] sm:$0xff]  ;;  %v4049_v0 = vsel %vm4017_vm11, %v3724_v22, %v3972_v3  ;;  %v3506_v7 = vsel %vm3470_vm12, %v11664_v60, %v15562_v61  ;;  %v15564_v28 = vld [vmem:[#allocation486_spill] sm:$0xff]  ;;  %v15567_v36 = vld [vmem:[#allocation487_spill] sm:$0xff]  ;;  %v3980_v62 = vpop.permute.xlu1 %3979 }
 0x5b9   : > { %v3723_v40 = vsel %vm3692_vm9, %v3686_v34, %v15561_v14  ;;  %v3614_v48 = vsel %vm3581_vm15, %v3577_v37, %v15563_v12  ;;  %v3652_v9 = vsel %vm3618_vm3, %v3615_v29, %v15564_v28  ;;  %v15565_v43 = vld [vmem:[#allocation374_spill] sm:$0xff]  ;;  %v15568_v5 = vld [vmem:[#allocation521_spill] sm:$0xff]  ;;  %v15569_v58 = vld [vmem:[#allocation415_spill] sm:$0xff]  ;;  %v3978_v10 = vpop.permute.xlu0 %3977 }
 0x5ba   : > { %v4048_v24 = vsel %vm4017_vm11, %v3723_v40, %v3970_v63  ;;  %v3505_v30 = vsel %vm3470_vm12, %v11672_v17, %v15565_v43  ;;  %v15566_v47 = vld [vmem:[#allocation414_spill] sm:$0xff]  ;;  %v3651_v21 = vsel %vm3618_vm3, %v3614_v48, %v15567_v36  ;;  %v3689_v60 = vsel %vm3655_vm10, %v3652_v9, %v15568_v5  ;;  %v15570_v6 = vld [vmem:[#allocation313_spill] sm:$0xff]  ;;  %v15574_v2 = vld [vmem:[#allocation375_spill] sm:$0xff] }
 0x5bb   : > { %v3543_v56 = vsel %vm3507_vm13, %v3506_v7, %v15566_v47  ;;  %6740 = vmatprep.mubr.msk.f32.mxu1 %vm4070_vm8, %v4048_v24  ;;  %v3542_v1 = vsel %vm3507_vm13, %v3505_v30, %v15569_v58  ;;  %v15571_v8 = vld [vmem:[#allocation522_spill] sm:$0xff]  ;;  %v15572_v11 = vld [vmem:[#allocation549_spill] sm:$0xff]  ;;  %v15576_v4 = vld [vmem:[#allocation460_spill] sm:$0xff]  ;;  %v15583_v40 = vmov 0.0  }
 0x5bc   : > { %v3580_v23 = vsel %vm3544_vm14, %v3543_v56, %v15570_v6  ;;  %v3688_v17 = vsel %vm3655_vm10, %v3651_v21, %v15571_v8  ;;  %v3726_v31 = vsel %vm3692_vm9, %v3689_v60, %v15572_v11  ;;  %6741 = vmatmul.mubr.msk.f32.gmra.mrb[48].mxu1 %vm4070_vm8, %v4049_v0  ;;  %v15573_v55 = vld [vmem:[#allocation314_spill] sm:$0xff]  ;;  %v15577_v15 = vld [vmem:[#allocation488_spill] sm:$0xff]  ;;  %v15578_v57 = vld [vmem:[#allocation489_spill] sm:$0xff] }
 0x5bd   : > { %v3579_v41 = vsel %vm3544_vm14, %v3542_v1, %v15573_v55  ;;  %v3617_v25 = vsel %vm3581_vm15, %v3580_v23, %v15574_v2  ;;  %v15575_v32 = vld [vmem:[#allocation550_spill] sm:$0xff]  ;;  %v4051_v45 = vsel %vm4017_vm11, %v3726_v31, %v3976_v51  ;;  %v15579_v38 = vld [vmem:[#allocation523_spill] sm:$0xff]  ;;  %v15580_v35 = vld [vmem:[#allocation524_spill] sm:$0xff] }
 0x5be   : > { %v3725_v46 = vsel %vm3692_vm9, %v3688_v17, %v15575_v32  ;;  %v3616_v27 = vsel %vm3581_vm15, %v3579_v41, %v15576_v4  ;;  %v3654_v50 = vsel %vm3618_vm3, %v3617_v25, %v15577_v15  ;;  %v15581_v42 = vld [vmem:[#allocation551_spill] sm:$0xff]  ;;  %v15582_v52 = vld [vmem:[#allocation552_spill] sm:$0xff] }
 0x5bf   : > { %v4050_v44 = vsel %vm4017_vm11, %v3725_v46, %v3974_v54  ;;  %v3653_v13 = vsel %vm3618_vm3, %v3616_v27, %v15578_v57  ;;  %v3691_v19 = vsel %vm3655_vm10, %v3654_v50, %v15579_v38  ;;  %v12279_v18 = vld [vmem:[%s13982_s5] ss:$0 sm:$0xff] }
 0x5c0   : > { %6743 = vmatprep.mubr.msk.f32.mxu1 %vm4070_vm8, %v4050_v44  ;;  %v3690_v53 = vsel %vm3655_vm10, %v3653_v13, %v15580_v35  ;;  %v3728_v16 = vsel %vm3692_vm9, %v3691_v19, %v15581_v42  ;;  %vm15722_vm10 = vcmask 228352  }
 0x5c1   : > { %6744 = vmatmul.mubr.msk.f32.gmra.mrb[50].mxu1 %vm4070_vm8, %v4051_v45  ;;  %v3727_v59 = vsel %vm3692_vm9, %v3690_v53, %v15582_v52  ;;  %v4053_v26 = vsel %vm4017_vm11, %v3728_v16, %v3980_v62  ;;  %vm15721_vm9 = vcmask 195584   ;;  %vm15727_vm15 = vmmov %vm15722_vm10 }
 0x5c2   : > { %v4052_v33 = vsel %vm4017_vm11, %v3727_v59, %v3978_v10  ;;  %vm15723_vm11 = vcmask 261120   ;;  %vm15726_vm14 = vmmov %vm15721_vm9 }
 0x5c3   : > { %6746 = vmatprep.mubr.msk.f32.mxu1 %vm4070_vm8, %v4052_v33  ;;  %vm15728_vm3 = vmmov %vm15723_vm11 }
 0x5c5   : > { %6747 = vmatmul.mubr.msk.f32.gmra.mrb[52].mxu1 %vm4070_vm8, %v4053_v26  ;;  %vm15720_vm8 = vcmask 162816  }
 0x5c6   : > { %vm15724_vm13 = vmmov %vm15720_vm8 }
 0x64c   : > { %v6697_v34 = vpop.f32.mrb[18].mxu1 }
 0x64d   : > { %v4251_v49 = vadd.f32 %v6697_v34, %v12279_v18  ;;  %v4245_v22 = vpop.f32.mrb[19].mxu1 }
 0x64e   : > { %v4246_v3 = vadd.f32 %v12279_v18, %v4245_v22 }
 0x64f   : > { %v4425_v39 = vmax.f32 %v4251_v49, 0.0 }
 0x650   : > { %v4424_v37 = vmax.f32 %v4246_v3, 0.0  ;;  %v6700_v20 = vpop.f32.mrb[20].mxu1 }
 0x651   : > { %4497 = vst.msk [vmem:[#allocation3 + $0x9] sm:$0xff] %vm880_vm5, %v4425_v39  ;;  %v4261_v29 = vadd.f32 %v6700_v20, %v12279_v18  ;;  %v4255_v14 = vpop.f32.mrb[21].mxu1 }
 0x652   : > { %4538 = vst.msk [vmem:[#allocation3 + $0x10] sm:$0x3] %vm926_vm4, %v15583_v40  ;;  %v4256_v0 = vadd.f32 %v12279_v18, %v4255_v14 }
 0x653   : > { %4496 = vst.msk [vmem:[#allocation3 + $0x1] sm:$0xff] %vm880_vm5, %v4424_v37  ;;  %v4427_v63 = vmax.f32 %v4261_v29, 0.0 }
 0x654   : > { %4535 = vst.msk [vmem:[#allocation3] sm:$0xff] %vm880_vm5, %v15583_v40  ;;  %4536 = vst.msk [vmem:[#allocation3 + $0x8] sm:$0xff] %vm880_vm5, %v15583_v40  ;;  %v4426_v61 = vmax.f32 %v4256_v0, 0.0  ;;  %v6703_v7 = vpop.f32.mrb[22].mxu1 }
 0x655   : > { %4499 = vst.msk [vmem:[#allocation3 + $0x21] sm:$0xff] %vm880_vm5, %v4427_v63  ;;  %v4271_v12 = vadd.f32 %v6703_v7, %v12279_v18  ;;  %v4265_v48 = vpop.f32.mrb[23].mxu1 }
 0x656   : > { %4498 = vst.msk [vmem:[#allocation3 + $0x19] sm:$0xff] %vm880_vm5, %v4426_v61  ;;  %v4266_v28 = vadd.f32 %v12279_v18, %v4265_v48 }
 0x657   : > { %v4429_v9 = vmax.f32 %v4271_v12, 0.0 }
 0x658   : > { %v4428_v24 = vmax.f32 %v4266_v28, 0.0  ;;  %v6706_v43 = vpop.f32.mrb[24].mxu1 }
 0x659   : > { %4501 = vst.msk [vmem:[#allocation3 + $0x39] sm:$0xff] %vm880_vm5, %v4429_v9  ;;  %v4281_v30 = vadd.f32 %v6706_v43, %v12279_v18  ;;  %v4275_v47 = vpop.f32.mrb[25].mxu1  ;;  %v12299_v56 = vld [vmem:[#allocation3 + $0x10] sm:$0x3] }
 0x65a   : > { %4500 = vst.msk [vmem:[#allocation3 + $0x31] sm:$0xff] %vm880_vm5, %v4428_v24  ;;  %v4276_v36 = vadd.f32 %v12279_v18, %v4275_v47  ;;  %v4648_v5 = vrot.slane %v12299_v56, 1 }
 0x65b   : > { %v12303_v21 = vld [vmem:[#allocation3 + $0x8] sm:$0xff]  ;;  %v12306_v60 = vld [vmem:[#allocation3] sm:$0xff]  ;;  %v4431_v58 = vmax.f32 %v4281_v30, 0.0 }
 0x65c   : > { %v4646_v1 = vrot.slane %v12303_v21, 1  ;;  %v4645_v6 = vrot.slane %v12306_v60, 1  ;;  %v4430_v23 = vmax.f32 %v4276_v36, 0.0  ;;  %v6709_v8 = vpop.f32.mrb[26].mxu1  ;;  %v12310_v17 = vld [vmem:[#allocation3 + $0x28] sm:$0x3] }
 0x65d   : > { %4503 = vst.msk [vmem:[#allocation3 + $0x51] sm:$0xff] %vm880_vm5, %v4431_v58  ;;  %v4291_v11 = vadd.f32 %v6709_v8, %v12279_v18  ;;  %v4285_v31 = vpop.f32.mrb[27].mxu1  ;;  %v12316_v41 = vld [vmem:[#allocation3 + $0x20] sm:$0xff]  ;;  %v4653_v2 = vrot.slane %v12310_v17, 1  ;;  %v12319_v25 = vld [vmem:[#allocation3 + $0x18] sm:$0xff] }
 0x65e   : > { %v4649_v51 = vsel %vm1052_vm0, %v4646_v1, %v4648_v5  ;;  %v4647_v55 = vsel %vm1052_vm0, %v4645_v6, %v4646_v1  ;;  %4502 = vst.msk [vmem:[#allocation3 + $0x49] sm:$0xff] %vm880_vm5, %v4430_v23  ;;  %v4286_v32 = vadd.f32 %v12279_v18, %v4285_v31  ;;  %v4651_v46 = vrot.slane %v12316_v41, 1 }
 0x65f   : > { %4833 = vrot.lane.b32.xlu1 %v4649_v51, %s7123_s24  ;;  %4831 = vrot.lane.b32.xlu0 %v4647_v55, %s7123_s24  ;;  %v4650_v45 = vrot.slane %v12319_v25, 1  ;;  %v4433_v54 = vmax.f32 %v4291_v11, 0.0 }
 0x660   : > { %v4432_v4 = vmax.f32 %v4286_v32, 0.0  ;;  %v6712_v27 = vpop.f32.mrb[28].mxu1  ;;  %v12328_v15 = vsel %vm1052_vm0, %v4651_v46, %v4653_v2  ;;  %v12333_v44 = vld [vmem:[#allocation3 + $0x40] sm:$0x3] }
 0x661   : > { %v12331_v50 = vsel %vm1052_vm0, %v4650_v45, %v4651_v46  ;;  %4505 = vst.msk [vmem:[#allocation3 + $0x69] sm:$0xff] %vm880_vm5, %v4433_v54  ;;  %v4301_v57 = vadd.f32 %v6712_v27, %v12279_v18  ;;  %v4295_v13 = vpop.f32.mrb[29].mxu1  ;;  %v12337_v38 = vld [vmem:[#allocation3 + $0x38] sm:$0xff]  ;;  %v4658_v19 = vrot.slane %v12333_v44, 1  ;;  %v12340_v35 = vld [vmem:[#allocation3 + $0x30] sm:$0xff] }
 0x662   : > { %4504 = vst.msk [vmem:[#allocation3 + $0x61] sm:$0xff] %vm880_vm5, %v4432_v4  ;;  %v4296_v53 = vadd.f32 %v12279_v18, %v4295_v13  ;;  %v4656_v42 = vrot.slane %v12337_v38, 1  ;;  %v4655_v16 = vrot.slane %v12340_v35, 1 }
 0x663   : > { %4837 = vrot.lane.b32.xlu1 %v12328_v15, %s7123_s24  ;;  %4835 = vrot.lane.b32.xlu0 %v12331_v50, %s7123_s24  ;;  %v4435_v62 = vmax.f32 %v4301_v57, 0.0 }
 0x664   : > { %v4434_v52 = vmax.f32 %v4296_v53, 0.0  ;;  %v12351_v26 = vsel %vm1052_vm0, %v4656_v42, %v4658_v19  ;;  %v12354_v10 = vsel %vm1052_vm0, %v4655_v16, %v4656_v42  ;;  %v12356_v33 = vld [vmem:[#allocation3 + $0x58] sm:$0x3] }
 0x665   : > { %v6715_v59 = vpop.f32.mrb[30].mxu1  ;;  %4507 = vst.msk [vmem:[#allocation3 + $0x81] sm:$0xff] %vm880_vm5, %v4435_v62  ;;  %v12360_v22 = vld [vmem:[#allocation3 + $0x50] sm:$0xff]  ;;  %v4663_v3 = vrot.slane %v12356_v33, 1  ;;  %v12363_v39 = vld [vmem:[#allocation3 + $0x48] sm:$0xff] }
 0x666   : > { %v4311_v34 = vadd.f32 %v6715_v59, %v12279_v18  ;;  %v4305_v49 = vpop.f32.mrb[31].mxu1  ;;  %4506 = vst.msk [vmem:[#allocation3 + $0x79] sm:$0xff] %vm880_vm5, %v4434_v52  ;;  %v4661_v20 = vrot.slane %v12360_v22, 1  ;;  %v4660_v29 = vrot.slane %v12363_v39, 1 }
 0x667   : > { %v4306_v37 = vadd.f32 %v12279_v18, %v4305_v49  ;;  %4841 = vrot.lane.b32.xlu1 %v12351_v26, %s7123_s24  ;;  %4839 = vrot.lane.b32.xlu0 %v12354_v10, %s7123_s24 }
 0x668   : > { %v4437_v14 = vmax.f32 %v4311_v34, 0.0  ;;  %v12374_v61 = vsel %vm1052_vm0, %v4661_v20, %v4663_v3  ;;  %v12377_v7 = vsel %vm1052_vm0, %v4660_v29, %v4661_v20  ;;  %v12379_v12 = vld [vmem:[#allocation3 + $0x70] sm:$0x3] }
 0x669   : > { %v4436_v0 = vmax.f32 %v4306_v37, 0.0  ;;  %v6718_v63 = vpop.f32.mrb[32].mxu1  ;;  %15584 = vst [vmem:[#allocation49_spill] sm:$0xff] %v12374_v61  ;;  %15585 = vst [vmem:[#allocation51_spill] sm:$0xff] %v12377_v7  ;;  %v12383_v9 = vld [vmem:[#allocation3 + $0x68] sm:$0xff]  ;;  %v4668_v24 = vrot.slane %v12379_v12, 1 }
 0x66a   : > { %4509 = vst.msk [vmem:[#allocation3 + $0x99] sm:$0xff] %vm880_vm5, %v4437_v14  ;;  %v4321_v48 = vadd.f32 %v6718_v63, %v12279_v18  ;;  %v4315_v28 = vpop.f32.mrb[33].mxu1  ;;  %v12386_v43 = vld [vmem:[#allocation3 + $0x60] sm:$0xff]  ;;  %v4666_v47 = vrot.slane %v12383_v9, 1 }
 0x66b   : > { %4508 = vst.msk [vmem:[#allocation3 + $0x91] sm:$0xff] %vm880_vm5, %v4436_v0  ;;  %v4316_v30 = vadd.f32 %v12279_v18, %v4315_v28  ;;  %4845 = vrot.lane.b32.xlu1 %v12374_v61, %s7123_s24  ;;  %4843 = vrot.lane.b32.xlu0 %v12377_v7, %s7123_s24  ;;  %v4665_v36 = vrot.slane %v12386_v43, 1 }
 0x66c   : > { %v4439_v5 = vmax.f32 %v4321_v48, 0.0  ;;  %v12397_v6 = vsel %vm1052_vm0, %v4666_v47, %v4668_v24  ;;  %v12402_v8 = vld [vmem:[#allocation3 + $0x88] sm:$0x3] }
 0x66d   : > { %v4438_v58 = vmax.f32 %v4316_v30, 0.0  ;;  %15586 = vst [vmem:[#allocation53_spill] sm:$0xff] %v12397_v6  ;;  %v12400_v23 = vsel %vm1052_vm0, %v4665_v36, %v4666_v47  ;;  %v12406_v51 = vld [vmem:[#allocation3 + $0x80] sm:$0xff]  ;;  %v4673_v55 = vrot.slane %v12402_v8, 1  ;;  %v12409_v2 = vld [vmem:[#allocation3 + $0x78] sm:$0xff] }
 0x66e   : > { %15587 = vst [vmem:[#allocation55_spill] sm:$0xff] %v12400_v23  ;;  %4511 = vst.msk [vmem:[#allocation3 + $0xb1] sm:$0xff] %vm880_vm5, %v4439_v5  ;;  %v4671_v46 = vrot.slane %v12406_v51, 1  ;;  %v4670_v45 = vrot.slane %v12409_v2, 1 }
 0x66f   : > { %v6721_v1 = vpop.f32.mrb[34].mxu1  ;;  %4510 = vst.msk [vmem:[#allocation3 + $0xa9] sm:$0xff] %vm880_vm5, %v4438_v58  ;;  %4849 = vrot.lane.b32.xlu1 %v12397_v6, %s7123_s24  ;;  %4847 = vrot.lane.b32.xlu0 %v12400_v23, %s7123_s24 }
 0x670   : > { %v4331_v11 = vadd.f32 %v6721_v1, %v12279_v18  ;;  %v4325_v31 = vpop.f32.mrb[35].mxu1  ;;  %v12420_v57 = vsel %vm1052_vm0, %v4671_v46, %v4673_v55  ;;  %v12423_v13 = vsel %vm1052_vm0, %v4670_v45, %v4671_v46 }
 0x671   : > { %v4326_v32 = vadd.f32 %v12279_v18, %v4325_v31  ;;  %15588 = vst [vmem:[#allocation56_spill] sm:$0xff] %v12420_v57  ;;  %15589 = vst [vmem:[#allocation58_spill] sm:$0xff] %v12423_v13  ;;  %v12425_v19 = vld [vmem:[#allocation3 + $0xa0] sm:$0x3] }
 0x672   : > { %v4441_v54 = vmax.f32 %v4331_v11, 0.0  ;;  %v12429_v16 = vld [vmem:[#allocation3 + $0x98] sm:$0xff]  ;;  %v4678_v62 = vrot.slane %v12425_v19, 1  ;;  %v12432_v52 = vld [vmem:[#allocation3 + $0x90] sm:$0xff] }
 0x673   : > { %v4440_v4 = vmax.f32 %v4326_v32, 0.0  ;;  %v6724_v27 = vpop.f32.mrb[36].mxu1  ;;  %4853 = vrot.lane.b32.xlu1 %v12420_v57, %s7123_s24  ;;  %4851 = vrot.lane.b32.xlu0 %v12423_v13, %s7123_s24  ;;  %v4676_v34 = vrot.slane %v12429_v16, 1  ;;  %v4675_v49 = vrot.slane %v12432_v52, 1 }
 0x674   : > { %4513 = vst.msk [vmem:[#allocation3 + $0xc9] sm:$0xff] %vm880_vm5, %v4441_v54  ;;  %v4341_v53 = vadd.f32 %v6724_v27, %v12279_v18  ;;  %v4335_v42 = vpop.f32.mrb[37].mxu1 }
 0x675   : > { %4512 = vst.msk [vmem:[#allocation3 + $0xc1] sm:$0xff] %vm880_vm5, %v4440_v4  ;;  %v4336_v59 = vadd.f32 %v12279_v18, %v4335_v42  ;;  %v12443_v29 = vsel %vm1052_vm0, %v4676_v34, %v4678_v62  ;;  %v12446_v14 = vsel %vm1052_vm0, %v4675_v49, %v4676_v34  ;;  %v12448_v0 = vld [vmem:[#allocation3 + $0xb8] sm:$0x3] }
 0x676   : > { %v4443_v3 = vmax.f32 %v4341_v53, 0.0  ;;  %15590 = vst [vmem:[#allocation60_spill] sm:$0xff] %v12443_v29  ;;  %15591 = vst [vmem:[#allocation62_spill] sm:$0xff] %v12446_v14  ;;  %v12452_v28 = vld [vmem:[#allocation3 + $0xb0] sm:$0xff]  ;;  %v4683_v24 = vrot.slane %v12448_v0, 1  ;;  %v12455_v30 = vld [vmem:[#allocation3 + $0xa8] sm:$0xff] }
 0x677   : > { %v4442_v37 = vmax.f32 %v4336_v59, 0.0  ;;  %v6727_v20 = vpop.f32.mrb[38].mxu1  ;;  %4857 = vrot.lane.b32.xlu1 %v12443_v29, %s7123_s24  ;;  %4855 = vrot.lane.b32.xlu0 %v12446_v14, %s7123_s24  ;;  %v4681_v36 = vrot.slane %v12452_v28, 1  ;;  %v4680_v5 = vrot.slane %v12455_v30, 1 }
 0x678   : > { %4515 = vst.msk [vmem:[#allocation3 + $0xe1] sm:$0xff] %vm880_vm5, %v4443_v3  ;;  %v4351_v63 = vadd.f32 %v6727_v20, %v12279_v18  ;;  %v4345_v48 = vpop.f32.mrb[39].mxu1 }
 0x679   : > { %4514 = vst.msk [vmem:[#allocation3 + $0xd9] sm:$0xff] %vm880_vm5, %v4442_v37  ;;  %v4346_v47 = vadd.f32 %v12279_v18, %v4345_v48  ;;  %v12466_v31 = vsel %vm1052_vm0, %v4681_v36, %v4683_v24  ;;  %v12469_v55 = vsel %vm1052_vm0, %v4680_v5, %v4681_v36 }
 0x67a   : > { %v4445_v58 = vmax.f32 %v4351_v63, 0.0  ;;  %15592 = vst [vmem:[#allocation64_spill] sm:$0xff] %v12466_v31  ;;  %15593 = vst [vmem:[#allocation66_spill] sm:$0xff] %v12469_v55 }
 0x67b   : > { %v4444_v1 = vmax.f32 %v4346_v47, 0.0  ;;  %v12471_v32 = vld [vmem:[#allocation3 + $0xd0] sm:$0x3]  ;;  %4861 = vrot.lane.b32.xlu1 %v12466_v31, %s7123_s24  ;;  %4859 = vrot.lane.b32.xlu0 %v12469_v55, %s7123_s24 }
 0x67c   : > { %v6730_v11 = vpop.f32.mrb[40].mxu1  ;;  %4517 = vst.msk [vmem:[#allocation3 + $0xf9] sm:$0xff] %vm880_vm5, %v4445_v58  ;;  %v12475_v54 = vld [vmem:[#allocation3 + $0xc8] sm:$0xff]  ;;  %v4688_v4 = vrot.slane %v12471_v32, 1  ;;  %v12478_v27 = vld [vmem:[#allocation3 + $0xc0] sm:$0xff] }
 0x67d   : > { %v4361_v46 = vadd.f32 %v6730_v11, %v12279_v18  ;;  %v4355_v45 = vpop.f32.mrb[41].mxu1  ;;  %4516 = vst.msk [vmem:[#allocation3 + $0xf1] sm:$0xff] %vm880_vm5, %v4444_v1  ;;  %v4686_v42 = vrot.slane %v12475_v54, 1  ;;  %v4685_v62 = vrot.slane %v12478_v27, 1 }
 0x67e   : > { %v4356_v53 = vadd.f32 %v12279_v18, %v4355_v45 }
 0x67f   : > { %v4447_v59 = vmax.f32 %v4361_v46, 0.0  ;;  %v12489_v3 = vsel %vm1052_vm0, %v4686_v42, %v4688_v4  ;;  %v12492_v37 = vsel %vm1052_vm0, %v4685_v62, %v4686_v42  ;;  %v12494_v20 = vld [vmem:[#allocation3 + $0xe8] sm:$0x3] }
 0x680   : > { %v4446_v34 = vmax.f32 %v4356_v53, 0.0  ;;  %15594 = vst [vmem:[#allocation37_spill] sm:$0xff] %v12489_v3  ;;  %15595 = vst [vmem:[#allocation68_spill] sm:$0xff] %v12492_v37  ;;  %v12498_v24 = vld [vmem:[#allocation3 + $0xe0] sm:$0xff]  ;;  %v4693_v47 = vrot.slane %v12494_v20, 1  ;;  %v12501_v36 = vld [vmem:[#allocation3 + $0xd8] sm:$0xff]  ;;  %4865 = vrot.lane.b32.xlu1 %v12489_v3, %s7123_s24  ;;  %4863 = vrot.lane.b32.xlu0 %v12492_v37, %s7123_s24 }
 0x681   : > { %v6733_v49 = vpop.f32.mrb[42].mxu1  ;;  %4519 = vst.msk [vmem:[#allocation3 + $0x111] sm:$0xff] %vm880_vm5, %v4447_v59  ;;  %v4691_v58 = vrot.slane %v12498_v24, 1  ;;  %v4690_v1 = vrot.slane %v12501_v36, 1 }
 0x682   : > { %v4371_v63 = vadd.f32 %v6733_v49, %v12279_v18  ;;  %v4365_v48 = vpop.f32.mrb[43].mxu1  ;;  %4518 = vst.msk [vmem:[#allocation3 + $0x109] sm:$0xff] %vm880_vm5, %v4446_v34 }
 0x683   : > { %v4366_v5 = vadd.f32 %v12279_v18, %v4365_v48  ;;  %v12512_v4 = vsel %vm1052_vm0, %v4691_v58, %v4693_v47  ;;  %v12515_v53 = vsel %vm1052_vm0, %v4690_v1, %v4691_v58  ;;  %v12517_v42 = vld [vmem:[#allocation3 + $0x100] sm:$0x3] }
 0x684   : > { %v4449_v11 = vmax.f32 %v4371_v63, 0.0  ;;  %15596 = vst [vmem:[#allocation69_spill] sm:$0xff] %v12512_v4  ;;  %15597 = vst [vmem:[#allocation70_spill] sm:$0xff] %v12515_v53  ;;  %v12521_v34 = vld [vmem:[#allocation3 + $0xf8] sm:$0xff]  ;;  %v4698_v49 = vrot.slane %v12517_v42, 1  ;;  %v12524_v63 = vld [vmem:[#allocation3 + $0xf0] sm:$0xff]  ;;  %4869 = vrot.lane.b32.xlu1 %v12512_v4, %s7123_s24  ;;  %4867 = vrot.lane.b32.xlu0 %v12515_v53, %s7123_s24 }
 0x685   : > { %v4448_v46 = vmax.f32 %v4366_v5, 0.0  ;;  %v6736_v45 = vpop.f32.mrb[44].mxu1  ;;  %v4696_v47 = vrot.slane %v12521_v34, 1  ;;  %v4695_v5 = vrot.slane %v12524_v63, 1 }
 0x686   : > { %4521 = vst.msk [vmem:[#allocation3 + $0x129] sm:$0xff] %vm880_vm5, %v4449_v11  ;;  %v4381_v62 = vadd.f32 %v6736_v45, %v12279_v18  ;;  %v4375_v59 = vpop.f32.mrb[45].mxu1 }
 0x687   : > { %4520 = vst.msk [vmem:[#allocation3 + $0x121] sm:$0xff] %vm880_vm5, %v4448_v46  ;;  %v4376_v48 = vadd.f32 %v12279_v18, %v4375_v59  ;;  %v12535_v45 = vsel %vm1052_vm0, %v4696_v47, %v4698_v49  ;;  %v12538_v46 = vsel %vm1052_vm0, %v4695_v5, %v4696_v47 }
 0x688   : > { %v4451_v58 = vmax.f32 %v4381_v62, 0.0  ;;  %15598 = vst [vmem:[#allocation71_spill] sm:$0xff] %v12535_v45  ;;  %15599 = vst [vmem:[#allocation72_spill] sm:$0xff] %v12538_v46  ;;  %v12540_v59 = vld [vmem:[#allocation3 + $0x118] sm:$0x3]  ;;  %4873 = vrot.lane.b32.xlu1 %v12535_v45, %s7123_s24  ;;  %4871 = vrot.lane.b32.xlu0 %v12538_v46, %s7123_s24 }
 0x689   : > { %v4450_v1 = vmax.f32 %v4376_v48, 0.0  ;;  %v12544_v37 = vld [vmem:[#allocation3 + $0x110] sm:$0xff]  ;;  %v4703_v3 = vrot.slane %v12540_v59, 1  ;;  %v12547_v62 = vld [vmem:[#allocation3 + $0x108] sm:$0xff] }
 0x68a   : > { %v6739_v11 = vpop.f32.mrb[46].mxu1  ;;  %4523 = vst.msk [vmem:[#allocation3 + $0x141] sm:$0xff] %vm880_vm5, %v4451_v58  ;;  %15600 = vst [vmem:[#allocation73_spill] sm:$0xff] %v12544_v37  ;;  %v4701_v48 = vrot.slane %v12544_v37, 1  ;;  %v4700_v47 = vrot.slane %v12547_v62, 1 }
 0x68b   : > { %v4391_v4 = vadd.f32 %v6739_v11, %v12279_v18  ;;  %v4385_v53 = vpop.f32.mrb[47].mxu1  ;;  %15601 = vst [vmem:[#allocation74_spill] sm:$0xff] %v12547_v62  ;;  %4522 = vst.msk [vmem:[#allocation3 + $0x139] sm:$0xff] %vm880_vm5, %v4450_v1 }
 0x68c   : > { %v4386_v49 = vadd.f32 %v12279_v18, %v4385_v53  ;;  %v12558_v55 = vsel %vm1052_vm0, %v4701_v48, %v4703_v3  ;;  %v12561_v1 = vsel %vm1052_vm0, %v4700_v47, %v4701_v48 }
 0x68d   : > { %v4453_v5 = vmax.f32 %v4391_v4, 0.0  ;;  %15602 = vst [vmem:[#allocation75_spill] sm:$0xff] %v12558_v55  ;;  %15603 = vst [vmem:[#allocation76_spill] sm:$0xff] %v12561_v1  ;;  %v12563_v53 = vld [vmem:[#allocation3 + $0x130] sm:$0x3]  ;;  %4877 = vrot.lane.b32.xlu1 %v12558_v55, %s7123_s24  ;;  %4875 = vrot.lane.b32.xlu0 %v12561_v1, %s7123_s24 }
 0x68e   : > { %v4452_v58 = vmax.f32 %v4386_v49, 0.0  ;;  %v12567_v31 = vld [vmem:[#allocation3 + $0x128] sm:$0xff]  ;;  %v4708_v14 = vrot.slane %v12563_v53, 1  ;;  %v12570_v4 = vld [vmem:[#allocation3 + $0x120] sm:$0xff] }
 0x68f   : > { %v6742_v11 = vpop.f32.mrb[48].mxu1  ;;  %4525 = vst.msk [vmem:[#allocation3 + $0x159] sm:$0xff] %vm880_vm5, %v4453_v5  ;;  %v4706_v49 = vrot.slane %v12567_v31, 1  ;;  %v4705_v48 = vrot.slane %v12570_v4, 1 }
 0x690   : > { %v4401_v45 = vadd.f32 %v6742_v11, %v12279_v18  ;;  %v4395_v46 = vpop.f32.mrb[49].mxu1  ;;  %4524 = vst.msk [vmem:[#allocation3 + $0x151] sm:$0xff] %vm880_vm5, %v4452_v58 }
 0x691   : > { %v4396_v3 = vadd.f32 %v12279_v18, %v4395_v46  ;;  %v12581_v29 = vsel %vm1052_vm0, %v4706_v49, %v4708_v14  ;;  %v12584_v58 = vsel %vm1052_vm0, %v4705_v48, %v4706_v49  ;;  %v12586_v46 = vld [vmem:[#allocation3 + $0x148] sm:$0x3] }
 0x692   : > { %v4455_v47 = vmax.f32 %v4401_v45, 0.0  ;;  %15604 = vst [vmem:[#allocation77_spill] sm:$0xff] %v12581_v29  ;;  %15605 = vst [vmem:[#allocation78_spill] sm:$0xff] %v12584_v58  ;;  %v12590_v13 = vld [vmem:[#allocation3 + $0x140] sm:$0xff]  ;;  %v4713_v57 = vrot.slane %v12586_v46, 1  ;;  %v12593_v45 = vld [vmem:[#allocation3 + $0x138] sm:$0xff]  ;;  %4881 = vrot.lane.b32.xlu1 %v12581_v29, %s7123_s24  ;;  %4879 = vrot.lane.b32.xlu0 %v12584_v58, %s7123_s24 }
 0x693   : > { %v4454_v5 = vmax.f32 %v4396_v3, 0.0  ;;  %v4711_v3 = vrot.slane %v12590_v13, 1  ;;  %v4710_v49 = vrot.slane %v12593_v45, 1 }
 0x694   : > { %v6745_v11 = vpop.f32.mrb[50].mxu1  ;;  %4527 = vst.msk [vmem:[#allocation3 + $0x171] sm:$0xff] %vm880_vm5, %v4455_v47 }
 0x695   : > { %v4411_v55 = vadd.f32 %v6745_v11, %v12279_v18  ;;  %v4405_v1 = vpop.f32.mrb[51].mxu1  ;;  %4526 = vst.msk [vmem:[#allocation3 + $0x169] sm:$0xff] %vm880_vm5, %v4454_v5  ;;  %v12604_v23 = vsel %vm1052_vm0, %v4711_v3, %v4713_v57  ;;  %v12607_v5 = vsel %vm1052_vm0, %v4710_v49, %v4711_v3 }
 0x696   : > { %v4406_v14 = vadd.f32 %v12279_v18, %v4405_v1  ;;  %15606 = vst [vmem:[#allocation79_spill] sm:$0xff] %v12604_v23  ;;  %15607 = vst [vmem:[#allocation318_spill] sm:$0xff] %v12607_v5  ;;  %v12609_v1 = vld [vmem:[#allocation3 + $0x160] sm:$0x3]  ;;  %4885 = vrot.lane.b32.xlu1 %v12604_v23, %s7123_s24  ;;  %4883 = vrot.lane.b32.xlu0 %v12607_v5, %s7123_s24 }
 0x697   : > { %v4457_v48 = vmax.f32 %v4411_v55, 0.0  ;;  %v12613_v6 = vld [vmem:[#allocation3 + $0x158] sm:$0xff]  ;;  %v4718_v7 = vrot.slane %v12609_v1, 1  ;;  %v12616_v55 = vld [vmem:[#allocation3 + $0x150] sm:$0xff] }
 0x698   : > { %v4456_v47 = vmax.f32 %v4406_v14, 0.0  ;;  %v6748_v11 = vpop.f32.mrb[52].mxu1  ;;  %v4716_v14 = vrot.slane %v12613_v6, 1  ;;  %v4715_v3 = vrot.slane %v12616_v55, 1 }
 0x699   : > { %4529 = vst.msk [vmem:[#allocation3 + $0x189] sm:$0xff] %vm880_vm5, %v4457_v48  ;;  %v4421_v29 = vadd.f32 %v6748_v11, %v12279_v18  ;;  %v4415_v58 = vpop.f32.mrb[53].mxu1 }
 0x69a   : > { %4528 = vst.msk [vmem:[#allocation3 + $0x181] sm:$0xff] %vm880_vm5, %v4456_v47  ;;  %v4416_v57 = vadd.f32 %v12279_v18, %v4415_v58  ;;  %v12627_v11 = vsel %vm1052_vm0, %v4716_v14, %v4718_v7  ;;  %v12630_v61 = vsel %vm1052_vm0, %v4715_v3, %v4716_v14  ;;  %v4728_v14 = vrot.slane %v12299_v56, 2 }
 0x69b   : > { %v4459_v49 = vmax.f32 %v4421_v29, 0.0  ;;  %15608 = vst [vmem:[#allocation80_spill] sm:$0xff] %v12627_v11  ;;  %15609 = vst [vmem:[#allocation81_spill] sm:$0xff] %v12630_v61  ;;  %v12632_v47 = vld [vmem:[#allocation3 + $0x178] sm:$0x3]  ;;  %4889 = vrot.lane.b32.xlu1 %v12627_v11, %s7123_s24  ;;  %4887 = vrot.lane.b32.xlu0 %v12630_v61, %s7123_s24  ;;  %v4725_v3 = vrot.slane %v12306_v60, 2 }
 0x69c   : > { %v4458_v48 = vmax.f32 %v4416_v57, 0.0  ;;  %v12635_v18 = vld [vmem:[#allocation3 + $0x170] sm:$0xff]  ;;  %v4723_v58 = vrot.slane %v12632_v47, 1  ;;  %v12638_v23 = vld [vmem:[#allocation3 + $0x168] sm:$0xff]  ;;  %v4726_v57 = vrot.slane %v12303_v21, 2  ;;  %v4731_v56 = vrot.slane %v12316_v41, 2 }
 0x69d   : > { %4531 = vst.msk [vmem:[#allocation3 + $0x1a1] sm:$0xff] %vm880_vm5, %v4459_v49  ;;  %v4721_v7 = vrot.slane %v12635_v18, 1  ;;  %v4720_v29 = vrot.slane %v12638_v23, 1  ;;  %v4733_v60 = vrot.slane %v12310_v17, 2 }
 0x69e   : > { %4542 = vst.msk [vmem:[#allocation3 + $0x1a8] sm:$0x3] %vm926_vm4, %v15583_v40  ;;  %v4727_v21 = vsel %vm1143_vm1, %v4725_v3, %v4726_v57  ;;  %vm5956_vm4 = vcmask 1043456  }
 0x69f   : > { %4530 = vst.msk [vmem:[#allocation3 + $0x199] sm:$0xff] %vm880_vm5, %v4458_v48  ;;  %v12657_v49 = vsel %vm1052_vm0, %v4721_v7, %v4723_v58  ;;  %v12660_v48 = vsel %vm1052_vm0, %v4720_v29, %v4721_v7  ;;  %v4730_v58 = vrot.slane %v12319_v25, 2  ;;  %v4736_v7 = vrot.slane %v12337_v38, 2 }
 0x6a0   : > { %4540 = vst.msk [vmem:[#allocation3 + $0x198] sm:$0xff] %vm880_vm5, %v15583_v40  ;;  %4541 = vst.msk [vmem:[#allocation3 + $0x1a0] sm:$0xff] %vm880_vm5, %v15583_v40  ;;  %4893 = vrot.lane.b32.xlu1 %v12657_v49, %s7123_s24  ;;  %4891 = vrot.lane.b32.xlu0 %v12660_v48, %s7123_s24  ;;  %v4729_v40 = vsel %vm1143_vm1, %v4726_v57, %v4728_v14  ;;  %v4738_v29 = vrot.slane %v12333_v44, 2  ;;  %v4735_v57 = vrot.slane %v12340_v35, 2  ;;  %v4741_v44 = vrot.slane %v12360_v22, 2  ;;  %s15663_s24 = smov 16  }
 0x6a1   : > { %15610 = vst [vmem:[#allocation82_spill] sm:$0xff] %v12657_v49  ;;  %15611 = vst [vmem:[#allocation83_spill] sm:$0xff] %v12660_v48  ;;  %v12676_v49 = vsel %vm1143_vm1, %v4731_v56, %v4733_v60  ;;  %v12679_v14 = vsel %vm1143_vm1, %v4730_v58, %v4731_v56  ;;  %v4746_v56 = vrot.slane %v12383_v9, 2  ;;  %v4748_v60 = vrot.slane %v12379_v12, 2 }
 0x6a2   : > { %v12687_v17 = vsel %vm1143_vm1, %v4736_v7, %v4738_v29  ;;  %v12690_v3 = vsel %vm1143_vm1, %v4735_v57, %v4736_v7  ;;  %v4751_v12 = vrot.slane %v12406_v51, 2 }
 0x6a3   : > { %v12713_v29 = vsel %vm1143_vm1, %v4746_v56, %v4748_v60  ;;  %v4758_v60 = vrot.slane %v12425_v19, 2  ;;  %v4761_v19 = vrot.slane %v12452_v28, 2 }
 0x6a4   : > { %4929 = vrot.lane.b32.xlu1 %v4729_v40, %s7124_s25  ;;  %4927 = vrot.lane.b32.xlu0 %v4727_v21, %s7124_s25  ;;  %v4743_v40 = vrot.slane %v12356_v33, 2  ;;  %v4740_v21 = vrot.slane %v12363_v39, 2  ;;  %v4745_v33 = vrot.slane %v12386_v43, 2 }
 0x6a6   : > { %v12702_v58 = vsel %vm1143_vm1, %v4741_v44, %v4743_v40  ;;  %v12705_v7 = vsel %vm1143_vm1, %v4740_v21, %v4741_v44  ;;  %v12716_v57 = vsel %vm1143_vm1, %v4745_v33, %v4746_v56  ;;  %v4753_v40 = vrot.slane %v12402_v8, 2 }
 0x6a7   : > { %v4750_v44 = vrot.slane %v12409_v2, 2  ;;  %v4756_v21 = vrot.slane %v12429_v16, 2  ;;  %v4755_v8 = vrot.slane %v12432_v52, 2 }
 0x6a8   : > { %4933 = vrot.lane.b32.xlu1 %v12676_v49, %s7124_s25  ;;  %4931 = vrot.lane.b32.xlu0 %v12679_v14, %s7124_s25  ;;  %v12728_v48 = vsel %vm1143_vm1, %v4751_v12, %v4753_v40  ;;  %v4763_v40 = vrot.slane %v12448_v0, 2  ;;  %v4765_v0 = vrot.slane %v12478_v27, 2 }
 0x6a9   : > { %v12731_v56 = vsel %vm1143_vm1, %v4750_v44, %v4751_v12  ;;  %v12739_v33 = vsel %vm1143_vm1, %v4756_v21, %v4758_v60  ;;  %v12742_v11 = vsel %vm1143_vm1, %v4755_v8, %v4756_v21  ;;  %v4760_v12 = vrot.slane %v12455_v30, 2 }
 0x6aa   : > { %v4766_v44 = vrot.slane %v12475_v54, 2  ;;  %v4768_v60 = vrot.slane %v12471_v32, 2  ;;  %v12754_v61 = vsel %vm1143_vm1, %v4761_v19, %v4763_v40  ;;  %v4771_v32 = vrot.slane %v12498_v24, 2 }
 0x6ab   : > { %15612 = vst [vmem:[#allocation84_spill] sm:$0xff] %v12754_v61  ;;  %v12757_v21 = vsel %vm1143_vm1, %v4760_v12, %v4761_v19  ;;  %v4773_v40 = vrot.slane %v12494_v20, 2  ;;  %v4770_v19 = vrot.slane %v12501_v36, 2  ;;  %v4776_v12 = vrot.slane %v12521_v34, 2 }
 0x6ac   : > { %4937 = vrot.lane.b32.xlu1 %v12687_v17, %s7124_s25  ;;  %4935 = vrot.lane.b32.xlu0 %v12690_v3, %s7124_s25  ;;  %v12765_v8 = vsel %vm1143_vm1, %v4766_v44, %v4768_v60  ;;  %v12768_v5 = vsel %vm1143_vm1, %v4765_v0, %v4766_v44  ;;  %v4778_v60 = vrot.slane %v12517_v42, 2  ;;  %v4775_v20 = vrot.slane %v12524_v63, 2 }
 0x6ad   : > { %15613 = vst [vmem:[#allocation85_spill] sm:$0xff] %v12765_v8  ;;  %v12783_v44 = vsel %vm1143_vm1, %v4770_v19, %v4771_v32  ;;  %v4781_v42 = vrot.slane %v12544_v37, 2  ;;  %v4786_v19 = vrot.slane %v12567_v31, 2 }
 0x6ae   : > { %v12791_v0 = vsel %vm1143_vm1, %v4776_v12, %v4778_v60  ;;  %v4788_v60 = vrot.slane %v12563_v53, 2  ;;  %v4791_v53 = vrot.slane %v12590_v13, 2 }
 0x6af   : > { %15615 = vst [vmem:[#allocation87_spill] sm:$0xff] %v12791_v0 }
 0x6b0   : > { %4941 = vrot.lane.b32.xlu1 %v12702_v58, %s7124_s25  ;;  %4939 = vrot.lane.b32.xlu0 %v12705_v7, %s7124_s25 }
 0x6b4   : > { %4945 = vrot.lane.b32.xlu1 %v12713_v29, %s7124_s25  ;;  %4943 = vrot.lane.b32.xlu0 %v12716_v57, %s7124_s25 }
 0x6b8   : > { %4949 = vrot.lane.b32.xlu1 %v12728_v48, %s7124_s25  ;;  %4947 = vrot.lane.b32.xlu0 %v12731_v56, %s7124_s25 }
 0x6bc   : > { %4953 = vrot.lane.b32.xlu1 %v12739_v33, %s7124_s25  ;;  %4951 = vrot.lane.b32.xlu0 %v12742_v11, %s7124_s25 }
 0x6c0   : > { %4957 = vrot.lane.b32.xlu1 %v12754_v61, %s7124_s25  ;;  %4955 = vrot.lane.b32.xlu0 %v12757_v21, %s7124_s25  ;;  %v12780_v61 = vsel %vm1143_vm1, %v4771_v32, %v4773_v40  ;;  %v4783_v40 = vrot.slane %v12540_v59, 2  ;;  %v4780_v32 = vrot.slane %v12547_v62, 2  ;;  %v4785_v59 = vrot.slane %v12570_v4, 2 }
 0x6c1   : > { %15614 = vst [vmem:[#allocation86_spill] sm:$0xff] %v12780_v61 }
 0x6c4   : > { %4961 = vrot.lane.b32.xlu1 %v12765_v8, %s7124_s25  ;;  %4959 = vrot.lane.b32.xlu0 %v12768_v5, %s7124_s25  ;;  %v12794_v8 = vsel %vm1143_vm1, %v4775_v20, %v4776_v12  ;;  %v12809_v12 = vsel %vm1143_vm1, %v4780_v32, %v4781_v42  ;;  %v12817_v20 = vsel %vm1143_vm1, %v4786_v19, %v4788_v60  ;;  %v4796_v60 = vrot.slane %v12613_v6, 2 }
 0x6c5   : > { %15616 = vst [vmem:[#allocation88_spill] sm:$0xff] %v12794_v8  ;;  %15618 = vst [vmem:[#allocation90_spill] sm:$0xff] %v12809_v12 }
 0x6c6   : > { %15619 = vst [vmem:[#allocation321_spill] sm:$0xff] %v12817_v20 }
 0x6c8   : > { %4965 = vrot.lane.b32.xlu1 %v12780_v61, %s7124_s25  ;;  %4963 = vrot.lane.b32.xlu0 %v12783_v44, %s7124_s25  ;;  %v12806_v61 = vsel %vm1143_vm1, %v4781_v42, %v4783_v40  ;;  %v4793_v40 = vrot.slane %v12586_v46, 2  ;;  %v4790_v42 = vrot.slane %v12593_v45, 2 }
 0x6c9   : > { %15617 = vst [vmem:[#allocation89_spill] sm:$0xff] %v12806_v61 }
 0x6ca   : > { %v12839_v46 = vsel %vm1143_vm1, %v4790_v42, %v4791_v53  ;;  %v4803_v42 = vrot.slane %v12632_v47, 2 }
 0x6cb   : > { %15622 = vst [vmem:[#allocation93_spill] sm:$0xff] %v12839_v46 }
 0x6cc   : > { %4969 = vrot.lane.b32.xlu1 %v12791_v0, %s7124_s25  ;;  %4967 = vrot.lane.b32.xlu0 %v12794_v8, %s7124_s25  ;;  %v12820_v0 = vsel %vm1143_vm1, %v4785_v59, %v4786_v19  ;;  %v4798_v19 = vrot.slane %v12609_v1, 2  ;;  %v12836_v59 = vsel %vm1143_vm1, %v4791_v53, %v4793_v40  ;;  %v4801_v53 = vrot.slane %v12635_v18, 2 }
 0x6cd   : > { %15620 = vst [vmem:[#allocation91_spill] sm:$0xff] %v12820_v0  ;;  %15621 = vst [vmem:[#allocation92_spill] sm:$0xff] %v12836_v59  ;;  %v4800_v8 = vrot.slane %v12638_v23, 2 }
 0x6ce   : > { %v12851_v1 = vsel %vm1143_vm1, %v4796_v60, %v4798_v19  ;;  %v12868_v19 = vsel %vm1143_vm1, %v4801_v53, %v4803_v42 }
 0x6cf   : > { %15624 = vst [vmem:[#allocation94_spill] sm:$0xff] %v12851_v1  ;;  %15628 = vst [vmem:[#allocation98_spill] sm:$0xff] %v12868_v19 }
 0x6d0   : > { %4973 = vrot.lane.b32.xlu1 %v12806_v61, %s7124_s25  ;;  %4971 = vrot.lane.b32.xlu0 %v12809_v12, %s7124_s25  ;;  %v4795_v12 = vrot.slane %v12616_v55, 2 }
 0x6d1   : > { %v12829_v32 = vpop.permute.xlu1 %4833  ;;  %v12831_v61 = vpop.permute.xlu0 %4831 }
 0x6d2   : > { %v12854_v40 = vsel %vm1143_vm1, %v4795_v12, %v4796_v60  ;;  %v12871_v12 = vsel %vm1143_vm1, %v4800_v8, %v4801_v53 }
 0x6d3   : > { %15625 = vst [vmem:[#allocation95_spill] sm:$0xff] %v12854_v40  ;;  %15629 = vst [vmem:[#allocation99_spill] sm:$0xff] %v12871_v12 }
 0x6d4   : > { %4977 = vrot.lane.b32.xlu1 %v12817_v20, %s7124_s25  ;;  %4975 = vrot.lane.b32.xlu0 %v12820_v0, %s7124_s25 }
 0x6d5   : > { %v12846_v20 = vpop.permute.xlu1 %4837  ;;  %v12848_v0 = vpop.permute.xlu0 %4835 }
 0x6d6   : > { %15623 = vst [vmem:[#allocation322_spill] sm:$0xff] %v12846_v20 }
 0x6d8   : > { %4981 = vrot.lane.b32.xlu1 %v12836_v59, %s7124_s25  ;;  %4979 = vrot.lane.b32.xlu0 %v12839_v46, %s7124_s25 }
 0x6d9   : > { %v12863_v59 = vpop.permute.xlu1 %4841  ;;  %v12865_v46 = vpop.permute.xlu0 %4839 }
 0x6da   : > { %15626 = vst [vmem:[#allocation96_spill] sm:$0xff] %v12863_v59  ;;  %15627 = vst [vmem:[#allocation97_spill] sm:$0xff] %v12865_v46  ;;  %v5858_v46 = vld [vmem:[%s13983_s6 + $0x18] sm:$0xff] }
 0x6dc   : > { %4985 = vrot.lane.b32.xlu1 %v12851_v1, %s7124_s25  ;;  %4983 = vrot.lane.b32.xlu0 %v12854_v40, %s7124_s25 }
 0x6dd   : > { %v12877_v47 = vpop.permute.xlu1 %4845  ;;  %v12879_v60 = vpop.permute.xlu0 %4843 }
 0x6de   : > { %15630 = vst [vmem:[#allocation100_spill] sm:$0xff] %v12877_v47  ;;  %15631 = vst [vmem:[#allocation101_spill] sm:$0xff] %v12879_v60 }
 0x6e0   : > { %4989 = vrot.lane.b32.xlu1 %v12868_v19, %s7124_s25  ;;  %4987 = vrot.lane.b32.xlu0 %v12871_v12, %s7124_s25  ;;  %s15700_s25 = smov 24  }
 0x6e1   : > { %v12885_v42 = vpop.permute.xlu1 %4849  ;;  %v12887_v8 = vpop.permute.xlu0 %4847 }
 0x6e2   : > { %15632 = vst [vmem:[#allocation102_spill] sm:$0xff] %v12885_v42  ;;  %15633 = vst [vmem:[#allocation103_spill] sm:$0xff] %v12887_v8 }
 0x6e4   : > { %5025 = vrot.lane.b32.xlu1 %v12316_v41, %s7125_s26  ;;  %5023 = vrot.lane.b32.xlu0 %v12319_v25, %s7125_s26 }
 0x6e5   : > { %v12893_v53 = vpop.permute.xlu1 %4853  ;;  %v12895_v19 = vpop.permute.xlu0 %4851 }
 0x6e6   : > { %15634 = vst [vmem:[#allocation104_spill] sm:$0xff] %v12893_v53  ;;  %15635 = vst [vmem:[#allocation325_spill] sm:$0xff] %v12895_v19  ;;  %v15672_v19 = vld [vmem:[#allocation53_spill] sm:$0xff] }
 0x6e8   : > { %5029 = vrot.lane.b32.xlu1 %v12337_v38, %s7125_s26  ;;  %5027 = vrot.lane.b32.xlu0 %v12340_v35, %s7125_s26 }
 0x6e9   : > { %v12901_v41 = vpop.permute.xlu1 %4857  ;;  %v12903_v25 = vpop.permute.xlu0 %4855 }
 0x6ea   : > { %15636 = vst [vmem:[#allocation105_spill] sm:$0xff] %v12901_v41  ;;  %15637 = vst [vmem:[#allocation106_spill] sm:$0xff] %v12903_v25 }
 0x6ec   : > { %5033 = vrot.lane.b32.xlu1 %v12360_v22, %s7125_s26  ;;  %5031 = vrot.lane.b32.xlu0 %v12363_v39, %s7125_s26 }
 0x6ed   : > { %v12909_v12 = vpop.permute.xlu1 %4861  ;;  %v12911_v1 = vpop.permute.xlu0 %4859 }
 0x6ee   : > { %15638 = vst [vmem:[#allocation107_spill] sm:$0xff] %v12909_v12  ;;  %15639 = vst [vmem:[#allocation326_spill] sm:$0xff] %v12911_v1 }
 0x6f0   : > { %5037 = vrot.lane.b32.xlu1 %v12383_v9, %s7125_s26  ;;  %5035 = vrot.lane.b32.xlu0 %v12386_v43, %s7125_s26 }
 0x6f2   : > { %v12917_v40 = vpop.permute.xlu1 %4865  ;;  %v12919_v41 = vpop.permute.xlu0 %4863 }
 0x6f3   : > { %15640 = vst [vmem:[#allocation108_spill] sm:$0xff] %v12917_v40  ;;  %15641 = vst [vmem:[#allocation8_spill] sm:$0xff] %v12919_v41 }
 0x6f4   : > { %5041 = vrot.lane.b32.xlu1 %v12406_v51, %s7125_s26  ;;  %5039 = vrot.lane.b32.xlu0 %v12409_v2, %s7125_s26 }
 0x6f6   : > { %v12925_v25 = vpop.permute.xlu1 %4869  ;;  %v12927_v12 = vpop.permute.xlu0 %4867 }
 0x6f7   : > { %15642 = vst [vmem:[#allocation7_spill] sm:$0xff] %v12925_v25  ;;  %15643 = vst [vmem:[#allocation9_spill] sm:$0xff] %v12927_v12 }
 0x6f8   : > { %5045 = vrot.lane.b32.xlu1 %v12429_v16, %s7125_s26  ;;  %5043 = vrot.lane.b32.xlu0 %v12432_v52, %s7125_s26 }
 0x6fa   : > { %v12933_v1 = vpop.permute.xlu1 %4873  ;;  %v12935_v40 = vpop.permute.xlu0 %4871 }
 0x6fb   : > { %15644 = vst [vmem:[#allocation10_spill] sm:$0xff] %v12933_v1  ;;  %15645 = vst [vmem:[#allocation11_spill] sm:$0xff] %v12935_v40 }
 0x6fc   : > { %5049 = vrot.lane.b32.xlu1 %v12452_v28, %s7125_s26  ;;  %5047 = vrot.lane.b32.xlu0 %v12455_v30, %s7125_s26 }
 0x6ff   : > { %v12941_v41 = vpop.permute.xlu1 %4877  ;;  %v12943_v25 = vpop.permute.xlu0 %4875 }
 0x700   : > { %5053 = vrot.lane.b32.xlu1 %v12475_v54, %s7125_s26  ;;  %5051 = vrot.lane.b32.xlu0 %v12478_v27, %s7125_s26  ;;  %15646 = vst [vmem:[#allocation12_spill] sm:$0xff] %v12941_v41  ;;  %15647 = vst [vmem:[#allocation13_spill] sm:$0xff] %v12943_v25 }
 0x704   : > { %5057 = vrot.lane.b32.xlu1 %v12498_v24, %s7125_s26  ;;  %5055 = vrot.lane.b32.xlu0 %v12501_v36, %s7125_s26  ;;  %v12949_v12 = vpop.permute.xlu1 %4881  ;;  %v12951_v1 = vpop.permute.xlu0 %4879 }
 0x705   : > { %15648 = vst [vmem:[#allocation14_spill] sm:$0xff] %v12949_v12  ;;  %15649 = vst [vmem:[#allocation15_spill] sm:$0xff] %v12951_v1 }
 0x708   : > { %5061 = vrot.lane.b32.xlu1 %v12521_v34, %s7125_s26  ;;  %5059 = vrot.lane.b32.xlu0 %v12524_v63, %s7125_s26  ;;  %v12957_v40 = vpop.permute.xlu1 %4885  ;;  %v12959_v41 = vpop.permute.xlu0 %4883 }
 0x709   : > { %15650 = vst [vmem:[#allocation16_spill] sm:$0xff] %v12957_v40  ;;  %15651 = vst [vmem:[#allocation330_spill] sm:$0xff] %v12959_v41 }
 0x70c   : > { %5065 = vrot.lane.b32.xlu1 %v12544_v37, %s7125_s26  ;;  %5063 = vrot.lane.b32.xlu0 %v12547_v62, %s7125_s26  ;;  %v15693_v62 = vld [vmem:[#allocation70_spill] sm:$0xff]  ;;  %v5857_v37 = vld [vmem:[%s13983_s6 + $0x10] sm:$0xff] }
 0x70d   : > { %v12965_v25 = vpop.permute.xlu1 %4889  ;;  %v12967_v12 = vpop.permute.xlu0 %4887 }
 0x70e   : > { %15652 = vst [vmem:[#allocation17_spill] sm:$0xff] %v12965_v25  ;;  %15653 = vst [vmem:[#allocation18_spill] sm:$0xff] %v12967_v12 }
 0x710   : > { %5069 = vrot.lane.b32.xlu1 %v12567_v31, %s7125_s26  ;;  %5067 = vrot.lane.b32.xlu0 %v12570_v4, %s7125_s26 }
 0x712   : > { %v12973_v1 = vpop.permute.xlu1 %4893  ;;  %v12975_v40 = vpop.permute.xlu0 %4891 }
 0x713   : > { %15654 = vst [vmem:[#allocation19_spill] sm:$0xff] %v12973_v1  ;;  %15655 = vst [vmem:[#allocation331_spill] sm:$0xff] %v12975_v40  ;;  %v13001_v40 = vld [vmem:[#allocation3 + $0x188] sm:$0xff] }
 0x714   : > { %5073 = vrot.lane.b32.xlu1 %v12590_v13, %s7125_s26  ;;  %5071 = vrot.lane.b32.xlu0 %v12593_v45, %s7125_s26  ;;  %15659 = vst [vmem:[#allocation23_spill] sm:$0xff] %v13001_v40 }
 0x716   : > { %v12981_v41 = vpop.permute.xlu1 %4929  ;;  %v12983_v25 = vpop.permute.xlu0 %4927 }
 0x718   : > { %5077 = vrot.lane.b32.xlu1 %v12613_v6, %s7125_s26  ;;  %5075 = vrot.lane.b32.xlu0 %v12616_v55, %s7125_s26  ;;  %v13003_v6 = vld [vmem:[#allocation3 + $0x180] sm:$0xff] }
 0x719   : > { %15660 = vst [vmem:[#allocation24_spill] sm:$0xff] %v13003_v6 }
 0x71a   : > { %v12989_v31 = vpop.permute.xlu1 %4933  ;;  %v12991_v4 = vpop.permute.xlu0 %4931 }
 0x71b   : > { %15656 = vst [vmem:[#allocation20_spill] sm:$0xff] %v12989_v31  ;;  %v5859_v31 = vld [vmem:[%s13983_s6 + $0x20] sm:$0xf] }
 0x71c   : > { %5081 = vrot.lane.b32.xlu1 %v12635_v18, %s7125_s26  ;;  %5079 = vrot.lane.b32.xlu0 %v12638_v23, %s7125_s26 }
 0x71e   : > { %v12997_v13 = vpop.permute.xlu1 %4937  ;;  %v12999_v45 = vpop.permute.xlu0 %4935 }
 0x71f   : > { %15657 = vst [vmem:[#allocation21_spill] sm:$0xff] %v12997_v13  ;;  %15658 = vst [vmem:[#allocation22_spill] sm:$0xff] %v12999_v45  ;;  %v15689_v13 = vld [vmem:[#allocation68_spill] sm:$0xff] }
 0x720   : > { %5085 = vrot.lane.b32.xlu1 %v13001_v40, %s7125_s26  ;;  %5083 = vrot.lane.b32.xlu0 %v13003_v6, %s7125_s26  ;;  %v15668_v40 = vld [vmem:[#allocation49_spill] sm:$0xff]  ;;  %s15703_s26 = smov 28  }
 0x722   : > { %v13009_v55 = vpop.permute.xlu1 %4941  ;;  %v13011_v18 = vpop.permute.xlu0 %4939 }
 0x723   : > { %15661 = vst [vmem:[#allocation25_spill] sm:$0xff] %v13009_v55  ;;  %15662 = vst [vmem:[#allocation26_spill] sm:$0xff] %v13011_v18  ;;  %v15681_v55 = vld [vmem:[#allocation62_spill] sm:$0xff] }
 0x724   : > { %5121 = vrot.lane.b32.xlu1 %v12328_v15, %s15663_s24  ;;  %5119 = vrot.lane.b32.xlu0 %v12331_v50, %s15663_s24  ;;  %v15669_v15 = vld [vmem:[#allocation51_spill] sm:$0xff]  ;;  %v15685_v18 = vld [vmem:[#allocation66_spill] sm:$0xff] }
 0x726   : > { %v13017_v23 = vpop.permute.xlu1 %4945  ;;  %v13019_v1 = vpop.permute.xlu0 %4943 }
 0x727   : > { %15664 = vst [vmem:[#allocation27_spill] sm:$0xff] %v13017_v23  ;;  %15665 = vst [vmem:[#allocation28_spill] sm:$0xff] %v13019_v1  ;;  %v15673_v23 = vld [vmem:[#allocation55_spill] sm:$0xff]  ;;  %v15677_v1 = vld [vmem:[#allocation58_spill] sm:$0xff] }
 0x728   : > { %5125 = vrot.lane.b32.xlu1 %v12351_v26, %s15663_s24  ;;  %5123 = vrot.lane.b32.xlu0 %v12354_v10, %s15663_s24 }
 0x72a   : > { %v13025_v12 = vpop.permute.xlu1 %4949  ;;  %v13027_v6 = vpop.permute.xlu0 %4947 }
 0x72b   : > { %15666 = vst [vmem:[#allocation29_spill] sm:$0xff] %v13025_v12  ;;  %15667 = vst [vmem:[#allocation30_spill] sm:$0xff] %v13027_v6  ;;  %v15676_v6 = vld [vmem:[#allocation56_spill] sm:$0xff] }
 0x72c   : > { %5129 = vrot.lane.b32.xlu1 %v15668_v40, %s15663_s24  ;;  %5127 = vrot.lane.b32.xlu0 %v15669_v15, %s15663_s24 }
 0x72e   : > { %v13033_v50 = vpop.permute.xlu1 %4953  ;;  %v13035_v53 = vpop.permute.xlu0 %4951 }
 0x72f   : > { %15670 = vst [vmem:[#allocation335_spill] sm:$0xff] %v13033_v50  ;;  %15671 = vst [vmem:[#allocation31_spill] sm:$0xff] %v13035_v53  ;;  %v15680_v53 = vld [vmem:[#allocation60_spill] sm:$0xff] }
 0x730   : > { %5133 = vrot.lane.b32.xlu1 %v15672_v19, %s15663_s24  ;;  %5131 = vrot.lane.b32.xlu0 %v15673_v23, %s15663_s24 }
 0x732   : > { %v13041_v42 = vpop.permute.xlu1 %4957  ;;  %v13043_v12 = vpop.permute.xlu0 %4955 }
 0x733   : > { %15674 = vst [vmem:[#allocation32_spill] sm:$0xff] %v13041_v42  ;;  %15675 = vst [vmem:[#allocation33_spill] sm:$0xff] %v13043_v12  ;;  %v15684_v12 = vld [vmem:[#allocation64_spill] sm:$0xff] }
 0x734   : > { %5137 = vrot.lane.b32.xlu1 %v15676_v6, %s15663_s24  ;;  %5135 = vrot.lane.b32.xlu0 %v15677_v1, %s15663_s24 }
 0x736   : > { %v13049_v8 = vpop.permute.xlu1 %4961  ;;  %v13051_v50 = vpop.permute.xlu0 %4959 }
 0x737   : > { %15678 = vst [vmem:[#allocation336_spill] sm:$0xff] %v13049_v8  ;;  %15679 = vst [vmem:[#allocation34_spill] sm:$0xff] %v13051_v50  ;;  %v15688_v50 = vld [vmem:[#allocation37_spill] sm:$0xff] }
 0x738   : > { %5141 = vrot.lane.b32.xlu1 %v15680_v53, %s15663_s24  ;;  %5139 = vrot.lane.b32.xlu0 %v15681_v55, %s15663_s24 }
 0x73a   : > { %v13057_v47 = vpop.permute.xlu1 %4965  ;;  %v13059_v42 = vpop.permute.xlu0 %4963 }
 0x73b   : > { %15682 = vst [vmem:[#allocation35_spill] sm:$0xff] %v13057_v47  ;;  %15683 = vst [vmem:[#allocation36_spill] sm:$0xff] %v13059_v42  ;;  %v5855_v47 = vld [vmem:[%s13983_s6] sm:$0xff]  ;;  %v5856_v42 = vld [vmem:[%s13983_s6 + $0x8] sm:$0xff] }
 0x73c   : > { %5145 = vrot.lane.b32.xlu1 %v15684_v12, %s15663_s24  ;;  %5143 = vrot.lane.b32.xlu0 %v15685_v18, %s15663_s24  ;;  %v6823_v59 = vpack.c.bf16 %v5856_v42, %v5855_v47  ;;  %v6827_v47 = vpack.c.bf16 %v5858_v46, %v5857_v37 }
 0x73e   : > { %v13065_v60 = vpop.permute.xlu1 %4969  ;;  %v13067_v8 = vpop.permute.xlu0 %4967  ;;  %6824 = vmatprep.subr.bf16.mxu0 %v6823_v59 }
 0x73f   : > { %15686 = vst [vmem:[#allocation109_spill] sm:$0xff] %v13065_v60  ;;  %15687 = vst [vmem:[#allocation110_spill] sm:$0xff] %v13067_v8  ;;  %v15692_v8 = vld [vmem:[#allocation69_spill] sm:$0xff]  ;;  %6826 = vmatpush3.bf16.msra.mxu0 %v6823_v59 }
 0x740   : > { %5149 = vrot.lane.b32.xlu1 %v15688_v50, %s15663_s24  ;;  %5147 = vrot.lane.b32.xlu0 %v15689_v13, %s15663_s24 }
 0x741   : > { %6828 = vmatprep.subr.bf16.mxu0 %v6827_v47 }
 0x742   : > { %v13079_v45 = vpop.permute.xlu1 %4973  ;;  %v13081_v60 = vpop.permute.xlu0 %4971 }
 0x743   : > { %15690 = vst [vmem:[#allocation38_spill] sm:$0xff] %v13079_v45  ;;  %15691 = vst [vmem:[#allocation111_spill] sm:$0xff] %v13081_v60  ;;  %v15697_v60 = vld [vmem:[#allocation72_spill] sm:$0xff]  ;;  %6830 = vmatpush3.bf16.msra.mxu0 %v6827_v47 }
 0x744   : > { %5153 = vrot.lane.b32.xlu1 %v15692_v8, %s15663_s24  ;;  %5151 = vrot.lane.b32.xlu0 %v15693_v62, %s15663_s24 }
 0x745   : > { %6757 = vmatprep.subr.msk.mxu0 %vm5956_vm4, %v5859_v31 }
 0x746   : > { %v13093_v42 = vpop.permute.xlu1 %4977  ;;  %v13095_v45 = vpop.permute.xlu0 %4975 }
 0x747   : > { %15694 = vst [vmem:[#allocation112_spill] sm:$0xff] %v13093_v42  ;;  %15695 = vst [vmem:[#allocation113_spill] sm:$0xff] %v13095_v45  ;;  %6758 = vmatpush3.msk.msra.mxu0 %vm5956_vm4, %v5859_v31 }
 0x748   : > { %5215 = vrot.lane.b32.xlu1 %v12679_v14, %s15696_s14  ;;  %5155 = vrot.lane.b32.xlu0 %v15697_v60, %s15663_s24  ;;  %vm15730_vm4 = vmmov %vm15720_vm8 }
 0x74a   : > { %v13104_v20 = vpop.permute.xlu1 %4981  ;;  %v13106_v37 = vpop.permute.xlu0 %4979 }
 0x74b   : > { %15698 = vst [vmem:[#allocation114_spill] sm:$0xff] %v13104_v20  ;;  %15699 = vst [vmem:[#allocation115_spill] sm:$0xff] %v13106_v37 }
 0x74c   : > { %5311 = vrot.lane.b32.xlu1 %v12340_v35, %s15700_s25  ;;  %5217 = vrot.lane.b32.xlu0 %v12676_v49, %s15696_s14 }
 0x74e   : > { %v13112_v14 = vpop.permute.xlu1 %4985  ;;  %v13114_v59 = vpop.permute.xlu0 %4983 }
 0x74f   : > { %15701 = vst [vmem:[#allocation340_spill] sm:$0xff] %v13112_v14  ;;  %15702 = vst [vmem:[#allocation116_spill] sm:$0xff] %v13114_v59 }
 0x750   : > { %5407 = vrot.lane.b32.xlu1 %v12354_v10, %s15703_s26  ;;  %5313 = vrot.lane.b32.xlu0 %v12337_v38, %s15700_s25 }
 0x752   : > { %v13120_v46 = vpop.permute.xlu1 %4989  ;;  %v13122_v47 = vpop.permute.xlu0 %4987 }
 0x753   : > { %15704 = vst [vmem:[#allocation117_spill] sm:$0xff] %v13120_v46  ;;  %15705 = vst [vmem:[#allocation39_spill] sm:$0xff] %v13122_v47 }
 0x754   : > { %5503 = vrot.lane.b32.xlu1 %v12690_v3, %s15706_s11  ;;  %5409 = vrot.lane.b32.xlu0 %v12351_v26, %s15703_s26 }
 0x756   : > { %v13128_v35 = vpop.permute.xlu1 %5025  ;;  %v13130_v49 = vpop.permute.xlu0 %5023 }
 0x758   : > { %5505 = vrot.lane.b32.xlu1 %v12687_v17, %s15706_s11  ;;  %5219 = vrot.lane.b32.xlu0 %v12690_v3, %s15696_s14 }
 0x75a   : > { %v13136_v38 = vpop.permute.xlu1 %5029  ;;  %v13138_v10 = vpop.permute.xlu0 %5027 }
 0x75c   : > { %5315 = vrot.lane.b32.xlu1 %v12363_v39, %s15700_s25  ;;  %5221 = vrot.lane.b32.xlu0 %v12687_v17, %s15696_s14 }
 0x75e   : > { %v13144_v26 = vpop.permute.xlu1 %5033  ;;  %v13146_v31 = vpop.permute.xlu0 %5031 }
 0x760   : > { %5411 = vrot.lane.b32.xlu1 %v15669_v15, %s15703_s26  ;;  %5317 = vrot.lane.b32.xlu0 %v12360_v22, %s15700_s25 }
 0x762   : > { %v13152_v3 = vpop.permute.xlu1 %5037  ;;  %v13154_v47 = vpop.permute.xlu0 %5035 }
 0x764   : > { %5507 = vrot.lane.b32.xlu1 %v12705_v7, %s15706_s11  ;;  %5413 = vrot.lane.b32.xlu0 %v15668_v40, %s15703_s26 }
 0x766   : > { %v13160_v39 = vpop.permute.xlu1 %5041  ;;  %v13162_v17 = vpop.permute.xlu0 %5039 }
 0x768   : > { %5509 = vrot.lane.b32.xlu1 %v12702_v58, %s15706_s11  ;;  %5223 = vrot.lane.b32.xlu0 %v12705_v7, %s15696_s14 }
 0x76a   : > { %v13168_v22 = vpop.permute.xlu1 %5045  ;;  %v13170_v15 = vpop.permute.xlu0 %5043 }
 0x76c   : > { %5319 = vrot.lane.b32.xlu1 %v12386_v43, %s15700_s25  ;;  %5225 = vrot.lane.b32.xlu0 %v12702_v58, %s15696_s14 }
 0x76e   : > { %v13176_v40 = vpop.permute.xlu1 %5049  ;;  %v13178_v46 = vpop.permute.xlu0 %5047 }
 0x770   : > { %5415 = vrot.lane.b32.xlu1 %v15673_v23, %s15703_s26  ;;  %5321 = vrot.lane.b32.xlu0 %v12383_v9, %s15700_s25 }
 0x772   : > { %v13184_v7 = vpop.permute.xlu1 %5053  ;;  %v13186_v14 = vpop.permute.xlu0 %5051 }
 0x774   : > { %5511 = vrot.lane.b32.xlu1 %v12716_v57, %s15706_s11  ;;  %5417 = vrot.lane.b32.xlu0 %v15672_v19, %s15703_s26 }
 0x776   : > { %v13192_v43 = vpop.permute.xlu1 %5057  ;;  %v13194_v58 = vpop.permute.xlu0 %5055 }
 0x778   : > { %5513 = vrot.lane.b32.xlu1 %v12713_v29, %s15706_s11  ;;  %5227 = vrot.lane.b32.xlu0 %v12716_v57, %s15696_s14 }
 0x77a   : > { %v13200_v9 = vpop.permute.xlu1 %5061  ;;  %v13202_v23 = vpop.permute.xlu0 %5059 }
 0x77c   : > { %5323 = vrot.lane.b32.xlu1 %v12409_v2, %s15700_s25  ;;  %5229 = vrot.lane.b32.xlu0 %v12713_v29, %s15696_s14 }
 0x77e   : > { %v13208_v19 = vpop.permute.xlu1 %5065  ;;  %v13210_v59 = vpop.permute.xlu0 %5063 }
 0x77f   : > { %15707 = vst [vmem:[#allocation341_spill] sm:$0xff] %v13208_v19  ;;  %v7012_v19 = vld [vmem:[#allocation3 + $0x8] sm:$0xff] }
 0x780   : > { %5419 = vrot.lane.b32.xlu1 %v15677_v1, %s15703_s26  ;;  %5325 = vrot.lane.b32.xlu0 %v12406_v51, %s15700_s25 }
 0x782   : > { %v13216_v57 = vpop.permute.xlu1 %5069  ;;  %v13218_v20 = vpop.permute.xlu0 %5067 }
 0x783   : > { %15708 = vst [vmem:[#allocation118_spill] sm:$0xff] %v13216_v57  ;;  %15709 = vst [vmem:[#allocation40_spill] sm:$0xff] %v13218_v20 }
 0x784   : > { %5515 = vrot.lane.b32.xlu1 %v12731_v56, %s15706_s11  ;;  %5421 = vrot.lane.b32.xlu0 %v15676_v6, %s15703_s26 }
 0x786   : > { %v13224_v2 = vpop.permute.xlu1 %5073  ;;  %v13226_v29 = vpop.permute.xlu0 %5071 }
 0x787   : > { %15710 = vst [vmem:[#allocation119_spill] sm:$0xff] %v13224_v2  ;;  %15711 = vst [vmem:[#allocation41_spill] sm:$0xff] %v13226_v29  ;;  %v15719_v2 = vld [vmem:[#allocation85_spill] sm:$0xff]  ;;  %v7011_v29 = vld [vmem:[#allocation3] sm:$0xff] }
 0x788   : > { %5517 = vrot.lane.b32.xlu1 %v12728_v48, %s15706_s11  ;;  %5231 = vrot.lane.b32.xlu0 %v12731_v56, %s15696_s14  ;;  %v5599_v45 = vsel %vm880_vm5, %v7011_v29, %v12831_v61  ;;  %v5600_v61 = vsel %vm880_vm5, %v7012_v19, %v12829_v32 }
 0x78a   : > { %v13232_v51 = vpop.permute.xlu1 %5077  ;;  %v13234_v1 = vpop.permute.xlu0 %5075 }
 0x78b   : > { %15712 = vst [vmem:[#allocation120_spill] sm:$0xff] %v13232_v51  ;;  %15713 = vst [vmem:[#allocation121_spill] sm:$0xff] %v13234_v1 }
 0x78c   : > { %5327 = vrot.lane.b32.xlu1 %v12432_v52, %s15700_s25  ;;  %5233 = vrot.lane.b32.xlu0 %v12728_v48, %s15696_s14 }
 0x78e   : > { %v13240_v6 = vpop.permute.xlu1 %5081  ;;  %v13242_v37 = vpop.permute.xlu0 %5079 }
 0x78f   : > { %15714 = vst [vmem:[#allocation122_spill] sm:$0xff] %v13240_v6  ;;  %15715 = vst [vmem:[#allocation123_spill] sm:$0xff] %v13242_v37  ;;  %v15718_v6 = vld [vmem:[#allocation84_spill] sm:$0xff] }
 0x790   : > { %5423 = vrot.lane.b32.xlu1 %v15681_v55, %s15703_s26  ;;  %5329 = vrot.lane.b32.xlu0 %v12429_v16, %s15700_s25 }
 0x792   : > { %v13248_v56 = vpop.permute.xlu1 %5085  ;;  %v13250_v51 = vpop.permute.xlu0 %5083 }
 0x793   : > { %15716 = vst [vmem:[#allocation124_spill] sm:$0xff] %v13248_v56  ;;  %15717 = vst [vmem:[#allocation125_spill] sm:$0xff] %v13250_v51 }
 0x794   : > { %5519 = vrot.lane.b32.xlu1 %v12742_v11, %s15706_s11  ;;  %5425 = vrot.lane.b32.xlu0 %v15680_v53, %s15703_s26 }
 0x796   : > { %v13256_v52 = vpop.permute.xlu1 %5121  ;;  %v5120_v48 = vpop.permute.xlu0 %5119 }
 0x798   : > { %5521 = vrot.lane.b32.xlu1 %v12739_v33, %s15706_s11  ;;  %5235 = vrot.lane.b32.xlu0 %v12742_v11, %s15696_s14 }
 0x79a   : > { %v13262_v16 = vpop.permute.xlu1 %5125  ;;  %v13264_v55 = vpop.permute.xlu0 %5123 }
 0x79c   : > { %5331 = vrot.lane.b32.xlu1 %v12455_v30, %s15700_s25  ;;  %5237 = vrot.lane.b32.xlu0 %v12739_v33, %s15696_s14 }
 0x79e   : > { %v13270_v53 = vpop.permute.xlu1 %5129  ;;  %v13272_v51 = vpop.permute.xlu0 %5127 }
 0x7a0   : > { %5427 = vrot.lane.b32.xlu1 %v15685_v18, %s15703_s26  ;;  %5333 = vrot.lane.b32.xlu0 %v12452_v28, %s15700_s25 }
 0x7a2   : > { %v13278_v11 = vpop.permute.xlu1 %5133  ;;  %v13280_v56 = vpop.permute.xlu0 %5131 }
 0x7a4   : > { %5523 = vrot.lane.b32.xlu1 %v12757_v21, %s15706_s11  ;;  %5429 = vrot.lane.b32.xlu0 %v15684_v12, %s15703_s26 }
 0x7a6   : > { %v13286_v30 = vpop.permute.xlu1 %5137  ;;  %v13288_v33 = vpop.permute.xlu0 %5135 }
 0x7a8   : > { %5525 = vrot.lane.b32.xlu1 %v15718_v6, %s15706_s11  ;;  %5239 = vrot.lane.b32.xlu0 %v12757_v21, %s15696_s14 }
 0x7aa   : > { %v13294_v28 = vpop.permute.xlu1 %5141  ;;  %v13296_v18 = vpop.permute.xlu0 %5139 }
 0x7ac   : > { %5335 = vrot.lane.b32.xlu1 %v12478_v27, %s15700_s25  ;;  %5241 = vrot.lane.b32.xlu0 %v15718_v6, %s15696_s14 }
 0x7ae   : > { %v13302_v12 = vpop.permute.xlu1 %5145  ;;  %v13304_v37 = vpop.permute.xlu0 %5143 }
 0x7b0   : > { %5431 = vrot.lane.b32.xlu1 %v15689_v13, %s15703_s26  ;;  %5337 = vrot.lane.b32.xlu0 %v12475_v54, %s15700_s25 }
 0x7b2   : > { %v13310_v21 = vpop.permute.xlu1 %5149  ;;  %v13312_v1 = vpop.permute.xlu0 %5147 }
 0x7b4   : > { %5527 = vrot.lane.b32.xlu1 %v12768_v5, %s15706_s11  ;;  %5433 = vrot.lane.b32.xlu0 %v15688_v50, %s15703_s26 }
 0x7b6   : > { %v13318_v27 = vpop.permute.xlu1 %5153  ;;  %v13320_v6 = vpop.permute.xlu0 %5151 }
 0x7b8   : > { %5529 = vrot.lane.b32.xlu1 %v15719_v2, %s15706_s11  ;;  %5243 = vrot.lane.b32.xlu0 %v12768_v5, %s15696_s14  ;;  %v5631_v5 = vsel %vm453_vm2, %v5599_v45, %v12983_v25 }
 0x7ba   : > { %v5216_v54 = vpop.permute.xlu1 %5215  ;;  %v13326_v13 = vpop.permute.xlu0 %5155 }
 0x7bc   : > { %5339 = vrot.lane.b32.xlu1 %v12501_v36, %s15700_s25  ;;  %5245 = vrot.lane.b32.xlu0 %v15719_v2, %s15696_s14  ;;  %v5663_v36 = vsel %vm3248_vm6, %v5631_v5, %v13130_v49 }
 0x7bd   : > { %v5695_v20 = vsel %vm3285_vm7, %v5663_v36, %v5120_v48 }
 0x7be   : > { %v5312_v50 = vpop.permute.xlu1 %5311  ;;  %v5218_v42 = vpop.permute.xlu0 %5217  ;;  %v5727_v29 = vsel %vm15720_vm8, %v5695_v20, %v5216_v54  ;;  %vm15734_vm8 = vmmov %vm15721_vm9 }
 0x7c0   : > { %5435 = vrot.lane.b32.xlu1 %v15693_v62, %s15703_s26  ;;  %5341 = vrot.lane.b32.xlu0 %v12498_v24, %s15700_s25  ;;  %v5632_v24 = vsel %vm453_vm2, %v5600_v61, %v12981_v41  ;;  %v5759_v62 = vsel %vm15721_vm9, %v5727_v29, %v5312_v50  ;;  %v7013_v50 = vld [vmem:[#allocation3 + $0x18] sm:$0xff]  ;;  %vm15735_vm9 = vmmov %vm15722_vm10 }
 0x7c1   : > { %v5664_v25 = vsel %vm3248_vm6, %v5632_v24, %v13128_v35  ;;  %v5601_v5 = vsel %vm880_vm5, %v7013_v50, %v12848_v0  ;;  %v7014_v24 = vld [vmem:[#allocation3 + $0x20] sm:$0xff]  ;;  %v15742_v50 = vld [vmem:[#allocation97_spill] sm:$0xff] }
 0x7c2   : > { %v5408_v57 = vpop.permute.xlu1 %5407  ;;  %v5314_v2 = vpop.permute.xlu0 %5313  ;;  %v5696_v20 = vsel %vm3285_vm7, %v5664_v25, %v13256_v52  ;;  %v15731_v25 = vld [vmem:[#allocation88_spill] sm:$0xff] }
 0x7c3   : > { %v5791_v45 = vsel %vm15722_vm10, %v5759_v62, %v5408_v57  ;;  %v5728_v48 = vsel %vm15724_vm13, %v5696_v20, %v5218_v42  ;;  %v15729_v62 = vld [vmem:[#allocation322_spill] sm:$0xff]  ;;  %vm15736_vm10 = vmmov %vm15728_vm3 }
 0x7c4   : > { %5531 = vrot.lane.b32.xlu1 %v12783_v44, %s15706_s11  ;;  %5437 = vrot.lane.b32.xlu0 %v15692_v8, %s15703_s26  ;;  %v15725_v8 = vld [vmem:[#allocation86_spill] sm:$0xff]  ;;  %v5760_v41 = vsel %vm15726_vm14, %v5728_v48, %v5314_v2  ;;  %v5602_v0 = vsel %vm880_vm5, %v7014_v24, %v15729_v62  ;;  %vm15738_vm13 = vmmov %vm15734_vm8 }
 0x7c5   : > { %vm15739_vm14 = vmmov %vm15735_vm9 }
 0x7c6   : > { %v5504_v49 = vpop.permute.xlu1 %5503  ;;  %v5410_v32 = vpop.permute.xlu0 %5409 }
 0x7c7   : > { %v5823_v19 = vsel %vm15723_vm11, %v5791_v45, %v5504_v49  ;;  %v5792_v35 = vsel %vm15727_vm15, %v5760_v41, %v5410_v32  ;;  %vm15737_vm11 = vmmov %vm15730_vm4 }
 0x7c8   : > { %5533 = vrot.lane.b32.xlu1 %v15725_v8, %s15706_s11  ;;  %5247 = vrot.lane.b32.xlu0 %v12783_v44, %s15696_s14  ;;  %vm15740_vm15 = vmmov %vm15728_vm3 }
 0x7c9   : > { %6759 = vmatprep.mubr.msk.f32.mxu0 %vm3470_vm12, %v5823_v19 }
 0x7ca   : > { %v5506_v57 = vpop.permute.xlu1 %5505  ;;  %v5220_v54 = vpop.permute.xlu0 %5219 }
 0x7cb   : > { %v5824_v52 = vsel %vm15728_vm3, %v5792_v35, %v5506_v57  ;;  %vm15747_vm3 = vmmov %vm15730_vm4 }
 0x7cc   : > { %5343 = vrot.lane.b32.xlu1 %v12524_v63, %s15700_s25  ;;  %5249 = vrot.lane.b32.xlu0 %v15725_v8, %s15696_s14  ;;  %v5633_v63 = vsel %vm453_vm2, %v5601_v5, %v12991_v4  ;;  %v15733_v4 = vld [vmem:[#allocation20_spill] sm:$0xff] }
 0x7cd   : > { %6760 = vmatmul.mubr.msk.f32.vlgmr.msra.gmra.mrb[22].mxu0 %vm3470_vm12, %v5824_v52  ;;  %v5665_v36 = vsel %vm3248_vm6, %v5633_v63, %v13138_v10  ;;  %v5634_v10 = vsel %vm453_vm2, %v5602_v0, %v15733_v4  ;;  %v15743_v63 = vld [vmem:[#allocation73_spill] sm:$0xff] }
 0x7ce   : > { %v5316_v42 = vpop.permute.xlu1 %5315  ;;  %v5222_v44 = vpop.permute.xlu0 %5221  ;;  %v5697_v29 = vsel %vm3285_vm7, %v5665_v36, %v13264_v55  ;;  %v5666_v55 = vsel %vm3248_vm6, %v5634_v10, %v13136_v38  ;;  %v15744_v36 = vld [vmem:[#allocation74_spill] sm:$0xff]  ;;  %v15748_v10 = vld [vmem:[#allocation76_spill] sm:$0xff] }
 0x7cf   : > { %v5698_v19 = vsel %vm3285_vm7, %v5666_v55, %v13262_v16 }
 0x7d0   : > { %5439 = vrot.lane.b32.xlu1 %v15697_v60, %s15703_s26  ;;  %5345 = vrot.lane.b32.xlu0 %v12521_v34, %s15700_s25  ;;  %v5729_v60 = vsel %vm15730_vm4, %v5697_v29, %v5220_v54  ;;  %v15732_v34 = vld [vmem:[#allocation71_spill] sm:$0xff]  ;;  %v5730_v8 = vsel %vm15737_vm11, %v5698_v19, %v5222_v44  ;;  %v7015_v44 = vld [vmem:[#allocation3 + $0x30] sm:$0xff]  ;;  %vm15750_vm4 = vmmov %vm15734_vm8 }
 0x7d1   : > { %v5761_v45 = vsel %vm15734_vm8, %v5729_v60, %v5316_v42  ;;  %v15741_v54 = vld [vmem:[#allocation87_spill] sm:$0xff]  ;;  %v5603_v5 = vsel %vm880_vm5, %v7015_v44, %v15742_v50  ;;  %v7016_v60 = vld [vmem:[#allocation3 + $0x38] sm:$0xff]  ;;  %vm15751_vm8 = vmmov %vm15735_vm9 }
 0x7d2   : > { %v5412_v2 = vpop.permute.xlu1 %5411  ;;  %v5318_v61 = vpop.permute.xlu0 %5317  ;;  %vm15756_vm11 = vmmov %vm15750_vm4  ;;  %v15759_v44 = vld [vmem:[#allocation101_spill] sm:$0xff] }
 0x7d3   : > { %v5793_v49 = vsel %vm15735_vm9, %v5761_v45, %v5412_v2  ;;  %v5762_v41 = vsel %vm15738_vm13, %v5730_v8, %v5318_v61  ;;  %v15745_v2 = vld [vmem:[#allocation22_spill] sm:$0xff]  ;;  %v15749_v45 = vld [vmem:[#allocation21_spill] sm:$0xff]  ;;  %vm15752_vm9 = vmmov %vm15736_vm10 }
 0x7d4   : > { %5535 = vrot.lane.b32.xlu1 %v15731_v25, %s15706_s11  ;;  %5441 = vrot.lane.b32.xlu0 %v15732_v34, %s15703_s26  ;;  %v5635_v61 = vsel %vm453_vm2, %v5603_v5, %v15745_v2  ;;  %vm15757_vm13 = vmmov %vm15751_vm8  ;;  %v15760_v5 = vld [vmem:[#allocation89_spill] sm:$0xff] }
 0x7d5   : > { %v5667_v29 = vsel %vm3248_vm6, %v5635_v61, %v13146_v31 }
 0x7d6   : > { %v5508_v32 = vpop.permute.xlu1 %5507  ;;  %v5414_v20 = vpop.permute.xlu0 %5413  ;;  %v5699_v0 = vsel %vm3285_vm7, %v5667_v29, %v13272_v51 }
 0x7d7   : > { %v5825_v48 = vsel %vm15736_vm10, %v5793_v49, %v5508_v32  ;;  %v5794_v38 = vsel %vm15739_vm14, %v5762_v41, %v5414_v20  ;;  %vm15753_vm10 = vmmov %vm15747_vm3  ;;  %v15754_v41 = vld [vmem:[#allocation90_spill] sm:$0xff] }
 0x7d8   : > { %5251 = vrot.lane.b32.xlu1 %v15731_v25, %s15696_s14  ;;  %5157 = vrot.lane.b32.xlu0 %v15732_v34, %s15663_s24  ;;  %v15746_v25 = vld [vmem:[#allocation96_spill] sm:$0xff]  ;;  %vm15758_vm14 = vmmov %vm15752_vm9 }
 0x7d9   : > { %6762 = vmatprep.mubr.msk.f32.mxu0 %vm3470_vm12, %v5825_v48  ;;  %v5604_v34 = vsel %vm880_vm5, %v7016_v60, %v15746_v25 }
 0x7da   : > { %v5510_v35 = vpop.permute.xlu1 %5509  ;;  %v5224_v57 = vpop.permute.xlu0 %5223  ;;  %v5636_v31 = vsel %vm453_vm2, %v5604_v34, %v15749_v45  ;;  %v13472_v34 = vld [vmem:[#allocation3 + $0x128] sm:$0xff] }
 0x7db   : > { %v5826_v16 = vsel %vm15740_vm15, %v5794_v38, %v5510_v35  ;;  %v5731_v4 = vsel %vm15747_vm3, %v5699_v0, %v5224_v57  ;;  %v5668_v51 = vsel %vm3248_vm6, %v5636_v31, %v13144_v26  ;;  %v15755_v38 = vld [vmem:[#allocation75_spill] sm:$0xff]  ;;  %v15762_v0 = vld [vmem:[#allocation100_spill] sm:$0xff]  ;;  %vm15763_vm15 = vmmov %vm15747_vm3 }
 0x7dc   : > { %5253 = vrot.lane.b32.xlu1 %v15741_v54, %s15696_s14  ;;  %5537 = vrot.lane.b32.xlu0 %v15741_v54, %s15706_s11  ;;  %v5700_v19 = vsel %vm3285_vm7, %v5668_v51, %v13270_v53  ;;  %vm15765_vm3 = vmmov %vm15750_vm4 }
 0x7dd   : > { %6763 = vmatmul.mubr.msk.f32.gmra.mrb[24].mxu0 %vm3470_vm12, %v5826_v16 }
 0x7de   : > { %v5320_v52 = vpop.permute.xlu1 %5319  ;;  %v5226_v42 = vpop.permute.xlu0 %5225 }
 0x7df   : > { %v5763_v55 = vsel %vm15750_vm4, %v5731_v4, %v5320_v52  ;;  %v5732_v8 = vsel %vm15753_vm10, %v5700_v19, %v5226_v42  ;;  %v7017_v42 = vld [vmem:[#allocation3 + $0x48] sm:$0xff]  ;;  %v13476_v4 = vld [vmem:[#allocation3 + $0x120] sm:$0xff]  ;;  %vm15766_vm4 = vmmov %vm15751_vm8 }
 0x7e0   : > { %5349 = vrot.lane.b32.xlu1 %v15743_v63, %s15700_s25  ;;  %5347 = vrot.lane.b32.xlu0 %v15744_v36, %s15700_s25  ;;  %v5605_v50 = vsel %vm880_vm5, %v7017_v42, %v15759_v44  ;;  %v15761_v63 = vld [vmem:[#allocation26_spill] sm:$0xff] }
 0x7e1   : > { %v5637_v36 = vsel %vm453_vm2, %v5605_v50, %v15761_v63  ;;  %v15769_v19 = vld [vmem:[#allocation78_spill] sm:$0xff] }
 0x7e2   : > { %v5416_v24 = vpop.permute.xlu1 %5415  ;;  %v5322_v62 = vpop.permute.xlu0 %5321  ;;  %v5669_v2 = vsel %vm3248_vm6, %v5637_v36, %v13154_v47  ;;  %v15764_v47 = vld [vmem:[#allocation25_spill] sm:$0xff]  ;;  %v7022_v36 = vld [vmem:[#allocation3 + $0x68] sm:$0xff] }
 0x7e3   : > { %v5795_v49 = vsel %vm15751_vm8, %v5763_v55, %v5416_v24  ;;  %v5764_v35 = vsel %vm15756_vm11, %v5732_v8, %v5322_v62  ;;  %v5701_v24 = vsel %vm3285_vm7, %v5669_v2, %v13280_v56  ;;  %v7018_v62 = vld [vmem:[#allocation3 + $0x50] sm:$0xff]  ;;  %vm15767_vm8 = vmmov %vm15752_vm9  ;;  %v15777_v2 = vld [vmem:[#allocation102_spill] sm:$0xff] }
 0x7e4   : > { %5159 = vrot.lane.b32.xlu1 %v15748_v10, %s15663_s24  ;;  %5443 = vrot.lane.b32.xlu0 %v15748_v10, %s15703_s26  ;;  %v5606_v60 = vsel %vm880_vm5, %v7018_v62, %v15762_v0  ;;  %vm15771_vm11 = vmmov %vm15766_vm4  ;;  %v15780_v62 = vld [vmem:[#allocation27_spill] sm:$0xff] }
 0x7e5   : > { %v5638_v10 = vsel %vm453_vm2, %v5606_v60, %v15764_v47 }
 0x7e6   : > { %v5512_v32 = vpop.permute.xlu1 %5511  ;;  %v5418_v20 = vpop.permute.xlu0 %5417  ;;  %v5670_v45 = vsel %vm3248_vm6, %v5638_v10, %v13152_v3 }
 0x7e7   : > { %v5827_v48 = vsel %vm15752_vm9, %v5795_v49, %v5512_v32  ;;  %v5796_v26 = vsel %vm15757_vm13, %v5764_v35, %v5418_v20  ;;  %v5702_v49 = vsel %vm3285_vm7, %v5670_v45, %v13278_v11  ;;  %vm15768_vm9 = vmmov %vm15753_vm10  ;;  %v15774_v35 = vld [vmem:[#allocation77_spill] sm:$0xff] }
 0x7e8   : > { %5539 = vrot.lane.b32.xlu1 %v15754_v41, %s15706_s11  ;;  %5445 = vrot.lane.b32.xlu0 %v15755_v38, %s15703_s26  ;;  %vm15770_vm10 = vmmov %vm15765_vm3 }
 0x7e9   : > { %6765 = vmatprep.mubr.msk.f32.mxu0 %vm3470_vm12, %v5827_v48  ;;  %vm15772_vm13 = vmmov %vm15767_vm8 }
 0x7ea   : > { %v5514_v57 = vpop.permute.xlu1 %5513  ;;  %v5228_v16 = vpop.permute.xlu0 %5227 }
 0x7eb   : > { %v5828_v53 = vsel %vm15758_vm14, %v5796_v26, %v5514_v57  ;;  %v5733_v25 = vsel %vm15763_vm15, %v5701_v24, %v5228_v16  ;;  %v7021_v16 = vld [vmem:[#allocation3 + $0x60] sm:$0xff]  ;;  %vm15778_vm14 = vmmov %vm15768_vm9  ;;  %v15779_v24 = vld [vmem:[#allocation321_spill] sm:$0xff] }
 0x7ec   : > { %5255 = vrot.lane.b32.xlu1 %v15754_v41, %s15696_s14  ;;  %5161 = vrot.lane.b32.xlu0 %v15755_v38, %s15663_s24  ;;  %v15773_v38 = vld [vmem:[#allocation91_spill] sm:$0xff]  ;;  %vm15781_vm15 = vmmov %vm15765_vm3 }
 0x7ed   : > { %6766 = vmatmul.mubr.msk.f32.gmra.mrb[26].mxu0 %vm3470_vm12, %v5828_v53  ;;  %v15775_v53 = vld [vmem:[#allocation103_spill] sm:$0xff] }
 0x7ee   : > { %v5324_v54 = vpop.permute.xlu1 %5323  ;;  %v5230_v52 = vpop.permute.xlu0 %5229 }
 0x7ef   : > { %v5765_v56 = vsel %vm15765_vm3, %v5733_v25, %v5324_v54  ;;  %v5734_v20 = vsel %vm15768_vm9, %v5702_v49, %v5230_v52  ;;  %v5607_v54 = vsel %vm880_vm5, %v7021_v16, %v15775_v53  ;;  %v15776_v52 = vld [vmem:[#allocation28_spill] sm:$0xff]  ;;  %vm15782_vm3 = vmmov %vm15766_vm4 }
 0x7f0   : > { %5257 = vrot.lane.b32.xlu1 %v15760_v5, %s15696_s14  ;;  %5541 = vrot.lane.b32.xlu0 %v15760_v5, %s15706_s11  ;;  %v5639_v42 = vsel %vm453_vm2, %v5607_v54, %v15776_v52  ;;  %v7026_v52 = vld [vmem:[#allocation3 + $0x80] sm:$0xff] }
 0x7f1   : > { %v5671_v44 = vsel %vm3248_vm6, %v5639_v42, %v13162_v17  ;;  %v15793_v42 = vld [vmem:[#allocation104_spill] sm:$0xff] }
 0x7f2   : > { %v5420_v61 = vpop.permute.xlu1 %5419  ;;  %v5326_v29 = vpop.permute.xlu0 %5325  ;;  %v5703_v63 = vsel %vm3285_vm7, %v5671_v44, %v13288_v33  ;;  %v5610_v44 = vsel %vm880_vm5, %v7026_v52, %v15793_v42 }
 0x7f3   : > { %v5797_v31 = vsel %vm15766_vm4, %v5765_v56, %v5420_v61  ;;  %v5766_v48 = vsel %vm15770_vm10, %v5734_v20, %v5326_v29  ;;  %v5608_v61 = vsel %vm880_vm5, %v7022_v36, %v15777_v2  ;;  %vm15783_vm4 = vmmov %vm15767_vm8  ;;  %v15788_v20 = vld [vmem:[#allocation318_spill] sm:$0xff] }
 0x7f4   : > { %5353 = vrot.lane.b32.xlu1 %v13472_v34, %s15700_s25  ;;  %5351 = vrot.lane.b32.xlu0 %v13476_v4, %s15700_s25  ;;  %v5640_v17 = vsel %vm453_vm2, %v5608_v61, %v15780_v62 }
 0x7f5   : > { %v5672_v33 = vsel %vm3248_vm6, %v5640_v17, %v13160_v39  ;;  %v15800_v17 = vld [vmem:[#allocation92_spill] sm:$0xff] }
 0x7f6   : > { %v5516_v55 = vpop.permute.xlu1 %5515  ;;  %v5422_v51 = vpop.permute.xlu0 %5421  ;;  %v5704_v10 = vsel %vm3285_vm7, %v5672_v33, %v13286_v30 }
 0x7f7   : > { %v5829_v32 = vsel %vm15767_vm8, %v5797_v31, %v5516_v55  ;;  %v5798_v3 = vsel %vm15771_vm11, %v5766_v48, %v5422_v51  ;;  %vm15784_vm8 = vmmov %vm15768_vm9  ;;  %v13532_v31 = vld [vmem:[#allocation3 + $0x140] sm:$0xff]  ;;  %v13536_v55 = vld [vmem:[#allocation3 + $0x138] sm:$0xff] }
 0x7f8   : > { %5163 = vrot.lane.b32.xlu1 %v15769_v19, %s15663_s24  ;;  %5447 = vrot.lane.b32.xlu0 %v15769_v19, %s15703_s26  ;;  %vm15785_vm9 = vmmov %vm15770_vm10 }
 0x7f9   : > { %6768 = vmatprep.mubr.msk.f32.mxu0 %vm3470_vm12, %v5829_v32  ;;  %vm15786_vm10 = vmmov %vm15782_vm3 }
 0x7fa   : > { %v5518_v8 = vpop.permute.xlu1 %5517  ;;  %v5232_v41 = vpop.permute.xlu0 %5231  ;;  %vm15787_vm11 = vmmov %vm15783_vm4 }
 0x7fb   : > { %v5830_v11 = vsel %vm15772_vm13, %v5798_v3, %v5518_v8  ;;  %v5735_v29 = vsel %vm15778_vm14, %v5703_v63, %v5232_v41  ;;  %v7025_v3 = vld [vmem:[#allocation3 + $0x78] sm:$0xff]  ;;  %v15789_v8 = vld [vmem:[#allocation325_spill] sm:$0xff]  ;;  %vm15794_vm13 = vmmov %vm15784_vm8 }
 0x7fc   : > { %5543 = vrot.lane.b32.xlu1 %v15773_v38, %s15706_s11  ;;  %5449 = vrot.lane.b32.xlu0 %v15774_v35, %s15703_s26  ;;  %v5609_v41 = vsel %vm880_vm5, %v7025_v3, %v15789_v8  ;;  %vm15796_vm14 = vmmov %vm15785_vm9  ;;  %v7030_v8 = vld [vmem:[#allocation3 + $0x98] sm:$0xff] }
 0x7fd   : > { %6769 = vmatmul.mubr.msk.f32.gmra.mrb[28].mxu0 %vm3470_vm12, %v5830_v11  ;;  %v15790_v11 = vld [vmem:[#allocation93_spill] sm:$0xff] }
 0x7fe   : > { %v5328_v26 = vpop.permute.xlu1 %5327  ;;  %v5234_v57 = vpop.permute.xlu0 %5233 }
 0x7ff   : > { %v5767_v0 = vsel %vm15781_vm15, %v5735_v29, %v5328_v26  ;;  %v5736_v45 = vsel %vm15784_vm8, %v5704_v10, %v5234_v57  ;;  %vm15797_vm15 = vmmov %vm15782_vm3 }
 0x800   : > { %5259 = vrot.lane.b32.xlu1 %v15773_v38, %s15696_s14  ;;  %5165 = vrot.lane.b32.xlu0 %v15774_v35, %s15663_s24  ;;  %v15791_v38 = vld [vmem:[#allocation79_spill] sm:$0xff]  ;;  %v15792_v35 = vld [vmem:[#allocation30_spill] sm:$0xff] }
 0x801   : > { %v5641_v26 = vsel %vm453_vm2, %v5609_v41, %v15792_v35  ;;  %v15807_v41 = vld [vmem:[#allocation105_spill] sm:$0xff]  ;;  %v15809_v35 = vld [vmem:[#allocation95_spill] sm:$0xff] }
 0x802   : > { %v5424_v50 = vpop.permute.xlu1 %5423  ;;  %v5330_v5 = vpop.permute.xlu0 %5329  ;;  %v5673_v57 = vsel %vm3248_vm6, %v5641_v26, %v13170_v15  ;;  %v15810_v26 = vld [vmem:[#allocation80_spill] sm:$0xff] }
 0x803   : > { %v5799_v60 = vsel %vm15782_vm3, %v5767_v0, %v5424_v50  ;;  %v5768_v39 = vsel %vm15785_vm9, %v5736_v45, %v5330_v5  ;;  %v5705_v54 = vsel %vm3285_vm7, %v5673_v57, %v13296_v18  ;;  %v15795_v5 = vld [vmem:[#allocation29_spill] sm:$0xff]  ;;  %vm15798_vm3 = vmmov %vm15783_vm4  ;;  %v15811_v57 = vld [vmem:[#allocation335_spill] sm:$0xff] }
 0x804   : > { %5261 = vrot.lane.b32.xlu1 %v15779_v24, %s15696_s14  ;;  %5545 = vrot.lane.b32.xlu0 %v15779_v24, %s15706_s11  ;;  %v5642_v15 = vsel %vm453_vm2, %v5610_v44, %v15795_v5  ;;  %v7029_v45 = vld [vmem:[#allocation3 + $0x90] sm:$0xff] }
 0x805   : > { %v5674_v18 = vsel %vm3248_vm6, %v5642_v15, %v13168_v22 }
 0x806   : > { %v5520_v25 = vpop.permute.xlu1 %5519  ;;  %v5426_v47 = vpop.permute.xlu0 %5425  ;;  %v5706_v29 = vsel %vm3285_vm7, %v5674_v18, %v13294_v28  ;;  %v15819_v18 = vld [vmem:[#allocation94_spill] sm:$0xff] }
 0x807   : > { %v5831_v56 = vsel %vm15783_vm4, %v5799_v60, %v5520_v25  ;;  %v5800_v30 = vsel %vm15786_vm10, %v5768_v39, %v5426_v47  ;;  %vm15799_vm4 = vmmov %vm15784_vm8  ;;  %v13586_v25 = vld [vmem:[#allocation3 + $0x158] sm:$0xff]  ;;  %v13590_v47 = vld [vmem:[#allocation3 + $0x150] sm:$0xff] }
 0x808   : > { %5357 = vrot.lane.b32.xlu1 %v13532_v31, %s15700_s25  ;;  %5355 = vrot.lane.b32.xlu0 %v13536_v55, %s15700_s25  ;;  %vm15801_vm8 = vmmov %vm15785_vm9  ;;  %v15804_v39 = vld [vmem:[#allocation106_spill] sm:$0xff] }
 0x809   : > { %6771 = vmatprep.mubr.msk.f32.mxu0 %vm3470_vm12, %v5831_v56  ;;  %vm15802_vm9 = vmmov %vm15786_vm10 }
 0x80a   : > { %v5522_v51 = vpop.permute.xlu1 %5521  ;;  %v5236_v49 = vpop.permute.xlu0 %5235  ;;  %vm15803_vm10 = vmmov %vm15798_vm3 }
 0x80b   : > { %v5832_v32 = vsel %vm15787_vm11, %v5800_v30, %v5522_v51  ;;  %v5737_v50 = vsel %vm15794_vm13, %v5705_v54, %v5236_v49  ;;  %v5611_v30 = vsel %vm880_vm5, %v7029_v45, %v15804_v39  ;;  %v15805_v51 = vld [vmem:[#allocation81_spill] sm:$0xff]  ;;  %v15806_v49 = vld [vmem:[#allocation31_spill] sm:$0xff]  ;;  %vm15808_vm11 = vmmov %vm15799_vm4 }
 0x80c   : > { %5167 = vrot.lane.b32.xlu1 %v15788_v20, %s15663_s24  ;;  %5451 = vrot.lane.b32.xlu0 %v15788_v20, %s15703_s26  ;;  %vm15812_vm13 = vmmov %vm15801_vm8  ;;  %v15822_v45 = vld [vmem:[#allocation107_spill] sm:$0xff] }
 0x80d   : > { %6772 = vmatmul.mubr.msk.f32.gmra.mrb[30].mxu0 %vm3470_vm12, %v5832_v32  ;;  %v5643_v32 = vsel %vm453_vm2, %v5611_v30, %v15806_v49  ;;  %v15825_v49 = vld [vmem:[#allocation32_spill] sm:$0xff] }
 0x80e   : > { %v5332_v19 = vpop.permute.xlu1 %5331  ;;  %v5238_v48 = vpop.permute.xlu0 %5237  ;;  %v5675_v20 = vsel %vm3248_vm6, %v5643_v32, %v13178_v46 }
 0x80f   : > { %v5769_v63 = vsel %vm15796_vm14, %v5737_v50, %v5332_v19  ;;  %v5738_v62 = vsel %vm15799_vm4, %v5706_v29, %v5238_v48  ;;  %v5707_v3 = vsel %vm3285_vm7, %v5675_v20, %v13304_v37  ;;  %vm15813_vm14 = vmmov %vm15802_vm9  ;;  %v15820_v29 = vld [vmem:[#allocation326_spill] sm:$0xff] }
 0x810   : > { %5547 = vrot.lane.b32.xlu1 %v15790_v11, %s15706_s11  ;;  %5453 = vrot.lane.b32.xlu0 %v15791_v38, %s15703_s26 }
 0x812   : > { %v5428_v16 = vpop.permute.xlu1 %5427  ;;  %v5334_v53 = vpop.permute.xlu0 %5333 }
 0x813   : > { %v5801_v36 = vsel %vm15797_vm15, %v5769_v63, %v5428_v16  ;;  %v5770_v0 = vsel %vm15801_vm8, %v5738_v62, %v5334_v53  ;;  %vm15814_vm15 = vmmov %vm15798_vm3  ;;  %v13639_v62 = vld [vmem:[#allocation3 + $0x170] sm:$0xff] }
 0x814   : > { %5263 = vrot.lane.b32.xlu1 %v15790_v11, %s15696_s14  ;;  %5169 = vrot.lane.b32.xlu0 %v15791_v38, %s15663_s24  ;;  %v5612_v11 = vsel %vm880_vm5, %v7030_v8, %v15807_v41 }
 0x815   : > { %v5644_v46 = vsel %vm453_vm2, %v5612_v11, %v15811_v57  ;;  %v15830_v11 = vld [vmem:[#allocation99_spill] sm:$0xff] }
 0x816   : > { %v5524_v2 = vpop.permute.xlu1 %5523  ;;  %v5430_v61 = vpop.permute.xlu0 %5429  ;;  %v5676_v37 = vsel %vm3248_vm6, %v5644_v46, %v13176_v40 }
 0x817   : > { %v5833_v24 = vsel %vm15798_vm3, %v5801_v36, %v5524_v2  ;;  %v5802_v22 = vsel %vm15802_vm9, %v5770_v0, %v5430_v61  ;;  %v5708_v42 = vsel %vm3285_vm7, %v5676_v37, %v13302_v12  ;;  %vm15815_vm3 = vmmov %vm15799_vm4  ;;  %v7031_v61 = vld [vmem:[#allocation3 + $0xa8] sm:$0xff]  ;;  %v15821_v0 = vld [vmem:[#allocation33_spill] sm:$0xff] }
 0x818   : > { %5265 = vrot.lane.b32.xlu1 %v15800_v17, %s15696_s14  ;;  %5549 = vrot.lane.b32.xlu0 %v15800_v17, %s15706_s11  ;;  %vm15816_vm4 = vmmov %vm15801_vm8  ;;  %v13643_v17 = vld [vmem:[#allocation3 + $0x168] sm:$0xff]  ;;  %v7035_v37 = vld [vmem:[#allocation3 + $0xc0] sm:$0xff] }
 0x819   : > { %6774 = vmatprep.mubr.msk.f32.mxu0 %vm3470_vm12, %v5833_v24  ;;  %vm15817_vm8 = vmmov %vm15802_vm9  ;;  %v5613_v24 = vsel %vm880_vm5, %v7031_v61, %v15820_v29 }
 0x81a   : > { %v5526_v33 = vpop.permute.xlu1 %5525  ;;  %v5240_v60 = vpop.permute.xlu0 %5239  ;;  %vm15818_vm9 = vmmov %vm15803_vm10 }
 0x81b   : > { %v5834_v28 = vsel %vm15803_vm10, %v5802_v22, %v5526_v33  ;;  %v5739_v38 = vsel %vm15808_vm11, %v5707_v3, %v5240_v60  ;;  %v5645_v22 = vsel %vm453_vm2, %v5613_v24, %v15821_v0  ;;  %vm15823_vm10 = vmmov %vm15815_vm3 }
 0x81c   : > { %5361 = vrot.lane.b32.xlu1 %v13586_v25, %s15700_s25  ;;  %5359 = vrot.lane.b32.xlu0 %v13590_v47, %s15700_s25  ;;  %v5677_v33 = vsel %vm3248_vm6, %v5645_v22, %v13186_v14  ;;  %vm15826_vm11 = vmmov %vm15816_vm4 }
 0x81d   : > { %6775 = vmatmul.mubr.msk.f32.gmra.mrb[32].mxu0 %vm3470_vm12, %v5834_v28 }
 0x81e   : > { %v5336_v10 = vpop.permute.xlu1 %5335  ;;  %v5242_v56 = vpop.permute.xlu0 %5241 }
 0x81f   : > { %v5771_v16 = vsel %vm15812_vm13, %v5739_v38, %v5336_v10  ;;  %v5740_v50 = vsel %vm15815_vm3, %v5708_v42, %v5242_v56  ;;  %v5709_v10 = vsel %vm3285_vm7, %v5677_v33, %v13312_v1  ;;  %v7034_v56 = vld [vmem:[#allocation3 + $0xb0] sm:$0xff]  ;;  %vm15827_vm13 = vmmov %vm15817_vm8  ;;  %v15831_v38 = vld [vmem:[#allocation82_spill] sm:$0xff] }
 0x820   : > { %5171 = vrot.lane.b32.xlu1 %v15805_v51, %s15663_s24  ;;  %5455 = vrot.lane.b32.xlu0 %v15805_v51, %s15703_s26  ;;  %v5614_v39 = vsel %vm880_vm5, %v7034_v56, %v15822_v45  ;;  %v15824_v51 = vld [vmem:[#allocation83_spill] sm:$0xff]  ;;  %v15837_v42 = vld [vmem:[#allocation34_spill] sm:$0xff]  ;;  %v15844_v56 = vld [vmem:[#allocation108_spill] sm:$0xff] }
 0x821   : > { %v5646_v14 = vsel %vm453_vm2, %v5614_v39, %v15825_v49  ;;  %v15845_v39 = vld [vmem:[#allocation336_spill] sm:$0xff] }
 0x822   : > { %v5432_v19 = vpop.permute.xlu1 %5431  ;;  %v5338_v48 = vpop.permute.xlu0 %5337  ;;  %v5678_v1 = vsel %vm3248_vm6, %v5646_v14, %v13184_v7 }
 0x823   : > { %v5803_v53 = vsel %vm15813_vm14, %v5771_v16, %v5432_v19  ;;  %v5772_v5 = vsel %vm15816_vm4, %v5740_v50, %v5338_v48  ;;  %v5710_v3 = vsel %vm3285_vm7, %v5678_v1, %v13310_v21  ;;  %vm15828_vm14 = vmmov %vm15818_vm9 }
 0x824   : > { %5551 = vrot.lane.b32.xlu1 %v15809_v35, %s15706_s11  ;;  %5457 = vrot.lane.b32.xlu0 %v15810_v26, %s15703_s26 }
 0x826   : > { %v5528_v54 = vpop.permute.xlu1 %5527  ;;  %v5434_v52 = vpop.permute.xlu0 %5433 }
 0x827   : > { %v5835_v44 = vsel %vm15814_vm15, %v5803_v53, %v5528_v54  ;;  %v5804_v40 = vsel %vm15817_vm8, %v5772_v5, %v5434_v52  ;;  %vm15829_vm15 = vmmov %vm15815_vm3  ;;  %v15835_v53 = vld [vmem:[#allocation8_spill] sm:$0xff]  ;;  %v15836_v52 = vld [vmem:[#allocation98_spill] sm:$0xff] }
 0x828   : > { %5267 = vrot.lane.b32.xlu1 %v15809_v35, %s15696_s14  ;;  %5173 = vrot.lane.b32.xlu0 %v15810_v26, %s15663_s24  ;;  %vm15832_vm3 = vmmov %vm15816_vm4  ;;  %v5615_v54 = vsel %vm880_vm5, %v7035_v37, %v15835_v53  ;;  %v15851_v37 = vld [vmem:[#allocation36_spill] sm:$0xff] }
 0x829   : > { %6777 = vmatprep.mubr.msk.f32.mxu0 %vm3470_vm12, %v5835_v44  ;;  %vm15833_vm4 = vmmov %vm15817_vm8  ;;  %v5647_v44 = vsel %vm453_vm2, %v5615_v54, %v15837_v42 }
 0x82a   : > { %v5530_v15 = vpop.permute.xlu1 %5529  ;;  %v5244_v63 = vpop.permute.xlu0 %5243  ;;  %vm15834_vm8 = vmmov %vm15818_vm9  ;;  %v5679_v50 = vsel %vm3248_vm6, %v5647_v44, %v13194_v58 }
 0x82b   : > { %v5836_v12 = vsel %vm15818_vm9, %v5804_v40, %v5530_v15  ;;  %v5741_v30 = vsel %vm15823_vm10, %v5709_v10, %v5244_v63  ;;  %v15838_v15 = vld [vmem:[#allocation23_spill] sm:$0xff]  ;;  %vm15840_vm9 = vmmov %vm15823_vm10  ;;  %v7036_v10 = vld [vmem:[#allocation3 + $0xc8] sm:$0xff] }
 0x82c   : > { %5269 = vrot.lane.b32.xlu1 %v15819_v18, %s15696_s14  ;;  %5553 = vrot.lane.b32.xlu0 %v15819_v18, %s15706_s11  ;;  %v4809_v63 = vrot.slane %v15838_v15, 1  ;;  %vm15841_vm10 = vmmov %vm15832_vm3  ;;  %v4814_v33 = vrot.slane %v15838_v15, 2  ;;  %v5616_v45 = vsel %vm880_vm5, %v7036_v10, %v15844_v56 }
 0x82d   : > { %6778 = vmatmul.mubr.msk.f32.gmra.mrb[34].mxu0 %vm3470_vm12, %v5836_v12  ;;  %v15839_v12 = vld [vmem:[#allocation24_spill] sm:$0xff] }
 0x82e   : > { %v5340_v36 = vpop.permute.xlu1 %5339  ;;  %v5246_v2 = vpop.permute.xlu0 %5245  ;;  %v4808_v18 = vrot.slane %v15839_v12, 1 }
 0x82f   : > { %v5773_v32 = vsel %vm15826_vm11, %v5741_v30, %v5340_v36  ;;  %v5742_v41 = vsel %vm15829_vm15, %v5710_v3, %v5246_v2  ;;  %v5711_v36 = vsel %vm3285_vm7, %v5679_v50, %v13320_v6  ;;  %v4593_v2 = vld [vmem:[#allocation3 + $0x190] sm:$0x3]  ;;  %vm15842_vm11 = vmmov %vm15833_vm4  ;;  %v4813_v6 = vrot.slane %v15839_v12, 2 }
 0x830   : > { %5365 = vrot.lane.b32.xlu1 %v13639_v62, %s15700_s25  ;;  %5363 = vrot.lane.b32.xlu0 %v13643_v17, %s15700_s25  ;;  %v4811_v22 = vrot.slane %v4593_v2, 1  ;;  %v5648_v30 = vsel %vm453_vm2, %v5616_v45, %v15845_v39  ;;  %vm15847_vm15 = vmmov %vm15832_vm3 }
 0x831   : > { %v4815_v1 = vsel %vm1143_vm1, %v4813_v6, %v4814_v33 }
 0x832   : > { %v5436_v60 = vpop.permute.xlu1 %5435  ;;  %v5342_v28 = vpop.permute.xlu0 %5341 }
 0x833   : > { %v5805_v20 = vsel %vm15827_vm13, %v5773_v32, %v5436_v60  ;;  %v5774_v35 = vsel %vm15832_vm3, %v5742_v41, %v5342_v28  ;;  %vm15843_vm13 = vmmov %vm15834_vm8  ;;  %v4810_v28 = vsel %vm1052_vm0, %v4808_v18, %v4809_v63 }
 0x834   : > { %5175 = vrot.lane.b32.xlu1 %v15824_v51, %s15663_s24  ;;  %5459 = vrot.lane.b32.xlu0 %v15824_v51, %s15703_s26  ;;  %v5680_v51 = vsel %vm3248_vm6, %v5648_v30, %v13192_v43  ;;  %vm15848_vm3 = vmmov %vm15833_vm4 }
 0x835   : > { %v5712_v32 = vsel %vm3285_vm7, %v5680_v51, %v13318_v27 }
 0x836   : > { %v5532_v19 = vpop.permute.xlu1 %5531  ;;  %v5438_v48 = vpop.permute.xlu0 %5437 }
 0x837   : > { %v5837_v8 = vsel %vm15828_vm14, %v5805_v20, %v5532_v19  ;;  %v5806_v7 = vsel %vm15833_vm4, %v5774_v35, %v5438_v48  ;;  %v4812_v20 = vsel %vm1052_vm0, %v4809_v63, %v4811_v22  ;;  %vm15846_vm14 = vmmov %vm15840_vm9  ;;  %v4595_v35 = vld [vmem:[#allocation3 + $0x1a0] sm:$0xff] }
 0x838   : > { %5555 = vrot.lane.b32.xlu1 %v15830_v11, %s15706_s11  ;;  %5461 = vrot.lane.b32.xlu0 %v15831_v38, %s15703_s26  ;;  %vm15849_vm4 = vmmov %vm15834_vm8  ;;  %v4822_v54 = vrot.slane %v4595_v35, 1  ;;  %v4827_v63 = vrot.slane %v4595_v35, 2 }
 0x839   : > { %6780 = vmatprep.mubr.msk.f32.mxu0 %vm3470_vm12, %v5837_v8 }
 0x83a   : > { %v5534_v26 = vpop.permute.xlu1 %5533  ;;  %v5248_v57 = vpop.permute.xlu0 %5247 }
 0x83b   : > { %v5838_v21 = vsel %vm15834_vm8, %v5806_v7, %v5534_v26  ;;  %v5743_v61 = vsel %vm15840_vm9, %v5711_v36, %v5248_v57  ;;  %v4594_v7 = vld [vmem:[#allocation3 + $0x198] sm:$0xff]  ;;  %v4596_v26 = vld [vmem:[#allocation3 + $0x1a8] sm:$0x3]  ;;  %vm15852_vm8 = vmmov %vm15840_vm9 }
 0x83c   : > { %5271 = vrot.lane.b32.xlu1 %v15830_v11, %s15696_s14  ;;  %5177 = vrot.lane.b32.xlu0 %v15831_v38, %s15663_s24  ;;  %v4816_v11 = vrot.slane %v4593_v2, 2  ;;  %v4824_v42 = vrot.slane %v4596_v26, 1  ;;  %vm15853_vm9 = vmmov %vm15841_vm10 }
 0x83d   : > { %6781 = vmatmul.mubr.msk.f32.gmra.mrb[36].mxu0 %vm3470_vm12, %v5838_v21  ;;  %v7037_v21 = vld [vmem:[#allocation3 + $0xd8] sm:$0xff] }
 0x83e   : > { %v5344_v46 = vpop.permute.xlu1 %5343  ;;  %v5250_v16 = vpop.permute.xlu0 %5249  ;;  %v4817_v57 = vsel %vm1143_vm1, %v4814_v33, %v4816_v11  ;;  %v4825_v36 = vsel %vm1052_vm0, %v4822_v54, %v4824_v42  ;;  %v15857_v33 = vld [vmem:[#allocation35_spill] sm:$0xff] }
 0x83f   : > { %v5775_v58 = vsel %vm15841_vm10, %v5743_v61, %v5344_v46  ;;  %v5744_v19 = vsel %vm15846_vm14, %v5712_v32, %v5250_v16  ;;  %v15850_v46 = vld [vmem:[#allocation9_spill] sm:$0xff]  ;;  %vm15854_vm10 = vmmov %vm15848_vm3 }
 0x840   : > { %5273 = vrot.lane.b32.xlu1 %v15836_v52, %s15696_s14  ;;  %5557 = vrot.lane.b32.xlu0 %v15836_v52, %s15706_s11  ;;  %v5617_v16 = vsel %vm880_vm5, %v7037_v21, %v15850_v46  ;;  %v4821_v52 = vrot.slane %v4594_v7, 1  ;;  %vm15860_vm14 = vmmov %vm15848_vm3 }
 0x841   : > { %v5649_v53 = vsel %vm453_vm2, %v5617_v16, %v15851_v37  ;;  %v7040_v16 = vld [vmem:[#allocation3 + $0xf8] sm:$0xff] }
 0x842   : > { %v5440_v5 = vpop.permute.xlu1 %5439  ;;  %v5346_v40 = vpop.permute.xlu0 %5345  ;;  %v5681_v44 = vsel %vm3248_vm6, %v5649_v53, %v13202_v23  ;;  %v4823_v2 = vsel %vm1052_vm0, %v4821_v52, %v4822_v54  ;;  %v4829_v23 = vrot.slane %v4596_v26, 2  ;;  %vm15858_vm0 = vmmov %vm15852_vm8  ;;  %v15868_v37 = vld [vmem:[#allocation10_spill] sm:$0xff]  ;;  %v15870_v52 = vld [vmem:[#allocation341_spill] sm:$0xff] }
 0x843   : > { %v5807_v29 = vsel %vm15842_vm11, %v5775_v58, %v5440_v5  ;;  %v5776_v48 = vsel %vm15847_vm15, %v5744_v19, %v5346_v40  ;;  %v5713_v40 = vsel %vm3285_vm7, %v5681_v44, %v13326_v13  ;;  %vm15855_vm11 = vmmov %vm15849_vm4  ;;  %v5620_v53 = vsel %vm880_vm5, %v7040_v16, %v15868_v37  ;;  %v15890_v16 = vld [vmem:[#allocation113_spill] sm:$0xff] }
 0x844   : > { %5369 = vrot.lane.b32.xlu1 %v15838_v15, %s15700_s25  ;;  %5367 = vrot.lane.b32.xlu0 %v15839_v12, %s15700_s25  ;;  %v4826_v12 = vrot.slane %v4594_v7, 2  ;;  %vm15864_vm15 = vmmov %vm15858_vm0 }
 0x846   : > { %v5536_v24 = vpop.permute.xlu1 %5535  ;;  %v5442_v0 = vpop.permute.xlu0 %5441 }
 0x847   : > { %v5839_v60 = vsel %vm15843_vm13, %v5807_v29, %v5536_v24  ;;  %v5808_v3 = vsel %vm15848_vm3, %v5776_v48, %v5442_v0  ;;  %v7038_v24 = vld [vmem:[#allocation3 + $0xe0] sm:$0xff]  ;;  %vm15859_vm13 = vmmov %vm15853_vm9  ;;  %v7039_v48 = vld [vmem:[#allocation3 + $0xf0] sm:$0xff] }
 0x848   : > { %5179 = vrot.lane.b32.xlu1 %v4810_v28, %s15663_s24  ;;  %5463 = vrot.lane.b32.xlu0 %v4810_v28, %s15703_s26  ;;  %v15856_v0 = vld [vmem:[#allocation7_spill] sm:$0xff]  ;;  %v4828_v28 = vsel %vm1143_vm1, %v4826_v12, %v4827_v63  ;;  %vm15865_vm3 = vmmov %vm15853_vm9 }
 0x849   : > { %6783 = vmatprep.mubr.msk.f32.mxu0 %vm3470_vm12, %v5839_v60  ;;  %v5618_v22 = vsel %vm880_vm5, %v7038_v24, %v15856_v0  ;;  %v4830_v60 = vsel %vm1143_vm1, %v4827_v63, %v4829_v23  ;;  %vm15861_vm1 = vmmov %vm15849_vm4  ;;  %v7140_v23 = vmov 0   ;;  %v15876_v0 = vld [vmem:[#allocation111_spill] sm:$0xff] }
 0x84a   : > { %v5252_v49 = vpop.permute.xlu1 %5251  ;;  %v5158_v14 = vpop.permute.xlu0 %5157  ;;  %v5650_v6 = vsel %vm453_vm2, %v5618_v22, %v15857_v33  ;;  %6908 = vset.pattern.permute.xlu1 %v7140_v23  ;;  %v15877_v33 = vld [vmem:[#allocation40_spill] sm:$0xff] }
 0x84b   : > { %v5745_v15 = vsel %vm15852_vm8, %v5713_v40, %v5252_v49  ;;  %v5682_v10 = vsel %vm3248_vm6, %v5650_v6, %v13200_v9  ;;  %vm15867_vm8 = vmmov %vm15861_vm1 }
 0x84c   : > { %5559 = vrot.lane.b32.xlu1 %v4815_v1, %s15706_s11  ;;  %5465 = vrot.lane.b32.xlu0 %v4812_v20, %s15703_s26  ;;  %v5714_v39 = vsel %vm3285_vm7, %v5682_v10, %v5158_v14  ;;  %v15862_v14 = vld [vmem:[#allocation11_spill] sm:$0xff] }
 0x84e   : > { %v5254_v43 = vpop.permute.xlu1 %5253  ;;  %v5538_v8 = vpop.permute.xlu0 %5537 }
 0x84f   : > { %v5840_v41 = vsel %vm15849_vm4, %v5808_v3, %v5538_v8  ;;  %v5746_v30 = vsel %vm15858_vm0, %v5714_v39, %v5254_v43  ;;  %v5619_v3 = vsel %vm880_vm5, %v7039_v48, %v15862_v14  ;;  %v15863_v43 = vld [vmem:[#allocation110_spill] sm:$0xff]  ;;  %vm15866_vm4 = vmmov %vm15854_vm10 }
 0x850   : > { %5275 = vrot.lane.b32.xlu1 %v4815_v1, %s15696_s14  ;;  %5181 = vrot.lane.b32.xlu0 %v4812_v20, %s15663_s24  ;;  %v5651_v8 = vsel %vm453_vm2, %v5619_v3, %v15863_v43  ;;  %v15884_v48 = vld [vmem:[#allocation118_spill] sm:$0xff]  ;;  %s7047_s24 = sshll.u32 %s7141_s30, 4  ;;  %s7048_s24 = int_to_ptr.vmem [resolvable:$false] %s7047_s24 }
 0x851   : > { %6784 = vmatmul.mubr.msk.f32.gmra.mrb[38].mxu0 %vm3470_vm12, %v5840_v41  ;;  %v5683_v41 = vsel %vm3248_vm6, %v5651_v8, %v13210_v59  ;;  %v15869_v59 = vld [vmem:[#allocation109_spill] sm:$0xff]  ;;  %s7049_s19 = scalar_lea.vmem %s7048_s24, 256 }
 0x852   : > { %v5350_v27 = vpop.permute.xlu1 %5349  ;;  %v5348_v38 = vpop.permute.xlu0 %5347  ;;  %v5652_v54 = vsel %vm453_vm2, %v5620_v53, %v15869_v59  ;;  %v15891_v53 = vld [vmem:[#allocation41_spill] sm:$0xff] }
 0x853   : > { %v5777_v18 = vsel %vm15853_vm9, %v5745_v15, %v5348_v38  ;;  %v5778_v51 = vsel %vm15859_vm13, %v5746_v30, %v5350_v27  ;;  %v5684_v42 = vsel %vm3248_vm6, %v5652_v54, %v15870_v52  ;;  %vm15871_vm9 = vmmov %vm15858_vm0 }
 0x854   : > { %5277 = vrot.lane.b32.xlu1 %v4817_v57, %s15696_s14  ;;  %5561 = vrot.lane.b32.xlu0 %v4817_v57, %s15706_s11  ;;  %vm15874_vm0 = vmmov %vm15861_vm1  ;;  %s6281_s14 = sshll.u32 %s327_s22, 4  ;;  %s13932_s14 = int_to_ptr.vmem [resolvable:$true] %s6281_s14 }
 0x855   : > { %vm15878_vm13 = vmmov %vm15871_vm9  ;;  %p7050_p1 = scmp.lt.s32.totalorder %s13932_s14, %s7048_s24 }
 0x856   : > { %v5160_v50 = vpop.permute.xlu1 %5159  ;;  %v5444_v5 = vpop.permute.xlu0 %5443 }
 0x857   : > { %v5809_v61 = vsel %vm15854_vm10, %v5777_v18, %v5444_v5  ;;  %v5715_v38 = vsel %vm3285_vm7, %v5683_v41, %v5160_v50  ;;  %vm15872_vm10 = vmmov %vm15865_vm3 }
 0x858   : > { %5373 = vrot.lane.b32.xlu1 %v4595_v35, %s15700_s25  ;;  %5371 = vrot.lane.b32.xlu0 %v4594_v7, %s15700_s25  ;;  %s13930_s25 = scalar_lea.hbm %s13985_s8, %s6491_s16 }
 0x85a   : > { %v5540_v58 = vpop.permute.xlu1 %5539  ;;  %v5446_v29 = vpop.permute.xlu0 %5445 }
 0x85b   : > { %v5841_v13 = vsel %vm15855_vm11, %v5809_v61, %v5540_v58  ;;  %v5810_v49 = vsel %vm15860_vm14, %v5778_v51, %v5446_v29  ;;  %vm15873_vm11 = vmmov %vm15866_vm4  ;;  %v7041_v29 = vld [vmem:[#allocation3 + $0x108] sm:$0xff] }
 0x85c   : > { %5469 = vrot.lane.b32.xlu1 %v4825_v36, %s15703_s26  ;;  %5467 = vrot.lane.b32.xlu0 %v4823_v2, %s15703_s26  ;;  %v6249_v36 = vld [vmem:[%s13984_s7] sm:$0xf]  ;;  %vm15879_vm14 = vmmov %vm15865_vm3  ;;  %s6265_s26 = scalar_lea.sflag [#allocation5], %s325_s12 }
 0x85d   : > { %6786 = vmatprep.mubr.msk.f32.mxu0 %vm3470_vm12, %v5841_v13  ;;  %v15875_v13 = vld [vmem:[#allocation13_spill] sm:$0xff] }
 0x85e   : > { %v5256_v56 = vpop.permute.xlu1 %5255  ;;  %v5162_v45 = vpop.permute.xlu0 %5161  ;;  %v5621_v24 = vsel %vm880_vm5, %v7041_v29, %v15875_v13 }
 0x85f   : > { %v5747_v35 = vsel %vm15864_vm15, %v5715_v38, %v5256_v56  ;;  %v5716_v5 = vsel %vm3285_vm7, %v5684_v42, %v5162_v45  ;;  %v5653_v22 = vsel %vm453_vm2, %v5621_v24, %v15876_v0  ;;  %vm15881_vm15 = vmmov %vm15874_vm0 }
 0x860   : > { %5565 = vrot.lane.b32.xlu1 %v4830_v60, %s15706_s11  ;;  %5563 = vrot.lane.b32.xlu0 %v4828_v28, %s15706_s11  ;;  %v5685_v6 = vsel %vm3248_vm6, %v5653_v22, %v15877_v33  ;;  %s7043_s11 = scalar_lea.vmem %s13932_s14, 128 }
 0x861   : > { %p7044_p12 = scmp.ne.s32.totalorder %s13932_s14, %s7043_s11  ;;  %p7051_p2 = scmp.lt.s32.totalorder %s7049_s19, %s7043_s11 }
 0x862   : > { %v5258_v32 = vpop.permute.xlu1 %5257  ;;  %v5542_v1 = vpop.permute.xlu0 %5541 }
 0x863   : > { %v5842_v20 = vsel %vm15861_vm1, %v5810_v49, %v5542_v1  ;;  %v5748_v40 = vsel %vm15871_vm9, %v5716_v5, %v5258_v32  ;;  %vm15880_vm1 = vmmov %vm15866_vm4  ;;  %v7042_v32 = vld [vmem:[#allocation3 + $0x110] sm:$0xff]  ;;  %v15882_v1 = vld [vmem:[#allocation12_spill] sm:$0xff]  ;;  %p7045_p13 = pnand %p7044_p12, %p7227_p4  ;;  %p7052_p3 = por %p7051_p2, %p7050_p1 }
 0x864   : > { %6787 = vmatmul.mubr.msk.f32.gmra.mrb[40].mxu0 %vm3470_vm12, %v5842_v20  ;;  %6252 = vperm.xlu1 %6908, %v6249_v36   ;;  %v5622_v20 = vsel %vm880_vm5, %v7042_v32, %v15882_v1 }
 0x865   : > { %p7046_p0 = pneg %p7045_p13 }
 0x866   : > { %v5354_v9 = vpop.permute.xlu1 %5353  ;;  %v5352_v19 = vpop.permute.xlu0 %5351 }
 0x867   : > { %v5779_v7 = vsel %vm15865_vm3, %v5747_v35, %v5352_v19  ;;  %v5780_v15 = vsel %vm15872_vm10, %v5748_v40, %v5354_v9  ;;  %v15883_v9 = vld [vmem:[#allocation38_spill] sm:$0xff]  ;;  %vm15885_vm3 = vmmov %vm15871_vm9  ;;  %p7053_p5 = pnand %p7052_p3, %p7046_p0 }
 0x868   : > { %v5654_v19 = vsel %vm453_vm2, %v5622_v20, %v15883_v9  ;;  %vm15888_vm9 = vmmov %vm15874_vm0 }
 0x869   : > { %v5686_v14 = vsel %vm3248_vm6, %v5654_v19, %v15884_v48 }
 0x86a   : > { %v5164_v11 = vpop.permute.xlu1 %5163  ;;  %v5448_v27 = vpop.permute.xlu0 %5447 }
 0x86b   : > { %v5811_v26 = vsel %vm15866_vm4, %v5779_v7, %v5448_v27  ;;  %v5717_v10 = vsel %vm3285_vm7, %v5685_v6, %v5164_v11  ;;  %vm15886_vm4 = vmmov %vm15872_vm10 }
 0x86c   : > { %vm15892_vm10 = vmmov %vm15885_vm3 }
 0x86e   : > { %v5544_v57 = vpop.permute.xlu1 %5543  ;;  %v5450_v21 = vpop.permute.xlu0 %5449 }
 0x86f   : > { %v5843_v46 = vsel %vm15867_vm8, %v5811_v26, %v5544_v57  ;;  %v5812_v63 = vsel %vm15873_vm11, %v5780_v15, %v5450_v21  ;;  %vm15887_vm8 = vmmov %vm15880_vm1  ;;  %v15889_v21 = vld [vmem:[#allocation15_spill] sm:$0xff] }
 0x870   : > { %6789 = vmatprep.mubr.msk.f32.mxu0 %vm3470_vm12, %v5843_v46  ;;  %v5623_v46 = vsel %vm880_vm5, %v13476_v4, %v15889_v21  ;;  %vm15893_vm11 = vmmov %vm15886_vm4 }
 0x871   : > { %v5655_v37 = vsel %vm453_vm2, %v5623_v46, %v15890_v16 }
 0x872   : > { %v5260_v44 = vpop.permute.xlu1 %5259  ;;  %v5166_v50 = vpop.permute.xlu0 %5165  ;;  %v5687_v59 = vsel %vm3248_vm6, %v5655_v37, %v15891_v53 }
 0x873   : > { %v5749_v56 = vsel %vm15878_vm13, %v5717_v10, %v5260_v44  ;;  %v5718_v8 = vsel %vm3285_vm7, %v5686_v14, %v5166_v50  ;;  %vm15895_vm13 = vmmov %vm15888_vm9 }
 0x876   : > { %v5262_v12 = vpop.permute.xlu1 %5261  ;;  %v5546_v18 = vpop.permute.xlu0 %5545 }
 0x877   : > { %v5844_v2 = vsel %vm15874_vm0, %v5812_v63, %v5546_v18  ;;  %v5750_v41 = vsel %vm15885_vm3, %v5718_v8, %v5262_v12  ;;  %vm15894_vm0 = vmmov %vm15880_vm1  ;;  %v15896_v63 = vld [vmem:[#allocation14_spill] sm:$0xff]  ;;  %v15897_v18 = vld [vmem:[#allocation112_spill] sm:$0xff] }
 0x878   : > { %6790 = vmatmul.mubr.msk.f32.gmra.mrb[42].mxu0 %vm3470_vm12, %v5844_v2  ;;  %v5624_v12 = vsel %vm880_vm5, %v13472_v34, %v15896_v63  ;;  %v15898_v2 = vld [vmem:[#allocation119_spill] sm:$0xff]  ;;  %v15910_v8 = vld [vmem:[#allocation16_spill] sm:$0xff] }
 0x879   : > { %v5656_v36 = vsel %vm453_vm2, %v5624_v12, %v15897_v18 }
 0x87a   : > { %v5358_v61 = vpop.permute.xlu1 %5357  ;;  %v5356_v58 = vpop.permute.xlu0 %5355 }
 0x87b   : > { %v5781_v45 = vsel %vm15879_vm14, %v5749_v56, %v5356_v58  ;;  %v5782_v11 = vsel %vm15886_vm4, %v5750_v41, %v5358_v61  ;;  %v5688_v61 = vsel %vm3248_vm6, %v5656_v36, %v15898_v2  ;;  %vm15899_vm14 = vmmov %vm15885_vm3  ;;  %v5626_v41 = vsel %vm880_vm5, %v13532_v31, %v15910_v8  ;;  %v15935_v8 = vld [vmem:[#allocation124_spill] sm:$0xff] }
 0x87c   : > { %vm15902_vm3 = vmmov %vm15888_vm9 }
 0x87e   : > { %v5168_v60 = vpop.permute.xlu1 %5167  ;;  %v5452_v28 = vpop.permute.xlu0 %5451 }
 0x87f   : > { %v5813_v39 = vsel %vm15880_vm1, %v5781_v45, %v5452_v28  ;;  %v5719_v42 = vsel %vm3285_vm7, %v5687_v59, %v5168_v60  ;;  %vm15900_vm1 = vmmov %vm15886_vm4  ;;  %v15903_v45 = vld [vmem:[#allocation330_spill] sm:$0xff] }
 0x880   : > { %vm15906_vm4 = vmmov %vm15892_vm10 }
 0x882   : > { %v5548_v30 = vpop.permute.xlu1 %5547  ;;  %v5454_v51 = vpop.permute.xlu0 %5453 }
 0x883   : > { %v5845_v49 = vsel %vm15881_vm15, %v5813_v39, %v5548_v30  ;;  %v5814_v27 = vsel %vm15887_vm8, %v5782_v11, %v5454_v51  ;;  %vm15901_vm15 = vmmov %vm15894_vm0  ;;  %v5625_v39 = vsel %vm880_vm5, %v13536_v55, %v15903_v45  ;;  %v15904_v30 = vld [vmem:[#allocation115_spill] sm:$0xff]  ;;  %v15911_v11 = vld [vmem:[#allocation114_spill] sm:$0xff] }
 0x884   : > { %6792 = vmatprep.mubr.msk.f32.mxu0 %vm3470_vm12, %v5845_v49  ;;  %v5657_v51 = vsel %vm453_vm2, %v5625_v39, %v15904_v30  ;;  %v15905_v49 = vld [vmem:[#allocation121_spill] sm:$0xff]  ;;  %vm15907_vm8 = vmmov %vm15900_vm1 }
 0x885   : > { %v5689_v32 = vsel %vm3248_vm6, %v5657_v51, %v15905_v49 }
 0x886   : > { %v5264_v3 = vpop.permute.xlu1 %5263  ;;  %v5170_v43 = vpop.permute.xlu0 %5169 }
 0x887   : > { %v5751_v44 = vsel %vm15892_vm10, %v5719_v42, %v5264_v3  ;;  %v5720_v13 = vsel %vm3285_vm7, %v5688_v61, %v5170_v43  ;;  %vm15909_vm10 = vmmov %vm15902_vm3 }
 0x88a   : > { %v5266_v38 = vpop.permute.xlu1 %5265  ;;  %v5550_v35 = vpop.permute.xlu0 %5549 }
 0x88b   : > { %v5846_v7 = vsel %vm15888_vm9, %v5814_v27, %v5550_v35  ;;  %v5752_v24 = vsel %vm15899_vm14, %v5720_v13, %v5266_v38  ;;  %vm15908_vm9 = vmmov %vm15894_vm0  ;;  %v5658_v27 = vsel %vm453_vm2, %v5626_v41, %v15911_v11  ;;  %v15912_v38 = vld [vmem:[#allocation120_spill] sm:$0xff]  ;;  %v15924_v13 = vld [vmem:[#allocation17_spill] sm:$0xff] }
 0x88c   : > { %6793 = vmatmul.mubr.msk.f32.gmra.mrb[44].mxu0 %vm3470_vm12, %v5846_v7  ;;  %v5690_v35 = vsel %vm3248_vm6, %v5658_v27, %v15912_v38  ;;  %vm15916_vm14 = vmmov %vm15902_vm3  ;;  %v15936_v11 = vld [vmem:[#allocation125_spill] sm:$0xff] }
 0x88e   : > { %v5362_v26 = vpop.permute.xlu1 %5361  ;;  %v5360_v57 = vpop.permute.xlu0 %5359 }
 0x88f   : > { %v5783_v50 = vsel %vm15893_vm11, %v5751_v44, %v5360_v57  ;;  %v5784_v0 = vsel %vm15900_vm1, %v5752_v24, %v5362_v26  ;;  %vm15913_vm11 = vmmov %vm15906_vm4  ;;  %v15917_v44 = vld [vmem:[#allocation18_spill] sm:$0xff]  ;;  %v5628_v24 = vsel %vm880_vm5, %v13586_v25, %v15924_v13 }
 0x892   : > { %v5172_v54 = vpop.permute.xlu1 %5171  ;;  %v5456_v52 = vpop.permute.xlu0 %5455 }
 0x893   : > { %v5815_v5 = vsel %vm15894_vm0, %v5783_v50, %v5456_v52  ;;  %v5721_v9 = vsel %vm3285_vm7, %v5689_v32, %v5172_v54  ;;  %vm15914_vm0 = vmmov %vm15900_vm1  ;;  %v5627_v50 = vsel %vm880_vm5, %v13590_v47, %v15917_v44 }
 0x894   : > { %vm15920_vm1 = vmmov %vm15906_vm4 }
 0x896   : > { %v5552_v40 = vpop.permute.xlu1 %5551  ;;  %v5458_v15 = vpop.permute.xlu0 %5457 }
 0x897   : > { %v5847_v4 = vsel %vm15895_vm13, %v5815_v5, %v5552_v40  ;;  %v5816_v22 = vsel %vm15901_vm15, %v5784_v0, %v5458_v15  ;;  %vm15915_vm13 = vmmov %vm15908_vm9  ;;  %v15918_v5 = vld [vmem:[#allocation116_spill] sm:$0xff]  ;;  %v15919_v15 = vld [vmem:[#allocation123_spill] sm:$0xff] }
 0x898   : > { %6795 = vmatprep.mubr.msk.f32.mxu0 %vm3470_vm12, %v5847_v4  ;;  %v5659_v40 = vsel %vm453_vm2, %v5627_v50, %v15918_v5  ;;  %vm15921_vm15 = vmmov %vm15914_vm0 }
 0x899   : > { %v5691_v4 = vsel %vm3248_vm6, %v5659_v40, %v15919_v15 }
 0x89a   : > { %v5268_v58 = vpop.permute.xlu1 %5267  ;;  %v5174_v29 = vpop.permute.xlu0 %5173 }
 0x89b   : > { %v5753_v19 = vsel %vm15906_vm4, %v5721_v9, %v5268_v58  ;;  %v5722_v57 = vsel %vm3285_vm7, %v5690_v35, %v5174_v29  ;;  %vm15923_vm4 = vmmov %vm15909_vm10 }
 0x89e   : > { %v5270_v33 = vpop.permute.xlu1 %5269  ;;  %v5554_v34 = vpop.permute.xlu0 %5553 }
 0x89f   : > { %v5848_v6 = vsel %vm15902_vm3, %v5816_v22, %v5554_v34  ;;  %v5754_v21 = vsel %vm15913_vm11, %v5722_v57, %v5270_v33  ;;  %vm15922_vm3 = vmmov %vm15908_vm9  ;;  %v15925_v22 = vld [vmem:[#allocation340_spill] sm:$0xff] }
 0x8a0   : > { %v6761_v60 = vpop.f32.mrb[22].mxu0  ;;  %6796 = vmatmul.mubr.msk.f32.gmra.mrb[46].mxu0 %vm3470_vm12, %v5848_v6  ;;  %v5660_v33 = vsel %vm453_vm2, %v5628_v24, %v15925_v22  ;;  %v15926_v6 = vld [vmem:[#allocation122_spill] sm:$0xff]  ;;  %vm15930_vm11 = vmmov %vm15923_vm4 }
 0x8a1   : > { %v6026_v28 = vpop.f32.mrb[23].mxu0 }
 0x8a2   : > { %6185 = vxpose.xlu0.b32.start [1/16] (narrow) %v6026_v28, 8  ;;  %v5366_v10 = vpop.permute.xlu1 %5365  ;;  %v5364_v56 = vpop.permute.xlu0 %5363 }
 0x8a3   : > { %v5785_v48 = vsel %vm15907_vm8, %v5753_v19, %v5364_v56  ;;  %v5786_v16 = vsel %vm15914_vm0, %v5754_v21, %v5366_v10  ;;  %vm15927_vm8 = vmmov %vm15920_vm1  ;;  %v15932_v19 = vld [vmem:[#allocation331_spill] sm:$0xff] }
 0x8a6   : > { %6186 = vxpose.xlu0.b32.cont [2/16] (narrow) %v6761_v60, 8  ;;  %v5176_v1 = vpop.permute.xlu1 %5175  ;;  %v5460_v20 = vpop.permute.xlu0 %5459  ;;  %v5692_v60 = vsel %vm3248_vm6, %v5660_v33, %v15926_v6 }
 0x8a7   : > { %v5817_v14 = vsel %vm15908_vm9, %v5785_v48, %v5460_v20  ;;  %v5723_v18 = vsel %vm3285_vm7, %v5691_v4, %v5176_v1  ;;  %vm15928_vm9 = vmmov %vm15914_vm0  ;;  %v15931_v20 = vld [vmem:[#allocation19_spill] sm:$0xff]  ;;  %v5629_v48 = vsel %vm880_vm5, %v13643_v17, %v15932_v19 }
 0x8a8   : > { %v5630_v9 = vsel %vm880_vm5, %v13639_v62, %v15931_v20  ;;  %vm15937_vm0 = vmmov %vm15920_vm1 }
 0x8a9   : > { %vm15938_vm5 = vmmov %vm15937_vm0 }
 0x8aa   : > { %v5556_v3 = vpop.permute.xlu1 %5555  ;;  %v5462_v43 = vpop.permute.xlu0 %5461 }
 0x8ab   : > { %v5849_v55 = vsel %vm15909_vm10, %v5817_v14, %v5556_v3  ;;  %v5818_v31 = vsel %vm15915_vm13, %v5786_v16, %v5462_v43  ;;  %vm15929_vm10 = vmmov %vm15922_vm3  ;;  %v15933_v14 = vld [vmem:[#allocation117_spill] sm:$0xff]  ;;  %v15934_v43 = vld [vmem:[#allocation39_spill] sm:$0xff] }
 0x8ac   : > { %6798 = vmatprep.mubr.msk.f32.mxu0 %vm3470_vm12, %v5849_v55  ;;  %v5662_v3 = vsel %vm453_vm2, %v5630_v9, %v15933_v14  ;;  %v5661_v55 = vsel %vm453_vm2, %v5629_v48, %v15934_v43  ;;  %vm15939_vm13 = vmmov %vm15928_vm9 }
 0x8ad   : > { %v5694_v41 = vsel %vm3248_vm6, %v5662_v3, %v15935_v8  ;;  %v5693_v27 = vsel %vm3248_vm6, %v5661_v55, %v15936_v11  ;;  %vm15940_vm2 = vmmov %vm15928_vm9 }
 0x8ae   : > { %v5272_v7 = vpop.permute.xlu1 %5271  ;;  %v5178_v26 = vpop.permute.xlu0 %5177  ;;  %vm15943_vm6 = vmmov %vm15923_vm4 }
 0x8af   : > { %v5755_v36 = vsel %vm15920_vm1, %v5723_v18, %v5272_v7  ;;  %v5724_v56 = vsel %vm3285_vm7, %v5692_v60, %v5178_v26  ;;  %vm15942_vm1 = vmmov %vm15922_vm3 }
 0x8b0   : > { %v6764_v46 = vpop.f32.mrb[24].mxu0 }
 0x8b1   : > { %v6036_v37 = vpop.f32.mrb[25].mxu0 }
 0x8b2   : > { %6187 = vxpose.xlu0.b32.cont [3/16] (narrow) %v6036_v37, 8  ;;  %v5274_v53 = vpop.permute.xlu1 %5273  ;;  %v5558_v59 = vpop.permute.xlu0 %5557 }
 0x8b3   : > { %v5850_v54 = vsel %vm15916_vm14, %v5818_v31, %v5558_v59  ;;  %v5756_v45 = vsel %vm15927_vm8, %v5724_v56, %v5274_v53  ;;  %vm15941_vm14 = vmmov %vm15922_vm3 }
 0x8b4   : > { %6799 = vmatmul.mubr.msk.f32.gmra.mrb[48].mxu0 %vm3470_vm12, %v5850_v54 }
 0x8b6   : > { %6188 = vxpose.xlu0.b32.cont [4/16] (narrow) %v6764_v46, 8  ;;  %v5370_v52 = vpop.permute.xlu1 %5369  ;;  %v5368_v42 = vpop.permute.xlu0 %5367 }
 0x8b7   : > { %v5787_v2 = vsel %vm15921_vm15, %v5755_v36, %v5368_v42  ;;  %v5788_v39 = vsel %vm15928_vm9, %v5756_v45, %v5370_v52 }
 0x8ba   : > { %v5180_v63 = vpop.permute.xlu1 %5179  ;;  %v5464_v12 = vpop.permute.xlu0 %5463 }
 0x8bb   : > { %v5819_v61 = vsel %vm15922_vm3, %v5787_v2, %v5464_v12  ;;  %v5725_v62 = vsel %vm3285_vm7, %v5693_v27, %v5180_v63 }
 0x8be   : > { %v5560_v58 = vpop.permute.xlu1 %5559  ;;  %v5466_v29 = vpop.permute.xlu0 %5465 }
 0x8bf   : > { %v5851_v47 = vsel %vm15923_vm4, %v5819_v61, %v5560_v58  ;;  %v5820_v25 = vsel %vm15929_vm10, %v5788_v39, %v5466_v29 }
 0x8c0   : > { %v6767_v0 = vpop.f32.mrb[26].mxu0  ;;  %6801 = vmatprep.mubr.msk.f32.mxu0 %vm3470_vm12, %v5851_v47 }
 0x8c1   : > { %v6046_v34 = vpop.f32.mrb[27].mxu0 }
 0x8c2   : > { %6189 = vxpose.xlu0.b32.cont [5/16] (narrow) %v6046_v34, 8  ;;  %v5276_v28 = vpop.permute.xlu1 %5275  ;;  %v5182_v10 = vpop.permute.xlu0 %5181 }
 0x8c3   : > { %v5726_v7 = vsel %vm3285_vm7, %v5694_v41, %v5182_v10  ;;  %v5757_v17 = vsel %vm15937_vm0, %v5725_v62, %v5276_v28  ;;  %vm15944_vm7 = vmmov %vm15923_vm4 }
 0x8c6   : > { %6190 = vxpose.xlu0.b32.cont [6/16] (narrow) %v6767_v0, 8  ;;  %v5278_v30 = vpop.permute.xlu1 %5277  ;;  %v5562_v51 = vpop.permute.xlu0 %5561 }
 0x8c7   : > { %v5852_v49 = vsel %vm15930_vm11, %v5820_v25, %v5562_v51  ;;  %v5758_v26 = vsel %vm15938_vm5, %v5726_v7, %v5278_v30 }
 0x8c8   : > { %6802 = vmatmul.mubr.msk.f32.gmra.mrb[50].mxu0 %vm3470_vm12, %v5852_v49 }
 0x8ca   : > { %v5374_v32 = vpop.permute.xlu1 %5373  ;;  %v5372_v1 = vpop.permute.xlu0 %5371 }
 0x8cb   : > { %v5790_v21 = vsel %vm15939_vm13, %v5758_v26, %v5374_v32  ;;  %v5789_v46 = vsel %vm15940_vm2, %v5757_v17, %v5372_v1 }
 0x8ce   : > { %v5470_v38 = vpop.permute.xlu1 %5469  ;;  %v5468_v35 = vpop.permute.xlu0 %5467 }
 0x8cf   : > { %v5822_v37 = vsel %vm15941_vm14, %v5790_v21, %v5470_v38  ;;  %v5821_v31 = vsel %vm15942_vm1, %v5789_v46, %v5468_v35 }
 0x8d0   : > { %v6770_v57 = vpop.f32.mrb[28].mxu0 }
 0x8d1   : > { %v6056_v16 = vpop.f32.mrb[29].mxu0 }
 0x8d2   : > { %6191 = vxpose.xlu0.b32.cont [7/16] (narrow) %v6056_v16, 8  ;;  %v5566_v53 = vpop.permute.xlu1 %5565  ;;  %v5564_v59 = vpop.permute.xlu0 %5563 }
 0x8d3   : > { %v5854_v54 = vsel %vm15943_vm6, %v5822_v37, %v5566_v53  ;;  %v5853_v52 = vsel %vm15944_vm7, %v5821_v31, %v5564_v59 }
 0x8d4   : > { %6804 = vmatprep.mubr.msk.f32.mxu0 %vm3470_vm12, %v5853_v52 }
 0x8d5   : > { %6805 = vmatmul.mubr.msk.f32.gmra.mrb[52].mxu0 %vm3470_vm12, %v5854_v54 }
 0x8d6   : > { %6192 = vxpose.xlu0.b32.cont [8/16] (narrow) %v6770_v57, 8 }
 0x8e0   : > { %v6773_v42 = vpop.f32.mrb[30].mxu0 }
 0x8e1   : > { %v6066_v44 = vpop.f32.mrb[31].mxu0 }
 0x8e2   : > { %6193 = vxpose.xlu0.b32.cont [9/16] (narrow) %v6066_v44, 8 }
 0x8e3   : > { %v6253_v60 = vpop.permute.xlu1 %6252 }
 0x8e6   : > { %6194 = vxpose.xlu0.b32.cont [10/16] (narrow) %v6773_v42, 8 }
 0x8f0   : > { %v6776_v50 = vpop.f32.mrb[32].mxu0 }
 0x8f1   : > { %v6076_v5 = vpop.f32.mrb[33].mxu0 }
 0x8f2   : > { %6195 = vxpose.xlu0.b32.cont [11/16] (narrow) %v6076_v5, 8 }
 0x8f6   : > { %6196 = vxpose.xlu0.b32.cont [12/16] (narrow) %v6776_v50, 8 }
 0x900   : > { %v6779_v40 = vpop.f32.mrb[34].mxu0 }
 0x901   : > { %v6086_v15 = vpop.f32.mrb[35].mxu0 }
 0x902   : > { %6197 = vxpose.xlu0.b32.cont [13/16] (narrow) %v6086_v15, 8 }
 0x906   : > { %6198 = vxpose.xlu0.b32.cont [14/16] (narrow) %v6779_v40, 8 }
 0x910   : > { %v6782_v4 = vpop.f32.mrb[36].mxu0 }
 0x911   : > { %v6096_v63 = vpop.f32.mrb[37].mxu0 }
 0x912   : > { %6199 = vxpose.xlu0.b32.cont [15/16] (narrow) %v6096_v63, 8 }
 0x916   : > { %6200 = vxpose.xlu0.b32.end [16/16] (narrow) %v6782_v4, 8 }
 0x924   : > { %v6785_v12 = vpop.f32.mrb[38].mxu0 }
 0x925   : > { %v6106_v18 = vpop.f32.mrb[39].mxu0 }
 0x926   : > { %6217 = vxpose.xlu1.b32.start [1/16] (narrow) %v6106_v18, 8 }
 0x92a   : > { %6218 = vxpose.xlu1.b32.cont [2/16] (narrow) %v6785_v12, 8 }
 0x937   : > { %v6788_v36 = vpop.f32.mrb[40].mxu0 }
 0x938   : > { %v6116_v2 = vpop.f32.mrb[41].mxu0 }
 0x939   : > { %6219 = vxpose.xlu1.b32.cont [3/16] (narrow) %v6116_v2, 8 }
 0x93d   : > { %6220 = vxpose.xlu1.b32.cont [4/16] (narrow) %v6788_v36, 8 }
 0x93f   : > { %6909 = vset.pattern.permute.xlu0 %v7140_v23 }
 0x94b   : > { %v6791_v61 = vpop.f32.mrb[42].mxu0 }
 0x94c   : > { %v6126_v58 = vpop.f32.mrb[43].mxu0 }
 0x94d   : > { %6221 = vxpose.xlu1.b32.cont [5/16] (narrow) %v6126_v58, 8 }
 0x951   : > { %6222 = vxpose.xlu1.b32.cont [6/16] (narrow) %v6791_v61, 8 }
 0x95a   : > { %v6201_v28 = vpop.trf.xlu0 }
 0x95b   : > { %v6255_v10 = vadd.f32 %v6253_v60, %v6201_v28 }
 0x95d   : > { %v6257_v39 = vmax.f32 %v6255_v10, 0.0 }
 0x95f   : > { %v6794_v29 = vpop.f32.mrb[44].mxu0 }
 0x960   : > { %v6136_v47 = vpop.f32.mrb[45].mxu0 }
 0x961   : > { %6223 = vxpose.xlu1.b32.cont [7/16] (narrow) %v6136_v47, 8 }
 0x965   : > { %6224 = vxpose.xlu1.b32.cont [8/16] (narrow) %v6794_v29, 8 }
 0x973   : > { %v6797_v13 = vpop.f32.mrb[46].mxu0 }
 0x974   : > { %v6146_v24 = vpop.f32.mrb[47].mxu0 }
 0x975   : > { %6225 = vxpose.xlu1.b32.cont [9/16] (narrow) %v6146_v24, 8 }
 0x979   : > { %6226 = vxpose.xlu1.b32.cont [10/16] (narrow) %v6797_v13, 8 }
 0x987   : > { %v6800_v0 = vpop.f32.mrb[48].mxu0 }
 0x988   : > { %v6156_v22 = vpop.f32.mrb[49].mxu0 }
 0x989   : > { %6227 = vxpose.xlu1.b32.cont [11/16] (narrow) %v6156_v22, 8 }
 0x98d   : > { %6228 = vxpose.xlu1.b32.cont [12/16] (narrow) %v6800_v0, 8 }
 0x99b   : > { %v6803_v33 = vpop.f32.mrb[50].mxu0 }
 0x99c   : > { %v6166_v23 = vpop.f32.mrb[51].mxu0 }
 0x99d   : > { %6229 = vxpose.xlu1.b32.cont [13/16] (narrow) %v6166_v23, 8 }
 0x9a1   : > { %6230 = vxpose.xlu1.b32.cont [14/16] (narrow) %v6803_v33, 8 }
 0x9a8   : > { %v6806_v34 = vpop.f32.mrb[52].mxu0 }
 0x9a9   : > { %v6176_v6 = vpop.f32.mrb[53].mxu0 }
 0x9aa   : > { %6231 = vxpose.xlu1.b32.cont [15/16] (narrow) %v6176_v6, 8 }
 0x9ae   : > { %6232 = vxpose.xlu1.b32.end [16/16] (narrow) %v6806_v34, 8 }
 0x9f2   : > { %v6233_v56 = vpop.trf.xlu1 }
 0x9f3   : > { %v6256_v45 = vadd.f32 %v6253_v60, %v6233_v56 }
 0x9f5   : > { %v6258_v25 = vmax.f32 %v6256_v45, 0.0 }
 0x9f7   : > { %v6261_v30 = vcombine.low %v6257_v39, %v6258_v25 }
 0x9f9   : > { %6263 = vst [vmem:[%s327_s22] sm:$0xff] %v6261_v30 }
 0x9fa   : > { %7056 = shalt.err (!%p7053_p5)
}
 0x9fb   : > { %s7057_s12 = scalar_lea.hbm %s13930_s25, 128  ;;  %s7061_s22 = scalar_lea.hbm %s13985_s8, 256 }
 0x9fc   : > { %p7058_p6 = scmp.ne.s32.totalorder %s13930_s25, %s7057_s12  ;;  %p7062_p10 = scmp.lt.u32.totalorder %s13930_s25, %s13985_s8 }
 0x9fd   : > { %p7063_p11 = scmp.lt.u32.totalorder %s7061_s22, %s7057_s12  ;;  %p7065_p13 = scmp.lt.u32.totalorder %s7057_s12, %s13930_s25 }
 0x9fe   : > { %p7059_p7 = pnand %p7058_p6, %p7227_p4 }
 0x9ff   : > { %p7064_p12 = por %p7063_p11, %p7062_p10 }
 0xa00   : > { %p7060_p9 = pneg %p7059_p7 }
 0xa01   : > { %p7066_p0 = por %p7065_p13, %p7064_p12 }
 0xa03   : > { %p7067_p1 = pnand %p7066_p0, %p7060_p9 }
 0xa05   : > { %7070 = shalt.err (!%p7067_p1)
}
 0xa06   : > { %6835 = dma.vmem_to_hbm [thread:$0]  (%p7227_p4), %s13932_s14, 128, %s13930_s25, %s6265_s26  }
 0xa07 PF: > { %p6841_p2 = scmp.ge.s32.totalorder %s7121_s10, 2  ;;  %s6293_s11 = sand.u32 1, %s7101_s27  }
 0xa08   : > { %s6294_s30 = scalar_lea.sflag [#allocation5], %s6293_s11 }
 0xa09   : > { %p6838_p3 = pnand %p6841_p2, %p7234_p8 }
 0xa0b   : > { %7096 = dma.done.wait (!%p6838_p3), %s6294_s30, 128  }
 0xa0c   : > { %7098 = vsyncadd (!%p6838_p3), %s6294_s30, 4294967168  ;;  %s21_s10 = sadd.s32 1, %s7121_s10   ;;  %s15945_s27 = smov %s7105_s28 }
 0xa0d   : > { %p18_p5 = scmp.ge.s32.totalorder %s21_s10, 4   ;;  %s15946_s28 = smov %s7109_s29 }
 0xa0e   : > { %s15947_s29 = smov %s7240_s18  ;;  %s15948_s30 = smov %s7117_s9 }
 0xa0f   : > { %s15949_s9 = smov %s15951_s13  ;;  %20 = sbr.rel (!%p18_p5) target bundleno = 4 (0x4), region = 102 }
 0xa16   :  { %6299 = vsyncpa [#allocation5], 1 }
 0xa17   :  { %6301 = vsyncpa [#allocation5 + $0x1], 1 }

</bundles_post_ra>
